<compile_context>
chip_gen: v7x
topology: tpu7x:2x2x1
jax: 0.10.0
libtpu: 0.0.40
codegen_flags: <defaults>
</compile_context>

<pallas_src>
import jax
import jax.numpy as jnp
from jax.experimental import pallas as pl
from jax.experimental.pallas import tpu as pltpu

BN_EPS = 1e-5


# -----------------------------------------------------------------------------
# Pallas kernel
# -----------------------------------------------------------------------------
def _make_skconv_kernel(N, H, W, C, M, max_pad, P, eps):
    HW = H * W
    NP = (N * HW) // P          # packed rows   (128 for the demo config)
    PC = P * C                  # packed lanes  (128 for the demo config)
    BPB = P // N                # row-blocks per batch element
    inv_NHW = 1.0 / float(N * HW)
    inv_HW = 1.0 / float(HW)

    def kernel(*refs):
        # ref order: x_pad, [w_im2col_i, gamma_i, beta_i] * M,
        #            fc_w, fc_b, fcs_w, fcs_b, out
        x_ref = refs[0]                               # (N, Hp, Wp, C) bf16
        conv_refs = refs[1:1 + 3 * M]
        fcw_ref, fcb_ref, fcsw_ref, fcsb_ref = refs[1 + 3 * M:5 + 3 * M]
        out_ref = refs[5 + 3 * M]                     # (NP, PC) f32

        x = x_ref[...]                                # bf16

        # ---- M conv branches: im2col matmul + fused train-mode BN + ReLU ----
        feas = []                                     # packed (NP, PC) f32
        for i in range(M):
            k = 3 + 2 * i
            pad = 1 + i
            off = max_pad - pad
            w_ref, g_ref, b_ref = conv_refs[3 * i:3 * i + 3]

            # im2col: concatenate the k*k taps along lanes -> (N*HW, k*k*C) bf16
            taps = []
            for kh in range(k):
                for kw in range(k):
                    taps.append(
                        x[:, off + kh:off + kh + H, off + kw:off + kw + W, :]
                        .reshape(N * HW, C))
            patches = jnp.concatenate(taps, axis=1)   # (N*HW, k*k*C) bf16

            # one long-K MXU matmul per branch, f32 accumulation
            acc = jnp.dot(patches, w_ref[...],
                          preferred_element_type=jnp.float32)   # (N*HW, C) f32
            # (conv bias omitted: exactly cancelled by train-mode BN below)

            # block-split lane packing: (N*HW, C) -> (NP, P*C), lane-dense
            packed = jnp.concatenate(
                [acc[j * NP:(j + 1) * NP, :] for j in range(P)], axis=1)

            # single-pass BN batch stats (sum + sum of squares), fold P groups
            s1 = jnp.sum(packed, axis=0, keepdims=True)           # (1, PC)
            s2 = jnp.sum(packed * packed, axis=0, keepdims=True)  # (1, PC)
            s1c = s1[:, 0:C]
            s2c = s2[:, 0:C]
            for j in range(1, P):
                s1c = s1c + s1[:, j * C:(j + 1) * C]
                s2c = s2c + s2[:, j * C:(j + 1) * C]
            mean = s1c * inv_NHW                                  # (1, C)
            var = s2c * inv_NHW - mean * mean                     # (1, C)
            scale_c = g_ref[...] * jax.lax.rsqrt(var + eps)       # (1, C)
            shift_c = b_ref[...] - mean * scale_c                 # (1, C)
            scale = jnp.concatenate([scale_c] * P, axis=1)        # (1, PC)
            shift = jnp.concatenate([shift_c] * P, axis=1)        # (1, PC)

            # fused BN affine + ReLU, fully lane-dense
            feas.append(jnp.maximum(packed * scale + shift, 0.0))

        # ---- fea_U = sum over branches ---------------------------------------
        fea_U = feas[0]
        for i in range(1, M):
            fea_U = fea_U + feas[i]

        # ---- global average pool per batch element ---------------------------
        col = jnp.sum(fea_U, axis=0, keepdims=True)               # (1, PC)
        rows = []
        for n in range(N):
            s = col[:, (n * BPB) * C:(n * BPB + 1) * C]
            for b in range(1, BPB):
                s = s + col[:, (n * BPB + b) * C:(n * BPB + b + 1) * C]
            rows.append(s)
        fea_s = jnp.concatenate(rows, axis=0) * inv_HW            # (N, C)

        # ---- fc: features -> d (tiny, keep f32) ------------------------------
        fea_z = jnp.dot(fea_s, fcw_ref[...],
                        preferred_element_type=jnp.float32) + fcb_ref[...]  # (N, d)

        # ---- per-branch fc: d -> features, stable softmax over branch dim ----
        logits = []
        for i in range(M):
            logits.append(jnp.dot(fea_z, fcsw_ref[i],
                                  preferred_element_type=jnp.float32)
                          + fcsb_ref[i])                          # (N, C)
        mx = logits[0]
        for i in range(1, M):
            mx = jnp.maximum(mx, logits[i])
        exps = [jnp.exp(v - mx) for v in logits]
        denom = exps[0]
        for i in range(1, M):
            denom = denom + exps[i]
        inv = pl.reciprocal(denom, approx=True)                   # (N, C), EUP

        # ---- attention-weighted fusion of branch features (lane-dense) ------
        fea_v = None
        for i in range(M):
            att = exps[i] * inv                                   # (N, C)
            att_lane = jnp.concatenate(
                [att[j // BPB:j // BPB + 1, :] for j in range(P)], axis=1)  # (1, PC)
            term = feas[i] * att_lane
            fea_v = term if fea_v is None else fea_v + term
        out_ref[...] = fea_v                                      # (NP, PC) lane-dense

    return kernel


# -----------------------------------------------------------------------------
# Wrapper: NCHW in/out, parameter re-layout, pallas_call
# -----------------------------------------------------------------------------
def skconv_forward(x_nchw, params, *, M, G):
    N, C, H, W = x_nchw.shape
    Cg = C // G
    HW = H * W
    max_pad = M                                      # 1 + (M - 1)

    # lane-packing factor: P channel-groups of C lanes fill a 128-lane vreg
    assert 128 % C == 0 and C <= 128, "demo packing requires C dividing 128"
    P = 128 // C
    assert (N * HW) % P == 0 and P % N == 0, "demo packing divisibility"
    NP = (N * HW) // P

    # NCHW -> NHWC (bf16), pad spatially with the largest branch padding
    x = jnp.transpose(x_nchw, (0, 2, 3, 1)).astype(jnp.bfloat16)
    x_pad = jnp.pad(x, ((0, 0), (max_pad, max_pad), (max_pad, max_pad), (0, 0)))

    inputs = [x_pad]
    for i in range(M):
        k = 3 + 2 * i
        w_pt = params["conv_w"][i]                   # (C, Cg, k, k) grouped
        # block-diagonal (k, k, C_in, C_out) -> im2col layout (k*k*C, C)
        wbd = jnp.zeros((k, k, C, C), jnp.float32)
        for g in range(G):
            blk = w_pt[g * Cg:(g + 1) * Cg]          # (Cg_out, Cg_in, k, k)
            blk = jnp.transpose(blk, (2, 3, 1, 0))   # (k, k, Cg_in, Cg_out)
            wbd = wbd.at[:, :, g * Cg:(g + 1) * Cg, g * Cg:(g + 1) * Cg].set(blk)
        # NOTE: block-diag densification burns G x MXU FLOPs; acceptable at C=32.
        inputs += [
            wbd.reshape(k * k * C, C).astype(jnp.bfloat16),
            params["bn_gamma"][i].reshape(1, C),
            params["bn_beta"][i].reshape(1, C),
        ]

    d = params["fc_w"].shape[0]
    inputs += [
        params["fc_w"].T,                            # (C, d)
        params["fc_b"].reshape(1, d),
        jnp.transpose(params["fcs_w"], (0, 2, 1)),   # (M, d, C)
        params["fcs_b"].reshape(M, 1, C),
    ]

    kernel = _make_skconv_kernel(N, H, W, C, M, max_pad, P, BN_EPS)
    vmem = pl.BlockSpec(memory_space=pltpu.MemorySpace.VMEM)
    out_packed = pl.pallas_call(
        kernel,
        out_shape=jax.ShapeDtypeStruct((NP, P * C), jnp.float32),
        in_specs=[vmem] * len(inputs),
        out_specs=vmem,
    )(*inputs)

    # undo block-split lane packing: lane group j holds rows [j*NP, (j+1)*NP)
    out_flat = jnp.concatenate(
        [out_packed[:, j * C:(j + 1) * C] for j in range(P)], axis=0)  # (N*HW, C)
    out_nhwc = out_flat.reshape(N, H, W, C)
    return jnp.transpose(out_nhwc, (0, 3, 1, 2))     # back to NCHW


# -----------------------------------------------------------------------------
# Deterministic parameter init (shapes per SKConv.__init__)
# -----------------------------------------------------------------------------
def init_skconv_params(key, features, M, G, r, L=32):
    d = max(int(features / r), L)
    Cg = features // G
    ks = iter(jax.random.split(key, 6 * M + 4))
    params = {"conv_w": [], "conv_b": [], "bn_gamma": [], "bn_beta": []}
    for i in range(M):
        k = 3 + 2 * i
        params["conv_w"].append(0.1 * jax.random.normal(next(ks), (features, Cg, k, k), jnp.float32))
        params["conv_b"].append(0.1 * jax.random.normal(next(ks), (features,), jnp.float32))
        params["bn_gamma"].append(1.0 + 0.1 * jax.random.normal(next(ks), (features,), jnp.float32))
        params["bn_beta"].append(0.1 * jax.random.normal(next(ks), (features,), jnp.float32))
    params["fc_w"] = 0.1 * jax.random.normal(next(ks), (d, features), jnp.float32)
    params["fc_b"] = 0.1 * jax.random.normal(next(ks), (d,), jnp.float32)
    params["fcs_w"] = 0.1 * jax.random.normal(next(ks), (M, features, d), jnp.float32)
    params["fcs_b"] = 0.1 * jax.random.normal(next(ks), (M, features), jnp.float32)
    return params


# -----------------------------------------------------------------------------
# Pure-JAX reference (same math, XLA conv) for a sanity check
# -----------------------------------------------------------------------------
def skconv_reference(x, params, *, M, G, eps=BN_EPS):
    feas = []
    for i in range(M):
        pad = 1 + i
        y = jax.lax.conv_general_dilated(
            x, params["conv_w"][i], window_strides=(1, 1),
            padding=((pad, pad), (pad, pad)),
            dimension_numbers=("NCHW", "OIHW", "NCHW"),
            feature_group_count=G)
        y = y + params["conv_b"][i][None, :, None, None]
        mean = jnp.mean(y, axis=(0, 2, 3), keepdims=True)
        var = jnp.mean((y - mean) ** 2, axis=(0, 2, 3), keepdims=True)
        y = (y - mean) * jax.lax.rsqrt(var + eps)
        y = y * params["bn_gamma"][i][None, :, None, None] + params["bn_beta"][i][None, :, None, None]
        feas.append(jnp.maximum(y, 0.0))
    feas = jnp.stack(feas, axis=1)                    # (N, M, C, H, W)
    fea_U = jnp.sum(feas, axis=1)
    fea_s = jnp.mean(fea_U, axis=(2, 3))              # (N, C)
    fea_z = fea_s @ params["fc_w"].T + params["fc_b"]  # (N, d)
    vecs = jnp.stack(
        [fea_z @ params["fcs_w"][i].T + params["fcs_b"][i] for i in range(M)], axis=1)
    att = jax.nn.softmax(vecs, axis=1)                # (N, M, C)
    return jnp.sum(feas * att[:, :, :, None, None], axis=1)


if __name__ == "__main__":
    # Small config: SKConv(features=32, WH=16, M=2, G=4, r=2, L=8) -> d=16
    features, WH, M, G, r, L = 32, 16, 2, 4, 2, 8
    N = 2

    key = jax.random.PRNGKey(0)
    kx, kp = jax.random.split(key)
    x = jax.random.normal(kx, (N, features, WH, WH), jnp.float32)
    params = init_skconv_params(kp, features, M, G, r, L)

    out = skconv_forward(x, params, M=M, G=G)
    out = jax.block_until_ready(out)
    assert out.shape == (N, features, WH, WH)

    ref = jax.block_until_ready(skconv_reference(x, params, M=M, G=G))
    err = float(jnp.max(jnp.abs(out - ref)))
    assert jnp.allclose(out, ref, atol=3e-2, rtol=3e-2), err

    print("KERNEL_OK")
</pallas_src>

<mosaic_0001>
module attributes {stable_mosaic.version = 11 : i64} {
  func.func @kernel(%arg0: memref<2x20x20x32xbf16, #tpu.memory_space<vmem>>, %arg1: memref<288x32xbf16, #tpu.memory_space<vmem>>, %arg2: memref<1x32xf32, #tpu.memory_space<vmem>>, %arg3: memref<1x32xf32, #tpu.memory_space<vmem>>, %arg4: memref<800x32xbf16, #tpu.memory_space<vmem>>, %arg5: memref<1x32xf32, #tpu.memory_space<vmem>>, %arg6: memref<1x32xf32, #tpu.memory_space<vmem>>, %arg7: memref<32x16xf32, #tpu.memory_space<vmem>>, %arg8: memref<1x16xf32, #tpu.memory_space<vmem>>, %arg9: memref<2x16x32xf32, #tpu.memory_space<vmem>>, %arg10: memref<2x1x32xf32, #tpu.memory_space<vmem>>, %arg11: memref<128x128xf32, #tpu.memory_space<vmem>>) attributes {dimension_semantics = [], scalar_prefetch = 0 : i64, scratch_operands = 0 : i64, tpu.core_type = #tpu.core_type<tc>} {
    %c0 = arith.constant 0 : index
    %c0_0 = arith.constant 0 : index
    %c0_1 = arith.constant 0 : index
    %c0_2 = arith.constant 0 : index
    %0 = vector.load %arg0[%c0, %c0_0, %c0_1, %c0_2] : memref<2x20x20x32xbf16, #tpu.memory_space<vmem>>, vector<2x20x20x32xbf16>
    %1 = vector.extract_strided_slice %0 {offsets = [0, 1, 1, 0], sizes = [2, 16, 16, 32], strides = [1, 1, 1, 1]} : vector<2x20x20x32xbf16> to vector<2x16x16x32xbf16>
    %2 = vector.shape_cast %1 : vector<2x16x16x32xbf16> to vector<512x32xbf16>
    %3 = vector.extract_strided_slice %0 {offsets = [0, 1, 2, 0], sizes = [2, 16, 16, 32], strides = [1, 1, 1, 1]} : vector<2x20x20x32xbf16> to vector<2x16x16x32xbf16>
    %4 = vector.shape_cast %3 : vector<2x16x16x32xbf16> to vector<512x32xbf16>
    %5 = vector.extract_strided_slice %0 {offsets = [0, 1, 3, 0], sizes = [2, 16, 16, 32], strides = [1, 1, 1, 1]} : vector<2x20x20x32xbf16> to vector<2x16x16x32xbf16>
    %6 = vector.shape_cast %5 : vector<2x16x16x32xbf16> to vector<512x32xbf16>
    %7 = vector.extract_strided_slice %0 {offsets = [0, 2, 1, 0], sizes = [2, 16, 16, 32], strides = [1, 1, 1, 1]} : vector<2x20x20x32xbf16> to vector<2x16x16x32xbf16>
    %8 = vector.shape_cast %7 : vector<2x16x16x32xbf16> to vector<512x32xbf16>
    %9 = vector.extract_strided_slice %0 {offsets = [0, 2, 2, 0], sizes = [2, 16, 16, 32], strides = [1, 1, 1, 1]} : vector<2x20x20x32xbf16> to vector<2x16x16x32xbf16>
    %10 = vector.shape_cast %9 : vector<2x16x16x32xbf16> to vector<512x32xbf16>
    %11 = vector.extract_strided_slice %0 {offsets = [0, 2, 3, 0], sizes = [2, 16, 16, 32], strides = [1, 1, 1, 1]} : vector<2x20x20x32xbf16> to vector<2x16x16x32xbf16>
    %12 = vector.shape_cast %11 : vector<2x16x16x32xbf16> to vector<512x32xbf16>
    %13 = vector.extract_strided_slice %0 {offsets = [0, 3, 1, 0], sizes = [2, 16, 16, 32], strides = [1, 1, 1, 1]} : vector<2x20x20x32xbf16> to vector<2x16x16x32xbf16>
    %14 = vector.shape_cast %13 : vector<2x16x16x32xbf16> to vector<512x32xbf16>
    %15 = vector.extract_strided_slice %0 {offsets = [0, 3, 2, 0], sizes = [2, 16, 16, 32], strides = [1, 1, 1, 1]} : vector<2x20x20x32xbf16> to vector<2x16x16x32xbf16>
    %16 = vector.shape_cast %15 : vector<2x16x16x32xbf16> to vector<512x32xbf16>
    %17 = vector.extract_strided_slice %0 {offsets = [0, 3, 3, 0], sizes = [2, 16, 16, 32], strides = [1, 1, 1, 1]} : vector<2x20x20x32xbf16> to vector<2x16x16x32xbf16>
    %18 = vector.shape_cast %17 : vector<2x16x16x32xbf16> to vector<512x32xbf16>
    %19 = tpu.concatenate %2, %4, %6, %8, %10, %12, %14, %16, %18 in 1 : vector<512x32xbf16>, vector<512x32xbf16>, vector<512x32xbf16>, vector<512x32xbf16>, vector<512x32xbf16>, vector<512x32xbf16>, vector<512x32xbf16>, vector<512x32xbf16>, vector<512x32xbf16> -> vector<512x288xbf16>
    %c0_3 = arith.constant 0 : index
    %c0_4 = arith.constant 0 : index
    %20 = vector.load %arg1[%c0_3, %c0_4] : memref<288x32xbf16, #tpu.memory_space<vmem>>, vector<288x32xbf16>
    %cst = arith.constant dense<0.000000e+00> : vector<512x32xf32>
    %21 = tpu.matmul %19, %20, %cst {dimension_numbers = #tpu.dot_dimension_numbers<[1], [0], [0], [1], [0, 0, 1, 1], [], []>} : vector<512x288xbf16>, vector<288x32xbf16>, vector<512x32xf32> -> vector<512x32xf32>
    %22 = vector.extract_strided_slice %21 {offsets = [0, 0], sizes = [128, 32], strides = [1, 1]} : vector<512x32xf32> to vector<128x32xf32>
    %23 = vector.extract_strided_slice %21 {offsets = [128, 0], sizes = [128, 32], strides = [1, 1]} : vector<512x32xf32> to vector<128x32xf32>
    %24 = vector.extract_strided_slice %21 {offsets = [256, 0], sizes = [128, 32], strides = [1, 1]} : vector<512x32xf32> to vector<128x32xf32>
    %25 = vector.extract_strided_slice %21 {offsets = [384, 0], sizes = [128, 32], strides = [1, 1]} : vector<512x32xf32> to vector<128x32xf32>
    %26 = tpu.concatenate %22, %23, %24, %25 in 1 : vector<128x32xf32>, vector<128x32xf32>, vector<128x32xf32>, vector<128x32xf32> -> vector<128x128xf32>
    %cst_5 = arith.constant dense<0.000000e+00> : vector<128xf32>
    %27 = vector.multi_reduction <add>, %26, %cst_5 [0] : vector<128x128xf32> to vector<128xf32>
    %28 = vector.shape_cast %27 : vector<128xf32> to vector<1x128xf32>
    %29 = arith.mulf %26, %26 : vector<128x128xf32>
    %cst_6 = arith.constant dense<0.000000e+00> : vector<128xf32>
    %30 = vector.multi_reduction <add>, %29, %cst_6 [0] : vector<128x128xf32> to vector<128xf32>
    %31 = vector.shape_cast %30 : vector<128xf32> to vector<1x128xf32>
    %32 = vector.extract_strided_slice %28 {offsets = [0, 0], sizes = [1, 32], strides = [1, 1]} : vector<1x128xf32> to vector<1x32xf32>
    %33 = vector.extract_strided_slice %31 {offsets = [0, 0], sizes = [1, 32], strides = [1, 1]} : vector<1x128xf32> to vector<1x32xf32>
    %34 = vector.extract_strided_slice %28 {offsets = [0, 32], sizes = [1, 32], strides = [1, 1]} : vector<1x128xf32> to vector<1x32xf32>
    %35 = arith.addf %32, %34 : vector<1x32xf32>
    %36 = vector.extract_strided_slice %31 {offsets = [0, 32], sizes = [1, 32], strides = [1, 1]} : vector<1x128xf32> to vector<1x32xf32>
    %37 = arith.addf %33, %36 : vector<1x32xf32>
    %38 = vector.extract_strided_slice %28 {offsets = [0, 64], sizes = [1, 32], strides = [1, 1]} : vector<1x128xf32> to vector<1x32xf32>
    %39 = arith.addf %35, %38 : vector<1x32xf32>
    %40 = vector.extract_strided_slice %31 {offsets = [0, 64], sizes = [1, 32], strides = [1, 1]} : vector<1x128xf32> to vector<1x32xf32>
    %41 = arith.addf %37, %40 : vector<1x32xf32>
    %42 = vector.extract_strided_slice %28 {offsets = [0, 96], sizes = [1, 32], strides = [1, 1]} : vector<1x128xf32> to vector<1x32xf32>
    %43 = arith.addf %39, %42 : vector<1x32xf32>
    %44 = vector.extract_strided_slice %31 {offsets = [0, 96], sizes = [1, 32], strides = [1, 1]} : vector<1x128xf32> to vector<1x32xf32>
    %45 = arith.addf %41, %44 : vector<1x32xf32>
    %cst_7 = arith.constant 0.001953125 : f32
    %46 = vector.broadcast %cst_7 : f32 to vector<1x32xf32>
    %47 = arith.mulf %43, %46 : vector<1x32xf32>
    %cst_8 = arith.constant 0.001953125 : f32
    %48 = vector.broadcast %cst_8 : f32 to vector<1x32xf32>
    %49 = arith.mulf %45, %48 : vector<1x32xf32>
    %50 = arith.mulf %47, %47 : vector<1x32xf32>
    %51 = arith.subf %49, %50 : vector<1x32xf32>
    %c0_9 = arith.constant 0 : index
    %c0_10 = arith.constant 0 : index
    %52 = vector.load %arg2[%c0_9, %c0_10] : memref<1x32xf32, #tpu.memory_space<vmem>>, vector<1x32xf32>
    %cst_11 = arith.constant 9.99999974E-6 : f32
    %53 = vector.broadcast %cst_11 : f32 to vector<1x32xf32>
    %54 = arith.addf %51, %53 : vector<1x32xf32>
    %55 = math.rsqrt %54 : vector<1x32xf32>
    %56 = arith.mulf %52, %55 : vector<1x32xf32>
    %c0_12 = arith.constant 0 : index
    %c0_13 = arith.constant 0 : index
    %57 = vector.load %arg3[%c0_12, %c0_13] : memref<1x32xf32, #tpu.memory_space<vmem>>, vector<1x32xf32>
    %58 = arith.mulf %47, %56 : vector<1x32xf32>
    %59 = arith.subf %57, %58 : vector<1x32xf32>
    %60 = tpu.concatenate %56, %56, %56, %56 in 1 : vector<1x32xf32>, vector<1x32xf32>, vector<1x32xf32>, vector<1x32xf32> -> vector<1x128xf32>
    %61 = tpu.concatenate %59, %59, %59, %59 in 1 : vector<1x32xf32>, vector<1x32xf32>, vector<1x32xf32>, vector<1x32xf32> -> vector<1x128xf32>
    %62 = vector.broadcast %60 : vector<1x128xf32> to vector<128x128xf32>
    %63 = arith.mulf %26, %62 : vector<128x128xf32>
    %64 = vector.broadcast %61 : vector<1x128xf32> to vector<128x128xf32>
    %65 = arith.addf %63, %64 : vector<128x128xf32>
    %cst_14 = arith.constant 0.000000e+00 : f32
    %66 = vector.broadcast %cst_14 : f32 to vector<128x128xf32>
    %67 = arith.maximumf %65, %66 : vector<128x128xf32>
    %68 = vector.extract_strided_slice %0 {offsets = [0, 0, 0, 0], sizes = [2, 16, 16, 32], strides = [1, 1, 1, 1]} : vector<2x20x20x32xbf16> to vector<2x16x16x32xbf16>
    %69 = vector.shape_cast %68 : vector<2x16x16x32xbf16> to vector<512x32xbf16>
    %70 = vector.extract_strided_slice %0 {offsets = [0, 0, 1, 0], sizes = [2, 16, 16, 32], strides = [1, 1, 1, 1]} : vector<2x20x20x32xbf16> to vector<2x16x16x32xbf16>
    %71 = vector.shape_cast %70 : vector<2x16x16x32xbf16> to vector<512x32xbf16>
    %72 = vector.extract_strided_slice %0 {offsets = [0, 0, 2, 0], sizes = [2, 16, 16, 32], strides = [1, 1, 1, 1]} : vector<2x20x20x32xbf16> to vector<2x16x16x32xbf16>
    %73 = vector.shape_cast %72 : vector<2x16x16x32xbf16> to vector<512x32xbf16>
    %74 = vector.extract_strided_slice %0 {offsets = [0, 0, 3, 0], sizes = [2, 16, 16, 32], strides = [1, 1, 1, 1]} : vector<2x20x20x32xbf16> to vector<2x16x16x32xbf16>
    %75 = vector.shape_cast %74 : vector<2x16x16x32xbf16> to vector<512x32xbf16>
    %76 = vector.extract_strided_slice %0 {offsets = [0, 0, 4, 0], sizes = [2, 16, 16, 32], strides = [1, 1, 1, 1]} : vector<2x20x20x32xbf16> to vector<2x16x16x32xbf16>
    %77 = vector.shape_cast %76 : vector<2x16x16x32xbf16> to vector<512x32xbf16>
    %78 = vector.extract_strided_slice %0 {offsets = [0, 1, 0, 0], sizes = [2, 16, 16, 32], strides = [1, 1, 1, 1]} : vector<2x20x20x32xbf16> to vector<2x16x16x32xbf16>
    %79 = vector.shape_cast %78 : vector<2x16x16x32xbf16> to vector<512x32xbf16>
    %80 = vector.extract_strided_slice %0 {offsets = [0, 1, 1, 0], sizes = [2, 16, 16, 32], strides = [1, 1, 1, 1]} : vector<2x20x20x32xbf16> to vector<2x16x16x32xbf16>
    %81 = vector.shape_cast %80 : vector<2x16x16x32xbf16> to vector<512x32xbf16>
    %82 = vector.extract_strided_slice %0 {offsets = [0, 1, 2, 0], sizes = [2, 16, 16, 32], strides = [1, 1, 1, 1]} : vector<2x20x20x32xbf16> to vector<2x16x16x32xbf16>
    %83 = vector.shape_cast %82 : vector<2x16x16x32xbf16> to vector<512x32xbf16>
    %84 = vector.extract_strided_slice %0 {offsets = [0, 1, 3, 0], sizes = [2, 16, 16, 32], strides = [1, 1, 1, 1]} : vector<2x20x20x32xbf16> to vector<2x16x16x32xbf16>
    %85 = vector.shape_cast %84 : vector<2x16x16x32xbf16> to vector<512x32xbf16>
    %86 = vector.extract_strided_slice %0 {offsets = [0, 1, 4, 0], sizes = [2, 16, 16, 32], strides = [1, 1, 1, 1]} : vector<2x20x20x32xbf16> to vector<2x16x16x32xbf16>
    %87 = vector.shape_cast %86 : vector<2x16x16x32xbf16> to vector<512x32xbf16>
    %88 = vector.extract_strided_slice %0 {offsets = [0, 2, 0, 0], sizes = [2, 16, 16, 32], strides = [1, 1, 1, 1]} : vector<2x20x20x32xbf16> to vector<2x16x16x32xbf16>
    %89 = vector.shape_cast %88 : vector<2x16x16x32xbf16> to vector<512x32xbf16>
    %90 = vector.extract_strided_slice %0 {offsets = [0, 2, 1, 0], sizes = [2, 16, 16, 32], strides = [1, 1, 1, 1]} : vector<2x20x20x32xbf16> to vector<2x16x16x32xbf16>
    %91 = vector.shape_cast %90 : vector<2x16x16x32xbf16> to vector<512x32xbf16>
    %92 = vector.extract_strided_slice %0 {offsets = [0, 2, 2, 0], sizes = [2, 16, 16, 32], strides = [1, 1, 1, 1]} : vector<2x20x20x32xbf16> to vector<2x16x16x32xbf16>
    %93 = vector.shape_cast %92 : vector<2x16x16x32xbf16> to vector<512x32xbf16>
    %94 = vector.extract_strided_slice %0 {offsets = [0, 2, 3, 0], sizes = [2, 16, 16, 32], strides = [1, 1, 1, 1]} : vector<2x20x20x32xbf16> to vector<2x16x16x32xbf16>
    %95 = vector.shape_cast %94 : vector<2x16x16x32xbf16> to vector<512x32xbf16>
    %96 = vector.extract_strided_slice %0 {offsets = [0, 2, 4, 0], sizes = [2, 16, 16, 32], strides = [1, 1, 1, 1]} : vector<2x20x20x32xbf16> to vector<2x16x16x32xbf16>
    %97 = vector.shape_cast %96 : vector<2x16x16x32xbf16> to vector<512x32xbf16>
    %98 = vector.extract_strided_slice %0 {offsets = [0, 3, 0, 0], sizes = [2, 16, 16, 32], strides = [1, 1, 1, 1]} : vector<2x20x20x32xbf16> to vector<2x16x16x32xbf16>
    %99 = vector.shape_cast %98 : vector<2x16x16x32xbf16> to vector<512x32xbf16>
    %100 = vector.extract_strided_slice %0 {offsets = [0, 3, 1, 0], sizes = [2, 16, 16, 32], strides = [1, 1, 1, 1]} : vector<2x20x20x32xbf16> to vector<2x16x16x32xbf16>
    %101 = vector.shape_cast %100 : vector<2x16x16x32xbf16> to vector<512x32xbf16>
    %102 = vector.extract_strided_slice %0 {offsets = [0, 3, 2, 0], sizes = [2, 16, 16, 32], strides = [1, 1, 1, 1]} : vector<2x20x20x32xbf16> to vector<2x16x16x32xbf16>
    %103 = vector.shape_cast %102 : vector<2x16x16x32xbf16> to vector<512x32xbf16>
    %104 = vector.extract_strided_slice %0 {offsets = [0, 3, 3, 0], sizes = [2, 16, 16, 32], strides = [1, 1, 1, 1]} : vector<2x20x20x32xbf16> to vector<2x16x16x32xbf16>
    %105 = vector.shape_cast %104 : vector<2x16x16x32xbf16> to vector<512x32xbf16>
    %106 = vector.extract_strided_slice %0 {offsets = [0, 3, 4, 0], sizes = [2, 16, 16, 32], strides = [1, 1, 1, 1]} : vector<2x20x20x32xbf16> to vector<2x16x16x32xbf16>
    %107 = vector.shape_cast %106 : vector<2x16x16x32xbf16> to vector<512x32xbf16>
    %108 = vector.extract_strided_slice %0 {offsets = [0, 4, 0, 0], sizes = [2, 16, 16, 32], strides = [1, 1, 1, 1]} : vector<2x20x20x32xbf16> to vector<2x16x16x32xbf16>
    %109 = vector.shape_cast %108 : vector<2x16x16x32xbf16> to vector<512x32xbf16>
    %110 = vector.extract_strided_slice %0 {offsets = [0, 4, 1, 0], sizes = [2, 16, 16, 32], strides = [1, 1, 1, 1]} : vector<2x20x20x32xbf16> to vector<2x16x16x32xbf16>
    %111 = vector.shape_cast %110 : vector<2x16x16x32xbf16> to vector<512x32xbf16>
    %112 = vector.extract_strided_slice %0 {offsets = [0, 4, 2, 0], sizes = [2, 16, 16, 32], strides = [1, 1, 1, 1]} : vector<2x20x20x32xbf16> to vector<2x16x16x32xbf16>
    %113 = vector.shape_cast %112 : vector<2x16x16x32xbf16> to vector<512x32xbf16>
    %114 = vector.extract_strided_slice %0 {offsets = [0, 4, 3, 0], sizes = [2, 16, 16, 32], strides = [1, 1, 1, 1]} : vector<2x20x20x32xbf16> to vector<2x16x16x32xbf16>
    %115 = vector.shape_cast %114 : vector<2x16x16x32xbf16> to vector<512x32xbf16>
    %116 = vector.extract_strided_slice %0 {offsets = [0, 4, 4, 0], sizes = [2, 16, 16, 32], strides = [1, 1, 1, 1]} : vector<2x20x20x32xbf16> to vector<2x16x16x32xbf16>
    %117 = vector.shape_cast %116 : vector<2x16x16x32xbf16> to vector<512x32xbf16>
    %118 = tpu.concatenate %69, %71, %73, %75, %77, %79, %81, %83, %85, %87, %89, %91, %93, %95, %97, %99 in 1 : vector<512x32xbf16>, vector<512x32xbf16>, vector<512x32xbf16>, vector<512x32xbf16>, vector<512x32xbf16>, vector<512x32xbf16>, vector<512x32xbf16>, vector<512x32xbf16>, vector<512x32xbf16>, vector<512x32xbf16>, vector<512x32xbf16>, vector<512x32xbf16>, vector<512x32xbf16>, vector<512x32xbf16>, vector<512x32xbf16>, vector<512x32xbf16> -> vector<512x512xbf16>
    %119 = tpu.concatenate %101, %103, %105, %107, %109, %111, %113, %115, %117 in 1 : vector<512x32xbf16>, vector<512x32xbf16>, vector<512x32xbf16>, vector<512x32xbf16>, vector<512x32xbf16>, vector<512x32xbf16>, vector<512x32xbf16>, vector<512x32xbf16>, vector<512x32xbf16> -> vector<512x288xbf16>
    %120 = tpu.concatenate %118, %119 in 1 : vector<512x512xbf16>, vector<512x288xbf16> -> vector<512x800xbf16>
    %c0_15 = arith.constant 0 : index
    %c0_16 = arith.constant 0 : index
    %121 = vector.load %arg4[%c0_15, %c0_16] : memref<800x32xbf16, #tpu.memory_space<vmem>>, vector<800x32xbf16>
    %cst_17 = arith.constant dense<0.000000e+00> : vector<512x32xf32>
    %122 = tpu.matmul %120, %121, %cst_17 {dimension_numbers = #tpu.dot_dimension_numbers<[1], [0], [0], [1], [0, 0, 1, 1], [], []>} : vector<512x800xbf16>, vector<800x32xbf16>, vector<512x32xf32> -> vector<512x32xf32>
    %123 = vector.extract_strided_slice %122 {offsets = [0, 0], sizes = [128, 32], strides = [1, 1]} : vector<512x32xf32> to vector<128x32xf32>
    %124 = vector.extract_strided_slice %122 {offsets = [128, 0], sizes = [128, 32], strides = [1, 1]} : vector<512x32xf32> to vector<128x32xf32>
    %125 = vector.extract_strided_slice %122 {offsets = [256, 0], sizes = [128, 32], strides = [1, 1]} : vector<512x32xf32> to vector<128x32xf32>
    %126 = vector.extract_strided_slice %122 {offsets = [384, 0], sizes = [128, 32], strides = [1, 1]} : vector<512x32xf32> to vector<128x32xf32>
    %127 = tpu.concatenate %123, %124, %125, %126 in 1 : vector<128x32xf32>, vector<128x32xf32>, vector<128x32xf32>, vector<128x32xf32> -> vector<128x128xf32>
    %cst_18 = arith.constant dense<0.000000e+00> : vector<128xf32>
    %128 = vector.multi_reduction <add>, %127, %cst_18 [0] : vector<128x128xf32> to vector<128xf32>
    %129 = vector.shape_cast %128 : vector<128xf32> to vector<1x128xf32>
    %130 = arith.mulf %127, %127 : vector<128x128xf32>
    %cst_19 = arith.constant dense<0.000000e+00> : vector<128xf32>
    %131 = vector.multi_reduction <add>, %130, %cst_19 [0] : vector<128x128xf32> to vector<128xf32>
    %132 = vector.shape_cast %131 : vector<128xf32> to vector<1x128xf32>
    %133 = vector.extract_strided_slice %129 {offsets = [0, 0], sizes = [1, 32], strides = [1, 1]} : vector<1x128xf32> to vector<1x32xf32>
    %134 = vector.extract_strided_slice %132 {offsets = [0, 0], sizes = [1, 32], strides = [1, 1]} : vector<1x128xf32> to vector<1x32xf32>
    %135 = vector.extract_strided_slice %129 {offsets = [0, 32], sizes = [1, 32], strides = [1, 1]} : vector<1x128xf32> to vector<1x32xf32>
    %136 = arith.addf %133, %135 : vector<1x32xf32>
    %137 = vector.extract_strided_slice %132 {offsets = [0, 32], sizes = [1, 32], strides = [1, 1]} : vector<1x128xf32> to vector<1x32xf32>
    %138 = arith.addf %134, %137 : vector<1x32xf32>
    %139 = vector.extract_strided_slice %129 {offsets = [0, 64], sizes = [1, 32], strides = [1, 1]} : vector<1x128xf32> to vector<1x32xf32>
    %140 = arith.addf %136, %139 : vector<1x32xf32>
    %141 = vector.extract_strided_slice %132 {offsets = [0, 64], sizes = [1, 32], strides = [1, 1]} : vector<1x128xf32> to vector<1x32xf32>
    %142 = arith.addf %138, %141 : vector<1x32xf32>
    %143 = vector.extract_strided_slice %129 {offsets = [0, 96], sizes = [1, 32], strides = [1, 1]} : vector<1x128xf32> to vector<1x32xf32>
    %144 = arith.addf %140, %143 : vector<1x32xf32>
    %145 = vector.extract_strided_slice %132 {offsets = [0, 96], sizes = [1, 32], strides = [1, 1]} : vector<1x128xf32> to vector<1x32xf32>
    %146 = arith.addf %142, %145 : vector<1x32xf32>
    %cst_20 = arith.constant 0.001953125 : f32
    %147 = vector.broadcast %cst_20 : f32 to vector<1x32xf32>
    %148 = arith.mulf %144, %147 : vector<1x32xf32>
    %cst_21 = arith.constant 0.001953125 : f32
    %149 = vector.broadcast %cst_21 : f32 to vector<1x32xf32>
    %150 = arith.mulf %146, %149 : vector<1x32xf32>
    %151 = arith.mulf %148, %148 : vector<1x32xf32>
    %152 = arith.subf %150, %151 : vector<1x32xf32>
    %c0_22 = arith.constant 0 : index
    %c0_23 = arith.constant 0 : index
    %153 = vector.load %arg5[%c0_22, %c0_23] : memref<1x32xf32, #tpu.memory_space<vmem>>, vector<1x32xf32>
    %cst_24 = arith.constant 9.99999974E-6 : f32
    %154 = vector.broadcast %cst_24 : f32 to vector<1x32xf32>
    %155 = arith.addf %152, %154 : vector<1x32xf32>
    %156 = math.rsqrt %155 : vector<1x32xf32>
    %157 = arith.mulf %153, %156 : vector<1x32xf32>
    %c0_25 = arith.constant 0 : index
    %c0_26 = arith.constant 0 : index
    %158 = vector.load %arg6[%c0_25, %c0_26] : memref<1x32xf32, #tpu.memory_space<vmem>>, vector<1x32xf32>
    %159 = arith.mulf %148, %157 : vector<1x32xf32>
    %160 = arith.subf %158, %159 : vector<1x32xf32>
    %161 = tpu.concatenate %157, %157, %157, %157 in 1 : vector<1x32xf32>, vector<1x32xf32>, vector<1x32xf32>, vector<1x32xf32> -> vector<1x128xf32>
    %162 = tpu.concatenate %160, %160, %160, %160 in 1 : vector<1x32xf32>, vector<1x32xf32>, vector<1x32xf32>, vector<1x32xf32> -> vector<1x128xf32>
    %163 = vector.broadcast %161 : vector<1x128xf32> to vector<128x128xf32>
    %164 = arith.mulf %127, %163 : vector<128x128xf32>
    %165 = vector.broadcast %162 : vector<1x128xf32> to vector<128x128xf32>
    %166 = arith.addf %164, %165 : vector<128x128xf32>
    %cst_27 = arith.constant 0.000000e+00 : f32
    %167 = vector.broadcast %cst_27 : f32 to vector<128x128xf32>
    %168 = arith.maximumf %166, %167 : vector<128x128xf32>
    %169 = arith.addf %67, %168 : vector<128x128xf32>
    %cst_28 = arith.constant dense<0.000000e+00> : vector<128xf32>
    %170 = vector.multi_reduction <add>, %169, %cst_28 [0] : vector<128x128xf32> to vector<128xf32>
    %171 = vector.shape_cast %170 : vector<128xf32> to vector<1x128xf32>
    %172 = vector.extract_strided_slice %171 {offsets = [0, 0], sizes = [1, 32], strides = [1, 1]} : vector<1x128xf32> to vector<1x32xf32>
    %173 = vector.extract_strided_slice %171 {offsets = [0, 32], sizes = [1, 32], strides = [1, 1]} : vector<1x128xf32> to vector<1x32xf32>
    %174 = arith.addf %172, %173 : vector<1x32xf32>
    %175 = vector.extract_strided_slice %171 {offsets = [0, 64], sizes = [1, 32], strides = [1, 1]} : vector<1x128xf32> to vector<1x32xf32>
    %176 = vector.extract_strided_slice %171 {offsets = [0, 96], sizes = [1, 32], strides = [1, 1]} : vector<1x128xf32> to vector<1x32xf32>
    %177 = arith.addf %175, %176 : vector<1x32xf32>
    %178 = tpu.concatenate %174, %177 in 0 : vector<1x32xf32>, vector<1x32xf32> -> vector<2x32xf32>
    %cst_29 = arith.constant 3.906250e-03 : f32
    %179 = vector.broadcast %cst_29 : f32 to vector<2x32xf32>
    %180 = arith.mulf %178, %179 : vector<2x32xf32>
    %c0_30 = arith.constant 0 : index
    %c0_31 = arith.constant 0 : index
    %181 = vector.load %arg7[%c0_30, %c0_31] : memref<32x16xf32, #tpu.memory_space<vmem>>, vector<32x16xf32>
    %cst_32 = arith.constant dense<0.000000e+00> : vector<2x16xf32>
    %182 = tpu.matmul %180, %181, %cst_32 {dimension_numbers = #tpu.dot_dimension_numbers<[1], [0], [0], [1], [0, 0, 1, 1], [], []>} : vector<2x32xf32>, vector<32x16xf32>, vector<2x16xf32> -> vector<2x16xf32>
    %c0_33 = arith.constant 0 : index
    %c0_34 = arith.constant 0 : index
    %183 = vector.load %arg8[%c0_33, %c0_34] : memref<1x16xf32, #tpu.memory_space<vmem>>, vector<1x16xf32>
    %184 = vector.broadcast %183 : vector<1x16xf32> to vector<2x16xf32>
    %185 = arith.addf %182, %184 : vector<2x16xf32>
    %c0_35 = arith.constant 0 : index
    %c0_36 = arith.constant 0 : index
    %c0_37 = arith.constant 0 : index
    %186 = vector.load %arg9[%c0_35, %c0_36, %c0_37] : memref<2x16x32xf32, #tpu.memory_space<vmem>>, vector<1x16x32xf32>
    %187 = vector.shape_cast %186 : vector<1x16x32xf32> to vector<16x32xf32>
    %cst_38 = arith.constant dense<0.000000e+00> : vector<2x32xf32>
    %188 = tpu.matmul %185, %187, %cst_38 {dimension_numbers = #tpu.dot_dimension_numbers<[1], [0], [0], [1], [0, 0, 1, 1], [], []>} : vector<2x16xf32>, vector<16x32xf32>, vector<2x32xf32> -> vector<2x32xf32>
    %c0_39 = arith.constant 0 : index
    %c0_40 = arith.constant 0 : index
    %c0_41 = arith.constant 0 : index
    %189 = vector.load %arg10[%c0_39, %c0_40, %c0_41] : memref<2x1x32xf32, #tpu.memory_space<vmem>>, vector<1x1x32xf32>
    %190 = vector.shape_cast %189 : vector<1x1x32xf32> to vector<1x32xf32>
    %191 = vector.broadcast %190 : vector<1x32xf32> to vector<2x32xf32>
    %192 = arith.addf %188, %191 : vector<2x32xf32>
    %c1 = arith.constant 1 : index
    %c0_42 = arith.constant 0 : index
    %c0_43 = arith.constant 0 : index
    %193 = vector.load %arg9[%c1, %c0_42, %c0_43] : memref<2x16x32xf32, #tpu.memory_space<vmem>>, vector<1x16x32xf32>
    %194 = vector.shape_cast %193 : vector<1x16x32xf32> to vector<16x32xf32>
    %cst_44 = arith.constant dense<0.000000e+00> : vector<2x32xf32>
    %195 = tpu.matmul %185, %194, %cst_44 {dimension_numbers = #tpu.dot_dimension_numbers<[1], [0], [0], [1], [0, 0, 1, 1], [], []>} : vector<2x16xf32>, vector<16x32xf32>, vector<2x32xf32> -> vector<2x32xf32>
    %c1_45 = arith.constant 1 : index
    %c0_46 = arith.constant 0 : index
    %c0_47 = arith.constant 0 : index
    %196 = vector.load %arg10[%c1_45, %c0_46, %c0_47] : memref<2x1x32xf32, #tpu.memory_space<vmem>>, vector<1x1x32xf32>
    %197 = vector.shape_cast %196 : vector<1x1x32xf32> to vector<1x32xf32>
    %198 = vector.broadcast %197 : vector<1x32xf32> to vector<2x32xf32>
    %199 = arith.addf %195, %198 : vector<2x32xf32>
    %200 = arith.maximumf %192, %199 : vector<2x32xf32>
    %201 = arith.subf %192, %200 : vector<2x32xf32>
    %202 = math.exp %201 : vector<2x32xf32>
    %203 = arith.subf %199, %200 : vector<2x32xf32>
    %204 = math.exp %203 : vector<2x32xf32>
    %205 = arith.addf %202, %204 : vector<2x32xf32>
    %206 = tpu.reciprocal %205 {approx = true} : vector<2x32xf32> -> vector<2x32xf32>
    %207 = arith.mulf %202, %206 : vector<2x32xf32>
    %208 = vector.extract_strided_slice %207 {offsets = [0, 0], sizes = [1, 32], strides = [1, 1]} : vector<2x32xf32> to vector<1x32xf32>
    %209 = vector.extract_strided_slice %207 {offsets = [0, 0], sizes = [1, 32], strides = [1, 1]} : vector<2x32xf32> to vector<1x32xf32>
    %210 = vector.extract_strided_slice %207 {offsets = [1, 0], sizes = [1, 32], strides = [1, 1]} : vector<2x32xf32> to vector<1x32xf32>
    %211 = vector.extract_strided_slice %207 {offsets = [1, 0], sizes = [1, 32], strides = [1, 1]} : vector<2x32xf32> to vector<1x32xf32>
    %212 = tpu.concatenate %208, %209, %210, %211 in 1 : vector<1x32xf32>, vector<1x32xf32>, vector<1x32xf32>, vector<1x32xf32> -> vector<1x128xf32>
    %213 = vector.broadcast %212 : vector<1x128xf32> to vector<128x128xf32>
    %214 = arith.mulf %67, %213 : vector<128x128xf32>
    %215 = arith.mulf %204, %206 : vector<2x32xf32>
    %216 = vector.extract_strided_slice %215 {offsets = [0, 0], sizes = [1, 32], strides = [1, 1]} : vector<2x32xf32> to vector<1x32xf32>
    %217 = vector.extract_strided_slice %215 {offsets = [0, 0], sizes = [1, 32], strides = [1, 1]} : vector<2x32xf32> to vector<1x32xf32>
    %218 = vector.extract_strided_slice %215 {offsets = [1, 0], sizes = [1, 32], strides = [1, 1]} : vector<2x32xf32> to vector<1x32xf32>
    %219 = vector.extract_strided_slice %215 {offsets = [1, 0], sizes = [1, 32], strides = [1, 1]} : vector<2x32xf32> to vector<1x32xf32>
    %220 = tpu.concatenate %216, %217, %218, %219 in 1 : vector<1x32xf32>, vector<1x32xf32>, vector<1x32xf32>, vector<1x32xf32> -> vector<1x128xf32>
    %221 = vector.broadcast %220 : vector<1x128xf32> to vector<128x128xf32>
    %222 = arith.mulf %168, %221 : vector<128x128xf32>
    %223 = arith.addf %214, %222 : vector<128x128xf32>
    %c0_48 = arith.constant 0 : index
    %c0_49 = arith.constant 0 : index
    %224 = vector.load %arg11[%c0_48, %c0_49] : memref<128x128xf32, #tpu.memory_space<vmem>>, vector<128x128xf32>
    tpu.vector_store %arg11[%c0_48, %c0_49], %223 {strides = array<i32>} : memref<128x128xf32, #tpu.memory_space<vmem>>, vector<128x128xf32>,
    return
  }
}

</mosaic_0001>

<bundles_post_ra>
// kernel: tpu_custom_call.1
= control target key start
LH: loop header
LB: loop body
LE: loop exit
PB: predicated region body
PF: predicated region fallthrough
CT: control target
= control target key end

     0   :  { %vm1027_vm0 = vcmask 1042432   ;;  %vm1028_vm1 = vcmask 1046532   ;;  %v20017_v5 = vmov 0  ;;  %vm160_vm3 = vsmask.f32 3328  ;;  %s10548_s16 = smov 32   ;;  %s19316_s0 = inlined_call_operand.vmem [shape: bf16[2,20,20,32], index: 0, kind: input, shape index: {}]   ;;  %s19317_s1 = inlined_call_operand.vmem [shape: bf16[288,32], index: 1, kind: input, shape index: {}]   ;;  %s19318_s2 = inlined_call_operand.vmem [shape: f32[1,32], index: 2, kind: input, shape index: {}]   ;;  %s19319_s3 = inlined_call_operand.vmem [shape: f32[1,32], index: 3, kind: input, shape index: {}]   ;;  %s19320_s4 = inlined_call_operand.vmem [shape: bf16[800,32], index: 4, kind: input, shape index: {}]   ;;  %s19321_s5 = inlined_call_operand.vmem [shape: f32[1,32], index: 5, kind: input, shape index: {}]   ;;  %s19322_s6 = inlined_call_operand.vmem [shape: f32[1,32], index: 6, kind: input, shape index: {}]   ;;  %s19323_s7 = inlined_call_operand.vmem [shape: f32[32,16], index: 7, kind: input, shape index: {}]   ;;  %s19324_s8 = inlined_call_operand.vmem [shape: f32[1,16], index: 8, kind: input, shape index: {}]   ;;  %s19325_s9 = inlined_call_operand.vmem [shape: f32[2,16,32], index: 9, kind: input, shape index: {}]   ;;  %s19326_s10 = inlined_call_operand.vmem [shape: f32[2,1,32], index: 10, kind: input, shape index: {}]   ;;  %s19327_s11 = inlined_call_operand.hbm [shape: f32[128,128], index: 11, kind: output, shape index: {}]  }
   0x1   :  { %v10621_v0 = vld [vmem:[%s19316_s0 + $0x18] sm:$0xf]  ;;  %v10626_v1 = vld [vmem:[%s19316_s0 + $0x1c] sm:$0xf]  ;;  %v10631_v2 = vld [vmem:[%s19316_s0 + $0x20] sm:$0x3] }
   0x2   :  { %v9281_v3 = vrot.slane %v10621_v0, 9  ;;  %v1039_v4 = vrot.slane %v10626_v1, 5  ;;  %vm10635_vm2 = vmor %vm1027_vm0, %vm1028_vm1  ;;  %v1042_v6 = vrot.slane %v10631_v2, 5  ;;  %v10643_v7 = vld [vmem:[%s19316_s0 + $0xc] sm:$0xf]  ;;  %v188_v17 = vshrl.u32 %v10621_v0, 16 }
   0x3   :  { %v20018_v5 = vsel %vm10635_vm2, 4294967295, %v20017_v5  ;;  %v10648_v8 = vld [vmem:[%s19316_s0 + $0x10] sm:$0xf]  ;;  %v10655_v11 = vld [vmem:[%s19316_s0 + $0x14] sm:$0x3]  ;;  %v9280_v12 = vrot.slane %v10643_v7, 9  ;;  %v10671_v18 = vcombine.low %v10621_v0, %v10626_v1 }
   0x4   :  { %20019 = vst [vmem:[#allocation5_spill] sm:$0xff] %v20018_v5  ;;  %v1040_v9 = vsel %vm10635_vm2, %v9281_v3, %v1039_v4  ;;  %v1041_v10 = vrot.slane %v1039_v4, 4  ;;  %v1032_v13 = vrot.slane %v10648_v8, 5  ;;  %v1035_v14 = vrot.slane %v10655_v11, 5  ;;  %v49_v15 = vld [vmem:[%s19316_s0 + $0x24] sm:$0xf] }
   0x5   :  { %v10666_v16 = vld [vmem:[%s19316_s0 + $0x28] sm:$0xf]  ;;  %20020 = vst [vmem:[#allocation6_spill] sm:$0xff] %v10671_v18  ;;  %v10680_v22 = vld [vmem:[%s19316_s0 + $0x2c] sm:$0x3]  ;;  %v212_v24 = vshrl.u32 %v49_v15, 16 }
   0x6   :  { %v1043_v19 = vsel %vm10635_vm2, %v1041_v10, %v1042_v6  ;;  %v1033_v20 = vsel %vm10635_vm2, %v9280_v12, %v1032_v13  ;;  %v1034_v21 = vrot.slane %v1032_v13, 4  ;;  %vm161_vm4 = vsmask.f32 7440  ;;  %v10200_v34 = vld [vmem:[%s19317_s1 + $0x80] sm:$0xff]   ;;  %v10202_v48 = vld [vmem:[%s19317_s1 + $0x88] sm:$0xff]   ;;  %s10549_s21 = smov 64  }
   0x7   :  { %v10682_v23 = vcombine.low %v1040_v9, %v1043_v19  ;;  %v215_v25 = vshll.u32 %v49_v15, 16  ;;  %v221_v27 = vshll.u32 %v10666_v16, 16  ;;  %v225_v28 = vshrl.u32 %v10666_v16, 16  ;;  %9780 = vmatprep.subr.bf16.mxu1 %v10200_v34  ;;  %vm10710_vm5 = vmor %vm160_vm3, %vm161_vm4  ;;  %s10550_s22 = smov 96  }
   0x8   :  { %v1036_v26 = vsel %vm10635_vm2, %v1034_v21, %v1035_v14  ;;  %v231_v29 = vshll.u32 %v10680_v22, 16  ;;  %v214_v31 = vrot.slane %v212_v24, 4  ;;  %v10693_v33 = vrot.slane %v212_v24, 5  ;;  %9781 = vmatpush3.bf16.msra.mxu1 %v10200_v34 }
   0x9   :  { %2127 = vrot.lane.b32.xlu1 %v10682_v23, %s10548_s16  ;;  %v10691_v30 = vcombine.low %v1033_v20, %v1036_v26  ;;  %v217_v32 = vrot.slane %v215_v25, 5  ;;  %v223_v35 = vrot.slane %v221_v27, 5  ;;  %v227_v36 = vrot.slane %v225_v28, 4  ;;  %9782 = vmatprep.subr.bf16.mxu1 %v10202_v48 }
   0xa   :  { %v233_v37 = vrot.slane %v231_v29, 5  ;;  %v10700_v38 = vrot.slane %v215_v25, 6  ;;  %v10704_v40 = vrot.slane %v221_v27, 6  ;;  %v10706_v41 = vrot.slane %v231_v29, 6 }
   0xb   :  { %2125 = vrot.lane.b32.xlu0 %v10691_v30, %s10548_s16  ;;  %v218_v39 = vor.u32 %v217_v32, %v214_v31  ;;  %v9282_v42 = vrot.slane %v49_v15, 9  ;;  %v20021_v43 = vmov 0  ;;  %v228_v44 = vor.u32 %v227_v36, %v223_v35 }
   0xc   :  { %v20022_v43 = vsel %vm10710_vm5, 4294967295, %v20021_v43  ;;  %v1046_v45 = vrot.slane %v10666_v16, 5  ;;  %v1049_v46 = vrot.slane %v10680_v22, 5  ;;  %v191_v47 = vshll.u32 %v10621_v0, 16  ;;  %9783 = vmatpush3.bf16.msra.mxu1 %v10202_v48 }
   0xd   :  { %20023 = vst [vmem:[#allocation7_spill] sm:$0xff] %v20022_v43  ;;  %v219_v49 = vrot.slane %v218_v39, 4  ;;  %v197_v50 = vshll.u32 %v10626_v1, 16  ;;  %v201_v51 = vshrl.u32 %v10626_v1, 16  ;;  %v207_v52 = vshll.u32 %v10631_v2, 16 }
   0xe   :  { %v229_v53 = vrot.slane %v228_v44, 4  ;;  %v1047_v54 = vsel %vm10635_vm2, %v9282_v42, %v1046_v45  ;;  %v1048_v55 = vrot.slane %v1046_v45, 4  ;;  %vm1254_vm6 = vsmask.f32 2304 }
   0xf   :  { %v224_v56 = vsel %vm10710_vm5, %v219_v49, %v223_v35  ;;  %vm1255_vm7 = vsmask.f32 6416  ;;  %v1272_v57 = vrot.slane %v188_v17, 5  ;;  %v1273_v58 = vrot.slane %v191_v47, 6 }
  0x10   :  { %v234_v59 = vsel %vm10710_vm5, %v229_v53, %v233_v37  ;;  %v1050_v60 = vsel %vm10635_vm2, %v1048_v55, %v1049_v46  ;;  %v1276_v61 = vrot.slane %v201_v51, 5  ;;  %v1277_v62 = vrot.slane %v197_v50, 6  ;;  %vm10743_vm8 = vmor %vm1254_vm6, %vm1255_vm7 }
  0x11   :  { %v10737_v63 = vcombine.low %v224_v56, %v234_v59  ;;  %v10739_v3 = vcombine.low %v1047_v54, %v1050_v60  ;;  %v1274_v4 = vor.u32 %v1273_v58, %v1272_v57  ;;  %v1281_v6 = vshrl.u32 %v10631_v2, 16 }
  0x12   :  { %v20024_v9 = vmov 0  ;;  %v1278_v10 = vor.u32 %v1277_v62, %v1276_v61  ;;  %v1284_v12 = vrot.slane %v207_v52, 6  ;;  %v164_v13 = vshrl.u32 %v10643_v7, 16 }
  0x13   :  { %v20025_v9 = vsel %vm10743_vm8, 4294967295, %v20024_v9  ;;  %v167_v14 = vshll.u32 %v10643_v7, 16  ;;  %2501 = vrot.lane.b32.xlu1 %v10737_v63, %s10549_s21  ;;  %2571 = vrot.lane.b32.xlu0 %v10739_v3, %s10550_s22  ;;  %v1275_v15 = vrot.slane %v1274_v4, 4  ;;  %v1283_v19 = vrot.slane %v1281_v6, 5 }
  0x14   :  { %20026 = vst [vmem:[#allocation8_spill] sm:$0xff] %v20025_v9  ;;  %v173_v20 = vshll.u32 %v10648_v8, 16  ;;  %v177_v21 = vshrl.u32 %v10648_v8, 16  ;;  %v1280_v24 = vrot.slane %v1278_v10, 4  ;;  %v19329_v25 = vshll.u32 %v10655_v11, 16 }
  0x15   :  { %v1257_v26 = vrot.slane %v164_v13, 5  ;;  %v1258_v27 = vrot.slane %v167_v14, 6  ;;  %v1279_v29 = vsel %vm10743_vm8, %v1275_v15, %v1278_v10  ;;  %v1285_v31 = vor.u32 %v1284_v12, %v1283_v19 }
  0x16   :  { %v1261_v32 = vrot.slane %v177_v21, 5  ;;  %v1262_v34 = vrot.slane %v173_v20, 6  ;;  %v1266_v36 = vshrl.u32 %v10655_v11, 16  ;;  %v1269_v37 = vrot.slane %v19329_v25, 6 }
  0x17   :  { %v1259_v35 = vor.u32 %v1258_v27, %v1257_v26  ;;  %v1289_v39 = vor.u32 %v10700_v38, %v10693_v33  ;;  %v1286_v42 = vsel %vm10743_vm8, %v1280_v24, %v1285_v31  ;;  %v1291_v45 = vrot.slane %v225_v28, 5  ;;  %v52_v38 = vld [vmem:[%s19316_s0 + $0x30] sm:$0xf] }
  0x18   :  { %v1263_v44 = vor.u32 %v1262_v34, %v1261_v32  ;;  %v1296_v46 = vshrl.u32 %v10680_v22, 16  ;;  %v10778_v48 = vcombine.low %v1279_v29, %v1286_v42  ;;  %v1268_v53 = vrot.slane %v1266_v36, 5  ;;  %v10822_v34 = vld [vmem:[%s19316_s0 + $0x3c] sm:$0xf] }
  0x19   :  { %v1260_v49 = vrot.slane %v1259_v35, 4  ;;  %v1290_v54 = vrot.slane %v1289_v39, 4  ;;  %v1293_v56 = vor.u32 %v10704_v40, %v1291_v45  ;;  %v190_v33 = vrot.slane %v188_v17, 4  ;;  %v53_v40 = vld [vmem:[%s19316_s0 + $0x34] sm:$0xf] }
  0x1a   :  { %20027 = vst [vmem:[#allocation9_spill] sm:$0xff] %v10778_v48  ;;  %v1265_v55 = vrot.slane %v1263_v44, 4  ;;  %v1298_v57 = vrot.slane %v1296_v46, 5  ;;  %2431 = vrot.lane.b32.xlu0 %v10778_v48, %s10548_s16  ;;  %v1270_v22 = vor.u32 %v1269_v37, %v1268_v53  ;;  %v193_v28 = vrot.slane %v191_v47, 5  ;;  %v54_v17 = vld [vmem:[%s19316_s0 + $0x38] sm:$0x3] }
  0x1b   :  { %v1264_v16 = vsel %vm10743_vm8, %v1260_v49, %v1263_v44  ;;  %v199_v58 = vrot.slane %v197_v50, 5  ;;  %v1294_v59 = vsel %vm10743_vm8, %v1290_v54, %v1293_v56  ;;  %v1295_v60 = vrot.slane %v1293_v56, 4  ;;  %v56_v49 = vld [vmem:[%s19316_s0 + $0x40] sm:$0xf] }
  0x1c   :  { %v1300_v61 = vor.u32 %v10706_v41, %v1298_v57  ;;  %v203_v62 = vrot.slane %v201_v51, 4  ;;  %v1271_v0 = vsel %vm10743_vm8, %v1265_v55, %v1270_v22  ;;  %v194_v47 = vor.u32 %v193_v28, %v190_v33 }
  0x1d   :  { %v209_v50 = vrot.slane %v207_v52, 5  ;;  %v236_v4 = vshrl.u32 %v52_v38, 16  ;;  %v10807_v6 = vcombine.low %v1264_v16, %v1271_v0  ;;  %v239_v15 = vshll.u32 %v52_v38, 16 }
  0x1e   :  { %v1301_v10 = vsel %vm10743_vm8, %v1295_v60, %v1300_v61  ;;  %v204_v12 = vor.u32 %v203_v62, %v199_v58  ;;  %v195_v41 = vrot.slane %v194_v47, 4  ;;  %v245_v51 = vshll.u32 %v53_v40, 16  ;;  %v57_v47 = vld [vmem:[%s19316_s0 + $0x44] sm:$0x3] }
  0x1f   :  { %20028 = vst [vmem:[#allocation10_spill] sm:$0xff] %v10807_v6  ;;  %v10811_v19 = vcombine.low %v1294_v59, %v1301_v10  ;;  %v238_v1 = vrot.slane %v236_v4, 4  ;;  %2285 = vrot.lane.b32.xlu1 %v10807_v6, %s10549_s21  ;;  %v241_v26 = vrot.slane %v239_v15, 5  ;;  %v249_v2 = vshrl.u32 %v53_v40, 16 }
  0x20   :  { %v205_v24 = vrot.slane %v204_v12, 4  ;;  %v255_v52 = vshll.u32 %v54_v17, 16  ;;  %v200_v27 = vsel %vm10710_vm5, %v195_v41, %v199_v58  ;;  %v247_v29 = vrot.slane %v245_v51, 5 }
  0x21   :  { %20029 = vst [vmem:[#allocation11_spill] sm:$0xff] %v10811_v19  ;;  %2433 = vrot.lane.b32.xlu0 %v10811_v19, %s10548_s16  ;;  %v1302_v31 = vrot.slane %v236_v4, 5  ;;  %v1303_v32 = vrot.slane %v239_v15, 6  ;;  %v242_v36 = vor.u32 %v241_v26, %v238_v1  ;;  %v251_v37 = vrot.slane %v249_v2, 4 }
  0x22   :  { %v210_v35 = vsel %vm10710_vm5, %v205_v24, %v209_v50  ;;  %v257_v39 = vrot.slane %v255_v52, 5  ;;  %v1307_v44 = vrot.slane %v245_v51, 6  ;;  %v1314_v45 = vrot.slane %v255_v52, 6 }
  0x23   :  { %v10826_v42 = vcombine.low %v200_v27, %v210_v35  ;;  %v9283_v46 = vrot.slane %v52_v38, 9  ;;  %v243_v53 = vrot.slane %v242_v36, 4  ;;  %v252_v54 = vor.u32 %v251_v37, %v247_v29 }
  0x24   :  { %v1053_v55 = vrot.slane %v53_v40, 5  ;;  %v1056_v56 = vrot.slane %v54_v17, 5  ;;  %v1304_v57 = vor.u32 %v1303_v32, %v1302_v31  ;;  %v1306_v33 = vrot.slane %v249_v2, 5  ;;  %v10859_v31 = vld [vmem:[%s19316_s0 + $0x48] sm:$0xf] }
  0x25   :  { %2355 = vrot.lane.b32.xlu1 %v10826_v42, %s10550_s22  ;;  %v1311_v16 = vshrl.u32 %v54_v17, 16  ;;  %v260_v22 = vshrl.u32 %v10822_v34, 16  ;;  %v248_v28 = vsel %vm10710_vm5, %v243_v53, %v247_v29  ;;  %v253_v38 = vrot.slane %v252_v54, 4 }
  0x26   :  { %v1054_v58 = vsel %vm10635_vm2, %v9283_v46, %v1053_v55  ;;  %v1055_v59 = vrot.slane %v1053_v55, 4  ;;  %v1305_v60 = vrot.slane %v1304_v57, 4  ;;  %v1308_v61 = vor.u32 %v1307_v44, %v1306_v33 }
  0x27   :  { %v1313_v40 = vrot.slane %v1311_v16, 5  ;;  %v262_v62 = vrot.slane %v260_v22, 4  ;;  %v258_v0 = vsel %vm10710_vm5, %v253_v38, %v257_v39  ;;  %v263_v50 = vshll.u32 %v10822_v34, 16 }
  0x28   :  { %v1057_v17 = vsel %vm10635_vm2, %v1055_v59, %v1056_v56  ;;  %v269_v4 = vshll.u32 %v56_v49, 16  ;;  %v10846_v10 = vcombine.low %v248_v28, %v258_v0  ;;  %v1309_v15 = vsel %vm10743_vm8, %v1305_v60, %v1308_v61 }
  0x29   :  { %2287 = vrot.lane.b32.xlu1 %v10778_v48, %s10549_s21  ;;  %v10850_v12 = vcombine.low %v1054_v58, %v1057_v17  ;;  %v1310_v41 = vrot.slane %v1308_v61, 4  ;;  %v1315_v1 = vor.u32 %v1314_v45, %v1313_v40  ;;  %v265_v51 = vrot.slane %v263_v50, 5  ;;  %v60_v40 = vld [vmem:[%s19316_s0 + $0x50] sm:$0x3] }
  0x2a   :  { %v271_v24 = vrot.slane %v269_v4, 5  ;;  %v273_v26 = vshrl.u32 %v56_v49, 16  ;;  %2503 = vrot.lane.b32.xlu0 %v10846_v10, %s10549_s21  ;;  %v279_v2 = vshll.u32 %v57_v47, 16  ;;  %v1317_v52 = vrot.slane %v260_v22, 5  ;;  %v59_v22 = vld [vmem:[%s19316_s0 + $0x4c] sm:$0xf] }
  0x2b   :  { %v1318_v27 = vrot.slane %v263_v50, 6  ;;  %v1322_v29 = vrot.slane %v269_v4, 6  ;;  %v1316_v32 = vsel %vm10743_vm8, %v1310_v41, %v1315_v1  ;;  %v266_v35 = vor.u32 %v265_v51, %v262_v62 }
  0x2c   :  { %v275_v36 = vrot.slane %v273_v26, 4  ;;  %v9284_v37 = vrot.slane %v10822_v34, 9  ;;  %v10866_v39 = vcombine.low %v1309_v15, %v1316_v32  ;;  %v281_v44 = vrot.slane %v279_v2, 5 }
  0x2d   :  { %2357 = vrot.lane.b32.xlu1 %v10737_v63, %s10550_s22  ;;  %v1329_v45 = vrot.slane %v279_v2, 6  ;;  %v1060_v46 = vrot.slane %v56_v49, 5  ;;  %v267_v53 = vrot.slane %v266_v35, 4  ;;  %v1063_v55 = vrot.slane %v57_v47, 5 }
  0x2e   :  { %20030 = vst [vmem:[#allocation12_spill] sm:$0xff] %v10866_v39  ;;  %v276_v54 = vor.u32 %v275_v36, %v271_v24  ;;  %v1319_v56 = vor.u32 %v1318_v27, %v1317_v52  ;;  %2573 = vrot.lane.b32.xlu0 %v10850_v12, %s10550_s22  ;;  %v1321_v34 = vrot.slane %v273_v26, 5  ;;  %v1326_v16 = vshrl.u32 %v57_v47, 16 }
  0x2f   :  { %v1061_v57 = vsel %vm10635_vm2, %v9284_v37, %v1060_v46  ;;  %v1062_v33 = vrot.slane %v1060_v46, 4  ;;  %v272_v49 = vsel %vm10710_vm5, %v267_v53, %v271_v24  ;;  %v284_v58 = vshrl.u32 %v10859_v31, 16 }
  0x30   :  { %v277_v28 = vrot.slane %v276_v54, 4  ;;  %v1320_v38 = vrot.slane %v1319_v56, 4  ;;  %v1323_v60 = vor.u32 %v1322_v29, %v1321_v34  ;;  %v1328_v61 = vrot.slane %v1326_v16, 5 }
  0x31   :  { %2129 = vrot.lane.b32.xlu1 %v10739_v3, %s10548_s16  ;;  %v1064_v59 = vsel %vm10635_vm2, %v1062_v33, %v1063_v55  ;;  %v287_v62 = vshll.u32 %v10859_v31, 16  ;;  %v286_v17 = vrot.slane %v284_v58, 4  ;;  %v293_v47 = vshll.u32 %v59_v22, 16 }
  0x32   :  { %v282_v0 = vsel %vm10710_vm5, %v277_v28, %v281_v44  ;;  %v10890_v50 = vcombine.low %v10643_v7, %v10648_v8  ;;  %2435 = vrot.lane.b32.xlu0 %v10866_v39, %s10548_s16  ;;  %v10896_v15 = vcombine.low %v1061_v57, %v1064_v59  ;;  %v1325_v41 = vrot.slane %v1323_v60, 4  ;;  %v10207_v7 = vld [vmem:[%s19317_s1 + $0x38] sm:$0xff]  }
  0x33   :  { %v10894_v4 = vcombine.low %v272_v49, %v282_v0  ;;  %v1330_v1 = vor.u32 %v1329_v45, %v1328_v61  ;;  %v289_v51 = vrot.slane %v287_v62, 5  ;;  %v295_v24 = vrot.slane %v293_v47, 5  ;;  %v10907_v45 = vld [vmem:[%s19316_s0 + $0x54] sm:$0xf] }
  0x34   :  { %20031 = vst [vmem:[#allocation13_spill] sm:$0xff] %v10890_v50  ;;  %v297_v26 = vshrl.u32 %v59_v22, 16  ;;  %v303_v2 = vshll.u32 %v60_v40, 16  ;;  %v1324_v52 = vsel %vm10743_vm8, %v1320_v38, %v1323_v60  ;;  %v1332_v29 = vrot.slane %v284_v58, 5  ;;  %v62_v38 = vld [vmem:[%s19316_s0 + $0x58] sm:$0xf] }
  0x35   :  { %2289 = vrot.lane.b32.xlu1 %v10811_v19, %s10549_s21  ;;  %v1331_v27 = vsel %vm10743_vm8, %v1325_v41, %v1330_v1  ;;  %v1333_v32 = vrot.slane %v287_v62, 6  ;;  %v290_v35 = vor.u32 %v289_v51, %v286_v17  ;;  %v1337_v44 = vrot.slane %v293_v47, 6 }
  0x36   :  { %v299_v36 = vrot.slane %v297_v26, 4  ;;  %v305_v37 = vrot.slane %v303_v2, 5  ;;  %2505 = vrot.lane.b32.xlu0 %v10894_v4, %s10549_s21  ;;  %v1344_v46 = vrot.slane %v303_v2, 6  ;;  %v9285_v53 = vrot.slane %v10859_v31, 9 }
  0x37   :  { %v1067_v54 = vrot.slane %v59_v22, 5  ;;  %v1070_v55 = vrot.slane %v60_v40, 5  ;;  %v291_v56 = vrot.slane %v290_v35, 4  ;;  %v1334_v33 = vor.u32 %v1333_v32, %v1332_v29 }
  0x38   :  { %v300_v57 = vor.u32 %v299_v36, %v295_v24  ;;  %v1336_v34 = vrot.slane %v297_v26, 5  ;;  %v1341_v28 = vshrl.u32 %v60_v40, 16  ;;  %v308_v31 = vshrl.u32 %v10907_v45, 16  ;;  %v63_v40 = vld [vmem:[%s19316_s0 + $0x5c] sm:$0x3] }
  0x39   :  { %2359 = vrot.lane.b32.xlu1 %v10846_v10, %s10550_s22  ;;  %v1068_v16 = vsel %vm10635_vm2, %v9285_v53, %v1067_v54  ;;  %v1069_v49 = vrot.slane %v1067_v54, 4  ;;  %v10920_v22 = vcombine.low %v1324_v52, %v1331_v27  ;;  %v1335_v59 = vrot.slane %v1334_v33, 4 }
  0x3a   :  { %v301_v58 = vrot.slane %v300_v57, 4  ;;  %v1338_v60 = vor.u32 %v1337_v44, %v1336_v34  ;;  %2575 = vrot.lane.b32.xlu0 %v10896_v15, %s10550_s22  ;;  %v1343_v62 = vrot.slane %v1341_v28, 5  ;;  %v310_v0 = vrot.slane %v308_v31, 4 }
  0x3b   :  { %20032 = vst [vmem:[#allocation14_spill] sm:$0xff] %v10920_v22  ;;  %v1071_v61 = vsel %vm10635_vm2, %v1069_v49, %v1070_v55  ;;  %v311_v17 = vshll.u32 %v10907_v45, 16  ;;  %v296_v47 = vsel %vm10710_vm5, %v291_v56, %v295_v24  ;;  %v317_v27 = vshll.u32 %v62_v38, 16  ;;  %v10197_v49 = vld [vmem:[%s19317_s1] sm:$0xff]  }
  0x3c   :  { %v306_v41 = vsel %vm10710_vm5, %v301_v58, %v305_v37  ;;  %v10934_v1 = vcombine.low %v1068_v16, %v1071_v61  ;;  %v1340_v51 = vrot.slane %v1338_v60, 4  ;;  %v1339_v26 = vsel %vm10743_vm8, %v1335_v59, %v1338_v60  ;;  %v10957_v60 = vld [vmem:[%s19316_s0 + $0x60] sm:$0xf]  ;;  %v65_v61 = vld [vmem:[%s19316_s0 + $0x64] sm:$0xf] }
  0x3d   :  { %2131 = vrot.lane.b32.xlu1 %v10850_v12, %s10548_s16  ;;  %v1345_v2 = vor.u32 %v1344_v46, %v1343_v62  ;;  %v313_v52 = vrot.slane %v311_v17, 5  ;;  %v321_v29 = vshrl.u32 %v62_v38, 16  ;;  %v327_v32 = vshll.u32 %v63_v40, 16 }
  0x3e   :  { %v1347_v35 = vrot.slane %v308_v31, 5  ;;  %v1348_v36 = vrot.slane %v311_v17, 6  ;;  %2437 = vrot.lane.b32.xlu0 %v10920_v22, %s10548_s16  ;;  %v10942_v24 = vcombine.low %v296_v47, %v306_v41  ;;  %v319_v53 = vrot.slane %v317_v27, 5 }
  0x3f   :  { %v1346_v37 = vsel %vm10743_vm8, %v1340_v51, %v1345_v2  ;;  %v314_v44 = vor.u32 %v313_v52, %v310_v0  ;;  %v323_v55 = vrot.slane %v321_v29, 4  ;;  %v329_v46 = vrot.slane %v327_v32, 5 }
  0x40   :  { %v10946_v54 = vcombine.low %v1339_v26, %v1346_v37  ;;  %v1352_v56 = vrot.slane %v317_v27, 6  ;;  %v9286_v33 = vrot.slane %v10907_v45, 9  ;;  %v1074_v34 = vrot.slane %v62_v38, 5  ;;  %v66_v26 = vld [vmem:[%s19316_s0 + $0x68] sm:$0x3] }
  0x41   :  { %2291 = vrot.lane.b32.xlu1 %v10866_v39, %s10549_s21  ;;  %v315_v57 = vrot.slane %v314_v44, 4  ;;  %v1077_v16 = vrot.slane %v63_v40, 5  ;;  %v324_v28 = vor.u32 %v323_v55, %v319_v53  ;;  %v1349_v31 = vor.u32 %v1348_v36, %v1347_v35 }
  0x42   :  { %20033 = vst [vmem:[#allocation15_spill] sm:$0xff] %v10946_v54  ;;  %v1351_v58 = vrot.slane %v321_v29, 5  ;;  %v1356_v59 = vshrl.u32 %v63_v40, 16  ;;  %2507 = vrot.lane.b32.xlu0 %v10942_v24, %s10549_s21  ;;  %v1359_v45 = vrot.slane %v327_v32, 6  ;;  %v1075_v38 = vsel %vm10635_vm2, %v9286_v33, %v1074_v34  ;;  %v10198_v29 = vld [vmem:[%s19317_s1 + $0x8] sm:$0xff]  }
  0x43   :  { %v1076_v62 = vrot.slane %v1074_v34, 4  ;;  %v325_v0 = vrot.slane %v324_v28, 4  ;;  %v10966_v17 = vrot.slane %v1349_v31, 4  ;;  %v19342_v41 = vmov 0  }
  0x44   :  { %v10968_v40 = vor.u32 %v1352_v56, %v1351_v58  ;;  %v1358_v47 = vrot.slane %v1356_v59, 5  ;;  %3396 = vmatprep.subr.bf16.mxu0 %v19342_v41  ;;  %7274 = vmatprep.subr.bf16.mxu1 %v19342_v41  ;;  %v332_v2 = vshrl.u32 %v10957_v60, 16  ;;  %v335_v52 = vshll.u32 %v10957_v60, 16  ;;  %v10199_v58 = vld [vmem:[%s19317_s1 + $0x10] sm:$0xff]  }
  0x45   :  { %2361 = vrot.lane.b32.xlu1 %v10894_v4, %s10550_s22  ;;  %v1078_v51 = vsel %vm10635_vm2, %v1076_v62, %v1077_v16  ;;  %v341_v27 = vshll.u32 %v65_v61, 16  ;;  %3397 = vmatpush1.bf16.msra.mxu0 %v10197_v49  ;;  %v320_v32 = vsel %vm10710_vm5, %v315_v57, %v319_v53  ;;  %v330_v35 = vsel %vm10710_vm5, %v325_v0, %v329_v46  ;;  %v11011_v0 = vld [vmem:[%s19316_s0 + $0x6c] sm:$0xf] }
  0x46   :  { %v10988_v36 = vcombine.low %v1075_v38, %v1078_v51  ;;  %v1355_v37 = vrot.slane %v10968_v40, 4  ;;  %3398 = vmatprep.subr.bf16.mxu0 %v19342_v41  ;;  %2577 = vrot.lane.b32.xlu0 %v10934_v1, %s10550_s22  ;;  %v1354_v44 = vsel %vm10743_vm8, %v10966_v17, %v10968_v40  ;;  %v1360_v55 = vor.u32 %v1359_v45, %v1358_v47 }
  0x47   :  { %v334_v56 = vrot.slane %v332_v2, 4  ;;  %v337_v53 = vrot.slane %v335_v52, 5  ;;  %v343_v57 = vrot.slane %v341_v27, 5  ;;  %v345_v33 = vshrl.u32 %v65_v61, 16 }
  0x48   :  { %v351_v46 = vshll.u32 %v66_v26, 16  ;;  %v1362_v34 = vrot.slane %v332_v2, 5  ;;  %v11000_v16 = vcombine.low %v320_v32, %v330_v35  ;;  %v1361_v49 = vsel %vm10743_vm8, %v1355_v37, %v1360_v55  ;;  %v11019_v32 = vld [vmem:[%s19316_s0 + $0x70] sm:$0xf]  ;;  %v10201_v35 = vld [vmem:[%s19317_s1 + $0x18] sm:$0xff]  }
  0x49   :  { %2133 = vrot.lane.b32.xlu1 %v10896_v15, %s10548_s16  ;;  %v338_v28 = vor.u32 %v337_v53, %v334_v56  ;;  %v1363_v31 = vrot.slane %v335_v52, 6  ;;  %3399 = vmatpush1.bf16.msra.mxu0 %v10198_v29  ;;  %v347_v59 = vrot.slane %v345_v33, 4  ;;  %v1367_v38 = vrot.slane %v341_v27, 6 }
  0x4a   :  { %20034 = vst [vmem:[#allocation16_spill] sm:$0xff] %v11000_v16  ;;  %v353_v45 = vrot.slane %v351_v46, 5  ;;  %v1374_v62 = vrot.slane %v351_v46, 6  ;;  %3400 = vmatprep.subr.bf16.mxu0 %v19342_v41  ;;  %2439 = vrot.lane.b32.xlu0 %v10946_v54, %s10548_s16  ;;  %v9287_v40 = vrot.slane %v10957_v60, 9  ;;  %v1081_v47 = vrot.slane %v65_v61, 5 }
  0x4b   :  { %v339_v17 = vrot.slane %v338_v28, 4  ;;  %v1084_v51 = vrot.slane %v66_v26, 5  ;;  %v348_v2 = vor.u32 %v347_v59, %v343_v57  ;;  %v1364_v52 = vor.u32 %v1363_v31, %v1362_v34 }
  0x4c   :  { %v1366_v29 = vrot.slane %v345_v33, 5  ;;  %v1371_v27 = vshrl.u32 %v66_v26, 16  ;;  %v1082_v61 = vsel %vm10635_vm2, %v9287_v40, %v1081_v47  ;;  %v1083_v37 = vrot.slane %v1081_v47, 4  ;;  %v11033_v26 = vld [vmem:[%s19316_s0 + $0x74] sm:$0x3] }
  0x4d   :  { %2293 = vrot.lane.b32.xlu1 %v10920_v22, %s10549_s21  ;;  %v344_v60 = vsel %vm10710_vm5, %v339_v17, %v343_v57  ;;  %3401 = vmatpush1.bf16.msra.mxu0 %v10199_v58  ;;  %v356_v55 = vshrl.u32 %v11011_v0, 16  ;;  %v349_v56 = vrot.slane %v348_v2, 4  ;;  %v1365_v53 = vrot.slane %v1364_v52, 4 }
  0x4e   :  { %v1368_v33 = vor.u32 %v1367_v38, %v1366_v29  ;;  %v1373_v46 = vrot.slane %v1371_v27, 5  ;;  %3402 = vmatprep.subr.bf16.mxu0 %v19342_v41  ;;  %2509 = vrot.lane.b32.xlu0 %v11000_v16, %s10549_s21  ;;  %v1085_v57 = vsel %vm10635_vm2, %v1083_v37, %v1084_v51  ;;  %v359_v28 = vshll.u32 %v11011_v0, 16  ;;  %v11080_v37 = vld [vmem:[%s19316_s0 + $0x4] sm:$0xf] }
  0x4f   :  { %v358_v34 = vrot.slane %v356_v55, 4  ;;  %v365_v31 = vshll.u32 %v11019_v32, 16  ;;  %v11043_v58 = vcombine.low %v1354_v44, %v1361_v49  ;;  %v354_v59 = vsel %vm10710_vm5, %v349_v56, %v353_v45  ;;  %v10203_v44 = vld [vmem:[%s19317_s1 + $0x20] sm:$0xff]  }
  0x50   :  { %v11047_v38 = vcombine.low %v1082_v61, %v1085_v57  ;;  %v1370_v17 = vrot.slane %v1368_v33, 4  ;;  %v11051_v40 = vcombine.low %v344_v60, %v354_v59  ;;  %v1369_v47 = vsel %vm10743_vm8, %v1365_v53, %v1368_v33  ;;  %v11075_v61 = vld [vmem:[%s19316_s0] sm:$0xf] }
  0x51   :  { %20035 = vst [vmem:[#allocation17_spill] sm:$0xff] %v11043_v58  ;;  %2363 = vrot.lane.b32.xlu1 %v10942_v24, %s10550_s22  ;;  %v1375_v51 = vor.u32 %v1374_v62, %v1373_v46  ;;  %v361_v2 = vrot.slane %v359_v28, 5  ;;  %3403 = vmatpush1.bf16.msra.mxu0 %v10201_v35  ;;  %v11058_v49 = vrot.slane %v365_v31, 5  ;;  %v19328_v45 = vshrl.u32 %v11019_v32, 16  ;;  %v11096_v46 = vld [vmem:[%s19316_s0 + $0x8] sm:$0x3] }
  0x52   :  { %20036 = vst [vmem:[#allocation18_spill] sm:$0xff] %v11047_v38  ;;  %20037 = vst [vmem:[#allocation19_spill] sm:$0xff] %v11051_v40  ;;  %v375_v52 = vshll.u32 %v11033_v26, 16  ;;  %v11062_v29 = vrot.slane %v356_v55, 5  ;;  %3404 = vmatprep.subr.bf16.mxu0 %v19342_v41  ;;  %2579 = vrot.lane.b32.xlu0 %v10988_v36, %s10550_s22  ;;  %v11069_v35 = vrot.slane %v359_v28, 6  ;;  %v9288_v60 = vrot.slane %v11011_v0, 9 }
  0x53   :  { %v1376_v62 = vsel %vm10743_vm8, %v1370_v17, %v1375_v51  ;;  %v362_v27 = vor.u32 %v361_v2, %v358_v34  ;;  %v10205_v55 = vld [vmem:[%s19317_s1 + $0x28] sm:$0xff]   ;;  %v371_v53 = vrot.slane %v19328_v45, 4  ;;  %v11091_v33 = vrot.slane %v365_v31, 6  ;;  %v10218_v57 = vld [vmem:[%s19320_s4] sm:$0xff]  }
  0x54   :  { %v11085_v56 = vcombine.low %v1369_v47, %v1376_v62  ;;  %v11089_v0 = vrot.slane %v375_v52, 5  ;;  %v1088_v28 = vrot.slane %v11019_v32, 5  ;;  %v1091_v59 = vrot.slane %v11033_v26, 5 }
  0x55   :  { %2135 = vrot.lane.b32.xlu1 %v10934_v1, %s10548_s16  ;;  %v11103_v34 = vrot.slane %v362_v27, 4  ;;  %3405 = vmatpush1.bf16.msra.mxu0 %v10203_v44  ;;  %vm2641_vm9 = vcmask 261120   ;;  %v372_v31 = vor.u32 %v371_v53, %v11058_v49  ;;  %v19332_v17 = vshrl.u32 %v11075_v61, 16 }
  0x56   :  { %20038 = vst [vmem:[#allocation20_spill] sm:$0xff] %v11085_v56  ;;  %9784 = vmatprep.mubr.msk.bf16.mxu1 %vm2641_vm9, %v10811_v19  ;;  %3406 = vmatprep.subr.bf16.mxu0 %v19342_v41  ;;  %v19330_v47 = vshll.u32 %v11075_v61, 16  ;;  %v19331_v51 = vshll.u32 %v11080_v37, 16  ;;  %v11116_v2 = vrot.slane %v375_v52, 6  ;;  %v1089_v44 = vsel %vm10635_vm2, %v9288_v60, %v1088_v28  ;;  %v10220_v60 = vld [vmem:[%s19320_s4 + $0x8] sm:$0xff]  }
  0x57   :  { %2441 = vrot.lane.b32.xlu0 %v11043_v58, %s10548_s16  ;;  %v1090_v62 = vrot.slane %v1088_v28, 4  ;;  %9785 = vmatmul.mubr.msk.bf16.vlgmr.msra.gmra.mrb[0].mxu1 %vm2641_vm9, %v10866_v39  ;;  %v19333_v27 = vshrl.u32 %v11080_v37, 16  ;;  %v373_v53 = vrot.slane %v372_v31, 4  ;;  %v4402_v45 = vrot.slane %v19332_v17, 4 }
  0x58   :  { %v4405_v25 = vrot.slane %v19330_v47, 5  ;;  %v4411_v52 = vrot.slane %v19331_v51, 5  ;;  %9788 = vmatprep.mubr.msk.bf16.mxu1 %vm2641_vm9, %v10920_v22  ;;  %7275 = vmatpush1.bf16.msra.mxu1 %v10218_v57  ;;  %v4419_v47 = vshll.u32 %v11096_v46, 16  ;;  %v166_v51 = vrot.slane %v164_v13, 4  ;;  %v10206_v57 = vld [vmem:[%s19317_s1 + $0x30] sm:$0xff]  }
  0x59   :  { %2295 = vrot.lane.b32.xlu1 %v10946_v54, %s10549_s21  ;;  %v1092_v28 = vsel %vm10635_vm2, %v1090_v62, %v1091_v59  ;;  %v4415_v31 = vrot.slane %v19333_v27, 4  ;;  %3407 = vmatpush1.bf16.msra.mxu0 %v10205_v55  ;;  %v368_v17 = vsel %vm10710_vm5, %v11103_v34, %v11058_v49  ;;  %v378_v59 = vsel %vm10710_vm5, %v373_v53, %v11089_v0  ;;  %v10221_v53 = vld [vmem:[%s19320_s4 + $0x10] sm:$0xff]  }
  0x5a   :  { %v4406_v62 = vor.u32 %v4405_v25, %v4402_v45  ;;  %3408 = vmatprep.subr.bf16.mxu0 %v19342_v41  ;;  %v169_v55 = vrot.slane %v167_v14, 5  ;;  %7276 = vmatprep.subr.bf16.mxu1 %v19342_v41  ;;  %v11159_v13 = vcombine.low %v1089_v44, %v1092_v28  ;;  %v4421_v49 = vrot.slane %v4419_v47, 5 }
  0x5b   :  { %2511 = vrot.lane.b32.xlu0 %v11051_v40, %s10549_s21  ;;  %v4416_v27 = vor.u32 %v4415_v31, %v4411_v52  ;;  %v11165_v0 = vrot.slane %v173_v20, 5  ;;  %v179_v45 = vrot.slane %v177_v21, 4  ;;  %v20040_v34 = vshll.u32 %v10655_v11, 16 }
  0x5c   :  { %20039 = vst [vmem:[#allocation21_spill] sm:$0xff] %v11159_v13  ;;  %v4407_v14 = vrot.slane %v4406_v62, 4  ;;  %v170_v25 = vor.u32 %v169_v55, %v166_v51  ;;  %7277 = vmatpush1.bf16.msra.mxu1 %v10220_v60  ;;  %v9474_v28 = vrot.slane %v11075_v61, 9  ;;  %v4455_v51 = vrot.slane %v11080_v37, 5 }
  0x5d   :  { %v11174_v44 = vrot.slane %v20040_v34, 5  ;;  %2365 = vrot.lane.b32.xlu1 %v11000_v16, %s10550_s22  ;;  %v4417_v20 = vrot.slane %v4416_v27, 4  ;;  %v4458_v8 = vrot.slane %v11096_v46, 5  ;;  %3409 = vmatpush1.bf16.msra.mxu0 %v10206_v57  ;;  %v180_v60 = vor.u32 %v179_v45, %v11165_v0 }
  0x5e   :  { %v4412_v11 = vsel %vm10710_vm5, %v4407_v14, %v4411_v52  ;;  %v11186_v21 = vrot.slane %v170_v25, 4  ;;  %3410 = vmatprep.subr.bf16.mxu0 %v19342_v41  ;;  %v1379_v31 = vor.u32 %v11069_v35, %v11062_v29  ;;  %7278 = vmatprep.subr.bf16.mxu1 %v19342_v41  ;;  %v11195_v27 = vcombine.low %v368_v17, %v378_v59  ;;  %v10208_v17 = vld [vmem:[%s19317_s1 + $0x40] sm:$0xff]   ;;  %v10222_v59 = vld [vmem:[%s19320_s4 + $0x18] sm:$0xff]  }
  0x5f   :  { %2581 = vrot.lane.b32.xlu0 %v11047_v38, %s10550_s22  ;;  %v4422_v57 = vsel %vm10710_vm5, %v4417_v20, %v4421_v49  ;;  %v4457_v52 = vrot.slane %v4455_v51, 4  ;;  %9789 = vmatmul.mubr.msk.bf16.gmra.mrb[4].mxu1 %vm2641_vm9, %v10946_v54  ;;  %v20042_v62 = vshrl.u32 %v11019_v32, 16  ;;  %v181_v29 = vrot.slane %v180_v60, 4  ;;  %v11217_v32 = vld [vmem:[%s19316_s0 + $0x78] sm:$0xf] }
  0x60   :  { %20041 = vst [vmem:[#allocation22_spill] sm:$0xff] %v11195_v27  ;;  %v11203_v14 = vcombine.low %v4412_v11, %v4422_v57  ;;  %v11207_v35 = vsel %vm10635_vm2, %v9474_v28, %v4455_v51  ;;  %v1380_v25 = vrot.slane %v1379_v31, 4  ;;  %9792 = vmatprep.mubr.msk.bf16.mxu1 %vm2641_vm9, %v11043_v58  ;;  %7279 = vmatpush1.bf16.msra.mxu1 %v10221_v53  ;;  %v1386_v34 = vshrl.u32 %v11033_v26, 16  ;;  %v11235_v53 = vld [vmem:[%s19316_s0 + $0x7c] sm:$0xf] }
  0x61   :  { %v1381_v55 = vrot.slane %v20042_v62, 5  ;;  %2137 = vrot.lane.b32.xlu1 %v10988_v36, %s10548_s16  ;;  %v11226_v49 = vsel %vm10635_vm2, %v4457_v52, %v4458_v8  ;;  %3411 = vmatpush1.bf16.msra.mxu0 %v10207_v7  ;;  %v20043_v20 = vshrl.u32 %v11075_v61, 16  ;;  %v176_v51 = vsel %vm10710_vm5, %v11186_v21, %v11165_v0 }
  0x62   :  { %3412 = vmatprep.subr.bf16.mxu0 %v19342_v41  ;;  %v20044_v26 = vshll.u32 %v11075_v61, 16  ;;  %v20045_v8 = vshrl.u32 %v11080_v37, 16  ;;  %7280 = vmatprep.subr.bf16.mxu1 %v19342_v41  ;;  %v9552_v0 = vcombine.low %v11207_v35, %v11226_v49  ;;  %v1388_v60 = vrot.slane %v1386_v34, 5 }
  0x63   :  { %v1383_v45 = vor.u32 %v11091_v33, %v1381_v55  ;;  %v4467_v28 = vrot.slane %v20043_v20, 5  ;;  %v186_v33 = vsel %vm10710_vm5, %v181_v29, %v11174_v44  ;;  %2443 = vrot.lane.b32.xlu0 %v11085_v56, %s10548_s16  ;;  %v20046_v61 = vshll.u32 %v11080_v37, 16  ;;  %v10223_v55 = vld [vmem:[%s19320_s4 + $0x20] sm:$0xff]  }
  0x64   :  { %v4468_v7 = vrot.slane %v20044_v26, 6  ;;  %v4471_v11 = vrot.slane %v20045_v8, 5  ;;  %v4476_v52 = vshrl.u32 %v11096_v46, 16  ;;  %v4479_v62 = vrot.slane %v4419_v47, 6  ;;  %7281 = vmatpush1.bf16.msra.mxu1 %v10222_v59  ;;  %v10209_v46 = vld [vmem:[%s19317_s1 + $0x48] sm:$0xff]  }
  0x65   :  { %v1384_v21 = vsel %vm10743_vm8, %v1380_v25, %v1383_v45  ;;  %v1385_v44 = vrot.slane %v1383_v45, 4  ;;  %v4472_v57 = vrot.slane %v20046_v61, 6  ;;  %2297 = vrot.lane.b32.xlu1 %v11043_v58, %s10549_s21  ;;  %v1390_v29 = vor.u32 %v11116_v2, %v1388_v60  ;;  %3413 = vmatpush1.bf16.msra.mxu0 %v10208_v17  ;;  %v11277_v2 = vld [vmem:[%s19316_s0 + $0x80] sm:$0x3]  ;;  %v10224_v61 = vld [vmem:[%s19320_s4 + $0x28] sm:$0xff]  }
  0x66   :  { %v4469_v31 = vor.u32 %v4468_v7, %v4467_v28  ;;  %v380_v25 = vshrl.u32 %v11217_v32, 16  ;;  %v383_v37 = vshll.u32 %v11217_v32, 16  ;;  %v389_v45 = vshll.u32 %v11235_v53, 16  ;;  %3414 = vmatprep.subr.bf16.mxu0 %v19342_v41  ;;  %7282 = vmatprep.subr.bf16.mxu1 %v19342_v41 }
  0x67   :  { %v4473_v59 = vor.u32 %v4472_v57, %v4471_v11  ;;  %v4478_v34 = vrot.slane %v4476_v52, 5  ;;  %v393_v17 = vshrl.u32 %v11235_v53, 16  ;;  %2513 = vrot.lane.b32.xlu0 %v11195_v27, %s10549_s21  ;;  %v1391_v20 = vsel %vm10743_vm8, %v1385_v44, %v1390_v29  ;;  %9793 = vmatmul.mubr.msk.bf16.gmra.mrb[8].mxu1 %vm2641_vm9, %v11085_v56 }
  0x68   :  { %v4470_v47 = vrot.slane %v4469_v31, 4  ;;  %v382_v28 = vrot.slane %v380_v25, 4  ;;  %v385_v26 = vrot.slane %v383_v37, 5  ;;  %v391_v7 = vrot.slane %v389_v45, 5  ;;  %7283 = vmatpush1.bf16.msra.mxu1 %v10223_v55 }
  0x69   :  { %v11287_v8 = vcombine.low %v176_v51, %v186_v33  ;;  %v11289_v11 = vcombine.low %v1384_v21, %v1391_v20  ;;  %v4475_v60 = vrot.slane %v4473_v59, 4  ;;  %v4480_v31 = vor.u32 %v4479_v62, %v4478_v34  ;;  %2367 = vrot.lane.b32.xlu1 %v11051_v40, %s10550_s22  ;;  %3415 = vmatpush1.bf16.msra.mxu0 %v10209_v46  ;;  %v10210_v51 = vld [vmem:[%s19317_s1 + $0x50] sm:$0xff]   ;;  %v11303_v33 = vld [vmem:[%s19316_s0 + $0x84] sm:$0xf]  ;;  %v10232_v40 = vld [vmem:[%s19320_s4 + $0x58] sm:$0xff]  }
  0x6a   :  { %v386_v44 = vor.u32 %v385_v26, %v382_v28  ;;  %v395_v57 = vrot.slane %v393_v17, 4  ;;  %v399_v52 = vshll.u32 %v11277_v2, 16  ;;  %v1392_v29 = vrot.slane %v380_v25, 5  ;;  %3416 = vmatprep.subr.bf16.mxu0 %v19342_v41  ;;  %7284 = vmatprep.subr.bf16.mxu1 %v19342_v41  ;;  %v10226_v26 = vld [vmem:[%s19320_s4 + $0x30] sm:$0xff]  }
  0x6b   :  { %20047 = vst [vmem:[#allocation23_spill] sm:$0xff] %v11289_v11  ;;  %v4474_v21 = vsel %vm10743_vm8, %v4470_v47, %v4473_v59  ;;  %v1393_v62 = vrot.slane %v383_v37, 6  ;;  %v1397_v55 = vrot.slane %v389_v45, 6  ;;  %v9289_v34 = vrot.slane %v11217_v32, 9  ;;  %9796 = vmatprep.mubr.msk.bf16.mxu1 %vm2641_vm9, %v11289_v11  ;;  %2583 = vrot.lane.b32.xlu0 %v11159_v13, %s10550_s22  ;;  %v11318_v37 = vld [vmem:[%s19316_s0 + $0x88] sm:$0xf] }
  0x6c   :  { %v4481_v25 = vsel %vm10743_vm8, %v4475_v60, %v4480_v31  ;;  %v387_v46 = vrot.slane %v386_v44, 4  ;;  %v396_v20 = vor.u32 %v395_v57, %v391_v7  ;;  %v401_v28 = vrot.slane %v399_v52, 5  ;;  %7285 = vmatpush1.bf16.msra.mxu1 %v10224_v61  ;;  %v11337_v61 = vld [vmem:[%s19316_s0 + $0x8c] sm:$0x3] }
  0x6d   :  { %v1404_v32 = vrot.slane %v399_v52, 6  ;;  %v1095_v45 = vrot.slane %v11235_v53, 5  ;;  %v1098_v47 = vrot.slane %v11277_v2, 5  ;;  %v1394_v59 = vor.u32 %v1393_v62, %v1392_v29  ;;  %4980 = vrot.lane.b32.xlu1 %v11203_v14, %s10548_s16  ;;  %3417 = vmatpush1.bf16.msra.mxu0 %v10210_v51  ;;  %v10212_v53 = vld [vmem:[%s19317_s1 + $0x58] sm:$0xff]  }
  0x6e   :  { %v392_v60 = vsel %vm10710_vm5, %v387_v46, %v391_v7  ;;  %v397_v31 = vrot.slane %v396_v20, 4  ;;  %v1396_v44 = vrot.slane %v393_v17, 5  ;;  %v1401_v57 = vshrl.u32 %v11277_v2, 16  ;;  %3418 = vmatprep.subr.bf16.mxu0 %v19342_v41  ;;  %v11346_v2 = vld [vmem:[%s19316_s0 + $0x90] sm:$0xf]  ;;  %7286 = vmatprep.subr.bf16.mxu1 %v19342_v41  ;;  %v10227_v17 = vld [vmem:[%s19320_s4 + $0x38] sm:$0xff]  }
  0x6f   :  { %v11339_v52 = vcombine.low %v4474_v21, %v4481_v25  ;;  %v1097_v14 = vrot.slane %v1095_v45, 4  ;;  %v1395_v7 = vrot.slane %v1394_v59, 4  ;;  %5286 = vrot.lane.b32.xlu0 %v10890_v50, %s10548_s16  ;;  %v19341_v25 = vshll.u32 %v11303_v33, 16 }
  0x70   :  { %v402_v51 = vsel %vm10710_vm5, %v397_v31, %v401_v28  ;;  %v1398_v21 = vor.u32 %v1397_v55, %v1396_v44  ;;  %v1403_v62 = vrot.slane %v1401_v57, 5  ;;  %v1096_v20 = vsel %vm10635_vm2, %v9289_v34, %v1095_v45  ;;  %7287 = vmatpush1.bf16.msra.mxu1 %v10226_v26  ;;  %v10213_v34 = vld [vmem:[%s19317_s1 + $0x60] sm:$0xff]  }
  0x71   :  { %v11357_v46 = vcombine.low %v392_v60, %v402_v51  ;;  %v19336_v59 = vshll.u32 %v11318_v37, 16  ;;  %v19335_v29 = vshrl.u32 %v11318_v37, 16  ;;  %5050 = vrot.lane.b32.xlu1 %v9552_v0, %s10549_s21  ;;  %v1099_v55 = vsel %vm10635_vm2, %v1097_v14, %v1098_v47  ;;  %3419 = vmatpush1.bf16.msra.mxu0 %v10212_v53  ;;  %v11398_v53 = vld [vmem:[%s19316_s0 + $0x98] sm:$0x3] }
  0x72   :  { %v1399_v28 = vsel %vm10743_vm8, %v1395_v7, %v1398_v21  ;;  %v1400_v60 = vrot.slane %v1398_v21, 4  ;;  %v1405_v31 = vor.u32 %v1404_v32, %v1403_v62  ;;  %3420 = vmatprep.subr.bf16.mxu0 %v19342_v41  ;;  %v19334_v45 = vshll.u32 %v11337_v61, 16  ;;  %v11385_v32 = vld [vmem:[%s19316_s0 + $0x94] sm:$0xf]  ;;  %7288 = vmatprep.subr.bf16.mxu1 %v19342_v41 }
  0x73   :  { %v20048_v35 = vshrl.u32 %v11303_v33, 16  ;;  %v1408_v0 = vrot.slane %v19341_v25, 6  ;;  %v1411_v47 = vrot.slane %v19335_v29, 5  ;;  %5350 = vrot.lane.b32.xlu0 %v11287_v8, %s10549_s21  ;;  %v1412_v44 = vrot.slane %v19336_v59, 6 }
  0x74   :  { %v1406_v26 = vsel %vm10743_vm8, %v1400_v60, %v1405_v31  ;;  %v1416_v57 = vshrl.u32 %v11337_v61, 16  ;;  %v19338_v14 = vshrl.u32 %v11346_v2, 16  ;;  %v1419_v21 = vrot.slane %v19334_v45, 6  ;;  %7289 = vmatpush1.bf16.msra.mxu1 %v10227_v17  ;;  %v10228_v60 = vld [vmem:[%s19320_s4 + $0x40] sm:$0xff]   ;;  %v11419_v17 = vld [vmem:[%s19316_s0 + $0x9c] sm:$0xf] }
  0x75   :  { %v1407_v49 = vrot.slane %v20048_v35, 5  ;;  %v11401_v7 = vcombine.low %v1399_v28, %v1406_v26  ;;  %v19337_v62 = vshll.u32 %v11346_v2, 16  ;;  %2445 = vrot.lane.b32.xlu1 %v11289_v11, %s10548_s16  ;;  %3421 = vmatpush1.bf16.msra.mxu0 %v10213_v34  ;;  %v1413_v31 = vor.u32 %v1412_v44, %v1411_v47 }
  0x76   :  { %v1418_v35 = vrot.slane %v1416_v57, 5  ;;  %v19340_v28 = vshll.u32 %v11385_v32, 16  ;;  %3422 = vmatprep.subr.bf16.mxu0 %v19342_v41  ;;  %v19346_v34 = vshll.u32 %v11398_v53, 16  ;;  %v1422_v47 = vrot.slane %v19338_v14, 5  ;;  %v11432_v57 = vld [vmem:[%s19316_s0 + $0xa0] sm:$0xf]  ;;  %7290 = vmatprep.subr.bf16.mxu1 %v19342_v41 }
  0x77   :  { %20049 = vst [vmem:[#allocation24_spill] sm:$0xff] %v11401_v7  ;;  %v1409_v51 = vor.u32 %v1408_v0, %v1407_v49  ;;  %v19339_v49 = vshrl.u32 %v11385_v32, 16  ;;  %v10214_v0 = vld [vmem:[%s19317_s1 + $0x68] sm:$0xff]   ;;  %9797 = vmatmul.mubr.msk.bf16.gmra.mrb[12].mxu1 %vm2641_vm9, %v11401_v7  ;;  %v1423_v44 = vrot.slane %v19337_v62, 6  ;;  %5358 = vrot.lane.b32.xlu0 %v10691_v30, %s10550_s22  ;;  %v1415_v45 = vrot.slane %v1413_v31, 4 }
  0x78   :  { %v1427_v59 = vrot.slane %v19340_v28, 6  ;;  %v11443_v62 = vld [vmem:[%s19316_s0 + $0xa4] sm:$0x3]  ;;  %v10229_v14 = vld [vmem:[%s19320_s4 + $0x48] sm:$0xff]   ;;  %v1434_v28 = vrot.slane %v19346_v34, 6  ;;  %7291 = vmatpush1.bf16.msra.mxu1 %v10228_v60  ;;  %v11456_v25 = vcombine.low %v1096_v20, %v1099_v55  ;;  %vm2738_vm10 = vcmask 523264  }
  0x79   :  { %v1410_v26 = vrot.slane %v1409_v51, 4  ;;  %v1420_v51 = vor.u32 %v1419_v21, %v1418_v35  ;;  %v1426_v29 = vrot.slane %v19339_v49, 5  ;;  %v1424_v35 = vor.u32 %v1423_v44, %v1422_v47  ;;  %2139 = vrot.lane.b32.xlu1 %v11047_v38, %s10548_s16  ;;  %3423 = vmatpush1.bf16.msra.mxu0 %v10214_v0  ;;  %v11467_v60 = vld [vmem:[%s19316_s0 + $0xa8] sm:$0xf] }
  0x7a   :  { %v1431_v49 = vshrl.u32 %v11398_v53, 16  ;;  %v20051_v44 = vmov 0   ;;  %v20060_v22 = vshll.u32 %v11318_v37, 16  ;;  %vm2803_vm11 = vcmask 785408  }
  0x7b   :  { %v1414_v21 = vsel %vm10743_vm8, %v1410_v26, %v1413_v31  ;;  %v1421_v41 = vsel %vm10743_vm8, %v1415_v45, %v1420_v51  ;;  %v1428_v58 = vor.u32 %v1427_v59, %v1426_v29  ;;  %v10215_v31 = vld [vmem:[%s19317_s1 + $0x70] sm:$0xff]   ;;  %v19350_v26 = vshrl.u32 %v11419_v17, 16  ;;  %3424 = vmatprep.subr.bf16.mxu0 %v20051_v44  ;;  %7292 = vmatprep.subr.bf16.mxu1 %v20051_v44  ;;  %v11485_v51 = vld [vmem:[%s19316_s0 + $0xac] sm:$0xf] }
  0x7c   :  { %v11469_v47 = vcombine.low %v1414_v21, %v1421_v41  ;;  %v1425_v20 = vrot.slane %v1424_v35, 4  ;;  %v1433_v55 = vrot.slane %v1431_v49, 5  ;;  %v19349_v29 = vshll.u32 %v11419_v17, 16  ;;  %v10230_v59 = vld [vmem:[%s19320_s4 + $0x50] sm:$0xff]   ;;  %5120 = vrot.lane.b32.xlu0 %v11339_v52, %s10550_s22  ;;  %v2128_v21 = vpop.permute.xlu1 %2127  ;;  %7293 = vmatpush1.bf16.msra.mxu1 %v10229_v14 }
  0x7d   :  { %v1430_v45 = vrot.slane %v1428_v58, 4  ;;  %v19353_v41 = vshrl.u32 %v11432_v57, 16  ;;  %v1437_v34 = vrot.slane %v19350_v26, 5  ;;  %2299 = vrot.lane.b32.xlu1 %v11085_v56, %s10549_s21  ;;  %v11499_v49 = vsel %vm2641_vm9, %v10826_v42, %v2128_v21  ;;  %3425 = vmatpush1.bf16.msra.mxu0 %v10215_v31  ;;  %v11514_v31 = vld [vmem:[%s19316_s0 + $0xb0] sm:$0x3] }
  0x7e   :  { %20050 = vst [vmem:[#allocation25_spill] sm:$0xff] %v11469_v47  ;;  %9800 = vmatprep.mubr.msk.bf16.mxu1 %vm2641_vm9, %v11469_v47  ;;  %v1429_v35 = vsel %vm10743_vm8, %v1425_v20, %v1428_v58  ;;  %v1435_v52 = vor.u32 %v1434_v28, %v1433_v55  ;;  %v1438_v0 = vrot.slane %v19349_v29, 6  ;;  %v20052_v58 = vshll.u32 %v11432_v57, 16  ;;  %v2126_v55 = vpop.permute.xlu0 %2125  ;;  %3426 = vmatprep.subr.bf16.mxu0 %v20051_v44 }
  0x7f   :  { %v1441_v54 = vrot.slane %v19353_v41, 5  ;;  %v1446_v20 = vshrl.u32 %v11443_v62, 16  ;;  %v20053_v26 = vshll.u32 %v11443_v62, 16  ;;  %20054 = vst [vmem:[#allocation26_spill] sm:$0xff] %v11514_v31  ;;  %7294 = vmatprep.subr.bf16.mxu1 %v20051_v44  ;;  %v19361_v41 = vshll.u32 %v11467_v60, 16 }
  0x80   :  { %v1442_v28 = vrot.slane %v20052_v58, 6  ;;  %v1436_v14 = vsel %vm10743_vm8, %v1430_v45, %v1435_v52  ;;  %v1439_v29 = vor.u32 %v1438_v0, %v1437_v34  ;;  %v10216_v58 = vld [vmem:[%s19317_s1 + $0x78] sm:$0xff]   ;;  %2515 = vrot.lane.b32.xlu0 %v11357_v46, %s10549_s21  ;;  %v11525_v34 = vsel %vm2641_vm9, %v11287_v8, %v2126_v55  ;;  %7295 = vmatpush1.bf16.msra.mxu1 %v10230_v59 }
  0x81   :  { %v1449_v56 = vrot.slane %v20053_v26, 6  ;;  %v11527_v26 = vcombine.low %v1429_v35, %v1436_v14  ;;  %v1448_v0 = vrot.slane %v1446_v20, 5  ;;  %v19360_v21 = vshll.u32 %v11485_v51, 16  ;;  %2369 = vrot.lane.b32.xlu1 %v11195_v27, %s10550_s22  ;;  %3427 = vmatpush1.bf16.msra.mxu0 %v10216_v58  ;;  %v11563_v58 = vld [vmem:[%s19316_s0 + $0xb4] sm:$0xf] }
  0x82   :  { %v1443_v45 = vor.u32 %v1442_v28, %v1441_v54  ;;  %v1440_v52 = vrot.slane %v1439_v29, 4  ;;  %v19359_v50 = vshrl.u32 %v11485_v51, 16  ;;  %v19362_v29 = vshll.u32 %v11514_v31, 16  ;;  %7296 = vmatprep.subr.bf16.mxu1 %v20051_v44  ;;  %7852 = vmatprep.subr.bf16.mxu0 %v20051_v44 }
  0x83   :  { %20055 = vst [vmem:[#allocation27_spill] sm:$0xff] %v11527_v26  ;;  %9801 = vmatmul.mubr.msk.bf16.gmra.mrb[16].mxu1 %vm2641_vm9, %v11527_v26  ;;  %v1450_v35 = vor.u32 %v1449_v56, %v1448_v0  ;;  %v20056_v28 = vshrl.u32 %v11467_v60, 16  ;;  %v1453_v55 = vrot.slane %v19361_v41, 6  ;;  %v1457_v27 = vrot.slane %v19360_v21, 6 }
  0x84   :  { %v1445_v54 = vrot.slane %v1443_v45, 4  ;;  %v1444_v59 = vsel %vm10743_vm8, %v1440_v52, %v1443_v45  ;;  %v1456_v14 = vrot.slane %v19359_v50, 5  ;;  %2585 = vrot.lane.b32.xlu0 %v11456_v25, %s10550_s22  ;;  %v1461_v45 = vshrl.u32 %v11514_v31, 16  ;;  %7297 = vmatpush1.bf16.msra.mxu1 %v10232_v40  ;;  %v11584_v40 = vld [vmem:[%s19316_s0 + $0xb8] sm:$0xf] }
  0x85   :  { %v1452_v20 = vrot.slane %v20056_v28, 5  ;;  %v1464_v0 = vrot.slane %v19362_v29, 6  ;;  %v20057_v52 = vshrl.u32 %v11303_v33, 16  ;;  %4982 = vrot.lane.b32.xlu1 %v11287_v8, %s10548_s16  ;;  %v415_v16 = vrot.slane %v20060_v22, 5  ;;  %7298 = vmatprep.subr.bf16.mxu1 %v20051_v44  ;;  %v11592_v22 = vld [vmem:[%s19316_s0 + $0xbc] sm:$0x3] }
  0x86   :  { %v1451_v56 = vsel %vm10743_vm8, %v1445_v54, %v1450_v35  ;;  %v1458_v54 = vor.u32 %v1457_v27, %v1456_v14  ;;  %v20059_v35 = vshll.u32 %v11303_v33, 16  ;;  %v1463_v29 = vrot.slane %v1461_v45, 5  ;;  %20063 = vst [vmem:[#allocation29_spill] sm:$0xff] %v11592_v22  ;;  %v11596_v45 = vpop.permute.xlu0 %2571 }
  0x87   :  { %v406_v28 = vrot.slane %v20057_v52, 4  ;;  %v11566_v50 = vcombine.low %v1444_v59, %v1451_v56  ;;  %v1454_v21 = vor.u32 %v1453_v55, %v1452_v20  ;;  %v10233_v52 = vld [vmem:[%s19320_s4 + $0x60] sm:$0xff]   ;;  %v20061_v59 = vshrl.u32 %v11318_v37, 16  ;;  %20064 = vst [vmem:[#allocation30_spill] sm:$0xff] %v11596_v45 }
  0x88   :  { %v409_v41 = vrot.slane %v20059_v35, 5  ;;  %v20062_v27 = vshll.u32 %v11337_v61, 16  ;;  %v1460_v55 = vrot.slane %v1458_v54, 4  ;;  %5288 = vrot.lane.b32.xlu0 %v10671_v18, %s10548_s16  ;;  %v1465_v35 = vor.u32 %v1464_v0, %v1463_v29  ;;  %7299 = vmatpush1.bf16.msra.mxu1 %v10233_v52  ;;  %v10235_v18 = vld [vmem:[%s19320_s4 + $0x68] sm:$0xff]  }
  0x89   :  { %20058 = vst [vmem:[#allocation28_spill] sm:$0xff] %v11566_v50  ;;  %v419_v56 = vrot.slane %v20061_v59, 4  ;;  %9804 = vmatprep.mubr.msk.bf16.mxu1 %vm2641_vm9, %v11566_v50  ;;  %v1455_v8 = vrot.slane %v1454_v21, 4  ;;  %v1102_v38 = vrot.slane %v11318_v37, 5  ;;  %v19376_v31 = vshrl.u32 %v11563_v58, 16  ;;  %5052 = vrot.lane.b32.xlu1 %v10691_v30, %s10549_s21 }
  0x8a   :  { %v425_v20 = vrot.slane %v20062_v27, 5  ;;  %v410_v14 = vor.u32 %v409_v41, %v406_v28  ;;  %v9290_v27 = vrot.slane %v11303_v33, 9  ;;  %v1105_v28 = vrot.slane %v11337_v61, 5  ;;  %v11616_v61 = vld [vmem:[%s19316_s0 + $0xc0] sm:$0xf]  ;;  %7300 = vmatprep.subr.bf16.mxu1 %v20051_v44 }
  0x8b   :  { %v420_v59 = vor.u32 %v419_v56, %v415_v16  ;;  %v1459_v41 = vsel %vm10743_vm8, %v1455_v8, %v1458_v54  ;;  %v1466_v33 = vsel %vm10743_vm8, %v1460_v55, %v1465_v35  ;;  %v1104_v0 = vrot.slane %v1102_v38, 4  ;;  %20065 = vst [vmem:[#allocation31_spill] sm:$0xff] %v11616_v61  ;;  %v11641_v35 = vld [vmem:[%s19316_s0 + $0xc8] sm:$0x3] }
  0x8c   :  { %v411_v21 = vrot.slane %v410_v14, 4  ;;  %v1103_v29 = vsel %vm10635_vm2, %v9290_v27, %v1102_v38  ;;  %v11619_v54 = vcombine.low %v1459_v41, %v1466_v33  ;;  %v19372_v52 = vshll.u32 %v11563_v58, 16  ;;  %v11628_v38 = vld [vmem:[%s19316_s0 + $0xc4] sm:$0xf]  ;;  %5352 = vrot.lane.b32.xlu0 %v10826_v42, %s10549_s21  ;;  %20068 = vst [vmem:[#allocation34_spill] sm:$0xff] %v11641_v35  ;;  %7301 = vmatpush1.bf16.msra.mxu1 %v10235_v18 }
  0x8d   :  { %v421_v37 = vrot.slane %v420_v59, 4  ;;  %v19375_v56 = vshll.u32 %v11584_v40, 16  ;;  %20067 = vst [vmem:[#allocation33_spill] sm:$0xff] %v11628_v38  ;;  %v1106_v55 = vsel %vm10635_vm2, %v1104_v0, %v1105_v28  ;;  %v19374_v14 = vshll.u32 %v11592_v22, 16  ;;  %v11643_v59 = vpop.permute.xlu1 %2501  ;;  %2447 = vrot.lane.b32.xlu1 %v11401_v7, %s10548_s16  ;;  %v2432_v28 = vpop.permute.xlu0 %2431  ;;  %7302 = vmatprep.subr.bf16.mxu1 %v20051_v44 }
  0x8e   :  { %20066 = vst [vmem:[#allocation32_spill] sm:$0xff] %v11619_v54  ;;  %v416_v30 = vsel %vm10710_vm5, %v411_v21, %v415_v16  ;;  %v19373_v16 = vshrl.u32 %v11584_v40, 16  ;;  %20069 = vst [vmem:[#allocation35_spill] sm:$0xff] %v11643_v59  ;;  %9805 = vmatmul.mubr.msk.bf16.gmra.mrb[20].mxu1 %vm2641_vm9, %v11619_v54  ;;  %v1467_v41 = vrot.slane %v19376_v31, 5  ;;  %v1468_v21 = vrot.slane %v19372_v52, 6 }
  0x8f   :  { %v426_v8 = vsel %vm10710_vm5, %v421_v37, %v425_v20  ;;  %v11649_v20 = vcombine.low %v1103_v29, %v1106_v55  ;;  %v1472_v37 = vrot.slane %v19375_v56, 6  ;;  %v1476_v0 = vshrl.u32 %v11592_v22, 16  ;;  %v11684_v52 = vld [vmem:[%s19316_s0 + $0xcc] sm:$0xf]  ;;  %v11695_v31 = vld [vmem:[%s19316_s0 + $0xd0] sm:$0xf] }
  0x90   :  { %v11647_v27 = vcombine.low %v416_v30, %v426_v8  ;;  %v1471_v33 = vrot.slane %v19373_v16, 5  ;;  %v1479_v29 = vrot.slane %v19374_v14, 6  ;;  %v11666_v30 = vsel %vm2641_vm9, %v10682_v23, %v2432_v28  ;;  %5360 = vrot.lane.b32.xlu0 %v10682_v23, %s10550_s22  ;;  %20071 = vst [vmem:[#allocation37_spill] sm:$0xff] %v11684_v52 }
  0x91   :  { %20070 = vst [vmem:[#allocation36_spill] sm:$0xff] %v11666_v30  ;;  %v1469_v8 = vor.u32 %v1468_v21, %v1467_v41  ;;  %v19378_v55 = vshrl.u32 %v11616_v61, 16  ;;  %v2997_v16 = vsel %vm2738_vm10, %v11666_v30, %v11643_v59  ;;  %v1478_v18 = vrot.slane %v1476_v0, 5  ;;  %2141 = vrot.lane.b32.xlu1 %v11159_v13, %s10548_s16  ;;  %v2286_v56 = vpop.permute.xlu1 %2285 }
  0x92   :  { %v1473_v14 = vor.u32 %v1472_v37, %v1471_v33  ;;  %v3061_v41 = vsel %vm2803_vm11, %v2997_v16, %v11596_v45  ;;  %v20072_v16 = vshll.u32 %v11616_v61, 16  ;;  %v20073_v30 = vshrl.u32 %v11628_v38, 16 }
  0x93   :  { %v1470_v21 = vrot.slane %v1469_v8, 4  ;;  %3428 = vmatprep.mubr.bf16.mxu0 %v3061_v41  ;;  %v1480_v37 = vor.u32 %v1479_v29, %v1478_v18  ;;  %v1482_v0 = vrot.slane %v19378_v55, 5  ;;  %v20074_v29 = vshll.u32 %v11628_v38, 16  ;;  %v10236_v38 = vld [vmem:[%s19320_s4 + $0x70] sm:$0xff]  }
  0x94   :  { %v1475_v33 = vrot.slane %v1473_v14, 4  ;;  %v1483_v8 = vrot.slane %v20072_v16, 6  ;;  %v1486_v41 = vrot.slane %v20073_v30, 5  ;;  %v1491_v55 = vshrl.u32 %v11641_v35, 16  ;;  %v11707_v16 = vld [vmem:[%s19316_s0 + $0xd4] sm:$0x3]  ;;  %5122 = vrot.lane.b32.xlu0 %v10807_v6, %s10550_s22  ;;  %7303 = vmatpush1.bf16.msra.mxu1 %v10236_v38 }
  0x95   :  { %v1474_v28 = vsel %vm10743_vm8, %v1470_v21, %v1473_v14  ;;  %v1487_v18 = vrot.slane %v20074_v29, 6  ;;  %v2740_v45 = vsel %vm2738_vm10, %v11525_v34, %v2286_v56  ;;  %v2434_v14 = vpop.permute.xlu0 %2433  ;;  %v20075_v29 = vshll.u32 %v11641_v35, 16  ;;  %2301 = vrot.lane.b32.xlu1 %v11289_v11, %s10549_s21  ;;  %7304 = vmatprep.subr.bf16.mxu1 %v20051_v44 }
  0x96   :  { %v1481_v30 = vsel %vm10743_vm8, %v1475_v33, %v1480_v37  ;;  %v1484_v21 = vor.u32 %v1483_v8, %v1482_v0  ;;  %v11722_v61 = vsel %vm2641_vm9, %v10739_v3, %v2434_v14  ;;  %v1493_v34 = vrot.slane %v1491_v55, 5  ;;  %v10315_v33 = vld [vmem:[%s19316_s0 + $0x24] sm:$0xf]  ;;  %v10316_v37 = vld [vmem:[%s19316_s0 + $0x28] sm:$0xf] }
  0x97   :  { %v1494_v59 = vrot.slane %v20075_v29, 6  ;;  %20076 = vst [vmem:[#allocation38_spill] sm:$0xff] %v11722_v61  ;;  %v11724_v6 = vcombine.low %v1474_v28, %v1481_v30  ;;  %v1488_v13 = vor.u32 %v1487_v18, %v1486_v41  ;;  %v11734_v0 = vcombine.low %v10315_v33, %v10316_v37  ;;  %v11741_v55 = vld [vmem:[%s19316_s0 + $0xd8] sm:$0xf]  ;;  %v11746_v41 = vld [vmem:[%s19316_s0 + $0xdc] sm:$0xf]  ;;  %v11760_v38 = vpop.permute.xlu1 %2355 }
  0x98   :  { %v1485_v56 = vrot.slane %v1484_v21, 4  ;;  %v19392_v8 = vshrl.u32 %v11684_v52, 16  ;;  %v19391_v28 = vshll.u32 %v11684_v52, 16  ;;  %20079 = vst [vmem:[#allocation41_spill] sm:$0xff] %v11741_v55  ;;  %20080 = vst [vmem:[#allocation42_spill] sm:$0xff] %v11746_v41  ;;  %2517 = vrot.lane.b32.xlu0 %v11647_v27, %s10549_s21  ;;  %v10237_v30 = vld [vmem:[%s19320_s4 + $0x78] sm:$0xff]   ;;  %v2805_v21 = vsel %vm2803_vm11, %v2740_v45, %v11760_v38 }
  0x99   :  { %20077 = vst [vmem:[#allocation39_spill] sm:$0xff] %v11724_v6  ;;  %20078 = vst [vmem:[#allocation40_spill] sm:$0xff] %v11734_v0  ;;  %9808 = vmatprep.mubr.msk.bf16.mxu1 %vm2641_vm9, %v11724_v6  ;;  %v1490_v18 = vrot.slane %v1488_v13, 4  ;;  %v1495_v14 = vor.u32 %v1494_v59, %v1493_v34  ;;  %v11755_v29 = vld [vmem:[%s19316_s0 + $0xe0] sm:$0x3]  ;;  %v20084_v59 = vshll.u32 %v11695_v31, 16  ;;  %3429 = vmatmul.mubr.bf16.vlgmr.msra.gmra.mrb[0].mxu0 %v2805_v21 }
  0x9a   :  { %20081 = vst [vmem:[#allocation43_spill] sm:$0xff] %v11755_v29  ;;  %20082 = vst [vmem:[#allocation44_spill] sm:$0xff] %v11760_v38  ;;  %v1489_v33 = vsel %vm10743_vm8, %v1485_v56, %v1488_v13  ;;  %v1805_v34 = vrot.slane %v19392_v8, 5  ;;  %v1806_v37 = vrot.slane %v19391_v28, 6  ;;  %v20083_v13 = vshrl.u32 %v11695_v31, 16  ;;  %2371 = vrot.lane.b32.xlu1 %v11357_v46, %s10550_s22  ;;  %7305 = vmatpush1.bf16.msra.mxu1 %v10237_v30 }
  0x9b   :  { %v1496_v11 = vsel %vm10743_vm8, %v1490_v18, %v1495_v14  ;;  %v1810_v35 = vrot.slane %v20084_v59, 6  ;;  %v1814_v52 = vshrl.u32 %v11707_v16, 16  ;;  %v20086_v45 = vshll.u32 %v11707_v16, 16  ;;  %v2288_v21 = vpop.permute.xlu1 %2287  ;;  %7563 = vmatprep.subr.bf16.mxu1 %v20051_v44 }
  0x9c   :  { %v1809_v56 = vrot.slane %v20083_v13, 5  ;;  %v11782_v28 = vcombine.low %v1489_v33, %v1496_v11  ;;  %v1807_v8 = vor.u32 %v1806_v37, %v1805_v34  ;;  %v19398_v18 = vshrl.u32 %v11741_v55, 16  ;;  %2587 = vrot.lane.b32.xlu0 %v11649_v20, %s10550_s22 }
  0x9d   :  { %v1817_v38 = vrot.slane %v20086_v45, 6  ;;  %v19397_v14 = vshll.u32 %v11741_v55, 16  ;;  %v19401_v13 = vshll.u32 %v11746_v41, 16  ;;  %v1816_v33 = vrot.slane %v1814_v52, 5  ;;  %v11803_v45 = vpop.permute.xlu0 %2503 }
  0x9e   :  { %20085 = vst [vmem:[#allocation45_spill] sm:$0xff] %v11782_v28  ;;  %v1811_v22 = vor.u32 %v1810_v35, %v1809_v56  ;;  %9809 = vmatmul.mubr.msk.bf16.gmra.mrb[24].mxu1 %vm2641_vm9, %v11782_v28  ;;  %v1808_v11 = vrot.slane %v1807_v8, 4  ;;  %v19400_v59 = vshrl.u32 %v11746_v41, 16  ;;  %v2742_v34 = vsel %vm2738_vm10, %v11499_v49, %v2288_v21  ;;  %20087 = vst [vmem:[#allocation46_spill] sm:$0xff] %v11803_v45 }
  0x9f   :  { %v1903_v30 = vrot.slane %v19398_v18, 5  ;;  %v1904_v56 = vrot.slane %v19397_v14, 6  ;;  %4984 = vrot.lane.b32.xlu1 %v10826_v42, %s10548_s16  ;;  %v1818_v8 = vor.u32 %v1817_v38, %v1816_v33  ;;  %v1908_v21 = vrot.slane %v19401_v13, 6  ;;  %v11826_v38 = vpop.permute.xlu1 %2357  ;;  %v11837_v13 = vld [vmem:[%s19316_s0 + $0x118] sm:$0xf] }
  0xa0   :  { %v1813_v37 = vrot.slane %v1811_v22, 4  ;;  %v1812_v52 = vsel %vm10743_vm8, %v1808_v11, %v1811_v22  ;;  %v1907_v49 = vrot.slane %v19400_v59, 5  ;;  %v2999_v14 = vsel %vm2738_vm10, %v11722_v61, %v11803_v45  ;;  %v11822_v22 = vld [vmem:[%s19316_s0 + $0x114] sm:$0xf]  ;;  %5290 = vrot.lane.b32.xlu0 %v11734_v0, %s10548_s16  ;;  %20090 = vst [vmem:[#allocation48_spill] sm:$0xff] %v11826_v38  ;;  %20093 = vst [vmem:[#allocation49_spill] sm:$0xff] %v11837_v13 }
  0xa1   :  { %v1905_v18 = vor.u32 %v1904_v56, %v1903_v30  ;;  %v1912_v35 = vshrl.u32 %v11755_v29, 16  ;;  %v20088_v44 = vshll.u32 %v11755_v29, 16  ;;  %20089 = vst [vmem:[#allocation47_spill] sm:$0xff] %v11822_v22  ;;  %v20091_v30 = vshrl.u32 %v11346_v2, 16 }
  0xa2   :  { %v1819_v11 = vsel %vm10743_vm8, %v1813_v37, %v1818_v8  ;;  %v1909_v33 = vor.u32 %v1908_v21, %v1907_v49  ;;  %v20092_v59 = vshll.u32 %v11346_v2, 16  ;;  %v2808_v61 = vsel %vm2803_vm11, %v2742_v34, %v11826_v38  ;;  %v11846_v37 = vld [vmem:[%s19316_s0 + $0x11c] sm:$0x3]  ;;  %v11848_v8 = vpop.permute.xlu0 %2573 }
  0xa3   :  { %v1915_v42 = vrot.slane %v20088_v44, 6  ;;  %v430_v56 = vrot.slane %v20091_v30, 4  ;;  %v11841_v29 = vcombine.low %v1812_v52, %v1819_v11  ;;  %v1906_v41 = vrot.slane %v1905_v18, 4  ;;  %20095 = vst [vmem:[#allocation51_spill] sm:$0xff] %v11846_v37  ;;  %20096 = vst [vmem:[#allocation52_spill] sm:$0xff] %v11848_v8  ;;  %2449 = vrot.lane.b32.xlu1 %v11469_v47, %s10548_s16 }
  0xa4   :  { %v433_v44 = vrot.slane %v20092_v59, 5  ;;  %v1914_v55 = vrot.slane %v1912_v35, 5  ;;  %v1911_v59 = vrot.slane %v1909_v33, 4  ;;  %v20097_v21 = vshll.u32 %v11385_v32, 16  ;;  %5054 = vrot.lane.b32.xlu0 %v10682_v23, %s10549_s21 }
  0xa5   :  { %20094 = vst [vmem:[#allocation50_spill] sm:$0xff] %v11841_v29  ;;  %v20098_v34 = vshrl.u32 %v11385_v32, 16  ;;  %v3064_v18 = vsel %vm2803_vm11, %v2999_v14, %v11848_v8  ;;  %9812 = vmatprep.mubr.msk.bf16.mxu1 %vm2641_vm9, %v11841_v29  ;;  %v1910_v35 = vsel %vm10743_vm8, %v1906_v41, %v1909_v33  ;;  %v20099_v38 = vshll.u32 %v11398_v53, 16  ;;  %v11871_v8 = vld [vmem:[%s19316_s0 + $0x120] sm:$0xf] }
  0xa6   :  { %v434_v49 = vor.u32 %v433_v44, %v430_v56  ;;  %v439_v30 = vrot.slane %v20097_v21, 5  ;;  %v1916_v11 = vor.u32 %v1915_v42, %v1914_v55  ;;  %3436 = vmatprep.mubr.bf16.mxu0 %v3064_v18  ;;  %v2130_v56 = vpop.permute.xlu1 %2129  ;;  %v19411_v14 = vshll.u32 %v11822_v22, 16  ;;  %20100 = vst [vmem:[#allocation53_spill] sm:$0xff] %v11871_v8  ;;  %v2436_v33 = vpop.permute.xlu0 %2435  ;;  %v11894_v18 = vld [vmem:[%s19316_s0 + $0x128] sm:$0x3] }
  0xa7   :  { %v443_v52 = vrot.slane %v20098_v34, 4  ;;  %v449_v45 = vrot.slane %v20099_v38, 5  ;;  %v19413_v34 = vshrl.u32 %v11822_v22, 16  ;;  %3437 = vmatmul.mubr.bf16.gmra.mrb[4].mxu0 %v2808_v61  ;;  %v2650_v55 = vsel %vm2641_vm9, %v10737_v63, %v2130_v56  ;;  %v11882_v38 = vld [vmem:[%s19316_s0 + $0x124] sm:$0xf]  ;;  %2143 = vrot.lane.b32.xlu1 %v11456_v25, %s10548_s16  ;;  %20103 = vst [vmem:[#allocation56_spill] sm:$0xff] %v11894_v18 }
  0xa8   :  { %v435_v44 = vrot.slane %v434_v49, 4  ;;  %v1917_v41 = vsel %vm10743_vm8, %v1911_v59, %v1916_v11  ;;  %v19419_v23 = vshll.u32 %v11837_v13, 16  ;;  %v19412_v42 = vshrl.u32 %v11837_v13, 16  ;;  %20101 = vst [vmem:[#allocation54_spill] sm:$0xff] %v11882_v38  ;;  %5124 = vrot.lane.b32.xlu0 %v10778_v48, %s10550_s22 }
  0xa9   :  { %v444_v21 = vor.u32 %v443_v52, %v439_v30  ;;  %v11884_v49 = vcombine.low %v1910_v35, %v1917_v41  ;;  %v19420_v59 = vshll.u32 %v11846_v37, 16  ;;  %v11898_v11 = vsel %vm2641_vm9, %v10850_v12, %v2436_v33 }
  0xaa   :  { %v440_v61 = vsel %vm10710_vm5, %v435_v44, %v439_v30  ;;  %20104 = vst [vmem:[#allocation57_spill] sm:$0xff] %v11898_v11  ;;  %v1527_v35 = vrot.slane %v19413_v34, 5  ;;  %v1528_v56 = vrot.slane %v19411_v14, 6  ;;  %v1531_v30 = vrot.slane %v19412_v42, 5  ;;  %v2290_v44 = vpop.permute.xlu1 %2289 }
  0xab   :  { %20102 = vst [vmem:[#allocation55_spill] sm:$0xff] %v11884_v49  ;;  %v445_v52 = vrot.slane %v444_v21, 4  ;;  %9813 = vmatmul.mubr.msk.bf16.gmra.mrb[28].mxu1 %vm2641_vm9, %v11884_v49  ;;  %v1532_v41 = vrot.slane %v19419_v23, 6  ;;  %v1536_v33 = vshrl.u32 %v11846_v37, 16  ;;  %v1539_v14 = vrot.slane %v19420_v59, 6 }
  0xac   :  { %v11918_v42 = vsel %vm2738_vm10, %v2650_v55, %v2290_v44  ;;  %v1529_v49 = vor.u32 %v1528_v56, %v1527_v35  ;;  %v19425_v48 = vshrl.u32 %v11871_v8, 16 }
  0xad   :  { %v450_v21 = vsel %vm10710_vm5, %v445_v52, %v449_v45  ;;  %20105 = vst [vmem:[#allocation58_spill] sm:$0xff] %v11918_v42 }
  0xae   :  { %v11920_v34 = vcombine.low %v440_v61, %v450_v21 }
  0xb0   :  { %20106 = vst [vmem:[#allocation59_spill] sm:$0xff] %v11920_v34 }
  0xb1   :  { %16 = vsyncpa [#allocation3], 0  ;;  %v11923_v22 = vpop.permute.xlu0 %2505  ;;  %2303 = vrot.lane.b32.xlu1 %v11401_v7, %s10549_s21  ;;  %v1533_v45 = vor.u32 %v1532_v41, %v1531_v30  ;;  %v1538_v52 = vrot.slane %v1536_v33, 5  ;;  %v19426_v23 = vshll.u32 %v11871_v8, 16  ;;  %v1530_v61 = vrot.slane %v1529_v49, 4  ;;  %2519 = vrot.lane.b32.xlu0 %v11920_v34, %s10549_s21  ;;  %v11936_v44 = vpop.permute.xlu1 %2359 }
  0xb2   :  { %20107 = vst [vmem:[#allocation60_spill] sm:$0xff] %v11923_v22  ;;  %v3001_v55 = vsel %vm2738_vm10, %v11898_v11, %v11923_v22  ;;  %v19429_v35 = vshrl.u32 %v11882_v38, 16  ;;  %20108 = vst [vmem:[#allocation61_spill] sm:$0xff] %v11936_v44  ;;  %v1542_v41 = vrot.slane %v19425_v48, 5  ;;  %v20109_v56 = vshll.u32 %v11882_v38, 16 }
  0xb3   :  { %v1535_v30 = vrot.slane %v1533_v45, 4  ;;  %v1540_v21 = vor.u32 %v1539_v14, %v1538_v52  ;;  %v1543_v33 = vrot.slane %v19426_v23, 6  ;;  %v1534_v49 = vsel %vm10743_vm8, %v1530_v61, %v1533_v45 }
  0xb4   :  { %v1546_v59 = vrot.slane %v19429_v35, 5  ;;  %v1547_v11 = vrot.slane %v20109_v56, 6  ;;  %v1551_v7 = vshrl.u32 %v11894_v18, 16  ;;  %v20111_v48 = vshll.u32 %v11894_v18, 16 }
  0xb5   :  { %v11949_v37 = vpop.permute.xlu0 %2575  ;;  %v1541_v14 = vsel %vm10743_vm8, %v1535_v30, %v1540_v21  ;;  %v1544_v52 = vor.u32 %v1543_v33, %v1542_v41  ;;  %v9291_v8 = vrot.slane %v11346_v2, 9  ;;  %2373 = vrot.lane.b32.xlu1 %v11647_v27, %s10550_s22  ;;  %v11965_v30 = vld [vmem:[%s19316_s0 + $0x12c] sm:$0xf]  ;;  %v1112_v2 = vrot.slane %v11398_v53, 5  ;;  %v2132_v33 = vpop.permute.xlu1 %2131  ;;  %v10317_v53 = vld [vmem:[%s19316_s0 + $0x30] sm:$0xf] }
  0xb6   :  { %20110 = vst [vmem:[#allocation62_spill] sm:$0xff] %v11949_v37  ;;  %v1554_v23 = vrot.slane %v20111_v48, 6  ;;  %v11958_v45 = vcombine.low %v1534_v49, %v1541_v14  ;;  %v3067_v61 = vsel %vm2803_vm11, %v3001_v55, %v11949_v37  ;;  %v1548_v56 = vor.u32 %v1547_v11, %v1546_v59  ;;  %20113 = vst [vmem:[#allocation64_spill] sm:$0xff] %v11965_v30  ;;  %v10318_v55 = vld [vmem:[%s19316_s0 + $0x34] sm:$0xf] }
  0xb7   :  { %v1553_v35 = vrot.slane %v1551_v7, 5  ;;  %3444 = vmatprep.mubr.bf16.mxu0 %v3067_v61  ;;  %v1545_v21 = vrot.slane %v1544_v52, 4  ;;  %v1109_v48 = vrot.slane %v11385_v32, 5  ;;  %v2811_v41 = vsel %vm2803_vm11, %v11918_v42, %v11936_v44  ;;  %v11975_v7 = vld [vmem:[%s19316_s0 + $0x130] sm:$0xf] }
  0xb8   :  { %20112 = vst [vmem:[#allocation63_spill] sm:$0xff] %v11958_v45  ;;  %20114 = vst [vmem:[#allocation65_spill] sm:$0xff] %v11975_v7  ;;  %9816 = vmatprep.mubr.msk.bf16.mxu1 %vm2641_vm9, %v11958_v45  ;;  %v1550_v59 = vrot.slane %v1548_v56, 4  ;;  %3445 = vmatmul.mubr.bf16.gmra.mrb[8].mxu0 %v2811_v41  ;;  %v2653_v32 = vsel %vm2641_vm9, %v10846_v10, %v2132_v33  ;;  %v11987_v49 = vcombine.low %v10317_v53, %v10318_v55  ;;  %v11992_v14 = vld [vmem:[%s19316_s0 + $0x134] sm:$0x3]  ;;  %vm4497_vm12 = vcmask 1041408  }
  0xb9   :  { %v1555_v11 = vor.u32 %v1554_v23, %v1553_v35  ;;  %20116 = vst [vmem:[#allocation67_spill] sm:$0xff] %v11992_v14  ;;  %v1549_v23 = vsel %vm10743_vm8, %v1545_v21, %v1548_v56  ;;  %v1110_v35 = vsel %vm10635_vm2, %v9291_v8, %v1109_v48  ;;  %v1111_v52 = vrot.slane %v1109_v48, 4  ;;  %v2438_v61 = vpop.permute.xlu0 %2437  ;;  %4986 = vrot.lane.b32.xlu1 %v10737_v63, %s10548_s16  ;;  %v2292_v48 = vpop.permute.xlu1 %2291 }
  0xba   :  { %20115 = vst [vmem:[#allocation66_spill] sm:$0xff] %v11987_v49  ;;  %v12005_v53 = vsel %vm2641_vm9, %v10896_v15, %v2438_v61  ;;  %v19430_v55 = vshll.u32 %v11965_v30, 16  ;;  %v19432_v56 = vshll.u32 %v11975_v7, 16  ;;  %v19431_v63 = vshrl.u32 %v11975_v7, 16 }
  0xbb   :  { %v1556_v33 = vsel %vm10743_vm8, %v1550_v59, %v1555_v11  ;;  %20117 = vst [vmem:[#allocation68_spill] sm:$0xff] %v12005_v53  ;;  %v1113_v8 = vsel %vm10635_vm2, %v1111_v52, %v1112_v2  ;;  %v12018_v59 = vld [vmem:[%s19316_s0 + $0x138] sm:$0xf]  ;;  %v12023_v61 = vsel %vm2738_vm10, %v2653_v32, %v2292_v48  ;;  %v12032_v52 = vld [vmem:[%s19316_s0 + $0x13c] sm:$0xf]  ;;  %v20124_v48 = vshll.u32 %v11992_v14, 16 }
  0xbc   :  { %v12009_v21 = vcombine.low %v1549_v23, %v1556_v33  ;;  %20119 = vst [vmem:[#allocation70_spill] sm:$0xff] %v12018_v59  ;;  %v12020_v11 = vcombine.low %v1110_v35, %v1113_v8  ;;  %20120 = vst [vmem:[#allocation71_spill] sm:$0xff] %v12023_v61  ;;  %v20121_v23 = vshrl.u32 %v11965_v30, 16  ;;  %v1558_v2 = vrot.slane %v19430_v55, 6  ;;  %v12048_v55 = vld [vmem:[%s19316_s0 + $0x140] sm:$0x3] }
  0xbd   :  { %20122 = vst [vmem:[#allocation72_spill] sm:$0xff] %v12032_v52  ;;  %v12036_v41 = vpop.permute.xlu0 %2507  ;;  %v1561_v32 = vrot.slane %v19431_v63, 5  ;;  %v1562_v35 = vrot.slane %v19432_v56, 6  ;;  %v1566_v8 = vshrl.u32 %v11992_v14, 16  ;;  %20125 = vst [vmem:[#allocation74_spill] sm:$0xff] %v12048_v55  ;;  %2451 = vrot.lane.b32.xlu1 %v11527_v26, %s10548_s16  ;;  %v19451_v44 = vshrl.u32 %v12018_v59, 16 }
  0xbe   :  { %20118 = vst [vmem:[#allocation69_spill] sm:$0xff] %v12009_v21  ;;  %v1557_v33 = vrot.slane %v20121_v23, 5  ;;  %9817 = vmatmul.mubr.msk.bf16.gmra.mrb[32].mxu1 %vm2641_vm9, %v12009_v21  ;;  %20123 = vst [vmem:[#allocation73_spill] sm:$0xff] %v12036_v41  ;;  %v1569_v23 = vrot.slane %v20124_v48, 6  ;;  %2589 = vrot.lane.b32.xlu0 %v12020_v11, %s10550_s22  ;;  %v3003_v63 = vsel %vm2738_vm10, %v12005_v53, %v12036_v41  ;;  %v19448_v48 = vshll.u32 %v12018_v59, 16  ;;  %v12061_v21 = vpop.permute.xlu1 %2361 }
  0xbf   :  { %v1563_v42 = vor.u32 %v1562_v35, %v1561_v32  ;;  %v1568_v14 = vrot.slane %v1566_v8, 5  ;;  %v19450_v7 = vshll.u32 %v12032_v52, 16  ;;  %v19449_v30 = vshrl.u32 %v12032_v52, 16  ;;  %20126 = vst [vmem:[#allocation75_spill] sm:$0xff] %v12061_v21 }
  0xc0   :  { %v1559_v56 = vor.u32 %v1558_v2, %v1557_v33  ;;  %v19452_v38 = vshll.u32 %v12048_v55, 16  ;;  %v1572_v45 = vrot.slane %v19451_v44, 5  ;;  %v1573_v33 = vrot.slane %v19448_v48, 6 }
  0xc1   :  { %v1565_v2 = vrot.slane %v1563_v42, 4  ;;  %v1570_v53 = vor.u32 %v1569_v23, %v1568_v14  ;;  %v1576_v32 = vrot.slane %v19449_v30, 5  ;;  %v1577_v35 = vrot.slane %v19450_v7, 6  ;;  %v12072_v8 = vpop.permute.xlu0 %2577  ;;  %2145 = vrot.lane.b32.xlu1 %v11649_v20, %s10548_s16  ;;  %v12086_v30 = vld [vmem:[%s19316_s0 + $0x144] sm:$0xf] }
  0xc2   :  { %v1560_v18 = vrot.slane %v1559_v56, 4  ;;  %20127 = vst [vmem:[#allocation76_spill] sm:$0xff] %v12072_v8  ;;  %5292 = vrot.lane.b32.xlu0 %v11987_v49, %s10548_s16  ;;  %v1574_v48 = vor.u32 %v1573_v33, %v1572_v45  ;;  %v1581_v14 = vshrl.u32 %v12048_v55, 16  ;;  %v1584_v23 = vrot.slane %v19452_v38, 6  ;;  %20128 = vst [vmem:[#allocation77_spill] sm:$0xff] %v12086_v30  ;;  %v2134_v33 = vpop.permute.xlu1 %2133 }
  0xc3   :  { %v12091_v7 = vld [vmem:[%s19316_s0 + $0x148] sm:$0xf]  ;;  %v1571_v44 = vsel %vm10743_vm8, %v1565_v2, %v1570_v53  ;;  %v2814_v45 = vsel %vm2803_vm11, %v12023_v61, %v12061_v21  ;;  %v12104_v59 = vsel %vm2641_vm9, %v10894_v4, %v2134_v33  ;;  %v12109_v53 = vld [vmem:[%s19316_s0 + $0x14c] sm:$0x3]  ;;  %vm4498_vm13 = vcmask 1045508  }
  0xc4   :  { %v1564_v56 = vsel %vm10743_vm8, %v1560_v18, %v1563_v42  ;;  %20129 = vst [vmem:[#allocation78_spill] sm:$0xff] %v12091_v7  ;;  %v1578_v42 = vor.u32 %v1577_v35, %v1576_v32  ;;  %v3070_v18 = vsel %vm2803_vm11, %v3003_v63, %v12072_v8  ;;  %v1575_v55 = vrot.slane %v1574_v48, 4  ;;  %20131 = vst [vmem:[#allocation80_spill] sm:$0xff] %v12109_v53  ;;  %v12117_v35 = vld [vmem:[%s19316_s0 + $0x150] sm:$0xf] }
  0xc5   :  { %v12100_v38 = vcombine.low %v1564_v56, %v1571_v44  ;;  %v1583_v52 = vrot.slane %v1581_v14, 5  ;;  %3452 = vmatprep.mubr.bf16.mxu0 %v3070_v18  ;;  %v2440_v2 = vpop.permute.xlu0 %2439  ;;  %v19459_v32 = vshrl.u32 %v12086_v30, 16  ;;  %v19460_v44 = vshll.u32 %v12086_v30, 16  ;;  %20132 = vst [vmem:[#allocation81_spill] sm:$0xff] %v12117_v35  ;;  %2305 = vrot.lane.b32.xlu1 %v11469_v47, %s10549_s21  ;;  %vm12765_vm14 = vmor %vm4497_vm12, %vm4498_vm13 }
  0xc6   :  { %v1580_v63 = vrot.slane %v1578_v42, 4  ;;  %3453 = vmatmul.mubr.bf16.gmra.mrb[12].mxu0 %v2814_v45  ;;  %v1579_v56 = vsel %vm10743_vm8, %v1575_v55, %v1578_v42  ;;  %5056 = vrot.lane.b32.xlu0 %v10739_v3, %s10549_s21  ;;  %v12129_v18 = vsel %vm2641_vm9, %v10934_v1, %v2440_v2  ;;  %v19466_v45 = vshrl.u32 %v12091_v7, 16  ;;  %v12142_v3 = vld [vmem:[%s19316_s0 + $0x154] sm:$0xf] }
  0xc7   :  { %20130 = vst [vmem:[#allocation79_spill] sm:$0xff] %v12100_v38  ;;  %9820 = vmatprep.mubr.msk.bf16.mxu1 %vm2641_vm9, %v12100_v38  ;;  %v1585_v14 = vor.u32 %v1584_v23, %v1583_v52  ;;  %20133 = vst [vmem:[#allocation82_spill] sm:$0xff] %v12129_v18  ;;  %v1587_v48 = vrot.slane %v19459_v32, 5  ;;  %v1588_v21 = vrot.slane %v19460_v44, 6  ;;  %v20134_v55 = vshll.u32 %v12091_v7, 16  ;;  %v2294_v23 = vpop.permute.xlu1 %2293 }
  0xc8   :  { %20135 = vst [vmem:[#allocation83_spill] sm:$0xff] %v12142_v3  ;;  %v1591_v2 = vrot.slane %v19466_v45, 5  ;;  %v1596_v32 = vshrl.u32 %v12109_v53, 16  ;;  %v12152_v44 = vld [vmem:[%s19316_s0 + $0x158] sm:$0x3]  ;;  %v20138_v30 = vshll.u32 %v12109_v53, 16 }
  0xc9   :  { %v1592_v52 = vrot.slane %v20134_v55, 6  ;;  %v1586_v42 = vsel %vm10743_vm8, %v1580_v63, %v1585_v14  ;;  %20136 = vst [vmem:[#allocation84_spill] sm:$0xff] %v12152_v44  ;;  %v1589_v61 = vor.u32 %v1588_v21, %v1587_v48  ;;  %v19477_v63 = vshll.u32 %v12117_v35, 16  ;;  %v12160_v14 = vpop.permute.xlu0 %2509  ;;  %2375 = vrot.lane.b32.xlu1 %v11920_v34, %s10550_s22 }
  0xca   :  { %v12155_v33 = vcombine.low %v1579_v56, %v1586_v42  ;;  %v1599_v47 = vrot.slane %v20138_v30, 6  ;;  %20139 = vst [vmem:[#allocation86_spill] sm:$0xff] %v12160_v14  ;;  %5126 = vrot.lane.b32.xlu0 %v10811_v19, %s10550_s22  ;;  %v1598_v7 = vrot.slane %v1596_v32, 5  ;;  %v19479_v55 = vshll.u32 %v12142_v3, 16 }
  0xcb   :  { %v1593_v45 = vor.u32 %v1592_v52, %v1591_v2  ;;  %v19478_v56 = vshrl.u32 %v12142_v3, 16  ;;  %v1590_v30 = vrot.slane %v1589_v61, 4  ;;  %v20140_v48 = vshrl.u32 %v12117_v35, 16  ;;  %v12175_v38 = vpop.permute.xlu1 %2363 }
  0xcc   :  { %20137 = vst [vmem:[#allocation85_spill] sm:$0xff] %v12155_v33  ;;  %9821 = vmatmul.mubr.msk.bf16.gmra.mrb[36].mxu1 %vm2641_vm9, %v12155_v33  ;;  %v1603_v53 = vrot.slane %v19477_v63, 6  ;;  %20141 = vst [vmem:[#allocation87_spill] sm:$0xff] %v12175_v38  ;;  %v1600_v32 = vor.u32 %v1599_v47, %v1598_v7  ;;  %v1607_v19 = vrot.slane %v19479_v55, 6  ;;  %v1611_v33 = vshrl.u32 %v12152_v44, 16 }
  0xcd   :  { %v1602_v42 = vrot.slane %v20140_v48, 5  ;;  %v1595_v52 = vrot.slane %v1593_v45, 4  ;;  %v1606_v2 = vrot.slane %v19478_v56, 5  ;;  %v1594_v61 = vsel %vm10743_vm8, %v1590_v30, %v1593_v45  ;;  %v12186_v63 = vpop.permute.xlu0 %2579  ;;  %4988 = vrot.lane.b32.xlu1 %v10846_v10, %s10548_s16 }
  0xce   :  { %v20142_v48 = vshll.u32 %v12152_v44, 16  ;;  %20143 = vst [vmem:[#allocation88_spill] sm:$0xff] %v12186_v63  ;;  %v20144_v56 = vshrl.u32 %v11419_v17, 16  ;;  %v20145_v45 = vshll.u32 %v11419_v17, 16  ;;  %v1613_v44 = vrot.slane %v1611_v33, 5 }
  0xcf   :  { %v1604_v21 = vor.u32 %v1603_v53, %v1602_v42  ;;  %v1601_v47 = vsel %vm10743_vm8, %v1595_v52, %v1600_v32  ;;  %v1608_v7 = vor.u32 %v1607_v19, %v1606_v2  ;;  %v12200_v8 = vpop.permute.xlu1 %2135  ;;  %v20148_v52 = vshrl.u32 %v11432_v57, 16  ;;  %v12209_v17 = vld [vmem:[%s19316_s0 + $0x15c] sm:$0xf] }
  0xd0   :  { %v1614_v35 = vrot.slane %v20142_v48, 6  ;;  %v454_v55 = vrot.slane %v20144_v56, 4  ;;  %v457_v53 = vrot.slane %v20145_v45, 5  ;;  %v12196_v30 = vcombine.low %v1594_v61, %v1601_v47  ;;  %20150 = vst [vmem:[#allocation90_spill] sm:$0xff] %v12209_v17  ;;  %v10321_v45 = vld [vmem:[%s19316_s0 + $0xa4] sm:$0x3] }
  0xd1   :  { %v1605_v42 = vrot.slane %v1604_v21, 4  ;;  %v20147_v48 = vshll.u32 %v11432_v57, 16  ;;  %v1610_v10 = vrot.slane %v1608_v7, 4  ;;  %v467_v19 = vrot.slane %v20148_v52, 4  ;;  %v12227_v2 = vpop.permute.xlu0 %2441  ;;  %2453 = vrot.lane.b32.xlu1 %v11566_v50, %s10548_s16 }
  0xd2   :  { %20146 = vst [vmem:[#allocation89_spill] sm:$0xff] %v12196_v30  ;;  %v458_v41 = vor.u32 %v457_v53, %v454_v55  ;;  %v20149_v32 = vshll.u32 %v11443_v62, 16  ;;  %9824 = vmatprep.mubr.msk.bf16.mxu1 %vm2641_vm9, %v12196_v30  ;;  %v1615_v21 = vor.u32 %v1614_v35, %v1613_v44  ;;  %v3005_v57 = vsel %vm2738_vm10, %v12129_v18, %v12160_v14  ;;  %v12225_v55 = vld [vmem:[%s19316_s0 + $0x160] sm:$0xf]  ;;  %v10319_v44 = vld [vmem:[%s19316_s0 + $0x9c] sm:$0xf] }
  0xd3   :  { %v463_v3 = vrot.slane %v20147_v48, 5  ;;  %v1609_v33 = vsel %vm10743_vm8, %v1605_v42, %v1608_v7  ;;  %v12220_v62 = vsel %vm2738_vm10, %v12104_v59, %v2294_v23  ;;  %20152 = vst [vmem:[#allocation92_spill] sm:$0xff] %v12225_v55  ;;  %v9292_v35 = vrot.slane %v10319_v44, 9  ;;  %v10320_v7 = vld [vmem:[%s19316_s0 + $0xa0] sm:$0xf]  ;;  %v12249_v52 = vpop.permute.xlu1 %2295 }
  0xd4   :  { %v473_v56 = vrot.slane %v20149_v32, 5  ;;  %20151 = vst [vmem:[#allocation91_spill] sm:$0xff] %v12220_v62  ;;  %v459_v61 = vrot.slane %v458_v41, 4  ;;  %v1116_v59 = vrot.slane %v10320_v7, 5  ;;  %v12238_v23 = vld [vmem:[%s19316_s0 + $0x164] sm:$0x3]  ;;  %v1616_v41 = vsel %vm10743_vm8, %v1610_v10, %v1615_v21 }
  0xd5   :  { %v468_v47 = vor.u32 %v467_v19, %v463_v3  ;;  %20153 = vst [vmem:[#allocation93_spill] sm:$0xff] %v12238_v23  ;;  %v1119_v53 = vrot.slane %v10321_v45, 5  ;;  %v19486_v48 = vshll.u32 %v12209_v17, 16  ;;  %v12251_v19 = vcombine.low %v1609_v33, %v1616_v41  ;;  %v12260_v18 = vpop.permute.xlu0 %2511  ;;  %2147 = vrot.lane.b32.xlu1 %v12020_v11, %s10548_s16 }
  0xd6   :  { %v464_v32 = vsel %vm10710_vm5, %v459_v61, %v463_v3  ;;  %v1117_v10 = vsel %vm10635_vm2, %v9292_v35, %v1116_v59  ;;  %v1118_v21 = vrot.slane %v1116_v59, 4  ;;  %v19492_v7 = vshll.u32 %v12225_v55, 16  ;;  %20155 = vst [vmem:[#allocation95_spill] sm:$0xff] %v12260_v18  ;;  %v12274_v59 = vld [vmem:[%s19316_s0 + $0x168] sm:$0xf] }
  0xd7   :  { %20154 = vst [vmem:[#allocation94_spill] sm:$0xff] %v12251_v19  ;;  %v469_v44 = vrot.slane %v468_v47, 4  ;;  %v19491_v45 = vshrl.u32 %v12225_v55, 16  ;;  %9825 = vmatmul.mubr.msk.bf16.gmra.mrb[40].mxu1 %vm2641_vm9, %v12251_v19  ;;  %v20156_v3 = vshrl.u32 %v12209_v17, 16  ;;  %v1618_v47 = vrot.slane %v19486_v48, 6  ;;  %20157 = vst [vmem:[#allocation96_spill] sm:$0xff] %v12274_v59  ;;  %v12291_v42 = vpop.permute.xlu1 %2365 }
  0xd8   :  { %v1626_v35 = vshrl.u32 %v12238_v23, 16  ;;  %v12289_v48 = vld [vmem:[%s19316_s0 + $0x16c] sm:$0xf]  ;;  %20160 = vst [vmem:[#allocation99_spill] sm:$0xff] %v12291_v42  ;;  %v20162_v19 = vshll.u32 %v12238_v23, 16  ;;  %vm10553_vm15 = vmmov 0  }
  0xd9   :  { %v474_v33 = vsel %vm10710_vm5, %v469_v44, %v473_v56  ;;  %v1617_v61 = vrot.slane %v20156_v3, 5  ;;  %v1120_v56 = vsel %vm10635_vm2, %v1118_v21, %v1119_v53  ;;  %v1621_v44 = vrot.slane %v19491_v45, 5  ;;  %20159 = vst [vmem:[#allocation98_spill] sm:$0xff] %v12289_v48  ;;  %v12300_v21 = vld [vmem:[%s19316_s0 + $0x170] sm:$0x3]  ;;  %2307 = vrot.lane.b32.xlu1 %v11527_v26, %s10549_s21 }
  0xda   :  { %v12278_v41 = vcombine.low %v464_v32, %v474_v33  ;;  %v1622_v3 = vrot.slane %v19492_v7, 6  ;;  %v12293_v17 = vcombine.low %v1117_v10, %v1120_v56  ;;  %v1628_v33 = vrot.slane %v1626_v35, 5  ;;  %20163 = vst [vmem:[#allocation101_spill] sm:$0xff] %v12300_v21 }
  0xdb   :  { %v1619_v32 = vor.u32 %v1618_v47, %v1617_v61  ;;  %v1629_v53 = vrot.slane %v20162_v19, 6  ;;  %v3073_v7 = vsel %vm2803_vm11, %v3005_v57, %v12186_v63  ;;  %v19498_v10 = vshrl.u32 %v12274_v59, 16  ;;  %v12308_v47 = vpop.permute.xlu0 %2581  ;;  %v12319_v30 = vpop.permute.xlu1 %2137 }
  0xdc   :  { %20158 = vst [vmem:[#allocation97_spill] sm:$0xff] %v12278_v41  ;;  %20161 = vst [vmem:[#allocation100_spill] sm:$0xff] %v12293_v17  ;;  %2521 = vrot.lane.b32.xlu0 %v12278_v41, %s10549_s21  ;;  %v1623_v45 = vor.u32 %v1622_v3, %v1621_v44  ;;  %v19499_v61 = vshll.u32 %v12274_v59, 16  ;;  %3460 = vmatprep.mubr.bf16.mxu0 %v3073_v7  ;;  %v19501_v56 = vshll.u32 %v12289_v48, 16  ;;  %v19500_v23 = vshrl.u32 %v12289_v48, 16 }
  0xdd   :  { %20164 = vst [vmem:[#allocation102_spill] sm:$0xff] %v12308_v47  ;;  %v1620_v35 = vrot.slane %v1619_v32, 4  ;;  %v1630_v19 = vor.u32 %v1629_v53, %v1628_v33  ;;  %v19509_v3 = vshll.u32 %v12300_v21, 16  ;;  %v1632_v57 = vrot.slane %v19498_v10, 5  ;;  %v12331_v10 = vld [vmem:[%s19316_s0 + $0x174] sm:$0xf]  ;;  %2377 = vrot.lane.b32.xlu1 %v12278_v41, %s10550_s22 }
  0xde   :  { %v1625_v44 = vrot.slane %v1623_v45, 4  ;;  %v1633_v55 = vrot.slane %v19499_v61, 6  ;;  %v1636_v32 = vrot.slane %v19500_v23, 5  ;;  %v1637_v33 = vrot.slane %v19501_v56, 6  ;;  %20165 = vst [vmem:[#allocation103_spill] sm:$0xff] %v12331_v10 }
  0xdf   :  { %v1624_v7 = vsel %vm10743_vm8, %v1620_v35, %v1623_v45  ;;  %v1641_v53 = vshrl.u32 %v12300_v21, 16  ;;  %v1644_v35 = vrot.slane %v19509_v3, 6  ;;  %v10322_v23 = vld [vmem:[%s19316_s0 + $0x3c] sm:$0xf]  ;;  %v10323_v56 = vld [vmem:[%s19316_s0 + $0x40] sm:$0xf]  ;;  %v12347_v59 = vpop.permute.xlu0 %2443 }
  0xe0   :  { %2591 = vrot.lane.b32.xlu0 %v12293_v17, %s10550_s22  ;;  %v1631_v61 = vsel %vm10743_vm8, %v1625_v44, %v1630_v19  ;;  %v1634_v45 = vor.u32 %v1633_v55, %v1632_v57  ;;  %v12345_v48 = vcombine.low %v10322_v23, %v10323_v56  ;;  %v1638_v63 = vor.u32 %v1637_v33, %v1636_v32  ;;  %v12357_v44 = vld [vmem:[%s19316_s0 + $0x178] sm:$0xf]  ;;  %v12372_v57 = vld [vmem:[%s19316_s0 + $0x17c] sm:$0x3]  ;;  %v12375_v32 = vpop.permute.xlu1 %2297  ;;  %v12409_v3 = vld [vmem:[%s19316_s0 + $0x184] sm:$0xf] }
  0xe1   :  { %v12349_v26 = vcombine.low %v1624_v7, %v1631_v61  ;;  %v1643_v19 = vrot.slane %v1641_v53, 5  ;;  %v2817_v55 = vsel %vm2803_vm11, %v12220_v62, %v12175_v38  ;;  %20168 = vst [vmem:[#allocation106_spill] sm:$0xff] %v12357_v44  ;;  %v12364_v61 = vsel %vm2641_vm9, %v10988_v36, %v12227_v2  ;;  %20170 = vst [vmem:[#allocation108_spill] sm:$0xff] %v12372_v57  ;;  %v12424_v62 = vld [vmem:[%s19316_s0 + $0x188] sm:$0x3] }
  0xe2   :  { %20166 = vst [vmem:[#allocation104_spill] sm:$0xff] %v12345_v48  ;;  %v1635_v23 = vrot.slane %v1634_v45, 4  ;;  %3461 = vmatmul.mubr.bf16.gmra.mrb[16].mxu0 %v2817_v55  ;;  %20169 = vst [vmem:[#allocation107_spill] sm:$0xff] %v12364_v61  ;;  %v2659_v56 = vsel %vm2641_vm9, %v10942_v24, %v12200_v8  ;;  %v1640_v33 = vrot.slane %v1638_v63, 4  ;;  %v3007_v2 = vsel %vm2738_vm10, %v12364_v61, %v12260_v18 }
  0xe3   :  { %20167 = vst [vmem:[#allocation105_spill] sm:$0xff] %v12349_v26  ;;  %9828 = vmatprep.mubr.msk.bf16.mxu1 %vm2641_vm9, %v12349_v26  ;;  %v1645_v53 = vor.u32 %v1644_v35, %v1643_v19  ;;  %v12384_v8 = vsel %vm2738_vm10, %v2659_v56, %v12249_v52  ;;  %v12396_v19 = vld [vmem:[%s19316_s0 + $0x180] sm:$0xf]  ;;  %v12398_v7 = vpop.permute.xlu0 %2513  ;;  %v1656_v55 = vshrl.u32 %v12372_v57, 16  ;;  %20175 = vst [vmem:[#allocation112_spill] sm:$0xff] %v12409_v3  ;;  %4990 = vrot.lane.b32.xlu1 %v10894_v4, %s10548_s16  ;;  %vm8902_vm0 = vcmask 1040384  }
  0xe4   :  { %20171 = vst [vmem:[#allocation109_spill] sm:$0xff] %v12384_v8  ;;  %v1639_v45 = vsel %vm10743_vm8, %v1635_v23, %v1638_v63  ;;  %5294 = vrot.lane.b32.xlu0 %v12345_v48, %s10548_s16  ;;  %20172 = vst [vmem:[#allocation110_spill] sm:$0xff] %v12396_v19  ;;  %v20174_v23 = vshrl.u32 %v12331_v10, 16  ;;  %v20177_v38 = vshll.u32 %v12331_v10, 16  ;;  %v12426_v21 = vpop.permute.xlu1 %2367  ;;  %v20182_v4 = vshll.u32 %v12372_v57, 16 }
  0xe5   :  { %20173 = vst [vmem:[#allocation111_spill] sm:$0xff] %v12398_v7  ;;  %v1646_v52 = vsel %vm10743_vm8, %v1640_v33, %v1645_v53  ;;  %v20178_v53 = vshrl.u32 %v12357_v44, 16  ;;  %20180 = vst [vmem:[#allocation114_spill] sm:$0xff] %v12424_v62  ;;  %v1658_v26 = vrot.slane %v1656_v55, 5  ;;  %v19525_v10 = vshrl.u32 %v12409_v3, 16 }
  0xe6   :  { %v1647_v56 = vrot.slane %v20174_v23, 5  ;;  %v12413_v35 = vcombine.low %v1639_v45, %v1646_v52  ;;  %v1648_v33 = vrot.slane %v20177_v38, 6  ;;  %v20179_v23 = vshll.u32 %v12357_v44, 16  ;;  %20181 = vst [vmem:[#allocation115_spill] sm:$0xff] %v12426_v21 }
  0xe7   :  { %v1651_v63 = vrot.slane %v20178_v53, 5  ;;  %v1659_v45 = vrot.slane %v20182_v4, 6  ;;  %v19524_v52 = vshrl.u32 %v12396_v19, 16  ;;  %v19528_v44 = vshll.u32 %v12409_v3, 16  ;;  %v12438_v55 = vpop.permute.xlu0 %2583  ;;  %2455 = vrot.lane.b32.xlu1 %v11619_v54, %s10548_s16 }
  0xe8   :  { %20176 = vst [vmem:[#allocation113_spill] sm:$0xff] %v12413_v35  ;;  %v1652_v61 = vrot.slane %v20179_v23, 6  ;;  %9829 = vmatmul.mubr.msk.bf16.gmra.mrb[44].mxu1 %vm2641_vm9, %v12413_v35  ;;  %5058 = vrot.lane.b32.xlu0 %v10850_v12, %s10549_s21  ;;  %v1649_v53 = vor.u32 %v1648_v33, %v1647_v56  ;;  %20183 = vst [vmem:[#allocation116_spill] sm:$0xff] %v12438_v55  ;;  %v19529_v4 = vshll.u32 %v12424_v62, 16  ;;  %v20184_v18 = vshll.u32 %v12396_v19, 16  ;;  %v20564_v9 = vld [vmem:[#allocation108_spill] sm:$0xff] }
  0xe9   :  { %v1660_v57 = vor.u32 %v1659_v45, %v1658_v26  ;;  %v1662_v38 = vrot.slane %v19524_v52, 5  ;;  %v1667_v56 = vrot.slane %v19528_v44, 6  ;;  %v12451_v26 = vpop.permute.xlu1 %4980  ;;  %v1671_v45 = vshrl.u32 %v12424_v62, 16 }
  0xea   :  { %v1653_v23 = vor.u32 %v1652_v61, %v1651_v63  ;;  %v1663_v35 = vrot.slane %v20184_v18, 6  ;;  %v1650_v12 = vrot.slane %v1649_v53, 4  ;;  %v1666_v63 = vrot.slane %v19525_v10, 5 }
  0xeb   :  { %v1674_v52 = vrot.slane %v19529_v4, 6  ;;  %v3076_v18 = vsel %vm2803_vm11, %v3007_v2, %v12308_v47  ;;  %v12466_v44 = vpop.permute.xlu0 %5286  ;;  %v1673_v2 = vrot.slane %v1671_v45, 5  ;;  %v20187_v3 = vshll.u32 %v11467_v60, 16  ;;  %2149 = vrot.lane.b32.xlu1 %v12293_v17, %s10548_s16 }
  0xec   :  { %v1655_v61 = vrot.slane %v1653_v23, 4  ;;  %v1664_v33 = vor.u32 %v1663_v35, %v1662_v38  ;;  %v1654_v53 = vsel %vm10743_vm8, %v1650_v12, %v1653_v23  ;;  %v1668_v19 = vor.u32 %v1667_v56, %v1666_v63  ;;  %5128 = vrot.lane.b32.xlu0 %v10866_v39, %s10550_s22  ;;  %3468 = vmatprep.mubr.bf16.mxu0 %v3076_v18 }
  0xed   :  { %v20185_v35 = vshrl.u32 %v11467_v60, 16  ;;  %v481_v23 = vrot.slane %v20187_v3, 5  ;;  %v12488_v60 = vld [vmem:[%s19316_s0 + $0x190] sm:$0xf]  ;;  %v12490_v3 = vpop.permute.xlu1 %5050  ;;  %vm8998_vm1 = vcmask 130048  }
  0xee   :  { %v1661_v10 = vsel %vm10743_vm8, %v1655_v61, %v1660_v57  ;;  %v1665_v62 = vrot.slane %v1664_v33, 4  ;;  %v12475_v57 = vld [vmem:[%s19316_s0 + $0x18c] sm:$0xf]  ;;  %v1670_v12 = vrot.slane %v1668_v19, 4  ;;  %v20189_v61 = vshll.u32 %v11485_v51, 16 }
  0xef   :  { %v478_v38 = vrot.slane %v20185_v35, 4  ;;  %v12468_v4 = vcombine.low %v1654_v53, %v1661_v10  ;;  %20188 = vst [vmem:[#allocation118_spill] sm:$0xff] %v12475_v57  ;;  %v20190_v10 = vshrl.u32 %v11485_v51, 16  ;;  %v20191_v33 = vld [vmem:[#allocation26_spill] sm:$0xff]  ;;  %v1675_v35 = vor.u32 %v1674_v52, %v1673_v2  ;;  %2309 = vrot.lane.b32.xlu1 %v11566_v50, %s10549_s21  ;;  %v12545_v52 = vld [vmem:[%s19316_s0 + $0x19c] sm:$0xf] }
  0xf0   :  { %v487_v63 = vrot.slane %v20189_v61, 5  ;;  %v20192_v45 = vshll.u32 %v20191_v33, 16  ;;  %20193 = vst [vmem:[#allocation26_spill] sm:$0xff] %v12488_v60  ;;  %v1669_v53 = vsel %vm10743_vm8, %v1665_v62, %v1668_v19  ;;  %v2820_v51 = vsel %vm2803_vm11, %v12384_v8, %v12291_v42  ;;  %v20197_v62 = vld [vmem:[#allocation16_spill] sm:$0xff]  ;;  %20202 = vst [vmem:[#allocation122_spill] sm:$0xff] %v12545_v52 }
  0xf1   :  { %20186 = vst [vmem:[#allocation117_spill] sm:$0xff] %v12468_v4  ;;  %v491_v56 = vrot.slane %v20190_v10, 4  ;;  %9832 = vmatprep.mubr.msk.bf16.mxu1 %vm2641_vm9, %v12468_v4  ;;  %v482_v61 = vor.u32 %v481_v23, %v478_v38  ;;  %v12502_v10 = vld [vmem:[%s19316_s0 + $0x194] sm:$0x3]  ;;  %3469 = vmatmul.mubr.bf16.gmra.mrb[20].mxu0 %v2820_v51  ;;  %v12512_v19 = vsel %vm2641_vm9, %v20197_v62, %v12319_v30  ;;  %v12515_v38 = vpop.permute.xlu0 %5350  ;;  %v19545_v30 = vshrl.u32 %v12488_v60, 16 }
  0xf2   :  { %v497_v18 = vrot.slane %v20192_v45, 5  ;;  %20194 = vst [vmem:[#allocation119_spill] sm:$0xff] %v12502_v10  ;;  %v20195_v45 = vld [vmem:[#allocation18_spill] sm:$0xff]  ;;  %v1676_v2 = vsel %vm10743_vm8, %v1670_v12, %v1675_v35  ;;  %v12530_v8 = vld [vmem:[%s19316_s0 + $0x198] sm:$0xf]  ;;  %v12532_v12 = vpop.permute.xlu1 %2445  ;;  %v19558_v47 = vshll.u32 %v12545_v52, 16 }
  0xf3   :  { %v492_v33 = vor.u32 %v491_v56, %v487_v63  ;;  %v12507_v39 = vsel %vm2641_vm9, %v20195_v45, %v12347_v59  ;;  %v483_v23 = vrot.slane %v482_v61, 4  ;;  %v19536_v56 = vshll.u32 %v12475_v57, 16  ;;  %20199 = vst [vmem:[#allocation121_spill] sm:$0xff] %v12530_v8 }
  0xf4   :  { %20196 = vst [vmem:[#allocation120_spill] sm:$0xff] %v12507_v39  ;;  %v12523_v59 = vcombine.low %v1669_v53, %v1676_v2  ;;  %v20200_v61 = vshrl.u32 %v12475_v57, 16 }
  0xf5   :  { %v493_v42 = vrot.slane %v492_v33, 4  ;;  %v488_v35 = vsel %vm10710_vm5, %v483_v23, %v487_v63  ;;  %v1678_v53 = vrot.slane %v19536_v56, 6  ;;  %v20201_v33 = vshll.u32 %v12488_v60, 16  ;;  %v12561_v4 = vpop.permute.xlu0 %5358 }
  0xf6   :  { %20198 = vst [vmem:[#allocation16_spill] sm:$0xff] %v12523_v59  ;;  %v1677_v51 = vrot.slane %v20200_v61, 5  ;;  %9833 = vmatmul.mubr.msk.bf16.gmra.mrb[48].mxu1 %vm2641_vm9, %v12523_v59  ;;  %v1681_v23 = vrot.slane %v19545_v30, 5  ;;  %v1686_v61 = vshrl.u32 %v12502_v10, 16  ;;  %v20203_v56 = vshll.u32 %v12502_v10, 16  ;;  %v12569_v10 = vpop.permute.xlu1 %2139 }
  0xf7   :  { %v1682_v2 = vrot.slane %v20201_v33, 6  ;;  %v498_v63 = vsel %vm10710_vm5, %v493_v42, %v497_v18  ;;  %v12559_v33 = vld [vmem:[%s19316_s0 + $0x1a0] sm:$0x3]  ;;  %v19551_v42 = vshrl.u32 %v12530_v8, 16  ;;  %v19554_v18 = vshll.u32 %v12530_v8, 16 }
  0xf8   :  { %v1689_v57 = vrot.slane %v20203_v56, 6  ;;  %20204 = vst [vmem:[#allocation123_spill] sm:$0xff] %v12559_v33  ;;  %v12563_v50 = vcombine.low %v488_v35, %v498_v63  ;;  %v1679_v59 = vor.u32 %v1678_v53, %v1677_v51  ;;  %v1688_v60 = vrot.slane %v1686_v61, 5 }
  0xf9   :  { %v1683_v30 = vor.u32 %v1682_v2, %v1681_v23  ;;  %v19557_v56 = vshrl.u32 %v12545_v52, 16  ;;  %v1692_v51 = vrot.slane %v19551_v42, 5  ;;  %v1693_v53 = vrot.slane %v19554_v18, 6  ;;  %v10325_v52 = vld [vmem:[%s19316_s0 + $0xac] sm:$0xf] }
  0xfa   :  { %20205 = vst [vmem:[#allocation124_spill] sm:$0xff] %v12563_v50  ;;  %2523 = vrot.lane.b32.xlu0 %v12563_v50, %s10549_s21  ;;  %v1680_v14 = vrot.slane %v1679_v59, 4  ;;  %2379 = vrot.lane.b32.xlu1 %v12563_v50, %s10550_s22  ;;  %v1690_v63 = vor.u32 %v1689_v57, %v1688_v60  ;;  %v1697_v61 = vrot.slane %v19558_v47, 6  ;;  %v12584_v59 = vpop.permute.xlu0 %5120  ;;  %v1701_v8 = vshrl.u32 %v12559_v33, 16 }
  0xfb   :  { %v1685_v2 = vrot.slane %v1683_v30, 4  ;;  %v1696_v23 = vrot.slane %v19557_v56, 5  ;;  %v1694_v42 = vor.u32 %v1693_v53, %v1692_v51  ;;  %v20206_v18 = vshll.u32 %v12559_v33, 16  ;;  %v10324_v56 = vld [vmem:[%s19316_s0 + $0xa8] sm:$0xf] }
  0xfc   :  { %v1684_v35 = vsel %vm10743_vm8, %v1680_v14, %v1683_v30  ;;  %v9293_v47 = vrot.slane %v10324_v56, 9  ;;  %v1123_v14 = vrot.slane %v10325_v52, 5  ;;  %v12602_v30 = vld [vmem:[%s19316_s0 + $0x1a4] sm:$0xf]  ;;  %v10326_v56 = vld [vmem:[%s19316_s0 + $0xb0] sm:$0x3] }
  0xfd   :  { %v1704_v41 = vrot.slane %v20206_v18, 6  ;;  %v1691_v57 = vsel %vm10743_vm8, %v1685_v2, %v1690_v63  ;;  %v1698_v60 = vor.u32 %v1697_v61, %v1696_v23  ;;  %20207 = vst [vmem:[#allocation125_spill] sm:$0xff] %v12602_v30  ;;  %v12604_v18 = vpop.permute.xlu1 %2299  ;;  %v1695_v53 = vrot.slane %v1694_v42, 4  ;;  %v12614_v52 = vld [vmem:[%s19316_s0 + $0x1a8] sm:$0xf] }
  0xfe   :  { %v12606_v51 = vcombine.low %v1684_v35, %v1691_v57  ;;  %v1703_v2 = vrot.slane %v1701_v8, 5  ;;  %v1126_v63 = vrot.slane %v10326_v56, 5  ;;  %20209 = vst [vmem:[#allocation127_spill] sm:$0xff] %v12614_v52  ;;  %4992 = vrot.lane.b32.xlu1 %v10942_v24, %s10548_s16  ;;  %v1124_v35 = vsel %vm10635_vm2, %v9293_v47, %v1123_v14  ;;  %v12626_v42 = vld [vmem:[%s19316_s0 + $0x1ac] sm:$0x3]  ;;  %v12628_v57 = vpop.permute.xlu0 %2515 }
  0xff   :  { %v1700_v23 = vrot.slane %v1698_v60, 4  ;;  %v1125_v61 = vrot.slane %v1123_v14, 4  ;;  %v3009_v8 = vsel %vm2738_vm10, %v12507_v39, %v12398_v7  ;;  %20210 = vst [vmem:[#allocation128_spill] sm:$0xff] %v12626_v42  ;;  %20211 = vst [vmem:[#allocation129_spill] sm:$0xff] %v12628_v57  ;;  %v1699_v24 = vsel %vm10743_vm8, %v1695_v53, %v1698_v60  ;;  %v10327_v14 = vld [vmem:[%s19316_s0 + $0x48] sm:$0xf] }
 0x100   :  { %20208 = vst [vmem:[#allocation126_spill] sm:$0xff] %v12606_v51  ;;  %9836 = vmatprep.mubr.msk.bf16.mxu1 %vm2641_vm9, %v12606_v51  ;;  %v1705_v56 = vor.u32 %v1704_v41, %v1703_v2  ;;  %v12637_v47 = vsel %vm2738_vm10, %v12512_v19, %v12375_v32  ;;  %v10328_v39 = vld [vmem:[%s19316_s0 + $0x4c] sm:$0xf]  ;;  %v19567_v41 = vshrl.u32 %v12602_v30, 16  ;;  %v19566_v60 = vshll.u32 %v12602_v30, 16 }
 0x101   :  { %20212 = vst [vmem:[#allocation130_spill] sm:$0xff] %v12637_v47  ;;  %v12645_v33 = vcombine.low %v10327_v14, %v10328_v39  ;;  %v1127_v51 = vsel %vm10635_vm2, %v1125_v61, %v1126_v63  ;;  %v19568_v32 = vshll.u32 %v12614_v52, 16  ;;  %v12652_v19 = vpop.permute.xlu1 %2369  ;;  %v19577_v7 = vshrl.u32 %v12614_v52, 16  ;;  %v12663_v63 = vld [vmem:[%s19316_s0 + $0x1b0] sm:$0xf] }
 0x102   :  { %20214 = vst [vmem:[#allocation132_spill] sm:$0xff] %v12652_v19  ;;  %v1706_v53 = vsel %vm10743_vm8, %v1700_v23, %v1705_v56  ;;  %v12656_v2 = vcombine.low %v1124_v35, %v1127_v51  ;;  %20216 = vst [vmem:[#allocation134_spill] sm:$0xff] %v12663_v63  ;;  %v12668_v61 = vld [vmem:[%s19316_s0 + $0x1b4] sm:$0xf]  ;;  %2457 = vrot.lane.b32.xlu1 %v11724_v6, %s10548_s16  ;;  %v1707_v51 = vrot.slane %v19567_v41, 5  ;;  %v1708_v35 = vrot.slane %v19566_v60, 6  ;;  %v12685_v39 = vpop.permute.xlu0 %2585 }
 0x103   :  { %20213 = vst [vmem:[#allocation131_spill] sm:$0xff] %v12645_v33  ;;  %20217 = vst [vmem:[#allocation135_spill] sm:$0xff] %v12668_v61  ;;  %v12672_v23 = vcombine.low %v1699_v24, %v1706_v53  ;;  %v1712_v56 = vrot.slane %v19568_v32, 6  ;;  %v12683_v14 = vld [vmem:[%s19316_s0 + $0x1b8] sm:$0x3]  ;;  %v1711_v24 = vrot.slane %v19577_v7, 5  ;;  %v3079_v32 = vsel %vm2803_vm11, %v3009_v8, %v12438_v55 }
 0x104   :  { %20215 = vst [vmem:[#allocation133_spill] sm:$0xff] %v12656_v2  ;;  %20219 = vst [vmem:[#allocation137_spill] sm:$0xff] %v12683_v14  ;;  %2593 = vrot.lane.b32.xlu0 %v12656_v2, %s10550_s22  ;;  %v1716_v53 = vshrl.u32 %v12626_v42, 16  ;;  %v20221_v60 = vshll.u32 %v12626_v42, 16  ;;  %v1709_v30 = vor.u32 %v1708_v35, %v1707_v51  ;;  %3476 = vmatprep.mubr.bf16.mxu0 %v3079_v32  ;;  %v19585_v50 = vshrl.u32 %v12663_v63, 16 }
 0x105   :  { %20218 = vst [vmem:[#allocation136_spill] sm:$0xff] %v12672_v23  ;;  %20220 = vst [vmem:[#allocation138_spill] sm:$0xff] %v12685_v39  ;;  %9837 = vmatmul.mubr.msk.bf16.gmra.mrb[52].mxu1 %vm2641_vm9, %v12672_v23  ;;  %v19586_v48 = vshll.u32 %v12663_v63, 16  ;;  %v19589_v52 = vshll.u32 %v12668_v61, 16  ;;  %v12701_v7 = vpop.permute.xlu1 %4982  ;;  %v1713_v17 = vor.u32 %v1712_v56, %v1711_v24 }
 0x106   :  { %v1719_v41 = vrot.slane %v20221_v60, 6  ;;  %v1718_v34 = vrot.slane %v1716_v53, 5  ;;  %v19591_v60 = vshrl.u32 %v12668_v61, 16  ;;  %2151 = vrot.lane.b32.xlu1 %v12656_v2, %s10548_s16  ;;  %v1710_v8 = vrot.slane %v1709_v30, 4  ;;  %v12713_v23 = vpop.permute.xlu0 %5288 }
 0x107   :  { %v1722_v32 = vrot.slane %v19585_v50, 5  ;;  %v1723_v51 = vrot.slane %v19586_v48, 6  ;;  %v1727_v35 = vrot.slane %v19589_v52, 6  ;;  %v1715_v56 = vrot.slane %v1713_v17, 4 }
 0x108   :  { %5296 = vrot.lane.b32.xlu0 %v12645_v33, %s10548_s16  ;;  %v1720_v24 = vor.u32 %v1719_v41, %v1718_v34  ;;  %v1726_v53 = vrot.slane %v19591_v60, 5  ;;  %v1731_v30 = vshrl.u32 %v12683_v14, 16  ;;  %v1714_v50 = vsel %vm10743_vm8, %v1710_v8, %v1713_v17  ;;  %v12734_v17 = vld [vmem:[%s19316_s0 + $0x1bc] sm:$0xf] }
 0x109   :  { %v1724_v42 = vor.u32 %v1723_v51, %v1722_v32  ;;  %v20222_v48 = vshll.u32 %v12683_v14, 16  ;;  %v2823_v52 = vsel %vm2803_vm11, %v12637_v47, %v12426_v21  ;;  %v12727_v55 = vpop.permute.xlu1 %5052  ;;  %20223 = vst [vmem:[#allocation139_spill] sm:$0xff] %v12734_v17  ;;  %v12743_v32 = vld [vmem:[%s19316_s0 + $0x1c0] sm:$0xf] }
 0x10a   :  { %v1721_v34 = vsel %vm10743_vm8, %v1715_v56, %v1720_v24  ;;  %v1728_v41 = vor.u32 %v1727_v35, %v1726_v53  ;;  %v1733_v60 = vrot.slane %v1731_v30, 5  ;;  %3477 = vmatmul.mubr.bf16.gmra.mrb[24].mxu0 %v2823_v52  ;;  %2311 = vrot.lane.b32.xlu1 %v11619_v54, %s10549_s21  ;;  %20225 = vst [vmem:[#allocation141_spill] sm:$0xff] %v12743_v32  ;;  %v12745_v51 = vpop.permute.xlu0 %5352  ;;  %v10329_v56 = vld [vmem:[%s19316_s0] sm:$0xf]  ;;  %v12758_v53 = vld [vmem:[%s19316_s0 + $0x1c4] sm:$0x3] }
 0x10b   :  { %v1734_v63 = vrot.slane %v20222_v48, 6  ;;  %v12738_v48 = vcombine.low %v1714_v50, %v1721_v34  ;;  %v1725_v8 = vrot.slane %v1724_v42, 4  ;;  %v9476_v50 = vrot.slane %v10329_v56, 10  ;;  %v10330_v42 = vld [vmem:[%s19316_s0 + $0x4] sm:$0xf]  ;;  %20226 = vst [vmem:[#allocation142_spill] sm:$0xff] %v12758_v53 }
 0x10c   :  { %v1730_v52 = vrot.slane %v1728_v41, 4  ;;  %5060 = vrot.lane.b32.xlu0 %v10896_v15, %s10549_s21  ;;  %v4502_v24 = vrot.slane %v10330_v42, 6  ;;  %v19603_v34 = vshrl.u32 %v12734_v17, 16  ;;  %v19610_v54 = vshrl.u32 %v12743_v32, 16 }
 0x10d   :  { %20224 = vst [vmem:[#allocation140_spill] sm:$0xff] %v12738_v48  ;;  %v1735_v35 = vor.u32 %v1734_v63, %v1733_v60  ;;  %9840 = vmatprep.mubr.msk.bf16.mxu1 %vm2641_vm9, %v12738_v48  ;;  %v1729_v15 = vsel %vm10743_vm8, %v1725_v8, %v1728_v41  ;;  %v10331_v60 = vld [vmem:[%s19316_s0 + $0x8] sm:$0x3]  ;;  %v12774_v47 = vpop.permute.xlu1 %2447  ;;  %v19611_v8 = vshll.u32 %v12743_v32, 16  ;;  %v9518_v48 = vcombine.low %v10329_v56, %v10330_v42 }
 0x10e   :  { %v4505_v30 = vrot.slane %v10331_v60, 6  ;;  %v4504_v41 = vrot.slane %v4502_v24, 4  ;;  %v12786_v60 = vld [vmem:[%s19316_s0 + $0x1c8] sm:$0xf]  ;;  %v12788_v21 = vpop.permute.xlu0 %5360  ;;  %v20232_v56 = vshll.u32 %v12734_v17, 16  ;;  %v1829_v33 = vshrl.u32 %v12758_v53, 16 }
 0x10f   :  { %v1736_v14 = vsel %vm10743_vm8, %v1730_v52, %v1735_v35  ;;  %20230 = vst [vmem:[#allocation144_spill] sm:$0xff] %v12786_v60  ;;  %v4503_v52 = vsel %vm12765_vm14, %v9476_v50, %v4502_v24  ;;  %v20231_v35 = vld [vmem:[#allocation14_spill] sm:$0xff]  ;;  %v1824_v24 = vrot.slane %v19610_v54, 5  ;;  %v12825_v54 = vsel %vm2641_vm9, %v9518_v48, %v12451_v26 }
 0x110   :  { %v12779_v61 = vcombine.low %v1729_v15, %v1736_v14  ;;  %5130 = vrot.lane.b32.xlu0 %v20231_v35, %s10550_s22  ;;  %v1820_v14 = vrot.slane %v19603_v34, 5  ;;  %v1821_v42 = vrot.slane %v20232_v56, 6  ;;  %v12801_v15 = vld [vmem:[%s19316_s0 + $0x1cc] sm:$0xf]  ;;  %v4506_v50 = vsel %vm12765_vm14, %v4504_v41, %v4505_v30  ;;  %v12815_v56 = vld [vmem:[%s19316_s0 + $0x1d0] sm:$0x3] }
 0x111   :  { %20233 = vst [vmem:[#allocation145_spill] sm:$0xff] %v12801_v15  ;;  %v1825_v34 = vrot.slane %v19611_v8, 6  ;;  %20234 = vst [vmem:[#allocation146_spill] sm:$0xff] %v12815_v56  ;;  %v12817_v35 = vpop.permute.xlu1 %2141  ;;  %v1831_v32 = vrot.slane %v1829_v33, 5  ;;  %v19624_v13 = vshll.u32 %v12801_v15, 16  ;;  %v9556_v37 = vcombine.low %v4503_v52, %v4506_v50 }
 0x112   :  { %20229 = vst [vmem:[#allocation143_spill] sm:$0xff] %v12779_v61  ;;  %9841 = vmatmul.mubr.msk.bf16.gmra.mrb[56].mxu1 %vm2641_vm9, %v12779_v61  ;;  %v1822_v17 = vor.u32 %v1821_v42, %v1820_v14  ;;  %v20235_v61 = vshll.u32 %v12758_v53, 16  ;;  %v12828_v49 = vpop.permute.xlu0 %5122  ;;  %v19623_v14 = vshrl.u32 %v12801_v15, 16  ;;  %v20236_v41 = vshrl.u32 %v12786_v60, 16 }
 0x113   :  { %v1826_v8 = vor.u32 %v1825_v34, %v1824_v24  ;;  %v20237_v26 = vshll.u32 %v12786_v60, 16  ;;  %v1923_v52 = vrot.slane %v19624_v13, 6  ;;  %v1927_v50 = vshrl.u32 %v12815_v56, 16 }
 0x114   :  { %v1832_v2 = vrot.slane %v20235_v61, 6  ;;  %v1823_v22 = vrot.slane %v1822_v17, 4  ;;  %v19627_v61 = vshll.u32 %v12815_v56, 16  ;;  %v1918_v53 = vrot.slane %v20236_v41, 5 }
 0x115   :  { %v1828_v42 = vrot.slane %v1826_v8, 4  ;;  %v1919_v48 = vrot.slane %v20237_v26, 6  ;;  %v12836_v34 = vpop.permute.xlu1 %2301  ;;  %v1922_v17 = vrot.slane %v19623_v14, 5  ;;  %v20238_v41 = vshrl.u32 %v11563_v58, 16 }
 0x116   :  { %v1833_v30 = vor.u32 %v1832_v2, %v1831_v32  ;;  %v1827_v33 = vsel %vm10743_vm8, %v1823_v22, %v1826_v8  ;;  %v1930_v24 = vrot.slane %v19627_v61, 6  ;;  %v12851_v60 = vpop.permute.xlu0 %2517  ;;  %v1929_v14 = vrot.slane %v1927_v50, 5 }
 0x117   :  { %v1920_v32 = vor.u32 %v1919_v48, %v1918_v53  ;;  %v502_v26 = vrot.slane %v20238_v41, 4  ;;  %20239 = vst [vmem:[#allocation147_spill] sm:$0xff] %v12851_v60  ;;  %v1924_v8 = vor.u32 %v1923_v52, %v1922_v17  ;;  %v20241_v13 = vshll.u32 %v11563_v58, 16  ;;  %v20245_v52 = vld [vmem:[#allocation29_spill] sm:$0xff] }
 0x118   :  { %v1834_v2 = vsel %vm10743_vm8, %v1828_v42, %v1833_v30  ;;  %v5904_v45 = vsel %vm2641_vm9, %v9556_v37, %v12466_v44  ;;  %v20242_v53 = vshll.u32 %v11584_v40, 16  ;;  %v20243_v48 = vshrl.u32 %v11584_v40, 16  ;;  %v10332_v40 = vld [vmem:[%s19316_s0 + $0xb4] sm:$0xf] }
 0x119   :  { %v12853_v22 = vcombine.low %v1827_v33, %v1834_v2  ;;  %v505_v15 = vrot.slane %v20241_v13, 5  ;;  %v1921_v30 = vrot.slane %v1920_v32, 4  ;;  %v12863_v41 = vpop.permute.xlu1 %2371  ;;  %v5999_v33 = vsel %vm2738_vm10, %v5904_v45, %v12515_v38 }
 0x11a   :  { %v511_v42 = vrot.slane %v20242_v53, 5  ;;  %v515_v61 = vrot.slane %v20243_v48, 4  ;;  %20244 = vst [vmem:[#allocation149_spill] sm:$0xff] %v12863_v41  ;;  %v1926_v58 = vrot.slane %v1924_v8, 4  ;;  %v1931_v13 = vor.u32 %v1930_v24, %v1929_v14  ;;  %v12876_v53 = vpop.permute.xlu0 %2587  ;;  %v20249_v48 = vld [vmem:[#allocation19_spill] sm:$0xff] }
 0x11b   :  { %20240 = vst [vmem:[#allocation148_spill] sm:$0xff] %v12853_v22  ;;  %9844 = vmatprep.mubr.msk.bf16.mxu1 %vm2641_vm9, %v12853_v22  ;;  %v506_v17 = vor.u32 %v505_v15, %v502_v26  ;;  %v1925_v37 = vsel %vm10743_vm8, %v1921_v30, %v1924_v8  ;;  %v20246_v50 = vshll.u32 %v20245_v52, 16  ;;  %v9294_v32 = vrot.slane %v10332_v40, 9  ;;  %20247 = vst [vmem:[#allocation29_spill] sm:$0xff] %v12876_v53  ;;  %v10333_v15 = vld [vmem:[%s19316_s0 + $0xb8] sm:$0xf] }
 0x11c   :  { %v516_v44 = vor.u32 %v515_v61, %v511_v42  ;;  %v1932_v45 = vsel %vm10743_vm8, %v1926_v58, %v1931_v13  ;;  %v1130_v14 = vrot.slane %v10333_v15, 5  ;;  %v10334_v61 = vld [vmem:[%s19316_s0 + $0xbc] sm:$0x3]  ;;  %v6035_v30 = vsel %vm2803_vm11, %v5999_v33, %v12561_v4  ;;  %v20250_v52 = vld [vmem:[#allocation21_spill] sm:$0xff] }
 0x11d   :  { %v521_v2 = vrot.slane %v20246_v50, 5  ;;  %v507_v38 = vrot.slane %v506_v17, 4  ;;  %v1133_v24 = vrot.slane %v10334_v61, 5  ;;  %v12886_v26 = vcombine.low %v1925_v37, %v1932_v45  ;;  %v12893_v13 = vpop.permute.xlu1 %4984 }
 0x11e   :  { %v517_v8 = vrot.slane %v516_v44, 4  ;;  %v2665_v58 = vsel %vm2641_vm9, %v20249_v48, %v12569_v10  ;;  %v12900_v50 = vsel %vm2641_vm9, %v20250_v52, %v12532_v12  ;;  %v1131_v37 = vsel %vm10635_vm2, %v9294_v32, %v1130_v14  ;;  %v10335_v12 = vld [vmem:[%s19316_s0 + $0xc] sm:$0xf]  ;;  %v12918_v40 = vpop.permute.xlu0 %5290 }
 0x11f   :  { %20248 = vst [vmem:[#allocation150_spill] sm:$0xff] %v12886_v26  ;;  %v512_v17 = vsel %vm10710_vm5, %v507_v38, %v511_v42  ;;  %20251 = vst [vmem:[#allocation19_spill] sm:$0xff] %v12900_v50  ;;  %v1132_v44 = vrot.slane %v1130_v14, 4  ;;  %9845 = vmatmul.mubr.msk.bf16.gmra.mrb[60].mxu1 %vm2641_vm9, %v12886_v26  ;;  %v3011_v10 = vsel %vm2738_vm10, %v12900_v50, %v12628_v57  ;;  %v9477_v33 = vrot.slane %v10335_v12, 10  ;;  %v10336_v38 = vld [vmem:[%s19316_s0 + $0x10] sm:$0xf] }
 0x120   :  { %v522_v4 = vsel %vm10710_vm5, %v517_v8, %v521_v2  ;;  %v12913_v42 = vsel %vm2738_vm10, %v2665_v58, %v12604_v18  ;;  %7306 = vmatprep.mubr.bf16.mxu1 %v6035_v30  ;;  %v3082_v45 = vsel %vm2803_vm11, %v3011_v10, %v12685_v39  ;;  %v4509_v15 = vrot.slane %v10336_v38, 6  ;;  %v10337_v14 = vld [vmem:[%s19316_s0 + $0x14] sm:$0x3]  ;;  %v20258_v38 = vld [vmem:[#allocation33_spill] sm:$0xff] }
 0x121   :  { %20252 = vst [vmem:[#allocation21_spill] sm:$0xff] %v12913_v42  ;;  %v12920_v32 = vcombine.low %v512_v17, %v522_v4  ;;  %v1134_v2 = vsel %vm10635_vm2, %v1132_v44, %v1133_v24  ;;  %v2826_v18 = vsel %vm2803_vm11, %v12913_v42, %v12652_v19  ;;  %3484 = vmatprep.mubr.bf16.mxu0 %v3082_v45  ;;  %v4512_v61 = vrot.slane %v10337_v14, 6  ;;  %v12935_v8 = vpop.permute.xlu1 %2449  ;;  %v20255_v58 = vld [vmem:[#allocation31_spill] sm:$0xff] }
 0x122   :  { %v5743_v24 = vsel %vm2738_vm10, %v12825_v54, %v12490_v3  ;;  %v12942_v30 = vcombine.low %v1131_v37, %v1134_v2  ;;  %3485 = vmatmul.mubr.bf16.gmra.mrb[28].mxu0 %v2826_v18  ;;  %v20256_v17 = vshrl.u32 %v20255_v58, 16  ;;  %v20257_v4 = vshll.u32 %v20255_v58, 16  ;;  %v12960_v2 = vpop.permute.xlu0 %5054 }
 0x123   :  { %20253 = vst [vmem:[#allocation151_spill] sm:$0xff] %v12920_v32  ;;  %2525 = vrot.lane.b32.xlu0 %v12920_v32, %s10549_s21  ;;  %v4510_v12 = vsel %vm12765_vm14, %v9477_v33, %v4509_v15  ;;  %v4511_v45 = vrot.slane %v4509_v15, 4  ;;  %v20259_v14 = vshll.u32 %v20258_v38, 16  ;;  %v20260_v54 = vshrl.u32 %v20258_v38, 16  ;;  %2381 = vrot.lane.b32.xlu1 %v12920_v32, %s10550_s22  ;;  %v20261_v33 = vld [vmem:[#allocation13_spill] sm:$0xff] }
 0x124   :  { %20254 = vst [vmem:[#allocation152_spill] sm:$0xff] %v12942_v30  ;;  %v526_v44 = vrot.slane %v20256_v17, 4  ;;  %v529_v10 = vrot.slane %v20257_v4, 5  ;;  %v5807_v37 = vsel %vm2803_vm11, %v5743_v24, %v12584_v59  ;;  %v5651_v15 = vsel %vm2641_vm9, %v20261_v33, %v12701_v7  ;;  %v12974_v17 = vld [vmem:[%s19316_s0 + $0x54] sm:$0xf] }
 0x125   :  { %v12952_v26 = vrot.slane %v20259_v14, 5  ;;  %v539_v3 = vrot.slane %v20260_v54, 4  ;;  %v4513_v18 = vsel %vm12765_vm14, %v4511_v45, %v4512_v61  ;;  %v12967_v58 = vpop.permute.xlu1 %2143  ;;  %20262 = vst [vmem:[#allocation31_spill] sm:$0xff] %v12974_v17  ;;  %v12979_v59 = vld [vmem:[%s19316_s0 + $0x58] sm:$0xf]  ;;  %v20265_v14 = vld [vmem:[#allocation22_spill] sm:$0xff] }
 0x126   :  { %v12983_v61 = vcombine.low %v12974_v17, %v12979_v59  ;;  %v12985_v7 = vcombine.low %v4510_v12, %v4513_v18  ;;  %v530_v24 = vor.u32 %v529_v10, %v526_v44  ;;  %v10340_v45 = vld [vmem:[%s19316_s0 + $0xc4] sm:$0xf]  ;;  %v2668_v54 = vsel %vm2641_vm9, %v20265_v14, %v12817_v35  ;;  %v20266_v44 = vld [vmem:[#allocation34_spill] sm:$0xff] }
 0x127   :  { %2595 = vrot.lane.b32.xlu0 %v12942_v30, %s10550_s22  ;;  %7307 = vmatmul.mubr.bf16.vlgmr.msra.gmra.mrb[64].mxu1 %v5807_v37  ;;  %v540_v4 = vor.u32 %v539_v3, %v12952_v26  ;;  %v1137_v38 = vrot.slane %v10340_v45, 5  ;;  %v20267_v10 = vshll.u32 %v20266_v44, 16  ;;  %v5745_v3 = vsel %vm2738_vm10, %v5651_v15, %v12727_v55  ;;  %v10342_v35 = vld [vmem:[%s19316_s0 + $0xc8] sm:$0x3] }
 0x128   :  { %20263 = vst [vmem:[#allocation33_spill] sm:$0xff] %v12983_v61  ;;  %20264 = vst [vmem:[#allocation13_spill] sm:$0xff] %v12985_v7  ;;  %4994 = vrot.lane.b32.xlu1 %v20197_v62, %s10548_s16  ;;  %v5907_v12 = vsel %vm2641_vm9, %v12985_v7, %v12713_v23  ;;  %v10341_v62 = vld [vmem:[%s19316_s0 + $0xc0] sm:$0xf]  ;;  %v1140_v45 = vrot.slane %v10342_v35, 5  ;;  %v13014_v23 = vsel %vm2641_vm9, %v11456_v25, %v12774_v47  ;;  %v531_v55 = vrot.slane %v530_v24, 4 }
 0x129   :  { %v545_v37 = vrot.slane %v20267_v10, 5  ;;  %v6001_v18 = vsel %vm2738_vm10, %v5907_v12, %v12745_v51  ;;  %v9295_v33 = vrot.slane %v10341_v62, 9  ;;  %20268 = vst [vmem:[#allocation22_spill] sm:$0xff] %v13014_v23  ;;  %v2304_v44 = vpop.permute.xlu1 %2303  ;;  %v3013_v15 = vsel %vm2738_vm10, %v13014_v23, %v12851_v60  ;;  %v5125_v10 = vpop.permute.xlu0 %5124  ;;  %v13185_v23 = vld [vmem:[%s19316_s0 + $0x110] sm:$0x3] }
 0x12a   :  { %v6038_v51 = vsel %vm2803_vm11, %v6001_v18, %v12788_v21  ;;  %v13025_v12 = vsel %vm2738_vm10, %v2668_v54, %v12836_v34  ;;  %v541_v62 = vrot.slane %v540_v4, 4  ;;  %v1139_v47 = vrot.slane %v1137_v38, 4  ;;  %v10343_v34 = vld [vmem:[%s19316_s0 + $0x18] sm:$0xf]  ;;  %v10344_v54 = vld [vmem:[%s19316_s0 + $0x1c] sm:$0xf] }
 0x12b   :  { %5298 = vrot.lane.b32.xlu0 %v12983_v61, %s10548_s16  ;;  %20269 = vst [vmem:[#allocation34_spill] sm:$0xff] %v13025_v12  ;;  %7314 = vmatprep.mubr.bf16.mxu1 %v6038_v51  ;;  %v3085_v24 = vsel %vm2803_vm11, %v3013_v15, %v12876_v53  ;;  %v2829_v21 = vsel %vm2803_vm11, %v13025_v12, %v12863_v41  ;;  %v9478_v4 = vrot.slane %v10343_v34, 10  ;;  %v4516_v35 = vrot.slane %v10344_v54, 6  ;;  %v10345_v51 = vld [vmem:[%s19316_s0 + $0x20] sm:$0x3]  ;;  %v20271_v54 = vld [vmem:[#allocation6_spill] sm:$0xff] }
 0x12c   :  { %2459 = vrot.lane.b32.xlu1 %v11782_v28, %s10548_s16  ;;  %v5810_v18 = vsel %vm2803_vm11, %v5745_v3, %v12828_v49  ;;  %3492 = vmatprep.mubr.bf16.mxu0 %v3085_v24  ;;  %v4519_v15 = vrot.slane %v10345_v51, 6  ;;  %v536_v24 = vsel %vm10710_vm5, %v531_v55, %v12952_v26  ;;  %v546_v34 = vsel %vm10710_vm5, %v541_v62, %v545_v37 }
 0x12d   :  { %3493 = vmatmul.mubr.bf16.gmra.mrb[32].mxu0 %v2829_v21  ;;  %v13045_v41 = vpop.permute.xlu1 %2373  ;;  %v4517_v49 = vsel %vm12765_vm14, %v9478_v4, %v4516_v35  ;;  %v4518_v3 = vrot.slane %v4516_v35, 4  ;;  %v1138_v21 = vsel %vm10635_vm2, %v9295_v33, %v1137_v38  ;;  %v5654_v26 = vsel %vm2641_vm9, %v20271_v54, %v12893_v13  ;;  %v13067_v55 = vpop.permute.xlu0 %2519  ;;  %v20276_v33 = vld [vmem:[#allocation37_spill] sm:$0xff] }
 0x12e   :  { %20270 = vst [vmem:[#allocation153_spill] sm:$0xff] %v13045_v41  ;;  %20272 = vst [vmem:[#allocation154_spill] sm:$0xff] %v13067_v55  ;;  %v13075_v38 = vcombine.low %v536_v24, %v546_v34  ;;  %v2671_v35 = vsel %vm2641_vm9, %v11357_v46, %v12967_v58  ;;  %v20279_v13 = vshll.u32 %v20276_v33, 16  ;;  %v20280_v24 = vshll.u32 %v11695_v31, 16 }
 0x12f   :  { %5062 = vrot.lane.b32.xlu0 %v10934_v1, %s10549_s21  ;;  %7315 = vmatmul.mubr.bf16.gmra.mrb[68].mxu1 %v5810_v18  ;;  %v1141_v1 = vsel %vm10635_vm2, %v1139_v47, %v1140_v45  ;;  %v4520_v4 = vsel %vm12765_vm14, %v4518_v3, %v4519_v15  ;;  %v20274_v18 = vld [vmem:[#allocation15_spill] sm:$0xff]  ;;  %v20277_v45 = vshrl.u32 %v20276_v33, 16  ;;  %v5747_v3 = vsel %vm2738_vm10, %v5654_v26, %v12960_v2 }
 0x130   :  { %2153 = vrot.lane.b32.xlu1 %v12942_v30, %s10548_s16  ;;  %v13069_v37 = vcombine.low %v4517_v49, %v4520_v4  ;;  %20275 = vst [vmem:[#allocation156_spill] sm:$0xff] %v13075_v38  ;;  %v13082_v51 = vcombine.low %v1138_v21, %v1141_v1  ;;  %v1743_v15 = vrot.slane %v20279_v13, 5  ;;  %v13095_v34 = vrot.slane %v20280_v24, 5  ;;  %v20282_v1 = vld [vmem:[#allocation35_spill] sm:$0xff] }
 0x131   :  { %v13071_v62 = vpop.permute.xlu1 %4986  ;;  %v1740_v47 = vrot.slane %v20277_v45, 4  ;;  %v20281_v58 = vshrl.u32 %v11695_v31, 16  ;;  %v5813_v33 = vsel %vm2803_vm11, %v5747_v3, %v5125_v10  ;;  %v20283_v45 = vld [vmem:[#allocation30_spill] sm:$0xff]  ;;  %v13110_v2 = vsel %vm2738_vm10, %v2671_v35, %v2304_v44  ;;  %v10346_v31 = vld [vmem:[%s19316_s0 + $0x24] sm:$0xf] }
 0x132   :  { %20273 = vst [vmem:[#allocation155_spill] sm:$0xff] %v13069_v37  ;;  %20278 = vst [vmem:[#allocation37_spill] sm:$0xff] %v13082_v51  ;;  %v5910_v49 = vsel %vm2641_vm9, %v13069_v37, %v12918_v40  ;;  %v13107_v40 = vsel %vm2641_vm9, %v11649_v20, %v12935_v8  ;;  %v9479_v26 = vrot.slane %v10346_v31, 10  ;;  %v13122_v8 = vpop.permute.xlu0 %2589  ;;  %v2832_v44 = vsel %vm2803_vm11, %v13110_v2, %v13045_v41  ;;  %v10347_v35 = vld [vmem:[%s19316_s0 + $0x28] sm:$0xf]  ;;  %v13144_v31 = vpop.f32.mrb[0].mxu1 }
 0x133   :  { %5132 = vrot.lane.b32.xlu0 %v20274_v18, %s10550_s22  ;;  %v1753_v21 = vrot.slane %v20281_v58, 4  ;;  %v6002_v4 = vsel %vm2738_vm10, %v5910_v49, %v20282_v1  ;;  %20284 = vst [vmem:[#allocation35_spill] sm:$0xff] %v13107_v40  ;;  %20285 = vst [vmem:[#allocation30_spill] sm:$0xff] %v13110_v2  ;;  %v3015_v10 = vsel %vm2738_vm10, %v13107_v40, %v13067_v55  ;;  %v4523_v49 = vrot.slane %v10347_v35, 6  ;;  %v10348_v3 = vld [vmem:[%s19316_s0 + $0x2c] sm:$0x3] }
 0x134   :  { %2313 = vrot.lane.b32.xlu1 %v11724_v6, %s10549_s21  ;;  %v6040_v13 = vsel %vm2803_vm11, %v6002_v4, %v20283_v45  ;;  %20286 = vst [vmem:[#allocation157_spill] sm:$0xff] %v13122_v8  ;;  %v4526_v58 = vrot.slane %v10348_v3, 6  ;;  %v3088_v1 = vsel %vm2803_vm11, %v3015_v10, %v13122_v8  ;;  %v1744_v35 = vor.u32 %v1743_v15, %v1740_v47  ;;  %v13152_v10 = vld [vmem:[%s19316_s0 + $0x10c] sm:$0xf]  ;;  %v13166_v47 = vld [vmem:[%s19316_s0 + $0x64] sm:$0xf] }
 0x135   :  { %v13115_v24 = vpop.permute.xlu1 %2451  ;;  %7322 = vmatprep.mubr.bf16.mxu1 %v6040_v13  ;;  %3500 = vmatprep.mubr.bf16.mxu0 %v3088_v1  ;;  %v4524_v4 = vsel %vm12765_vm14, %v9479_v26, %v4523_v49  ;;  %v4525_v45 = vrot.slane %v4523_v49, 4  ;;  %v13142_v13 = vld [vmem:[%s19316_s0 + $0x108] sm:$0xf]  ;;  %v1754_v3 = vor.u32 %v1753_v21, %v13095_v34  ;;  %v13154_v26 = vpop.f32.mrb[1].mxu1  ;;  %v13161_v49 = vld [vmem:[%s19316_s0 + $0x60] sm:$0xf]  ;;  %v5657_v50 = vsel %vm2641_vm9, %v11734_v0, %v13071_v62 }
 0x136   :  { %3501 = vmatmul.mubr.bf16.gmra.mrb[36].mxu0 %v2832_v44  ;;  %20287 = vst [vmem:[#allocation158_spill] sm:$0xff] %v13161_v49  ;;  %20288 = vst [vmem:[#allocation159_spill] sm:$0xff] %v13166_v47  ;;  %v13170_v15 = vcombine.low %v13161_v49, %v13166_v47  ;;  %v5293_v44 = vpop.permute.xlu0 %5292  ;;  %v13174_v1 = vpop.f32.mrb[2].mxu1  ;;  %v20290_v41 = vshll.u32 %v11707_v16, 16  ;;  %v20294_v62 = vld [vmem:[#allocation52_spill] sm:$0xff]  ;;  %v20295_v0 = vshll.u32 %v13142_v13, 16 }
 0x137   :  { %2527 = vrot.lane.b32.xlu0 %v13075_v38, %s10549_s21  ;;  %7323 = vmatmul.mubr.bf16.gmra.mrb[72].mxu1 %v5813_v33  ;;  %v4527_v21 = vsel %vm12765_vm14, %v4525_v45, %v4526_v58  ;;  %v13188_v18 = vpop.f32.mrb[3].mxu1  ;;  %v10351_v58 = vld [vmem:[%s19316_s0 + $0xd0] sm:$0xf]  ;;  %v1745_v45 = vrot.slane %v1744_v35, 4  ;;  %v20293_v35 = vshrl.u32 %v13142_v13, 16  ;;  %v20296_v54 = vshrl.u32 %v13152_v10, 16 }
 0x138   :  { %2383 = vrot.lane.b32.xlu1 %v13075_v38, %s10550_s22  ;;  %20289 = vst [vmem:[#allocation160_spill] sm:$0xff] %v13170_v15  ;;  %v1759_v40 = vrot.slane %v20290_v41, 5  ;;  %v13180_v19 = vcombine.low %v4524_v4, %v4527_v21  ;;  %v1793_v16 = vrot.slane %v10351_v58, 5  ;;  %v1755_v21 = vrot.slane %v1754_v3, 4  ;;  %v20292_v41 = vld [vmem:[#allocation46_spill] sm:$0xff] }
 0x139   :  { %v13147_v33 = vpop.permute.xlu1 %2145  ;;  %v1512_v3 = vrot.slane %v20293_v35, 5  ;;  %v1513_v37 = vrot.slane %v20295_v0, 6  ;;  %v1516_v7 = vrot.slane %v20296_v54, 5  ;;  %v10352_v35 = vld [vmem:[%s19316_s0 + $0xcc] sm:$0xf]  ;;  %v1750_v0 = vsel %vm10710_vm5, %v1745_v45, %v13095_v34 }
 0x13a   :  { %20291 = vst [vmem:[#allocation161_spill] sm:$0xff] %v13180_v19  ;;  %v5913_v2 = vsel %vm2641_vm9, %v13180_v19, %v5293_v44  ;;  %v5057_v58 = vpop.permute.xlu0 %5056  ;;  %v1521_v44 = vshrl.u32 %v13185_v23, 16  ;;  %v9312_v4 = vrot.slane %v10352_v35, 9  ;;  %v1795_v19 = vrot.slane %v1793_v16, 4  ;;  %v13246_v34 = vld [vmem:[%s19316_s0 + $0xfc] sm:$0xf] }
 0x13b   :  { %2597 = vrot.lane.b32.xlu0 %v13082_v51, %s10550_s22  ;;  %v1760_v35 = vsel %vm10710_vm5, %v1755_v21, %v1759_v40  ;;  %v5749_v56 = vsel %vm2738_vm10, %v5657_v50, %v5057_v58  ;;  %v20299_v22 = vshll.u32 %v13185_v23, 16  ;;  %v13256_v50 = vld [vmem:[%s19316_s0 + $0x100] sm:$0xf]  ;;  %v19661_v53 = vshrl.u32 %v13246_v34, 16  ;;  %v20305_v6 = vld [vmem:[#allocation42_spill] sm:$0xff] }
 0x13c   :  { %4996 = vrot.lane.b32.xlu1 %v20249_v48, %s10548_s16  ;;  %v6003_v48 = vsel %vm2738_vm10, %v5913_v2, %v20292_v41  ;;  %v20297_v2 = vshll.u32 %v13152_v10, 16  ;;  %v1794_v21 = vsel %vm10635_vm2, %v9312_v4, %v1793_v16  ;;  %v20306_v39 = vshll.u32 %v20305_v6, 16 }
 0x13d   :  { %v13201_v12 = vpop.permute.xlu1 %2305  ;;  %v6042_v42 = vsel %vm2803_vm11, %v6003_v48, %v20294_v62  ;;  %v13227_v62 = vpop.f32.mrb[4].mxu1  ;;  %v1524_v8 = vrot.slane %v20299_v22, 6  ;;  %v9296_v57 = vrot.slane %v13246_v34, 9 }
 0x13e   :  { %v1517_v41 = vrot.slane %v20297_v2, 6  ;;  %7330 = vmatprep.mubr.bf16.mxu1 %v6042_v42  ;;  %v13234_v2 = vpop.f32.mrb[5].mxu1  ;;  %v1523_v42 = vrot.slane %v1521_v44, 5  ;;  %v13264_v44 = vcombine.low %v1750_v0, %v1760_v35  ;;  %v19662_v0 = vshll.u32 %v13246_v34, 16 }
 0x13f   :  { %5300 = vrot.lane.b32.xlu0 %v13170_v15, %s10548_s16  ;;  %v13248_v45 = vpop.f32.mrb[6].mxu1  ;;  %v19663_v35 = vshll.u32 %v13256_v50, 16  ;;  %v10356_v15 = vld [vmem:[%s19316_s0 + $0x34] sm:$0xf] }
 0x140   :  { %2461 = vrot.lane.b32.xlu1 %v11841_v29, %s10548_s16  ;;  %v10353_v29 = vld [vmem:[%s19316_s0 + $0xd4] sm:$0x3]  ;;  %v1518_v55 = vor.u32 %v1517_v41, %v1516_v7  ;;  %v13258_v22 = vpop.f32.mrb[7].mxu1  ;;  %20300 = vst [vmem:[#allocation52_spill] sm:$0xff] %v13264_v44  ;;  %v1525_v4 = vor.u32 %v1524_v8, %v1523_v42  ;;  %v1498_v8 = vrot.slane %v19662_v0, 6 }
 0x141   :  { %v1796_v48 = vrot.slane %v10353_v29, 5  ;;  %v13232_v54 = vpop.permute.xlu1 %2375  ;;  %v5127_v29 = vpop.permute.xlu0 %5126  ;;  %v1502_v42 = vrot.slane %v19663_v35, 6  ;;  %v13310_v35 = vld [vmem:[%s19316_s0 + $0x6c] sm:$0xf] }
 0x142   :  { %20298 = vst [vmem:[#allocation46_spill] sm:$0xff] %v13232_v54  ;;  %v5816_v40 = vsel %vm2803_vm11, %v5749_v56, %v5127_v29  ;;  %v13273_v29 = vld [vmem:[%s19316_s0 + $0x104] sm:$0x3]  ;;  %20310 = vst [vmem:[#allocation42_spill] sm:$0xff] %v13310_v35 }
 0x143   :  { %5064 = vrot.lane.b32.xlu0 %v10988_v36, %s10549_s21  ;;  %v1514_v36 = vor.u32 %v1513_v37, %v1512_v3  ;;  %v1797_v58 = vsel %vm10635_vm2, %v1795_v19, %v1796_v48  ;;  %7331 = vmatmul.mubr.bf16.gmra.mrb[76].mxu1 %v5816_v40  ;;  %v20301_v37 = vld [vmem:[#allocation41_spill] sm:$0xff]  ;;  %v1144_v48 = vrot.slane %v13256_v50, 5  ;;  %v20313_v49 = vshll.u32 %v13273_v29, 16 }
 0x144   :  { %2155 = vrot.lane.b32.xlu1 %v13082_v51, %s10548_s16  ;;  %v20302_v7 = vshrl.u32 %v20301_v37, 16  ;;  %v20303_v56 = vshll.u32 %v20301_v37, 16  ;;  %v20304_v19 = vld [vmem:[#allocation17_spill] sm:$0xff]  ;;  %v1520_v37 = vrot.slane %v1518_v55, 4  ;;  %v13305_v0 = vcombine.low %v1794_v21, %v1797_v58 }
 0x145   :  { %v13276_v16 = vpop.permute.xlu1 %4988  ;;  %v1515_v40 = vrot.slane %v1514_v36, 4  ;;  %v20307_v36 = vshrl.u32 %v20305_v6, 16  ;;  %v13315_v6 = vld [vmem:[%s19316_s0 + $0x70] sm:$0xf]  ;;  %v1509_v47 = vrot.slane %v20313_v49, 6 }
 0x146   :  { %v1838_v3 = vrot.slane %v20302_v7, 4  ;;  %v1841_v41 = vrot.slane %v20303_v56, 5  ;;  %v1497_v56 = vrot.slane %v19661_v53, 5  ;;  %v20308_v53 = vshrl.u32 %v13256_v50, 16  ;;  %20309 = vst [vmem:[#allocation41_spill] sm:$0xff] %v13305_v0  ;;  %20311 = vst [vmem:[#allocation162_spill] sm:$0xff] %v13315_v6 }
 0x147   :  { %5134 = vrot.lane.b32.xlu0 %v20304_v19, %s10550_s22  ;;  %v1506_v19 = vshrl.u32 %v13273_v29, 16  ;;  %v1851_v7 = vrot.slane %v20307_v36, 4  ;;  %v1519_v21 = vsel %vm10743_vm8, %v1515_v40, %v1518_v55  ;;  %v1526_v58 = vsel %vm10743_vm8, %v1520_v37, %v1525_v4 }
 0x148   :  { %2315 = vrot.lane.b32.xlu1 %v11782_v28, %s10549_s21  ;;  %v13296_v28 = vrot.slane %v20306_v39, 5  ;;  %v1501_v60 = vrot.slane %v20308_v53, 5  ;;  %v13319_v39 = vcombine.low %v13310_v35, %v13315_v6  ;;  %v1147_v53 = vrot.slane %v13273_v29, 5 }
 0x149   :  { %v13322_v36 = vpop.permute.xlu1 %2453  ;;  %v1499_v38 = vor.u32 %v1498_v8, %v1497_v56  ;;  %v4530_v35 = vrot.slane %v10356_v15, 6  ;;  %v1146_v6 = vrot.slane %v1144_v48, 4  ;;  %v1508_v32 = vrot.slane %v1506_v19, 5 }
 0x14a   :  { %20312 = vst [vmem:[#allocation163_spill] sm:$0xff] %v13319_v39  ;;  %v1503_v51 = vor.u32 %v1502_v42, %v1501_v60  ;;  %v1842_v61 = vor.u32 %v1841_v41, %v1838_v3  ;;  %v2674_v55 = vsel %vm2641_vm9, %v11647_v27, %v13147_v33  ;;  %v1145_v4 = vsel %vm10635_vm2, %v9296_v57, %v1144_v48  ;;  %v10357_v60 = vld [vmem:[%s19316_s0 + $0x30] sm:$0xf]  ;;  %v10358_v3 = vld [vmem:[%s19316_s0 + $0x38] sm:$0x3] }
 0x14b   :  { %2529 = vrot.lane.b32.xlu0 %v13264_v44, %s10549_s21  ;;  %v13343_v15 = vcombine.low %v1519_v21, %v1526_v58  ;;  %v9480_v49 = vrot.slane %v10357_v60, 10  ;;  %v4533_v41 = vrot.slane %v10358_v3, 6  ;;  %v20315_v33 = vshrl.u32 %v13142_v13, 16 }
 0x14c   :  { %2385 = vrot.lane.b32.xlu1 %v13264_v44, %s10550_s22  ;;  %v1852_v44 = vor.u32 %v1851_v7, %v13296_v28  ;;  %v1500_v57 = vrot.slane %v1499_v38, 4  ;;  %v4532_v48 = vrot.slane %v4530_v35, 4  ;;  %v20316_v37 = vshll.u32 %v13142_v13, 16  ;;  %v10359_v38 = vld [vmem:[%s19316_s0 + $0xdc] sm:$0xf] }
 0x14d   :  { %20314 = vst [vmem:[#allocation164_spill] sm:$0xff] %v13343_v15  ;;  %v574_v19 = vrot.slane %v20315_v33, 4  ;;  %v13353_v40 = vpop.permute.xlu1 %2147  ;;  %v20317_v56 = vshll.u32 %v13152_v10, 16  ;;  %v1148_v42 = vsel %vm10635_vm2, %v1146_v6, %v1147_v53  ;;  %v1505_v21 = vrot.slane %v1503_v51, 4 }
 0x14e   :  { %v577_v7 = vrot.slane %v20316_v37, 5  ;;  %v1510_v58 = vor.u32 %v1509_v47, %v1508_v32  ;;  %v20318_v60 = vshrl.u32 %v13152_v10, 16  ;;  %v1843_v33 = vrot.slane %v1842_v61, 4  ;;  %v13370_v17 = vpop.permute.xlu0 %2521 }
 0x14f   :  { %2599 = vrot.lane.b32.xlu0 %v13305_v0, %s10550_s22  ;;  %v583_v8 = vrot.slane %v20317_v56, 5  ;;  %v20319_v0 = vld [vmem:[#allocation43_spill] sm:$0xff]  ;;  %v1891_v37 = vrot.slane %v10359_v38, 5  ;;  %v1853_v6 = vrot.slane %v1852_v44, 4  ;;  %v13377_v32 = vsel %vm2641_vm9, %v12020_v11, %v13115_v24 }
 0x150   :  { %4998 = vrot.lane.b32.xlu1 %v20265_v14, %s10548_s16  ;;  %v587_v3 = vrot.slane %v20318_v60, 4  ;;  %v20320_v30 = vshll.u32 %v20319_v0, 16  ;;  %20321 = vst [vmem:[#allocation43_spill] sm:$0xff] %v13370_v17  ;;  %v578_v56 = vor.u32 %v577_v7, %v574_v19  ;;  %20322 = vst [vmem:[#allocation165_spill] sm:$0xff] %v13377_v32  ;;  %v13385_v47 = vcombine.low %v1145_v4, %v1148_v42  ;;  %v13399_v42 = vpop.f32.mrb[8].mxu1 }
 0x151   :  { %v1504_v0 = vsel %vm10743_vm8, %v1500_v57, %v1503_v51  ;;  %v4531_v44 = vsel %vm12765_vm14, %v9480_v49, %v4530_v35  ;;  %v4534_v24 = vsel %vm12765_vm14, %v4532_v48, %v4533_v41  ;;  %v13393_v53 = vpop.permute.xlu1 %2307  ;;  %v20324_v7 = vshll.u32 %v13185_v23, 16  ;;  %v13409_v41 = vpop.f32.mrb[9].mxu1  ;;  %v20326_v57 = vld [vmem:[#allocation18_spill] sm:$0xff]  ;;  %v10360_v48 = vld [vmem:[%s19316_s0 + $0xd8] sm:$0xf] }
 0x152   :  { %v1857_v14 = vrot.slane %v20320_v30, 5  ;;  %v13381_v30 = vsel %vm2738_vm10, %v2674_v55, %v13201_v12  ;;  %v588_v61 = vor.u32 %v587_v3, %v583_v8  ;;  %v1511_v12 = vsel %vm10743_vm8, %v1505_v21, %v1510_v58  ;;  %v13404_v35 = vpop.permute.xlu0 %2591  ;;  %v10361_v58 = vld [vmem:[%s19316_s0 + $0xe0] sm:$0x3] }
 0x153   :  { %5302 = vrot.lane.b32.xlu0 %v13319_v39, %s10548_s16  ;;  %20323 = vst [vmem:[#allocation166_spill] sm:$0xff] %v13381_v30  ;;  %v579_v55 = vrot.slane %v578_v56, 4  ;;  %v593_v4 = vrot.slane %v20324_v7, 5  ;;  %v3017_v51 = vsel %vm2738_vm10, %v13377_v32, %v13370_v17  ;;  %20325 = vst [vmem:[#allocation167_spill] sm:$0xff] %v13404_v35  ;;  %v2835_v49 = vsel %vm2803_vm11, %v13381_v30, %v13232_v54 }
 0x154   :  { %2463 = vrot.lane.b32.xlu1 %v13343_v15, %s10548_s16  ;;  %v589_v19 = vrot.slane %v588_v61, 4  ;;  %v9314_v21 = vrot.slane %v10360_v48, 9  ;;  %v1894_v60 = vrot.slane %v10361_v58, 5  ;;  %v3091_v3 = vsel %vm2803_vm11, %v3017_v51, %v13404_v35  ;;  %v13432_v48 = vpop.f32.mrb[10].mxu1 }
 0x155   :  { %v13421_v38 = vcombine.low %v4531_v44, %v4534_v24  ;;  %v1848_v56 = vsel %vm10710_vm5, %v1843_v33, %v13296_v28  ;;  %v1858_v61 = vsel %vm10710_vm5, %v1853_v6, %v1857_v14  ;;  %v1893_v7 = vrot.slane %v1891_v37, 4  ;;  %3508 = vmatprep.mubr.bf16.mxu0 %v3091_v3  ;;  %v13438_v28 = vpop.f32.mrb[11].mxu1  ;;  %v13440_v14 = vpop.permute.xlu1 %2377  ;;  %v20330_v6 = vld [vmem:[#allocation20_spill] sm:$0xff] }
 0x156   :  { %3509 = vmatmul.mubr.bf16.gmra.mrb[40].mxu0 %v2835_v49  ;;  %v584_v44 = vsel %vm10710_vm5, %v579_v55, %v583_v8  ;;  %v594_v24 = vsel %vm10710_vm5, %v589_v19, %v593_v4  ;;  %v5295_v33 = vpop.permute.xlu0 %5294  ;;  %20329 = vst [vmem:[#allocation169_spill] sm:$0xff] %v13440_v14  ;;  %v1892_v51 = vsel %vm10635_vm2, %v9314_v21, %v1891_v37  ;;  %v20332_v19 = vld [vmem:[#allocation60_spill] sm:$0xff]  ;;  %v20333_v49 = vld [vmem:[#allocation62_spill] sm:$0xff]  ;;  %v1151_v3 = vrot.slane %v13152_v10, 5  ;;  %v20335_v21 = vld [vmem:[#allocation47_spill] sm:$0xff] }
 0x157   :  { %5066 = vrot.lane.b32.xlu0 %v20326_v57, %s10549_s21  ;;  %20327 = vst [vmem:[#allocation18_spill] sm:$0xff] %v13421_v38  ;;  %v13430_v57 = vcombine.low %v1504_v0, %v1511_v12  ;;  %v13444_v0 = vcombine.low %v1848_v56, %v1858_v61  ;;  %v5916_v12 = vsel %vm2641_vm9, %v13421_v38, %v5295_v33 }
 0x158   :  { %2157 = vrot.lane.b32.xlu1 %v13385_v47, %s10548_s16  ;;  %v1895_v8 = vsel %vm10635_vm2, %v1893_v7, %v1894_v60  ;;  %v13454_v55 = vcombine.low %v584_v44, %v594_v24  ;;  %v6004_v4 = vsel %vm2738_vm10, %v5916_v12, %v20332_v19  ;;  %v20336_v60 = vshrl.u32 %v20335_v21, 16  ;;  %v20338_v24 = vld [vmem:[#allocation66_spill] sm:$0xff]  ;;  %v20339_v12 = vld [vmem:[#allocation49_spill] sm:$0xff] }
 0x159   :  { %20328 = vst [vmem:[#allocation168_spill] sm:$0xff] %v13430_v57  ;;  %20331 = vst [vmem:[#allocation170_spill] sm:$0xff] %v13444_v0  ;;  %v6044_v58 = vsel %vm2803_vm11, %v6004_v4, %v20333_v49  ;;  %v13463_v37 = vcombine.low %v1892_v51, %v1895_v8  ;;  %v20337_v7 = vshll.u32 %v20335_v21, 16  ;;  %v5660_v33 = vsel %vm2641_vm9, %v20338_v24, %v13276_v16  ;;  %v13478_v51 = vpop.permute.xlu1 %4990  ;;  %v13488_v16 = vld [vmem:[%s19316_s0 + $0x78] sm:$0xf] }
 0x15a   :  { %v5059_v56 = vpop.permute.xlu0 %5058  ;;  %7338 = vmatprep.mubr.bf16.mxu1 %v6044_v58  ;;  %v598_v61 = vrot.slane %v20336_v60, 4  ;;  %v20340_v19 = vshll.u32 %v20339_v12, 16  ;;  %v20341_v4 = vshrl.u32 %v20339_v12, 16  ;;  %v9297_v8 = vrot.slane %v13142_v13, 9  ;;  %v13493_v12 = vld [vmem:[%s19316_s0 + $0x7c] sm:$0xf] }
 0x15b   :  { %5136 = vrot.lane.b32.xlu0 %v20330_v6, %s10550_s22  ;;  %20334 = vst [vmem:[#allocation60_spill] sm:$0xff] %v13463_v37  ;;  %v601_v44 = vrot.slane %v20337_v7, 5  ;;  %v1153_v58 = vrot.slane %v1151_v3, 4  ;;  %v1154_v21 = vrot.slane %v13185_v23, 5  ;;  %v5751_v60 = vsel %vm2738_vm10, %v5660_v33, %v5059_v56 }
 0x15c   :  { %2317 = vrot.lane.b32.xlu1 %v13430_v57, %s10549_s21  ;;  %v607_v10 = vrot.slane %v20340_v19, 5  ;;  %v611_v49 = vrot.slane %v20341_v4, 4  ;;  %v13497_v13 = vcombine.low %v13488_v16, %v13493_v12  ;;  %v1152_v19 = vsel %vm10635_vm2, %v9297_v8, %v1151_v3  ;;  %v20346_v3 = vld [vmem:[#allocation63_spill] sm:$0xff] }
 0x15d   :  { %v602_v23 = vor.u32 %v601_v44, %v598_v61  ;;  %v1155_v4 = vsel %vm10635_vm2, %v1153_v58, %v1154_v21  ;;  %v13509_v54 = vpop.permute.xlu1 %2455 }
 0x15e   :  { %v5129_v7 = vpop.permute.xlu0 %5128  ;;  %20342 = vst [vmem:[#allocation62_spill] sm:$0xff] %v13497_v13  ;;  %v612_v33 = vor.u32 %v611_v49, %v607_v10  ;;  %v13520_v8 = vcombine.low %v1152_v19, %v1155_v4  ;;  %v10366_v19 = vld [vmem:[%s19316_s0 + $0x11c] sm:$0x3] }
 0x15f   :  { %2531 = vrot.lane.b32.xlu0 %v13444_v0, %s10549_s21  ;;  %v13500_v56 = vsel %vm2803_vm11, %v5751_v60, %v5129_v7  ;;  %v603_v61 = vrot.slane %v602_v23, 4  ;;  %v20344_v60 = vld [vmem:[#allocation51_spill] sm:$0xff]  ;;  %v1161_v4 = vrot.slane %v10366_v19, 5 }
 0x160   :  { %2387 = vrot.lane.b32.xlu1 %v13454_v55, %s10550_s22  ;;  %20343 = vst [vmem:[#allocation47_spill] sm:$0xff] %v13500_v56  ;;  %7339 = vmatmul.mubr.bf16.gmra.mrb[80].mxu1 %v13500_v56  ;;  %v613_v44 = vrot.slane %v612_v33, 4  ;;  %v20345_v49 = vshll.u32 %v20344_v60, 16  ;;  %v10365_v23 = vld [vmem:[%s19316_s0 + $0x114] sm:$0xf] }
 0x161   :  { %v608_v58 = vsel %vm10710_vm5, %v603_v61, %v607_v10  ;;  %v9298_v33 = vrot.slane %v10365_v23, 9  ;;  %v10367_v10 = vld [vmem:[%s19316_s0 + $0x40] sm:$0xf]  ;;  %v20351_v0 = vld [vmem:[#allocation59_spill] sm:$0xff] }
 0x162   :  { %v617_v7 = vrot.slane %v20345_v49, 5  ;;  %v4537_v61 = vrot.slane %v10367_v10, 6  ;;  %v20347_v49 = vld [vmem:[#allocation23_spill] sm:$0xff] }
 0x163   :  { %2601 = vrot.lane.b32.xlu0 %v13463_v37, %s10550_s22  ;;  %v2677_v37 = vsel %vm2641_vm9, %v20351_v0, %v13353_v40 }
 0x164   :  { %5000 = vrot.lane.b32.xlu1 %v11357_v46, %s10548_s16  ;;  %v10364_v46 = vld [vmem:[%s19316_s0 + $0x118] sm:$0xf]  ;;  %v618_v21 = vsel %vm10710_vm5, %v613_v44, %v617_v7  ;;  %v13541_v44 = vpop.f32.mrb[12].mxu1 }
 0x165   :  { %v1158_v32 = vrot.slane %v10364_v46, 5  ;;  %v13545_v7 = vcombine.low %v608_v58, %v618_v21  ;;  %v13547_v46 = vpop.f32.mrb[13].mxu1  ;;  %v10368_v58 = vld [vmem:[%s19316_s0 + $0x3c] sm:$0xf] }
 0x166   :  { %v13555_v6 = vpop.f32.mrb[14].mxu1  ;;  %v9481_v21 = vrot.slane %v10368_v58, 10  ;;  %v20352_v58 = vld [vmem:[#allocation53_spill] sm:$0xff] }
 0x167   :  { %5304 = vrot.lane.b32.xlu0 %v13497_v13, %s10548_s16  ;;  %v1160_v60 = vrot.slane %v1158_v32, 4  ;;  %20348 = vst [vmem:[#allocation49_spill] sm:$0xff] %v13545_v7  ;;  %v1159_v23 = vsel %vm10635_vm2, %v9298_v33, %v1158_v32  ;;  %20349 = vst [vmem:[#allocation51_spill] sm:$0xff] %v13555_v6  ;;  %v10369_v32 = vld [vmem:[%s19316_s0 + $0x44] sm:$0x3]  ;;  %v13565_v30 = vpop.f32.mrb[15].mxu1 }
 0x168   :  { %2465 = vrot.lane.b32.xlu1 %v20346_v3, %s10548_s16  ;;  %v4540_v33 = vrot.slane %v10369_v32, 6  ;;  %v20353_v56 = vshrl.u32 %v20352_v58, 16  ;;  %v20354_v38 = vshll.u32 %v20352_v58, 16  ;;  %v20355_v32 = vld [vmem:[#allocation54_spill] sm:$0xff] }
 0x169   :  { %v1162_v19 = vsel %vm10635_vm2, %v1160_v60, %v1161_v4  ;;  %v20356_v35 = vshll.u32 %v20355_v32, 16  ;;  %v20357_v57 = vshrl.u32 %v20355_v32, 16 }
 0x16a   :  { %v13571_v4 = vcombine.low %v1159_v23, %v1162_v19  ;;  %v622_v24 = vrot.slane %v20353_v56, 4  ;;  %v4538_v23 = vsel %vm12765_vm14, %v9481_v21, %v4537_v61  ;;  %v20358_v56 = vld [vmem:[#allocation100_spill] sm:$0xff] }
 0x16b   :  { %5068 = vrot.lane.b32.xlu0 %v20250_v52, %s10549_s21  ;;  %v13536_v52 = vpop.permute.xlu1 %2149  ;;  %v631_v17 = vrot.slane %v20356_v35, 5  ;;  %v635_v6 = vrot.slane %v20357_v57, 4  ;;  %v13593_v19 = vsel %vm2641_vm9, %v20358_v56, %v13322_v36  ;;  %v13597_v35 = vsel %vm2738_vm10, %v2677_v37, %v13393_v53  ;;  %v13609_v57 = vld [vmem:[%s19316_s0 + $0x88] sm:$0xf] }
 0x16c   :  { %2159 = vrot.lane.b32.xlu1 %v13520_v8, %s10548_s16  ;;  %v13557_v10 = vpop.permute.xlu0 %2523  ;;  %20359 = vst [vmem:[#allocation59_spill] sm:$0xff] %v13593_v19  ;;  %20360 = vst [vmem:[#allocation53_spill] sm:$0xff] %v13597_v35 }
 0x16d   :  { %20350 = vst [vmem:[#allocation171_spill] sm:$0xff] %v13557_v10  ;;  %v3019_v53 = vsel %vm2738_vm10, %v13593_v19, %v13557_v10  ;;  %v636_v21 = vor.u32 %v635_v6, %v631_v17 }
 0x16f   :  { %5138 = vrot.lane.b32.xlu0 %v20347_v49, %s10550_s22  ;;  %v4539_v49 = vrot.slane %v4537_v61, 4  ;;  %v13567_v60 = vpop.permute.xlu1 %2309 }
 0x170   :  { %2319 = vrot.lane.b32.xlu1 %v13343_v15, %s10549_s21  ;;  %v625_v15 = vrot.slane %v20354_v38, 5  ;;  %v13604_v38 = vld [vmem:[%s19316_s0 + $0x84] sm:$0xf] }
 0x171   :  { %v4541_v40 = vsel %vm12765_vm14, %v4539_v49, %v4540_v33  ;;  %v13613_v36 = vcombine.low %v13604_v38, %v13609_v57  ;;  %v2838_v49 = vsel %vm2803_vm11, %v13597_v35, %v13440_v14  ;;  %v637_v35 = vrot.slane %v636_v21, 4 }
 0x172   :  { %v626_v61 = vor.u32 %v625_v15, %v622_v24  ;;  %v13625_v58 = vcombine.low %v4538_v23, %v4541_v40  ;;  %v20365_v24 = vld [vmem:[#allocation56_spill] sm:$0xff]  ;;  %v10372_v23 = vld [vmem:[%s19316_s0 + $0x124] sm:$0xf] }
 0x173   :  { %2533 = vrot.lane.b32.xlu0 %v13545_v7, %s10549_s21  ;;  %20361 = vst [vmem:[#allocation54_spill] sm:$0xff] %v13613_v36  ;;  %v13629_v32 = vpop.permute.xlu1 %2379  ;;  %v20366_v19 = vshll.u32 %v20365_v24, 16  ;;  %v1165_v40 = vrot.slane %v10372_v23, 5  ;;  %v20371_v23 = vshll.u32 %v13246_v34, 16 }
 0x174   :  { %2389 = vrot.lane.b32.xlu1 %v13545_v7, %s10550_s22  ;;  %20363 = vst [vmem:[#allocation172_spill] sm:$0xff] %v13625_v58  ;;  %20364 = vst [vmem:[#allocation173_spill] sm:$0xff] %v13629_v32  ;;  %v627_v15 = vrot.slane %v626_v61, 4 }
 0x175   :  { %v641_v14 = vrot.slane %v20366_v19, 5  ;;  %v20369_v19 = vshrl.u32 %v13246_v34, 16  ;;  %v553_v21 = vrot.slane %v20371_v23, 5  ;;  %v20374_v23 = vshll.u32 %v13256_v50, 16 }
 0x176   :  { %v13618_v37 = vpop.permute.xlu0 %2593  ;;  %v632_v34 = vsel %vm10710_vm5, %v627_v15, %v631_v17  ;;  %v10374_v17 = vld [vmem:[%s19316_s0 + $0x128] sm:$0x3] }
 0x177   :  { %2603 = vrot.lane.b32.xlu0 %v13571_v4, %s10550_s22  ;;  %20362 = vst [vmem:[#allocation100_spill] sm:$0xff] %v13618_v37  ;;  %v3094_v33 = vsel %vm2803_vm11, %v3019_v53, %v13618_v37  ;;  %v3430_v53 = vpop.f32.mrb[0].mxu0  ;;  %v550_v24 = vrot.slane %v20369_v19, 4  ;;  %v20370_v37 = vld [vmem:[#allocation73_spill] sm:$0xff]  ;;  %v1168_v15 = vrot.slane %v10374_v17, 5 }
 0x178   :  { %5002 = vrot.lane.b32.xlu1 %v11647_v27, %s10548_s16  ;;  %3516 = vmatprep.mubr.bf16.mxu0 %v3094_v33  ;;  %v13643_v33 = vadd.f32 %v13154_v26, %v3430_v53  ;;  %v3432_v61 = vpop.f32.mrb[1].mxu0  ;;  %v13656_v53 = vpop.permute.xlu1 %4992 }
 0x179   :  { %3517 = vmatmul.mubr.bf16.gmra.mrb[44].mxu0 %v2838_v49  ;;  %v20367_v49 = vld [vmem:[#allocation69_spill] sm:$0xff]  ;;  %v3433_v7 = vpop.f32.mrb[2].mxu0 }
 0x17a   :  { %v5297_v6 = vpop.permute.xlu0 %5296  ;;  %20368 = vst [vmem:[#allocation56_spill] sm:$0xff] %v13643_v33  ;;  %v13659_v61 = vadd.f32 %v13188_v18, %v3433_v7  ;;  %v3435_v19 = vpop.f32.mrb[3].mxu0  ;;  %v642_v18 = vsel %vm10710_vm5, %v637_v35, %v641_v14  ;;  %v20376_v7 = vld [vmem:[#allocation104_spill] sm:$0xff] }
 0x17b   :  { %5306 = vrot.lane.b32.xlu0 %v13613_v36, %s10548_s16  ;;  %v5919_v27 = vsel %vm2641_vm9, %v13625_v58, %v5297_v6  ;;  %v10373_v6 = vld [vmem:[%s19316_s0 + $0x120] sm:$0xf]  ;;  %v20372_v36 = vld [vmem:[#allocation76_spill] sm:$0xff]  ;;  %v5663_v19 = vsel %vm2641_vm9, %v20376_v7, %v13478_v51  ;;  %v13683_v35 = vcombine.low %v632_v34, %v642_v18 }
 0x17c   :  { %2467 = vrot.lane.b32.xlu1 %v20367_v49, %s10548_s16  ;;  %v6005_v10 = vsel %vm2738_vm10, %v5919_v27, %v20370_v37  ;;  %v9299_v58 = vrot.slane %v10373_v6, 9  ;;  %20373 = vst [vmem:[#allocation73_spill] sm:$0xff] %v13659_v61  ;;  %v554_v27 = vor.u32 %v553_v21, %v550_v24  ;;  %v559_v6 = vrot.slane %v20374_v23, 5  ;;  %v20378_v14 = vld [vmem:[#allocation24_spill] sm:$0xff]  ;;  %v13697_v34 = vpop.permute.xlu1 %2457 }
 0x17d   :  { %v6046_v26 = vsel %vm2803_vm11, %v6005_v10, %v20372_v36  ;;  %v20375_v10 = vshrl.u32 %v13256_v50, 16  ;;  %v20377_v50 = vshll.u32 %v13273_v29, 16  ;;  %20379 = vst [vmem:[#allocation76_spill] sm:$0xff] %v13683_v35 }
 0x17e   :  { %v5061_v37 = vpop.permute.xlu0 %5060  ;;  %7346 = vmatprep.mubr.bf16.mxu1 %v6046_v26  ;;  %v555_v24 = vrot.slane %v554_v27, 4  ;;  %v1166_v33 = vsel %vm10635_vm2, %v9299_v58, %v1165_v40 }
 0x17f   :  { %5070 = vrot.lane.b32.xlu0 %v11456_v25, %s10549_s21  ;;  %v563_v36 = vrot.slane %v20375_v10, 4  ;;  %v1167_v25 = vrot.slane %v1165_v40, 4  ;;  %v569_v26 = vrot.slane %v20377_v50, 5  ;;  %v5753_v51 = vsel %vm2738_vm10, %v5663_v19, %v5061_v37  ;;  %v20382_v19 = vld [vmem:[#allocation64_spill] sm:$0xff]  ;;  %v20385_v50 = vld [vmem:[#allocation65_spill] sm:$0xff] }
 0x180   :  { %2161 = vrot.lane.b32.xlu1 %v13571_v4, %s10548_s16  ;;  %v560_v10 = vsel %vm10710_vm5, %v555_v24, %v559_v6  ;;  %v20384_v24 = vshll.u32 %v20382_v19, 16 }
 0x181   :  { %v564_v21 = vor.u32 %v563_v36, %v559_v6  ;;  %v1169_v27 = vsel %vm10635_vm2, %v1167_v25, %v1168_v15  ;;  %v3438_v6 = vpop.f32.mrb[4].mxu0  ;;  %v20383_v25 = vshrl.u32 %v20382_v19, 16 }
 0x182   :  { %v5131_v23 = vpop.permute.xlu0 %5130  ;;  %v13706_v58 = vcombine.low %v1166_v33, %v1169_v27  ;;  %v13709_v40 = vadd.f32 %v13144_v31, %v3438_v6  ;;  %v3440_v18 = vpop.f32.mrb[5].mxu0  ;;  %v13736_v6 = vld [vmem:[%s19316_s0 + $0x94] sm:$0xf] }
 0x183   :  { %5140 = vrot.lane.b32.xlu0 %v20378_v14, %s10550_s22  ;;  %v565_v17 = vrot.slane %v564_v21, 4  ;;  %v13693_v29 = vsel %vm2803_vm11, %v5753_v51, %v5131_v23  ;;  %v646_v15 = vrot.slane %v20383_v25, 4  ;;  %v649_v21 = vrot.slane %v20384_v24, 5  ;;  %v3441_v33 = vpop.f32.mrb[6].mxu0  ;;  %v13724_v27 = vpop.permute.xlu1 %2151  ;;  %v10377_v25 = vld [vmem:[%s19316_s0 + $0x4c] sm:$0xf] }
 0x184   :  { %20380 = vst [vmem:[#allocation174_spill] sm:$0xff] %v13693_v29  ;;  %2321 = vrot.lane.b32.xlu1 %v20346_v3, %s10549_s21  ;;  %7347 = vmatmul.mubr.bf16.gmra.mrb[84].mxu1 %v13693_v29  ;;  %20381 = vst [vmem:[#allocation175_spill] sm:$0xff] %v13709_v40  ;;  %v20387_v23 = vshrl.u32 %v20385_v50, 16  ;;  %v13722_v31 = vadd.f32 %v13174_v1, %v3441_v33  ;;  %v4544_v24 = vrot.slane %v10377_v25, 6 }
 0x185   :  { %v570_v37 = vsel %vm10710_vm5, %v565_v17, %v569_v26  ;;  %v20386_v26 = vshll.u32 %v20385_v50, 16  ;;  %v3443_v17 = vpop.f32.mrb[7].mxu0  ;;  %v650_v18 = vor.u32 %v649_v21, %v646_v15  ;;  %v10378_v15 = vld [vmem:[%s19316_s0 + $0x130] sm:$0xf] }
 0x186   :  { %v13702_v36 = vcombine.low %v560_v10, %v570_v37  ;;  %v659_v10 = vrot.slane %v20387_v23, 4  ;;  %20388 = vst [vmem:[#allocation64_spill] sm:$0xff] %v13722_v31  ;;  %v13731_v37 = vld [vmem:[%s19316_s0 + $0x90] sm:$0xf]  ;;  %v1172_v21 = vrot.slane %v10378_v15, 5 }
 0x187   :  { %2535 = vrot.lane.b32.xlu0 %v13683_v35, %s10549_s21  ;;  %v655_v51 = vrot.slane %v20386_v26, 5  ;;  %v13740_v1 = vcombine.low %v13731_v37, %v13736_v6  ;;  %v651_v50 = vrot.slane %v650_v18, 4  ;;  %v20390_v23 = vld [vmem:[#allocation67_spill] sm:$0xff]  ;;  %v10379_v31 = vld [vmem:[%s19316_s0 + $0x48] sm:$0xf] }
 0x188   :  { %2391 = vrot.lane.b32.xlu1 %v13683_v35, %s10550_s22  ;;  %v20391_v33 = vshll.u32 %v20390_v23, 16  ;;  %v9482_v25 = vrot.slane %v10379_v31, 10  ;;  %v10380_v23 = vld [vmem:[%s19316_s0 + $0x50] sm:$0x3]  ;;  %v10381_v15 = vld [vmem:[%s19316_s0 + $0x12c] sm:$0xf] }
 0x189   :  { %20389 = vst [vmem:[#allocation65_spill] sm:$0xff] %v13740_v1  ;;  %v660_v19 = vor.u32 %v659_v10, %v655_v51  ;;  %v13756_v10 = vpop.permute.xlu1 %2311  ;;  %v9300_v40 = vrot.slane %v10381_v15, 9  ;;  %v656_v31 = vsel %vm10710_vm5, %v651_v50, %v655_v51  ;;  %v1174_v29 = vrot.slane %v1172_v21, 4 }
 0x18a   :  { %v665_v17 = vrot.slane %v20391_v33, 5  ;;  %v4547_v33 = vrot.slane %v10380_v23, 6  ;;  %v10382_v23 = vld [vmem:[%s19316_s0 + $0x134] sm:$0x3] }
 0x18b   :  { %2605 = vrot.lane.b32.xlu0 %v13706_v58, %s10550_s22  ;;  %v661_v26 = vrot.slane %v660_v19, 4  ;;  %v3446_v18 = vpop.f32.mrb[8].mxu0  ;;  %v4546_v19 = vrot.slane %v4544_v24, 4  ;;  %v1175_v7 = vrot.slane %v10382_v23, 5 }
 0x18c   :  { %5004 = vrot.lane.b32.xlu1 %v20351_v0, %s10548_s16  ;;  %v20392_v0 = vld [vmem:[#allocation79_spill] sm:$0xff]  ;;  %v13770_v61 = vadd.f32 %v13234_v2, %v3446_v18  ;;  %v3448_v14 = vpop.f32.mrb[9].mxu0  ;;  %v20394_v2 = vld [vmem:[#allocation97_spill] sm:$0xff] }
 0x18d   :  { %v3449_v15 = vpop.f32.mrb[10].mxu0  ;;  %v2680_v14 = vsel %vm2641_vm9, %v20394_v2, %v13536_v52  ;;  %v4548_v3 = vsel %vm12765_vm14, %v4546_v19, %v4547_v33  ;;  %v20400_v52 = vld [vmem:[#allocation133_spill] sm:$0xff] }
 0x18e   :  { %20393 = vst [vmem:[#allocation67_spill] sm:$0xff] %v13770_v61  ;;  %v13787_v51 = vadd.f32 %v13258_v22, %v3449_v15  ;;  %v3451_v50 = vpop.f32.mrb[11].mxu0  ;;  %v4545_v61 = vsel %vm12765_vm14, %v9482_v25, %v4544_v24  ;;  %v13802_v35 = vsel %vm2641_vm9, %v20400_v52, %v13509_v54  ;;  %v13806_v22 = vsel %vm2738_vm10, %v2680_v14, %v13567_v60 }
 0x18f   :  { %5308 = vrot.lane.b32.xlu0 %v13740_v1, %s10548_s16  ;;  %20401 = vst [vmem:[#allocation133_spill] sm:$0xff] %v13802_v35  ;;  %20402 = vst [vmem:[#allocation179_spill] sm:$0xff] %v13806_v22  ;;  %v1173_v15 = vsel %vm10635_vm2, %v9300_v40, %v1172_v21  ;;  %v2841_v54 = vsel %vm2803_vm11, %v13806_v22, %v13629_v32  ;;  %v13824_v40 = vcombine.low %v4545_v61, %v4548_v3  ;;  %v20409_v50 = vld [vmem:[#allocation72_spill] sm:$0xff] }
 0x190   :  { %2469 = vrot.lane.b32.xlu1 %v20392_v0, %s10548_s16  ;;  %20396 = vst [vmem:[#allocation176_spill] sm:$0xff] %v13787_v51  ;;  %v20410_v51 = vshll.u32 %v20409_v50, 16  ;;  %v20411_v3 = vshrl.u32 %v20409_v50, 16 }
 0x191   :  { %20404 = vst [vmem:[#allocation181_spill] sm:$0xff] %v13824_v40 }
 0x192   :  { %v683_v61 = vrot.slane %v20411_v3, 4 }
 0x193   :  { %5072 = vrot.lane.b32.xlu0 %v11649_v20, %s10549_s21  ;;  %v666_v20 = vsel %vm10710_vm5, %v661_v26, %v665_v17  ;;  %v20398_v17 = vld [vmem:[#allocation25_spill] sm:$0xff] }
 0x194   :  { %2163 = vrot.lane.b32.xlu1 %v13706_v58, %s10548_s16  ;;  %v13793_v23 = vcombine.low %v656_v31, %v666_v20  ;;  %v1176_v31 = vsel %vm10635_vm2, %v1174_v29, %v1175_v7  ;;  %v20406_v29 = vld [vmem:[#allocation70_spill] sm:$0xff] }
 0x195   :  { %v13784_v18 = vpop.permute.xlu0 %2525  ;;  %v13789_v26 = vpop.permute.xlu1 %2381  ;;  %v13830_v7 = vcombine.low %v1173_v15, %v1176_v31  ;;  %v20407_v19 = vshrl.u32 %v20406_v29, 16  ;;  %v20408_v20 = vshll.u32 %v20406_v29, 16 }
 0x196   :  { %20395 = vst [vmem:[#allocation97_spill] sm:$0xff] %v13784_v18  ;;  %20397 = vst [vmem:[#allocation177_spill] sm:$0xff] %v13789_v26  ;;  %v3021_v24 = vsel %vm2738_vm10, %v13802_v35, %v13784_v18  ;;  %v20417_v35 = vld [vmem:[#allocation88_spill] sm:$0xff] }
 0x197   :  { %5142 = vrot.lane.b32.xlu0 %v20398_v17, %s10550_s22  ;;  %20399 = vst [vmem:[#allocation178_spill] sm:$0xff] %v13793_v23  ;;  %20405 = vst [vmem:[#allocation182_spill] sm:$0xff] %v13830_v7  ;;  %v670_v33 = vrot.slane %v20407_v19, 4  ;;  %v673_v14 = vrot.slane %v20408_v20, 5  ;;  %v13857_v19 = vld [vmem:[%s19316_s0 + $0x9c] sm:$0xf] }
 0x198   :  { %2323 = vrot.lane.b32.xlu1 %v20367_v49, %s10549_s21  ;;  %20413 = vst [vmem:[#allocation70_spill] sm:$0xff] %v13857_v19  ;;  %v13862_v20 = vld [vmem:[%s19316_s0 + $0xa0] sm:$0xf] }
 0x199   :  { %v13817_v25 = vpop.permute.xlu0 %2595  ;;  %20414 = vst [vmem:[#allocation72_spill] sm:$0xff] %v13862_v20  ;;  %v3454_v50 = vpop.f32.mrb[12].mxu0 }
 0x19a   :  { %20403 = vst [vmem:[#allocation180_spill] sm:$0xff] %v13817_v25  ;;  %v3097_v60 = vsel %vm2803_vm11, %v3021_v24, %v13817_v25  ;;  %v13826_v21 = vpop.permute.xlu1 %4994  ;;  %v679_v24 = vrot.slane %v20410_v51, 5  ;;  %v20412_v51 = vld [vmem:[#allocation86_spill] sm:$0xff]  ;;  %v13875_v22 = vadd.f32 %v13227_v62, %v3454_v50  ;;  %v4551_v62 = vrot.slane %v12979_v59, 6 }
 0x19b   :  { %2537 = vrot.lane.b32.xlu0 %v13793_v23, %s10549_s21  ;;  %3524 = vmatprep.mubr.bf16.mxu0 %v3097_v60  ;;  %v13842_v60 = vpop.f32.mrb[16].mxu1 }
 0x19c   :  { %3525 = vmatmul.mubr.bf16.gmra.mrb[48].mxu0 %v2841_v54  ;;  %2393 = vrot.lane.b32.xlu1 %v13793_v23, %s10550_s22  ;;  %v13848_v54 = vpop.f32.mrb[17].mxu1  ;;  %v684_v17 = vor.u32 %v683_v61, %v679_v24  ;;  %20418 = vst [vmem:[#allocation88_spill] sm:$0xff] %v13875_v22  ;;  %v20419_v23 = vld [vmem:[#allocation131_spill] sm:$0xff] }
 0x19d   :  { %v5299_v32 = vpop.permute.xlu0 %5298  ;;  %v13868_v3 = vpop.f32.mrb[18].mxu1 }
 0x19e   :  { %v5922_v15 = vsel %vm2641_vm9, %v13824_v40, %v5299_v32  ;;  %v13846_v31 = vpop.permute.xlu1 %2459  ;;  %v13866_v32 = vcombine.low %v13857_v19, %v13862_v20  ;;  %20416 = vst [vmem:[#allocation183_spill] sm:$0xff] %v13868_v3  ;;  %v3456_v40 = vpop.f32.mrb[13].mxu0  ;;  %v5666_v19 = vsel %vm2641_vm9, %v20419_v23, %v13656_v53  ;;  %v10385_v53 = vld [vmem:[%s19316_s0 + $0x13c] sm:$0xf] }
 0x19f   :  { %2607 = vrot.lane.b32.xlu0 %v13830_v7, %s10550_s22  ;;  %v6006_v29 = vsel %vm2738_vm10, %v5922_v15, %v20412_v51  ;;  %v674_v51 = vor.u32 %v673_v14, %v670_v33  ;;  %v13877_v49 = vpop.f32.mrb[19].mxu1  ;;  %v3457_v18 = vpop.f32.mrb[14].mxu0  ;;  %v685_v40 = vrot.slane %v684_v17, 4  ;;  %v20421_v14 = vld [vmem:[#allocation74_spill] sm:$0xff]  ;;  %v1179_v50 = vrot.slane %v10385_v53, 5  ;;  %v20425_v17 = vld [vmem:[#allocation31_spill] sm:$0xff] }
 0x1a0   :  { %20415 = vst [vmem:[#allocation86_spill] sm:$0xff] %v13866_v32  ;;  %v6048_v15 = vsel %vm2803_vm11, %v6006_v29, %v20417_v35  ;;  %5006 = vrot.lane.b32.xlu1 %v20394_v2, %s10548_s16  ;;  %v13885_v35 = vadd.f32 %v13248_v45, %v3457_v18  ;;  %v3459_v33 = vpop.f32.mrb[15].mxu0  ;;  %v20422_v61 = vshll.u32 %v20421_v14, 16  ;;  %v4553_v14 = vrot.slane %v4551_v62, 4 }
 0x1a1   :  { %v5063_v25 = vpop.permute.xlu0 %5062  ;;  %7354 = vmatprep.mubr.bf16.mxu1 %v6048_v15  ;;  %v675_v2 = vrot.slane %v674_v51, 4  ;;  %v20423_v15 = vld [vmem:[#allocation85_spill] sm:$0xff]  ;;  %v9483_v51 = vrot.slane %v20425_v17, 10 }
 0x1a2   :  { %v13882_v20 = vpop.permute.xlu1 %2153  ;;  %20420 = vst [vmem:[#allocation184_spill] sm:$0xff] %v13885_v35  ;;  %v689_v29 = vrot.slane %v20422_v61, 5  ;;  %v5755_v45 = vsel %vm2738_vm10, %v5666_v19, %v5063_v25  ;;  %v10386_v61 = vld [vmem:[%s19316_s0 + $0x5c] sm:$0x3]  ;;  %v10387_v25 = vld [vmem:[%s19316_s0 + $0x138] sm:$0xf] }
 0x1a3   :  { %5310 = vrot.lane.b32.xlu0 %v13866_v32, %s10548_s16  ;;  %v4554_v53 = vrot.slane %v10386_v61, 6  ;;  %v9301_v19 = vrot.slane %v10387_v25, 9  ;;  %v10388_v17 = vld [vmem:[%s19316_s0 + $0x140] sm:$0x3]  ;;  %v20426_v61 = vld [vmem:[#allocation124_spill] sm:$0xff] }
 0x1a4   :  { %2471 = vrot.lane.b32.xlu1 %v20423_v15, %s10548_s16  ;;  %v1182_v35 = vrot.slane %v10388_v17, 5  ;;  %v2683_v22 = vsel %vm2641_vm9, %v20426_v61, %v13724_v27  ;;  %v20431_v17 = vld [vmem:[#allocation152_spill] sm:$0xff] }
 0x1a5   :  { %v5133_v18 = vpop.permute.xlu0 %5132  ;;  %v13940_v23 = vsel %vm2641_vm9, %v20431_v17, %v13697_v34  ;;  %v13944_v27 = vsel %vm2738_vm10, %v2683_v22, %v13756_v10 }
 0x1a6   :  { %v13899_v33 = vsel %vm2803_vm11, %v5755_v45, %v5133_v18  ;;  %v13901_v59 = vpop.permute.xlu1 %2313  ;;  %v680_v45 = vsel %vm10710_vm5, %v675_v2, %v679_v24  ;;  %v1181_v18 = vrot.slane %v1179_v50, 4  ;;  %v20429_v24 = vld [vmem:[#allocation27_spill] sm:$0xff]  ;;  %20432 = vst [vmem:[#allocation152_spill] sm:$0xff] %v13940_v23  ;;  %20433 = vst [vmem:[#allocation186_spill] sm:$0xff] %v13944_v27  ;;  %v2844_v34 = vsel %vm2803_vm11, %v13944_v27, %v13789_v26  ;;  %v20440_v26 = vld [vmem:[#allocation78_spill] sm:$0xff] }
 0x1a7   :  { %20424 = vst [vmem:[#allocation74_spill] sm:$0xff] %v13899_v33  ;;  %5074 = vrot.lane.b32.xlu0 %v12020_v11, %s10549_s21  ;;  %7355 = vmatmul.mubr.bf16.gmra.mrb[88].mxu1 %v13899_v33  ;;  %v690_v11 = vsel %vm10710_vm5, %v685_v40, %v689_v29  ;;  %v4552_v40 = vsel %vm12765_vm14, %v9483_v51, %v4551_v62 }
 0x1a8   :  { %2165 = vrot.lane.b32.xlu1 %v13830_v7, %s10548_s16  ;;  %v13931_v2 = vcombine.low %v680_v45, %v690_v11  ;;  %v4555_v29 = vsel %vm12765_vm14, %v4553_v14, %v4554_v53  ;;  %v1183_v45 = vsel %vm10635_vm2, %v1181_v18, %v1182_v35  ;;  %v20437_v14 = vld [vmem:[#allocation77_spill] sm:$0xff] }
 0x1a9   :  { %v13925_v25 = vpop.permute.xlu0 %2527  ;;  %v13962_v22 = vcombine.low %v4552_v40, %v4555_v29  ;;  %v20438_v53 = vshrl.u32 %v20437_v14, 16  ;;  %v20439_v11 = vshll.u32 %v20437_v14, 16  ;;  %v20442_v40 = vshrl.u32 %v20440_v26, 16  ;;  %v20447_v14 = vld [vmem:[#allocation102_spill] sm:$0xff] }
 0x1aa   :  { %20427 = vst [vmem:[#allocation31_spill] sm:$0xff] %v13925_v25  ;;  %v13927_v33 = vpop.permute.xlu1 %2383  ;;  %20430 = vst [vmem:[#allocation185_spill] sm:$0xff] %v13931_v2  ;;  %v3023_v62 = vsel %vm2738_vm10, %v13940_v23, %v13925_v25  ;;  %v20441_v23 = vshll.u32 %v20440_v26, 16  ;;  %v13991_v26 = vld [vmem:[%s19316_s0 + $0xa8] sm:$0xf] }
 0x1ab   :  { %20428 = vst [vmem:[#allocation124_spill] sm:$0xff] %v13927_v33  ;;  %5144 = vrot.lane.b32.xlu0 %v20429_v24, %s10550_s22  ;;  %v1180_v24 = vsel %vm10635_vm2, %v9301_v19, %v1179_v50  ;;  %20435 = vst [vmem:[#allocation188_spill] sm:$0xff] %v13962_v22  ;;  %v694_v19 = vrot.slane %v20438_v53, 4  ;;  %v697_v18 = vrot.slane %v20439_v11, 5  ;;  %v707_v29 = vrot.slane %v20442_v40, 4 }
 0x1ac   :  { %2325 = vrot.lane.b32.xlu1 %v20392_v0, %s10549_s21  ;;  %v13968_v35 = vcombine.low %v1180_v24, %v1183_v45  ;;  %20444 = vst [vmem:[#allocation77_spill] sm:$0xff] %v13991_v26 }
 0x1ad   :  { %v13955_v51 = vpop.permute.xlu0 %2597  ;;  %v698_v11 = vor.u32 %v697_v18, %v694_v19  ;;  %v20450_v19 = vld [vmem:[#allocation80_spill] sm:$0xff] }
 0x1ae   :  { %20434 = vst [vmem:[#allocation187_spill] sm:$0xff] %v13955_v51  ;;  %v3100_v10 = vsel %vm2803_vm11, %v3023_v62, %v13955_v51  ;;  %v13964_v50 = vpop.permute.xlu1 %4996  ;;  %20436 = vst [vmem:[#allocation189_spill] sm:$0xff] %v13968_v35  ;;  %v703_v62 = vrot.slane %v20441_v23, 5  ;;  %v13996_v23 = vld [vmem:[%s19316_s0 + $0xac] sm:$0xf]  ;;  %v20449_v51 = vld [vmem:[#allocation159_spill] sm:$0xff] }
 0x1af   :  { %2539 = vrot.lane.b32.xlu0 %v13931_v2, %s10549_s21  ;;  %3532 = vmatprep.mubr.bf16.mxu0 %v3100_v10  ;;  %20445 = vst [vmem:[#allocation78_spill] sm:$0xff] %v13996_v23  ;;  %v4558_v25 = vrot.slane %v20449_v51, 6  ;;  %v20451_v18 = vshll.u32 %v20450_v19, 16  ;;  %v20454_v51 = vld [vmem:[#allocation158_spill] sm:$0xff] }
 0x1b0   :  { %3533 = vmatmul.mubr.bf16.gmra.mrb[52].mxu0 %v2844_v34  ;;  %2395 = vrot.lane.b32.xlu1 %v13931_v2, %s10550_s22  ;;  %v20443_v34 = vld [vmem:[#allocation95_spill] sm:$0xff]  ;;  %v708_v40 = vor.u32 %v707_v29, %v703_v62  ;;  %v699_v2 = vrot.slane %v698_v11, 4  ;;  %v9484_v11 = vrot.slane %v20454_v51, 10 }
 0x1b1   :  { %v5301_v27 = vpop.permute.xlu0 %5300  ;;  %v713_v29 = vrot.slane %v20451_v18, 5 }
 0x1b2   :  { %v5925_v24 = vsel %vm2641_vm9, %v13962_v22, %v5301_v27  ;;  %v13982_v45 = vpop.permute.xlu1 %2461  ;;  %v14000_v27 = vcombine.low %v13991_v26, %v13996_v23 }
 0x1b3   :  { %2609 = vrot.lane.b32.xlu0 %v13968_v35, %s10550_s22  ;;  %v6007_v10 = vsel %vm2738_vm10, %v5925_v24, %v20443_v34  ;;  %v20448_v34 = vld [vmem:[#allocation33_spill] sm:$0xff] }
 0x1b4   :  { %20446 = vst [vmem:[#allocation95_spill] sm:$0xff] %v14000_v27  ;;  %v6050_v53 = vsel %vm2803_vm11, %v6007_v10, %v20447_v14  ;;  %5008 = vrot.lane.b32.xlu1 %v20426_v61, %s10548_s16  ;;  %v5669_v22 = vsel %vm2641_vm9, %v20448_v34, %v13826_v21  ;;  %v709_v10 = vrot.slane %v708_v40, 4  ;;  %v10391_v61 = vld [vmem:[%s19316_s0 + $0x148] sm:$0xf] }
 0x1b5   :  { %v5065_v24 = vpop.permute.xlu0 %5064  ;;  %7362 = vmatprep.mubr.bf16.mxu1 %v6050_v53  ;;  %v1186_v14 = vrot.slane %v10391_v61, 5  ;;  %v20452_v53 = vld [vmem:[#allocation89_spill] sm:$0xff]  ;;  %v3462_v26 = vpop.f32.mrb[16].mxu0  ;;  %v4560_v61 = vrot.slane %v4558_v25, 4 }
 0x1b6   :  { %v14009_v0 = vpop.permute.xlu1 %2155  ;;  %v5757_v21 = vsel %vm2738_vm10, %v5669_v22, %v5065_v24  ;;  %v14029_v19 = vadd.f32 %v13409_v41, %v3462_v26  ;;  %v3464_v18 = vpop.f32.mrb[17].mxu0  ;;  %v10392_v22 = vld [vmem:[%s19316_s0 + $0x68] sm:$0x3]  ;;  %v10394_v41 = vld [vmem:[%s19316_s0 + $0x14c] sm:$0x3] }
 0x1b7   :  { %5312 = vrot.lane.b32.xlu0 %v14000_v27, %s10548_s16  ;;  %v4561_v24 = vrot.slane %v10392_v22, 6  ;;  %v1189_v26 = vrot.slane %v10394_v41, 5  ;;  %v3465_v51 = vpop.f32.mrb[18].mxu0  ;;  %v714_v18 = vsel %vm10710_vm5, %v709_v10, %v713_v29  ;;  %v4559_v10 = vsel %vm12765_vm14, %v9484_v11, %v4558_v25  ;;  %v20461_v29 = vld [vmem:[#allocation37_spill] sm:$0xff] }
 0x1b8   :  { %2473 = vrot.lane.b32.xlu1 %v20452_v53, %s10548_s16  ;;  %20455 = vst [vmem:[#allocation159_spill] sm:$0xff] %v14029_v19  ;;  %v1188_v19 = vrot.slane %v1186_v14, 4  ;;  %v14050_v22 = vadd.f32 %v13438_v28, %v3465_v51  ;;  %v14068_v51 = vsel %vm2641_vm9, %v20461_v29, %v13846_v31 }
 0x1b9   :  { %v5135_v34 = vpop.permute.xlu0 %5134  ;;  %v4562_v28 = vsel %vm12765_vm14, %v4560_v61, %v4561_v24  ;;  %20462 = vst [vmem:[#allocation190_spill] sm:$0xff] %v14068_v51 }
 0x1ba   :  { %v14023_v27 = vsel %vm2803_vm11, %v5757_v21, %v5135_v34  ;;  %v14026_v40 = vpop.permute.xlu1 %2315  ;;  %v10393_v34 = vld [vmem:[%s19316_s0 + $0x144] sm:$0xf]  ;;  %20456 = vst [vmem:[#allocation80_spill] sm:$0xff] %v14050_v22 }
 0x1bb   :  { %20453 = vst [vmem:[#allocation102_spill] sm:$0xff] %v14023_v27  ;;  %5076 = vrot.lane.b32.xlu0 %v20358_v56, %s10549_s21  ;;  %7363 = vmatmul.mubr.bf16.gmra.mrb[92].mxu1 %v14023_v27  ;;  %v9302_v21 = vrot.slane %v10393_v34, 9  ;;  %v704_v56 = vsel %vm10710_vm5, %v699_v2, %v703_v62  ;;  %v3467_v34 = vpop.f32.mrb[19].mxu0  ;;  %v20457_v27 = vld [vmem:[#allocation151_spill] sm:$0xff]  ;;  %v20459_v2 = vld [vmem:[#allocation28_spill] sm:$0xff] }
 0x1bc   :  { %2167 = vrot.lane.b32.xlu1 %v13968_v35, %s10548_s16  ;;  %v2686_v23 = vsel %vm2641_vm9, %v20457_v27, %v13882_v20  ;;  %v14059_v62 = vcombine.low %v704_v56, %v714_v18  ;;  %v1190_v56 = vsel %vm10635_vm2, %v1188_v19, %v1189_v26  ;;  %v14098_v19 = vld [vmem:[%s19316_s0 + $0xf4] sm:$0xf] }
 0x1bd   :  { %v2530_v41 = vpop.permute.xlu0 %2529  ;;  %v14072_v20 = vsel %vm2738_vm10, %v2686_v23, %v13901_v59  ;;  %v1187_v34 = vsel %vm10635_vm2, %v9302_v21, %v1186_v14  ;;  %v14086_v23 = vcombine.low %v4559_v10, %v4562_v28  ;;  %v14093_v14 = vld [vmem:[%s19316_s0 + $0xf0] sm:$0xf]  ;;  %v20466_v21 = vld [vmem:[#allocation81_spill] sm:$0xff] }
 0x1be   :  { %v14055_v32 = vpop.permute.xlu1 %2385  ;;  %20460 = vst [vmem:[#allocation151_spill] sm:$0xff] %v14059_v62  ;;  %20463 = vst [vmem:[#allocation191_spill] sm:$0xff] %v14072_v20  ;;  %v3025_v25 = vsel %vm2738_vm10, %v14068_v51, %v2530_v41  ;;  %v2847_v31 = vsel %vm2803_vm11, %v14072_v20, %v13927_v33  ;;  %v14102_v24 = vcombine.low %v1187_v34, %v1190_v56  ;;  %v20467_v26 = vshrl.u32 %v20466_v21, 16  ;;  %v20469_v28 = vld [vmem:[#allocation83_spill] sm:$0xff] }
 0x1bf   :  { %20458 = vst [vmem:[#allocation158_spill] sm:$0xff] %v14055_v32  ;;  %5146 = vrot.lane.b32.xlu0 %v20459_v2, %s10550_s22  ;;  %20464 = vst [vmem:[#allocation192_spill] sm:$0xff] %v14086_v23  ;;  %v20468_v41 = vshll.u32 %v20466_v21, 16  ;;  %v20471_v22 = vshrl.u32 %v20469_v28, 16  ;;  %v14140_v21 = vld [vmem:[%s19316_s0 + $0xb8] sm:$0xf] }
 0x1c0   :  { %2327 = vrot.lane.b32.xlu1 %v20423_v15, %s10549_s21  ;;  %20465 = vst [vmem:[#allocation193_spill] sm:$0xff] %v14102_v24  ;;  %v718_v18 = vrot.slane %v20467_v26, 4  ;;  %v14120_v26 = vpop.f32.mrb[20].mxu1  ;;  %20476 = vst [vmem:[#allocation194_spill] sm:$0xff] %v14140_v21  ;;  %v20479_v2 = vld [vmem:[#allocation116_spill] sm:$0xff] }
 0x1c1   :  { %v2600_v11 = vpop.permute.xlu0 %2599  ;;  %v721_v10 = vrot.slane %v20468_v41, 5  ;;  %v731_v33 = vrot.slane %v20471_v22, 4  ;;  %20472 = vst [vmem:[#allocation81_spill] sm:$0xff] %v14120_v26  ;;  %v14126_v22 = vpop.f32.mrb[21].mxu1 }
 0x1c2   :  { %v3103_v59 = vsel %vm2803_vm11, %v3025_v25, %v2600_v11  ;;  %v14088_v61 = vpop.permute.xlu1 %4998  ;;  %v20470_v25 = vshll.u32 %v20469_v28, 16  ;;  %20473 = vst [vmem:[#allocation83_spill] sm:$0xff] %v14126_v22  ;;  %v20474_v28 = vld [vmem:[#allocation111_spill] sm:$0xff]  ;;  %v14146_v51 = vpop.f32.mrb[22].mxu1 }
 0x1c3   :  { %2541 = vrot.lane.b32.xlu0 %v14059_v62, %s10549_s21  ;;  %3540 = vmatprep.mubr.bf16.mxu0 %v3103_v59  ;;  %20478 = vst [vmem:[#allocation196_spill] sm:$0xff] %v14146_v51  ;;  %v14156_v15 = vpop.f32.mrb[23].mxu1  ;;  %v20482_v51 = vshrl.u32 %v14093_v14, 16 }
 0x1c4   :  { %3541 = vmatmul.mubr.bf16.gmra.mrb[56].mxu0 %v2847_v31  ;;  %v14110_v11 = vrot.slane %v20470_v25, 5  ;;  %2397 = vrot.lane.b32.xlu1 %v14059_v62, %s10550_s22  ;;  %v14135_v31 = vld [vmem:[%s19316_s0 + $0xb4] sm:$0xf]  ;;  %v3470_v56 = vpop.f32.mrb[20].mxu0  ;;  %20481 = vst [vmem:[#allocation197_spill] sm:$0xff] %v14156_v15 }
 0x1c5   :  { %v5303_v59 = vpop.permute.xlu0 %5302  ;;  %20475 = vst [vmem:[#allocation111_spill] sm:$0xff] %v14135_v31  ;;  %v14154_v29 = vadd.f32 %v13399_v42, %v3470_v56  ;;  %v20487_v56 = vld [vmem:[#allocation162_spill] sm:$0xff] }
 0x1c6   :  { %v5928_v41 = vsel %vm2641_vm9, %v14086_v23, %v5303_v59  ;;  %v14124_v25 = vpop.permute.xlu1 %2463  ;;  %v14144_v59 = vcombine.low %v14135_v31, %v14140_v21  ;;  %v732_v20 = vor.u32 %v731_v33, %v14110_v11  ;;  %v3472_v23 = vpop.f32.mrb[21].mxu0  ;;  %v4426_v31 = vrot.slane %v20482_v51, 4 }
 0x1c7   :  { %2611 = vrot.lane.b32.xlu0 %v14102_v24, %s10550_s22  ;;  %v6008_v34 = vsel %vm2738_vm10, %v5928_v41, %v20474_v28  ;;  %v722_v28 = vor.u32 %v721_v10, %v718_v18  ;;  %20480 = vst [vmem:[#allocation116_spill] sm:$0xff] %v14154_v29  ;;  %v3473_v26 = vpop.f32.mrb[22].mxu0  ;;  %v20484_v33 = vshll.u32 %v14098_v19, 16  ;;  %v20486_v23 = vld [vmem:[#allocation160_spill] sm:$0xff] }
 0x1c8   :  { %20477 = vst [vmem:[#allocation195_spill] sm:$0xff] %v14144_v59  ;;  %v6052_v41 = vsel %vm2803_vm11, %v6008_v34, %v20479_v2  ;;  %5010 = vrot.lane.b32.xlu1 %v20457_v27, %s10548_s16  ;;  %v20483_v2 = vshll.u32 %v14093_v14, 16  ;;  %v20485_v27 = vshrl.u32 %v14098_v19, 16  ;;  %v5672_v34 = vsel %vm2641_vm9, %v20486_v23, %v13964_v50  ;;  %v3475_v21 = vpop.f32.mrb[23].mxu0  ;;  %v10397_v50 = vld [vmem:[%s19316_s0 + $0x154] sm:$0xf] }
 0x1c9   :  { %v5067_v62 = vpop.permute.xlu0 %5066  ;;  %7370 = vmatprep.mubr.bf16.mxu1 %v6052_v41  ;;  %v14164_v10 = vrot.slane %v20484_v33, 5  ;;  %v4565_v41 = vrot.slane %v20487_v56, 6  ;;  %v14175_v51 = vadd.f32 %v13432_v48, %v3473_v26  ;;  %v1193_v33 = vrot.slane %v10397_v50, 5  ;;  %v20489_v23 = vld [vmem:[#allocation84_spill] sm:$0xff]  ;;  %v20491_v21 = vld [vmem:[#allocation94_spill] sm:$0xff] }
 0x1ca   :  { %v4429_v18 = vrot.slane %v20483_v2, 5  ;;  %v4439_v42 = vrot.slane %v20485_v27, 4  ;;  %v14172_v29 = vpop.permute.xlu1 %2157  ;;  %v14180_v2 = vld [vmem:[%s19316_s0 + $0xf8] sm:$0x3]  ;;  %v723_v27 = vrot.slane %v722_v28, 4  ;;  %v733_v56 = vrot.slane %v732_v20, 4 }
 0x1cb   :  { %20488 = vst [vmem:[#allocation162_spill] sm:$0xff] %v14175_v51  ;;  %5314 = vrot.lane.b32.xlu0 %v14144_v59, %s10548_s16  ;;  %v20490_v35 = vshll.u32 %v20489_v23, 16  ;;  %v5759_v26 = vsel %vm2738_vm10, %v5672_v34, %v5067_v62  ;;  %v20493_v50 = vld [vmem:[#allocation42_spill] sm:$0xff]  ;;  %v4567_v20 = vrot.slane %v4565_v41, 4  ;;  %v10399_v62 = vld [vmem:[%s19316_s0 + $0x150] sm:$0xf] }
 0x1cc   :  { %2475 = vrot.lane.b32.xlu1 %v20491_v21, %s10548_s16  ;;  %v4430_v15 = vor.u32 %v4429_v18, %v4426_v31  ;;  %v4440_v22 = vor.u32 %v4439_v42, %v14164_v10  ;;  %v9485_v28 = vrot.slane %v20493_v50, 10  ;;  %v9303_v31 = vrot.slane %v10399_v62, 9  ;;  %v10400_v42 = vld [vmem:[%s19316_s0 + $0x158] sm:$0x3] }
 0x1cd   :  { %v737_v48 = vrot.slane %v20490_v35, 5  ;;  %v5137_v51 = vpop.permute.xlu0 %5136  ;;  %v10398_v35 = vld [vmem:[%s19316_s0 + $0x74] sm:$0x3]  ;;  %v1195_v18 = vrot.slane %v1193_v33, 4  ;;  %v1196_v34 = vrot.slane %v10400_v42, 5  ;;  %v20494_v50 = vld [vmem:[#allocation156_spill] sm:$0xff] }
 0x1ce   :  { %v14195_v7 = vsel %vm2803_vm11, %v5759_v26, %v5137_v51  ;;  %v4568_v23 = vrot.slane %v10398_v35, 6  ;;  %v14201_v1 = vpop.permute.xlu1 %2317  ;;  %v728_v51 = vsel %vm10710_vm5, %v723_v27, %v14110_v11  ;;  %v4462_v26 = vrot.slane %v14098_v19, 5 }
 0x1cf   :  { %20492 = vst [vmem:[#allocation84_spill] sm:$0xff] %v14195_v7  ;;  %5078 = vrot.lane.b32.xlu0 %v20400_v52, %s10549_s21  ;;  %7371 = vmatmul.mubr.bf16.gmra.mrb[96].mxu1 %v14195_v7  ;;  %v738_v52 = vsel %vm10710_vm5, %v733_v56, %v737_v48  ;;  %v2689_v35 = vsel %vm2641_vm9, %v20494_v50, %v14009_v0  ;;  %v4431_v59 = vrot.slane %v4430_v15, 4  ;;  %v4441_v7 = vrot.slane %v4440_v22, 4  ;;  %v20497_v48 = vld [vmem:[#allocation32_spill] sm:$0xff] }
 0x1d0   :  { %2169 = vrot.lane.b32.xlu1 %v14102_v24, %s10548_s16  ;;  %v20495_v42 = vshll.u32 %v14180_v2, 16  ;;  %v4566_v11 = vsel %vm12765_vm14, %v9485_v28, %v4565_v41  ;;  %v4569_v27 = vsel %vm12765_vm14, %v4567_v20, %v4568_v23  ;;  %v14233_v24 = vcombine.low %v728_v51, %v738_v52  ;;  %v20498_v41 = vld [vmem:[#allocation41_spill] sm:$0xff] }
 0x1d1   :  { %v2532_v62 = vpop.permute.xlu0 %2531  ;;  %v1194_v0 = vsel %vm10635_vm2, %v9303_v31, %v1193_v33  ;;  %v1197_v15 = vsel %vm10635_vm2, %v1195_v18, %v1196_v34  ;;  %v9475_v22 = vrot.slane %v14093_v14, 9  ;;  %v14243_v28 = vsel %vm2641_vm9, %v20498_v41, %v13982_v45 }
 0x1d2   :  { %v4445_v3 = vrot.slane %v20495_v42, 5  ;;  %v14229_v56 = vpop.permute.xlu1 %2387  ;;  %20499 = vst [vmem:[#allocation198_spill] sm:$0xff] %v14243_v28  ;;  %v14247_v20 = vsel %vm2738_vm10, %v2689_v35, %v14026_v40  ;;  %v4464_v23 = vrot.slane %v4462_v26, 4  ;;  %v4465_v33 = vrot.slane %v14180_v2, 5  ;;  %v20502_v42 = vld [vmem:[#allocation90_spill] sm:$0xff] }
 0x1d3   :  { %20496 = vst [vmem:[#allocation42_spill] sm:$0xff] %v14229_v56  ;;  %5148 = vrot.lane.b32.xlu0 %v20497_v48, %s10550_s22  ;;  %20500 = vst [vmem:[#allocation199_spill] sm:$0xff] %v14247_v20  ;;  %v3027_v31 = vsel %vm2738_vm10, %v14243_v28, %v2532_v62  ;;  %v2850_v34 = vsel %vm2803_vm11, %v14247_v20, %v14055_v32  ;;  %v4436_v45 = vsel %vm10710_vm5, %v4431_v59, %v14164_v10 }
 0x1d4   :  { %2329 = vrot.lane.b32.xlu1 %v20452_v53, %s10549_s21  ;;  %v4446_v40 = vsel %vm10710_vm5, %v4441_v7, %v4445_v3  ;;  %v14263_v52 = vcombine.low %v4566_v11, %v4569_v27  ;;  %v14269_v62 = vcombine.low %v1194_v0, %v1197_v15  ;;  %v20503_v32 = vshrl.u32 %v20502_v42, 16  ;;  %v20505_v7 = vld [vmem:[#allocation92_spill] sm:$0xff] }
 0x1d5   :  { %v2602_v18 = vpop.permute.xlu0 %2601  ;;  %v20504_v59 = vshll.u32 %v20502_v42, 16  ;;  %v20506_v3 = vshll.u32 %v20505_v7, 16  ;;  %v20507_v11 = vshrl.u32 %v20505_v7, 16  ;;  %v4463_v0 = vsel %vm10635_vm2, %v9475_v22, %v4462_v26  ;;  %v20508_v42 = vld [vmem:[#allocation129_spill] sm:$0xff] }
 0x1d6   :  { %v3106_v51 = vsel %vm2803_vm11, %v3027_v31, %v2602_v18  ;;  %20501 = vst [vmem:[#allocation200_spill] sm:$0xff] %v14263_v52  ;;  %v14265_v35 = vpop.permute.xlu1 %5000  ;;  %v742_v28 = vrot.slane %v20503_v32, 4  ;;  %v9551_v18 = vcombine.low %v4436_v45, %v4446_v40  ;;  %v4466_v32 = vsel %vm10635_vm2, %v4464_v23, %v4465_v33  ;;  %v10401_v45 = vld [vmem:[%s19316_s0 + $0xc0] sm:$0xf]  ;;  %v10402_v26 = vld [vmem:[%s19316_s0 + $0xc4] sm:$0xf] }
 0x1d7   :  { %2543 = vrot.lane.b32.xlu0 %v14233_v24, %s10549_s21  ;;  %3548 = vmatprep.mubr.bf16.mxu0 %v3106_v51  ;;  %v745_v10 = vrot.slane %v20504_v59, 5  ;;  %v751_v31 = vrot.slane %v20506_v3, 5  ;;  %v755_v27 = vrot.slane %v20507_v11, 4  ;;  %v14299_v22 = vcombine.low %v10401_v45, %v10402_v26  ;;  %v20510_v23 = vld [vmem:[#allocation138_spill] sm:$0xff] }
 0x1d8   :  { %3549 = vmatmul.mubr.bf16.gmra.mrb[60].mxu0 %v2850_v34  ;;  %2399 = vrot.lane.b32.xlu1 %v14233_v24, %s10550_s22  ;;  %v9553_v3 = vcombine.low %v4463_v0, %v4466_v32  ;;  %v20512_v0 = vld [vmem:[#allocation93_spill] sm:$0xff] }
 0x1d9   :  { %v5305_v51 = vpop.permute.xlu0 %5304  ;;  %20509 = vst [vmem:[#allocation90_spill] sm:$0xff] %v14299_v22  ;;  %v746_v40 = vor.u32 %v745_v10, %v742_v28  ;;  %v756_v7 = vor.u32 %v755_v27, %v751_v31  ;;  %v20513_v32 = vshll.u32 %v20512_v0, 16 }
 0x1da   :  { %v5931_v15 = vsel %vm2641_vm9, %v14263_v52, %v5305_v51  ;;  %v14287_v34 = vpop.permute.xlu1 %2465  ;;  %v5675_v51 = vsel %vm2641_vm9, %v13319_v39, %v14088_v61  ;;  %v10403_v61 = vld [vmem:[%s19316_s0 + $0x160] sm:$0xf]  ;;  %v20585_v52 = vld [vmem:[#allocation112_spill] sm:$0xff] }
 0x1db   :  { %2613 = vrot.lane.b32.xlu0 %v14269_v62, %s10550_s22  ;;  %v6009_v59 = vsel %vm2738_vm10, %v5931_v15, %v20508_v42  ;;  %v4572_v15 = vrot.slane %v13493_v12, 6  ;;  %v747_v27 = vrot.slane %v746_v40, 4  ;;  %v1200_v12 = vrot.slane %v10403_v61, 5  ;;  %v10406_v61 = vld [vmem:[%s19316_s0 + $0x164] sm:$0x3] }
 0x1dc   :  { %v6054_v33 = vsel %vm2803_vm11, %v6009_v59, %v20510_v23  ;;  %5012 = vrot.lane.b32.xlu1 %v9551_v18, %s10548_s16  ;;  %v757_v18 = vrot.slane %v756_v7, 4  ;;  %v761_v59 = vrot.slane %v20513_v32, 5  ;;  %v9486_v7 = vrot.slane %v13488_v16, 10 }
 0x1dd   :  { %v5069_v11 = vpop.permute.xlu0 %5068  ;;  %7378 = vmatprep.mubr.bf16.mxu1 %v6054_v33  ;;  %v3478_v42 = vpop.f32.mrb[24].mxu0  ;;  %v752_v16 = vsel %vm10710_vm5, %v747_v27, %v751_v31 }
 0x1de   :  { %v14308_v48 = vpop.permute.xlu1 %2159  ;;  %v14313_v28 = vadd.f32 %v13547_v46, %v3478_v42  ;;  %v3480_v10 = vpop.f32.mrb[25].mxu0  ;;  %v5761_v26 = vsel %vm2738_vm10, %v5675_v51, %v5069_v11  ;;  %v4574_v42 = vrot.slane %v4572_v15, 4  ;;  %v762_v11 = vsel %vm10710_vm5, %v757_v18, %v761_v59  ;;  %v20518_v59 = vld [vmem:[#allocation39_spill] sm:$0xff] }
 0x1df   :  { %5316 = vrot.lane.b32.xlu0 %v14299_v22, %s10548_s16  ;;  %v3481_v45 = vpop.f32.mrb[26].mxu0  ;;  %v10404_v10 = vld [vmem:[%s19316_s0 + $0x80] sm:$0x3]  ;;  %v1202_v51 = vrot.slane %v1200_v12, 4  ;;  %v4573_v31 = vsel %vm12765_vm14, %v9486_v7, %v4572_v15 }
 0x1e0   :  { %20511 = vst [vmem:[#allocation92_spill] sm:$0xff] %v14313_v28  ;;  %5082 = vrot.lane.b32.xlu1 %v9553_v3, %s10549_s21  ;;  %v14323_v46 = vadd.f32 %v13565_v30, %v3481_v45  ;;  %v3483_v33 = vpop.f32.mrb[27].mxu0  ;;  %v4575_v0 = vrot.slane %v10404_v10, 6  ;;  %v10405_v30 = vld [vmem:[%s19316_s0 + $0x15c] sm:$0xf]  ;;  %v1203_v45 = vrot.slane %v10406_v61, 5  ;;  %v14367_v10 = vsel %vm2641_vm9, %v13520_v8, %v14124_v25 }
 0x1e1   :  { %v5139_v23 = vpop.permute.xlu0 %5138  ;;  %v9304_v3 = vrot.slane %v10405_v30, 9  ;;  %v14362_v33 = vcombine.low %v752_v16, %v762_v11  ;;  %20519 = vst [vmem:[#allocation201_spill] sm:$0xff] %v14367_v10  ;;  %v20522_v16 = vshll.u32 %v14093_v14, 16  ;;  %v20526_v28 = vld [vmem:[#allocation147_spill] sm:$0xff] }
 0x1e2   :  { %20514 = vst [vmem:[#allocation129_spill] sm:$0xff] %v14323_v46  ;;  %v14326_v40 = vsel %vm2803_vm11, %v5761_v26, %v5139_v23  ;;  %v14332_v32 = vpop.permute.xlu1 %2319  ;;  %v2692_v26 = vsel %vm2641_vm9, %v13702_v36, %v14172_v29  ;;  %v4576_v27 = vsel %vm12765_vm14, %v4574_v42, %v4575_v0  ;;  %v1204_v7 = vsel %vm10635_vm2, %v1202_v51, %v1203_v45 }
 0x1e3   :  { %20515 = vst [vmem:[#allocation138_spill] sm:$0xff] %v14326_v40  ;;  %5080 = vrot.lane.b32.xlu0 %v20431_v17, %s10549_s21  ;;  %7379 = vmatmul.mubr.bf16.gmra.mrb[100].mxu1 %v14326_v40  ;;  %v20516_v17 = vld [vmem:[#allocation105_spill] sm:$0xff]  ;;  %v2772_v29 = vsel %vm2738_vm10, %v2692_v26, %v14201_v1  ;;  %v1201_v15 = vsel %vm10635_vm2, %v9304_v3, %v1200_v12  ;;  %v20521_v1 = vshrl.u32 %v14093_v14, 16  ;;  %v4483_v11 = vrot.slane %v20522_v16, 6 }
 0x1e4   :  { %2477 = vrot.lane.b32.xlu1 %v20516_v17, %s10548_s16  ;;  %v2853_v25 = vsel %vm2803_vm11, %v2772_v29, %v14229_v56  ;;  %v14384_v30 = vcombine.low %v4573_v31, %v4576_v27  ;;  %v20523_v51 = vshrl.u32 %v14098_v19, 16  ;;  %v20524_v45 = vshll.u32 %v14098_v19, 16  ;;  %v14408_v19 = vld [vmem:[%s19316_s0 + $0xfc] sm:$0xf]  ;;  %v14413_v29 = vld [vmem:[%s19316_s0 + $0x100] sm:$0xf] }
 0x1e5   :  { %v14352_v23 = vpop.permute.xlu0 %2533  ;;  %v4482_v12 = vrot.slane %v20521_v1, 5  ;;  %v14400_v31 = vcombine.low %v1201_v15, %v1204_v7  ;;  %v4491_v27 = vshrl.u32 %v14180_v2, 16  ;;  %v14417_v15 = vcombine.low %v14408_v19, %v14413_v29  ;;  %v14419_v7 = vpop.f32.mrb[24].mxu1 }
 0x1e6   :  { %v14358_v18 = vpop.permute.xlu1 %2389  ;;  %v3029_v42 = vsel %vm2738_vm10, %v14367_v10, %v14352_v23  ;;  %20520 = vst [vmem:[#allocation202_spill] sm:$0xff] %v14384_v30  ;;  %v4486_v61 = vrot.slane %v20523_v51, 5  ;;  %v4487_v26 = vrot.slane %v20524_v45, 6  ;;  %v14427_v45 = vpop.f32.mrb[25].mxu1 }
 0x1e7   :  { %20517 = vst [vmem:[#allocation93_spill] sm:$0xff] %v14358_v18  ;;  %5150 = vrot.lane.b32.xlu0 %v20518_v59, %s10550_s22  ;;  %v4493_v10 = vrot.slane %v4491_v27, 5  ;;  %v20527_v59 = vld [vmem:[#allocation96_spill] sm:$0xff] }
 0x1e8   :  { %2171 = vrot.lane.b32.xlu1 %v14269_v62, %s10548_s16  ;;  %v4488_v1 = vor.u32 %v4487_v26, %v4486_v61  ;;  %v20528_v20 = vshrl.u32 %v20527_v59, 16  ;;  %v20530_v61 = vld [vmem:[#allocation29_spill] sm:$0xff]  ;;  %v20531_v26 = vld [vmem:[#allocation98_spill] sm:$0xff] }
 0x1e9   :  { %v14380_v0 = vpop.permute.xlu0 %2603  ;;  %v20533_v40 = vshrl.u32 %v20531_v26, 16 }
 0x1ea   :  { %v3109_v3 = vsel %vm2803_vm11, %v3029_v42, %v14380_v0  ;;  %v14396_v46 = vpop.permute.xlu1 %5002  ;;  %v766_v22 = vrot.slane %v20528_v20, 4 }
 0x1eb   :  { %2545 = vrot.lane.b32.xlu0 %v14362_v33, %s10549_s21  ;;  %3556 = vmatprep.mubr.bf16.mxu0 %v3109_v3  ;;  %v20525_v3 = vshll.u32 %v14180_v2, 16  ;;  %v779_v50 = vrot.slane %v20533_v40, 4  ;;  %v4490_v40 = vrot.slane %v4488_v1, 4 }
 0x1ec   :  { %3557 = vmatmul.mubr.bf16.gmra.mrb[64].mxu0 %v2853_v25  ;;  %2331 = vrot.lane.b32.xlu1 %v20491_v21, %s10549_s21  ;;  %v4484_v25 = vor.u32 %v4483_v11, %v4482_v12  ;;  %v20529_v12 = vshll.u32 %v20527_v59, 16 }
 0x1ed   :  { %v5307_v14 = vpop.permute.xlu0 %5306  ;;  %v4494_v16 = vrot.slane %v20525_v3, 6 }
 0x1ee   :  { %v5934_v42 = vsel %vm2641_vm9, %v14384_v30, %v5307_v14  ;;  %v14425_v51 = vpop.permute.xlu1 %2467  ;;  %v769_v11 = vrot.slane %v20529_v12, 5  ;;  %v20532_v14 = vshll.u32 %v20531_v26, 16  ;;  %v4485_v59 = vrot.slane %v4484_v25, 4 }
 0x1ef   :  { %2615 = vrot.lane.b32.xlu0 %v14400_v31, %s10550_s22  ;;  %v6010_v56 = vsel %vm2738_vm10, %v5934_v42, %v20526_v28  ;;  %v14447_v28 = vpop.f32.mrb[26].mxu1  ;;  %v4495_v12 = vor.u32 %v4494_v16, %v4493_v10  ;;  %v20586_v30 = vshll.u32 %v20585_v52, 16 }
 0x1f0   :  { %v6056_v2 = vsel %vm2803_vm11, %v6010_v56, %v20530_v61  ;;  %v14441_v3 = vrot.slane %v20532_v14, 5  ;;  %2401 = vrot.lane.b32.xlu1 %v14362_v33, %s10550_s22  ;;  %v14449_v20 = vpop.f32.mrb[27].mxu1  ;;  %v5678_v56 = vsel %vm2641_vm9, %v13497_v13, %v14265_v35  ;;  %v4579_v61 = vrot.slane %v13609_v57, 6  ;;  %v10409_v57 = vld [vmem:[%s19316_s0 + $0x8c] sm:$0x3] }
 0x1f1   :  { %v5071_v27 = vpop.permute.xlu0 %5070  ;;  %7386 = vmatprep.mubr.bf16.mxu1 %v6056_v2  ;;  %v770_v26 = vor.u32 %v769_v11, %v766_v22  ;;  %v4489_v25 = vsel %vm10743_vm8, %v4485_v59, %v4488_v1  ;;  %v9487_v13 = vrot.slane %v13604_v38, 10  ;;  %v4582_v22 = vrot.slane %v10409_v57, 6  ;;  %v10410_v57 = vld [vmem:[%s19316_s0 + $0x16c] sm:$0xf] }
 0x1f2   :  { %v14454_v42 = vpop.permute.xlu1 %2161  ;;  %v780_v14 = vor.u32 %v779_v50, %v14441_v3  ;;  %v5763_v2 = vsel %vm2738_vm10, %v5678_v56, %v5071_v27  ;;  %v4581_v16 = vrot.slane %v4579_v61, 4  ;;  %v20536_v56 = vld [vmem:[#allocation101_spill] sm:$0xff] }
 0x1f3   :  { %5318 = vrot.lane.b32.xlu0 %v14417_v15, %s10548_s16  ;;  %v771_v1 = vrot.slane %v770_v26, 4  ;;  %v20537_v59 = vshll.u32 %v20536_v56, 16 }
 0x1f4   :  { %5014 = vrot.lane.b32.xlu1 %v13702_v36, %s10548_s16  ;;  %v781_v27 = vrot.slane %v780_v14, 4 }
 0x1f5   :  { %v5141_v41 = vpop.permute.xlu0 %5140  ;;  %v3486_v50 = vpop.f32.mrb[28].mxu0 }
 0x1f6   :  { %v14464_v35 = vsel %vm2803_vm11, %v5763_v2, %v5141_v41  ;;  %v14472_v10 = vpop.permute.xlu1 %2321  ;;  %v4496_v41 = vsel %vm10743_vm8, %v4490_v40, %v4495_v12  ;;  %v14480_v38 = vadd.f32 %v13541_v44, %v3486_v50  ;;  %v3488_v11 = vpop.f32.mrb[29].mxu0  ;;  %v785_v2 = vrot.slane %v20537_v59, 5  ;;  %v20539_v12 = vld [vmem:[#allocation51_spill] sm:$0xff] }
 0x1f7   :  { %20534 = vst [vmem:[#allocation147_spill] sm:$0xff] %v14464_v35  ;;  %5354 = vrot.lane.b32.xlu0 %v13702_v36, %s10549_s21  ;;  %7387 = vmatmul.mubr.bf16.gmra.mrb[104].mxu1 %v14464_v35  ;;  %v1207_v36 = vrot.slane %v10410_v57, 5  ;;  %v3489_v39 = vpop.f32.mrb[30].mxu0  ;;  %v2695_v40 = vsel %vm2641_vm9, %v13454_v55, %v14308_v48  ;;  %v9555_v50 = vcombine.low %v4489_v25, %v4496_v41  ;;  %v20565_v35 = vshll.u32 %v20564_v9, 16  ;;  %v20569_v9 = vld [vmem:[#allocation183_spill] sm:$0xff] }
 0x1f8   :  { %20535 = vst [vmem:[#allocation96_spill] sm:$0xff] %v14480_v38  ;;  %5084 = vrot.lane.b32.xlu1 %v13385_v47, %s10549_s21  ;;  %v14495_v26 = vadd.f32 %v20539_v12, %v3489_v39  ;;  %v3491_v14 = vpop.f32.mrb[31].mxu0  ;;  %v4580_v11 = vsel %vm12765_vm14, %v9487_v13, %v4579_v61  ;;  %v4583_v59 = vsel %vm12765_vm14, %v4581_v16, %v4582_v22  ;;  %v10411_v39 = vld [vmem:[%s19316_s0 + $0x168] sm:$0xf]  ;;  %v10412_v13 = vld [vmem:[%s19316_s0 + $0x170] sm:$0x3] }
 0x1f9   :  { %v14492_v44 = vpop.permute.xlu0 %2535  ;;  %v776_v48 = vsel %vm10710_vm5, %v771_v1, %v14441_v3  ;;  %v9305_v25 = vrot.slane %v10411_v39, 9  ;;  %v1210_v61 = vrot.slane %v10412_v13, 5  ;;  %v2774_v22 = vsel %vm2738_vm10, %v2695_v40, %v14332_v32  ;;  %v20543_v16 = vld [vmem:[#allocation113_spill] sm:$0xff] }
 0x1fa   :  { %20538 = vst [vmem:[#allocation29_spill] sm:$0xff] %v14492_v44  ;;  %20540 = vst [vmem:[#allocation98_spill] sm:$0xff] %v14495_v26  ;;  %v14499_v56 = vpop.permute.xlu1 %2391  ;;  %v786_v3 = vsel %vm10710_vm5, %v781_v27, %v785_v2  ;;  %v1209_v41 = vrot.slane %v1207_v36, 4  ;;  %v14534_v32 = vcombine.low %v4580_v11, %v4583_v59  ;;  %v10256_v27 = vld [vmem:[%s19320_s4 + $0x100] sm:$0xff]  }
 0x1fb   :  { %20541 = vst [vmem:[#allocation101_spill] sm:$0xff] %v14499_v56  ;;  %5362 = vrot.lane.b32.xlu0 %v13385_v47, %s10550_s22  ;;  %v14517_v47 = vsel %vm2641_vm9, %v13571_v4, %v14287_v34  ;;  %v2856_v34 = vsel %vm2803_vm11, %v2774_v22, %v14358_v18  ;;  %v14542_v2 = vcombine.low %v776_v48, %v786_v3  ;;  %v20547_v3 = vmov 0  }
 0x1fc   :  { %20542 = vst [vmem:[#allocation51_spill] sm:$0xff] %v14517_v47  ;;  %2479 = vrot.lane.b32.xlu1 %v20543_v16, %s10548_s16  ;;  %v3031_v1 = vsel %vm2738_vm10, %v14517_v47, %v14492_v44  ;;  %20545 = vst [vmem:[#allocation204_spill] sm:$0xff] %v14534_v32  ;;  %v1208_v14 = vsel %vm10635_vm2, %v9305_v25, %v1207_v36  ;;  %v1211_v39 = vsel %vm10635_vm2, %v1209_v41, %v1210_v61  ;;  %v20548_v36 = vld [vmem:[#allocation154_spill] sm:$0xff] }
 0x1fd   :  { %v14528_v57 = vpop.permute.xlu0 %2605  ;;  %7853 = vmatpush1.bf16.msra.mxu0 %v10256_v27  ;;  %v14562_v61 = vcombine.low %v1208_v14, %v1211_v39  ;;  %v14581_v14 = vld [vmem:[%s19316_s0 + $0x108] sm:$0xf] }
 0x1fe   :  { %20544 = vst [vmem:[#allocation203_spill] sm:$0xff] %v14528_v57  ;;  %v3112_v12 = vsel %vm2803_vm11, %v3031_v1, %v14528_v57  ;;  %v14536_v40 = vpop.permute.xlu1 %5004  ;;  %7854 = vmatprep.subr.bf16.mxu0 %v20547_v3  ;;  %v20549_v1 = vld [vmem:[#allocation157_spill] sm:$0xff] }
 0x1ff   :  { %5152 = vrot.lane.b32.xlu0 %v9555_v50, %s10550_s22  ;;  %3564 = vmatprep.mubr.bf16.mxu0 %v3112_v12 }
 0x200   :  { %3565 = vmatmul.mubr.bf16.gmra.mrb[68].mxu0 %v2856_v34  ;;  %2173 = vrot.lane.b32.xlu1 %v14400_v31, %s10548_s16  ;;  %v3494_v59 = vpop.f32.mrb[32].mxu0 }
 0x201   :  { %v5309_v11 = vpop.permute.xlu0 %5308  ;;  %v14555_v48 = vadd.f32 %v13848_v54, %v3494_v59  ;;  %v3496_v22 = vpop.f32.mrb[33].mxu0 }
 0x202   :  { %v5937_v13 = vsel %vm2641_vm9, %v14534_v32, %v5309_v11  ;;  %v14552_v50 = vpop.permute.xlu1 %2469  ;;  %v3497_v41 = vpop.f32.mrb[34].mxu0  ;;  %v20551_v11 = vld [vmem:[#allocation54_spill] sm:$0xff]  ;;  %v20553_v22 = vld [vmem:[#allocation103_spill] sm:$0xff] }
 0x203   :  { %20546 = vst [vmem:[#allocation205_spill] sm:$0xff] %v14555_v48  ;;  %2547 = vrot.lane.b32.xlu0 %v14542_v2, %s10549_s21  ;;  %v6011_v25 = vsel %vm2738_vm10, %v5937_v13, %v20548_v36  ;;  %v14569_v54 = vadd.f32 %v13877_v49, %v3497_v41  ;;  %v3499_v12 = vpop.f32.mrb[35].mxu0  ;;  %v5681_v59 = vsel %vm2641_vm9, %v20551_v11, %v14396_v46  ;;  %v14586_v49 = vld [vmem:[%s19316_s0 + $0x10c] sm:$0xf]  ;;  %v4586_v46 = vrot.slane %v13736_v6, 6 }
 0x204   :  { %v6058_v34 = vsel %vm2803_vm11, %v6011_v25, %v20549_v1  ;;  %2333 = vrot.lane.b32.xlu1 %v20516_v17, %s10549_s21  ;;  %v14590_v39 = vcombine.low %v14581_v14, %v14586_v49  ;;  %v20554_v36 = vshrl.u32 %v20553_v22, 16  ;;  %v20555_v41 = vshll.u32 %v20553_v22, 16 }
 0x205   :  { %20550 = vst [vmem:[#allocation154_spill] sm:$0xff] %v14569_v54  ;;  %v5073_v27 = vpop.permute.xlu0 %5072  ;;  %7394 = vmatprep.mubr.bf16.mxu1 %v6058_v34  ;;  %v20556_v34 = vld [vmem:[#allocation106_spill] sm:$0xff] }
 0x206   :  { %v14574_v13 = vpop.permute.xlu1 %2163  ;;  %20552 = vst [vmem:[#allocation157_spill] sm:$0xff] %v14590_v39  ;;  %v790_v25 = vrot.slane %v20554_v36, 4  ;;  %v793_v1 = vrot.slane %v20555_v41, 5  ;;  %v20557_v12 = vshll.u32 %v20556_v34, 16  ;;  %v20558_v38 = vshrl.u32 %v20556_v34, 16 }
 0x207   :  { %2617 = vrot.lane.b32.xlu0 %v14562_v61, %s10550_s22  ;;  %v5765_v54 = vsel %vm2738_vm10, %v5681_v59, %v5073_v27  ;;  %v9488_v36 = vrot.slane %v13731_v37, 10  ;;  %v4588_v41 = vrot.slane %v4586_v46, 4  ;;  %v20560_v37 = vld [vmem:[#allocation49_spill] sm:$0xff] }
 0x208   :  { %v14599_v26 = vrot.slane %v20557_v12, 5  ;;  %v803_v48 = vrot.slane %v20558_v38, 4  ;;  %2403 = vrot.lane.b32.xlu1 %v14542_v2, %s10550_s22  ;;  %v10415_v38 = vld [vmem:[%s19316_s0 + $0x98] sm:$0x3]  ;;  %v794_v27 = vor.u32 %v793_v1, %v790_v25 }
 0x209   :  { %v5143_v18 = vpop.permute.xlu0 %5142  ;;  %v4589_v34 = vrot.slane %v10415_v38, 6  ;;  %v3502_v12 = vpop.f32.mrb[36].mxu0  ;;  %v4587_v47 = vsel %vm12765_vm14, %v9488_v36, %v4586_v46  ;;  %v809_v46 = vrot.slane %v20565_v35, 5 }
 0x20a   :  { %v14607_v6 = vsel %vm2803_vm11, %v5765_v54, %v5143_v18  ;;  %v14610_v22 = vpop.permute.xlu1 %2323  ;;  %v804_v59 = vor.u32 %v803_v48, %v14599_v26  ;;  %v2698_v18 = vsel %vm2641_vm9, %v20560_v37, %v14454_v42  ;;  %v14631_v38 = vadd.f32 %v13842_v60, %v3502_v12  ;;  %v3504_v25 = vpop.f32.mrb[37].mxu0  ;;  %v10258_v48 = vld [vmem:[%s19320_s4 + $0x108] sm:$0xff]   ;;  %v10416_v60 = vld [vmem:[%s19316_s0 + $0x178] sm:$0xf] }
 0x20b   :  { %20559 = vst [vmem:[#allocation103_spill] sm:$0xff] %v14607_v6  ;;  %5320 = vrot.lane.b32.xlu0 %v14590_v39, %s10548_s16  ;;  %7395 = vmatmul.mubr.bf16.gmra.mrb[108].mxu1 %v14607_v6  ;;  %v4590_v42 = vsel %vm12765_vm14, %v4588_v41, %v4589_v34  ;;  %v795_v1 = vrot.slane %v794_v27, 4  ;;  %v1214_v36 = vrot.slane %v10416_v60, 5  ;;  %v3505_v12 = vpop.f32.mrb[38].mxu0  ;;  %v14648_v25 = vsel %vm2641_vm9, %v13706_v58, %v14425_v51  ;;  %v20568_v34 = vld [vmem:[#allocation117_spill] sm:$0xff] }
 0x20c   :  { %5016 = vrot.lane.b32.xlu1 %v13454_v55, %s10548_s16  ;;  %20563 = vst [vmem:[#allocation206_spill] sm:$0xff] %v14631_v38  ;;  %20566 = vst [vmem:[#allocation108_spill] sm:$0xff] %v14648_v25  ;;  %v805_v41 = vrot.slane %v804_v59, 4  ;;  %v14657_v35 = vadd.f32 %v20569_v9, %v3505_v12  ;;  %v3507_v27 = vpop.f32.mrb[39].mxu0  ;;  %7855 = vmatpush1.bf16.msra.mxu0 %v10258_v48  ;;  %v14670_v59 = vcombine.low %v4587_v47, %v4590_v42  ;;  %v14679_v48 = vld [vmem:[%s19316_s0 + $0x174] sm:$0xf] }
 0x20d   :  { %v14624_v54 = vpop.permute.xlu0 %2537  ;;  %7856 = vmatprep.subr.bf16.mxu0 %v20547_v3  ;;  %v9306_v12 = vrot.slane %v14679_v48, 9  ;;  %v800_v9 = vsel %vm10710_vm5, %v795_v1, %v14599_v26  ;;  %v1216_v42 = vrot.slane %v1214_v36, 4  ;;  %v10418_v27 = vld [vmem:[%s19316_s0 + $0x17c] sm:$0x3]  ;;  %v20575_v1 = vld [vmem:[#allocation43_spill] sm:$0xff] }
 0x20e   :  { %20561 = vst [vmem:[#allocation106_spill] sm:$0xff] %v14624_v54  ;;  %v14628_v6 = vpop.permute.xlu1 %2393  ;;  %20570 = vst [vmem:[#allocation183_spill] sm:$0xff] %v14657_v35  ;;  %v3033_v60 = vsel %vm2738_vm10, %v14648_v25, %v14624_v54  ;;  %v810_v47 = vsel %vm10710_vm5, %v805_v41, %v809_v46  ;;  %v20574_v26 = vld [vmem:[#allocation168_spill] sm:$0xff]  ;;  %v20577_v25 = vld [vmem:[#allocation167_spill] sm:$0xff] }
 0x20f   :  { %20562 = vst [vmem:[#allocation49_spill] sm:$0xff] %v14628_v6  ;;  %5356 = vrot.lane.b32.xlu0 %v13454_v55, %s10549_s21  ;;  %v14652_v55 = vsel %vm2738_vm10, %v2698_v18, %v14472_v10  ;;  %20572 = vst [vmem:[#allocation209_spill] sm:$0xff] %v14670_v59  ;;  %v14702_v41 = vcombine.low %v800_v9, %v810_v47  ;;  %v20579_v47 = vld [vmem:[#allocation65_spill] sm:$0xff] }
 0x210   :  { %20567 = vst [vmem:[#allocation207_spill] sm:$0xff] %v14652_v55  ;;  %2481 = vrot.lane.b32.xlu1 %v20568_v34, %s10548_s16  ;;  %v2859_v51 = vsel %vm2803_vm11, %v14652_v55, %v14499_v56  ;;  %v14696_v56 = vpop.f32.mrb[28].mxu1 }
 0x211   :  { %v14662_v38 = vpop.permute.xlu0 %2607  ;;  %20573 = vst [vmem:[#allocation210_spill] sm:$0xff] %v14696_v56  ;;  %20576 = vst [vmem:[#allocation43_spill] sm:$0xff] %v14702_v41 }
 0x212   :  { %20571 = vst [vmem:[#allocation208_spill] sm:$0xff] %v14662_v38  ;;  %v3115_v10 = vsel %vm2803_vm11, %v3033_v60, %v14662_v38  ;;  %v14672_v18 = vpop.permute.xlu1 %5006  ;;  %v1217_v60 = vrot.slane %v10418_v27, 5  ;;  %v14704_v27 = vpop.f32.mrb[29].mxu1  ;;  %v823_v38 = vrot.slane %v20586_v30, 5  ;;  %v14748_v30 = vld [vmem:[%s19316_s0 + $0x114] sm:$0xf] }
 0x213   :  { %5364 = vrot.lane.b32.xlu0 %v13520_v8, %s10550_s22  ;;  %3572 = vmatprep.mubr.bf16.mxu0 %v3115_v10 }
 0x214   :  { %3573 = vmatmul.mubr.bf16.gmra.mrb[72].mxu0 %v2859_v51  ;;  %2175 = vrot.lane.b32.xlu1 %v14562_v61, %s10548_s16  ;;  %v1218_v11 = vsel %vm10635_vm2, %v1216_v42, %v1217_v60  ;;  %v20582_v60 = vld [vmem:[#allocation110_spill] sm:$0xff] }
 0x215   :  { %v5311_v10 = vpop.permute.xlu0 %5310 }
 0x216   :  { %v5940_v51 = vsel %vm2641_vm9, %v14670_v59, %v5311_v10  ;;  %v14694_v35 = vpop.permute.xlu1 %2471  ;;  %v1215_v10 = vsel %vm10635_vm2, %v9306_v12, %v1214_v36  ;;  %v20581_v12 = vld [vmem:[#allocation72_spill] sm:$0xff] }
 0x217   :  { %5154 = vrot.lane.b32.xlu0 %v20574_v26, %s10550_s22  ;;  %v6012_v46 = vsel %vm2738_vm10, %v5940_v51, %v20575_v1  ;;  %v14714_v26 = vpop.f32.mrb[30].mxu1  ;;  %v5684_v51 = vsel %vm2641_vm9, %v20579_v47, %v14536_v40  ;;  %v14725_v36 = vcombine.low %v1215_v10, %v1218_v11  ;;  %v4593_v42 = vrot.slane %v20581_v12, 6  ;;  %v10260_v12 = vld [vmem:[%s19320_s4 + $0x110] sm:$0xff]  }
 0x218   :  { %v6060_v55 = vsel %vm2803_vm11, %v6012_v46, %v20577_v25  ;;  %2335 = vrot.lane.b32.xlu1 %v20543_v16, %s10549_s21  ;;  %20578 = vst [vmem:[#allocation167_spill] sm:$0xff] %v14714_v26  ;;  %v14716_v9 = vpop.f32.mrb[31].mxu1  ;;  %v20583_v1 = vshrl.u32 %v20582_v60, 16  ;;  %v20587_v40 = vshrl.u32 %v20585_v52, 16  ;;  %v14753_v52 = vld [vmem:[%s19316_s0 + $0x118] sm:$0xf]  ;;  %7857 = vmatpush1.bf16.msra.mxu0 %v10260_v12 }
 0x219   :  { %v5075_v32 = vpop.permute.xlu0 %5074  ;;  %7402 = vmatprep.mubr.bf16.mxu1 %v6060_v55  ;;  %20580 = vst [vmem:[#allocation211_spill] sm:$0xff] %v14725_v36  ;;  %v20584_v55 = vshll.u32 %v20582_v60, 16  ;;  %v20590_v60 = vld [vmem:[#allocation70_spill] sm:$0xff]  ;;  %v20591_v26 = vld [vmem:[#allocation76_spill] sm:$0xff]  ;;  %7858 = vmatprep.subr.bf16.mxu0 %v20547_v3 }
 0x21a   :  { %v14721_v25 = vpop.permute.xlu1 %2165  ;;  %v814_v46 = vrot.slane %v20583_v1, 4  ;;  %v827_v47 = vrot.slane %v20587_v40, 4  ;;  %v5767_v11 = vsel %vm2738_vm10, %v5684_v51, %v5075_v32  ;;  %v14757_v32 = vcombine.low %v14748_v30, %v14753_v52  ;;  %v20594_v12 = vld [vmem:[#allocation182_spill] sm:$0xff] }
 0x21b   :  { %2549 = vrot.lane.b32.xlu0 %v14702_v41, %s10549_s21  ;;  %v817_v59 = vrot.slane %v20584_v55, 5  ;;  %v9489_v55 = vrot.slane %v20590_v60, 10  ;;  %v4595_v40 = vrot.slane %v4593_v42, 4 }
 0x21c   :  { %2405 = vrot.lane.b32.xlu1 %v14702_v41, %s10550_s22  ;;  %20589 = vst [vmem:[#allocation110_spill] sm:$0xff] %v14757_v32  ;;  %v828_v16 = vor.u32 %v827_v47, %v823_v38  ;;  %v2701_v41 = vsel %vm2641_vm9, %v20591_v26, %v14574_v13  ;;  %v10422_v13 = vld [vmem:[%s19316_s0 + $0x184] sm:$0xf] }
 0x21d   :  { %v5145_v10 = vpop.permute.xlu0 %5144  ;;  %v818_v54 = vor.u32 %v817_v59, %v814_v46  ;;  %v4594_v59 = vsel %vm12765_vm14, %v9489_v55, %v4593_v42  ;;  %v1221_v46 = vrot.slane %v10422_v13, 5  ;;  %v20597_v42 = vld [vmem:[#allocation114_spill] sm:$0xff]  ;;  %v10423_v13 = vld [vmem:[%s19316_s0 + $0x180] sm:$0xf] }
 0x21e   :  { %v14743_v1 = vsel %vm2803_vm11, %v5767_v11, %v5145_v10  ;;  %v14759_v51 = vpop.permute.xlu1 %2325  ;;  %v10421_v11 = vld [vmem:[%s19316_s0 + $0xa4] sm:$0x3]  ;;  %v20598_v55 = vshll.u32 %v20597_v42, 16  ;;  %v9307_v42 = vrot.slane %v10423_v13, 9  ;;  %v20602_v13 = vld [vmem:[#allocation164_spill] sm:$0xff] }
 0x21f   :  { %20588 = vst [vmem:[#allocation72_spill] sm:$0xff] %v14743_v1  ;;  %2619 = vrot.lane.b32.xlu0 %v14725_v36, %s10550_s22  ;;  %7403 = vmatmul.mubr.bf16.gmra.mrb[112].mxu1 %v14743_v1  ;;  %v4596_v10 = vrot.slane %v10421_v11, 6  ;;  %v819_v47 = vrot.slane %v818_v54, 4  ;;  %v14790_v11 = vsel %vm2641_vm9, %v20594_v12, %v14552_v50  ;;  %v14794_v1 = vsel %vm2738_vm10, %v2701_v41, %v14610_v22  ;;  %v20599_v54 = vld [vmem:[#allocation16_spill] sm:$0xff] }
 0x220   :  { %5018 = vrot.lane.b32.xlu1 %v20560_v37, %s10548_s16  ;;  %20595 = vst [vmem:[#allocation76_spill] sm:$0xff] %v14790_v11  ;;  %20596 = vst [vmem:[#allocation182_spill] sm:$0xff] %v14794_v1  ;;  %v833_v56 = vrot.slane %v20598_v55, 5  ;;  %v2862_v50 = vsel %vm2803_vm11, %v14794_v1, %v14628_v6  ;;  %v1223_v55 = vrot.slane %v1221_v46, 4  ;;  %v10424_v6 = vld [vmem:[%s19316_s0 + $0x188] sm:$0x3] }
 0x221   :  { %v14773_v57 = vpop.permute.xlu0 %2539  ;;  %v4597_v37 = vsel %vm12765_vm14, %v4595_v40, %v4596_v10 }
 0x222   :  { %20592 = vst [vmem:[#allocation112_spill] sm:$0xff] %v14773_v57  ;;  %v14776_v60 = vpop.permute.xlu1 %2395  ;;  %v3035_v40 = vsel %vm2738_vm10, %v14790_v11, %v14773_v57  ;;  %v1224_v11 = vrot.slane %v10424_v6, 5  ;;  %v20603_v6 = vld [vmem:[#allocation171_spill] sm:$0xff] }
 0x223   :  { %20593 = vst [vmem:[#allocation70_spill] sm:$0xff] %v14776_v60  ;;  %5322 = vrot.lane.b32.xlu0 %v14757_v32, %s10548_s16  ;;  %v829_v32 = vrot.slane %v828_v16, 4  ;;  %v14810_v16 = vcombine.low %v4594_v59, %v4597_v37  ;;  %v824_v59 = vsel %vm10710_vm5, %v819_v47, %v823_v38 }
 0x224   :  { %2483 = vrot.lane.b32.xlu1 %v20599_v54, %s10548_s16  ;;  %v1225_v38 = vsel %vm10635_vm2, %v1223_v55, %v1224_v11 }
 0x225   :  { %v14803_v10 = vpop.permute.xlu0 %2609  ;;  %20601 = vst [vmem:[#allocation212_spill] sm:$0xff] %v14810_v16  ;;  %v834_v37 = vsel %vm10710_vm5, %v829_v32, %v833_v56  ;;  %v1222_v56 = vsel %vm10635_vm2, %v9307_v42, %v1221_v46  ;;  %v20605_v32 = vld [vmem:[#allocation100_spill] sm:$0xff] }
 0x226   :  { %20600 = vst [vmem:[#allocation114_spill] sm:$0xff] %v14803_v10  ;;  %v3118_v22 = vsel %vm2803_vm11, %v3035_v40, %v14803_v10  ;;  %v14812_v41 = vpop.permute.xlu1 %5008  ;;  %v14836_v1 = vcombine.low %v824_v59, %v834_v37  ;;  %v20608_v37 = vld [vmem:[#allocation86_spill] sm:$0xff]  ;;  %v14852_v42 = vcombine.low %v1222_v56, %v1225_v38  ;;  %v20614_v56 = vld [vmem:[#allocation197_spill] sm:$0xff] }
 0x227   :  { %5086 = vrot.lane.b32.xlu0 %v13520_v8, %s10549_s21  ;;  %3580 = vmatprep.mubr.bf16.mxu0 %v3118_v22  ;;  %v5687_v46 = vsel %vm2641_vm9, %v20608_v37, %v14672_v18 }
 0x228   :  { %3581 = vmatmul.mubr.bf16.gmra.mrb[76].mxu0 %v2862_v50  ;;  %2177 = vrot.lane.b32.xlu1 %v14725_v36, %s10548_s16  ;;  %20604 = vst [vmem:[#allocation171_spill] sm:$0xff] %v14836_v1 }
 0x229   :  { %v5313_v8 = vpop.permute.xlu0 %5312 }
 0x22a   :  { %v5943_v40 = vsel %vm2641_vm9, %v14810_v16, %v5313_v8  ;;  %v14830_v22 = vpop.permute.xlu1 %2473  ;;  %v3510_v8 = vpop.f32.mrb[40].mxu0 }
 0x22b   :  { %5156 = vrot.lane.b32.xlu0 %v20602_v13, %s10550_s22  ;;  %v6013_v50 = vsel %vm2738_vm10, %v5943_v40, %v20603_v6  ;;  %v20606_v13 = vld [vmem:[#allocation83_spill] sm:$0xff]  ;;  %v3512_v59 = vpop.f32.mrb[41].mxu0  ;;  %v10261_v40 = vld [vmem:[%s19320_s4 + $0x118] sm:$0xff]   ;;  %v20610_v6 = vld [vmem:[#allocation78_spill] sm:$0xff] }
 0x22c   :  { %v6062_v47 = vsel %vm2803_vm11, %v6013_v50, %v20605_v32  ;;  %2337 = vrot.lane.b32.xlu1 %v20568_v34, %s10549_s21  ;;  %v14847_v10 = vadd.f32 %v20606_v13, %v3510_v8  ;;  %20609 = vst [vmem:[#allocation83_spill] sm:$0xff] %v14852_v42  ;;  %v3513_v55 = vpop.f32.mrb[42].mxu0  ;;  %v4600_v13 = vrot.slane %v20610_v6, 6  ;;  %v20611_v50 = vld [vmem:[#allocation118_spill] sm:$0xff]  ;;  %7859 = vmatpush1.bf16.msra.mxu0 %v10261_v40 }
 0x22d   :  { %v5077_v16 = vpop.permute.xlu0 %5076  ;;  %7410 = vmatprep.mubr.bf16.mxu1 %v6062_v47  ;;  %v20612_v32 = vshrl.u32 %v20611_v50, 16  ;;  %v20613_v8 = vshll.u32 %v20611_v50, 16  ;;  %v14867_v38 = vadd.f32 %v20614_v56, %v3513_v55  ;;  %v3515_v59 = vpop.f32.mrb[43].mxu0  ;;  %7860 = vmatprep.subr.bf16.mxu0 %v20547_v3  ;;  %v14883_v55 = vld [vmem:[%s19316_s0 + $0x120] sm:$0xf] }
 0x22e   :  { %20607 = vst [vmem:[#allocation100_spill] sm:$0xff] %v14847_v10  ;;  %v14854_v11 = vpop.permute.xlu1 %2167  ;;  %v20616_v10 = vld [vmem:[#allocation26_spill] sm:$0xff]  ;;  %v5769_v6 = vsel %vm2738_vm10, %v5687_v46, %v5077_v16  ;;  %20620 = vst [vmem:[#allocation197_spill] sm:$0xff] %v14883_v55  ;;  %v4602_v40 = vrot.slane %v4600_v13, 4 }
 0x22f   :  { %2551 = vrot.lane.b32.xlu0 %v14836_v1, %s10549_s21  ;;  %v838_v47 = vrot.slane %v20612_v32, 4  ;;  %v841_v18 = vrot.slane %v20613_v8, 5  ;;  %20615 = vst [vmem:[#allocation78_spill] sm:$0xff] %v14867_v38  ;;  %v20617_v37 = vshll.u32 %v20616_v10, 16  ;;  %v20618_v34 = vshrl.u32 %v20616_v10, 16 }
 0x230   :  { %2407 = vrot.lane.b32.xlu1 %v14836_v1, %s10550_s22  ;;  %v10427_v8 = vld [vmem:[%s19316_s0 + $0xb0] sm:$0x3] }
 0x231   :  { %v847_v57 = vrot.slane %v20617_v37, 5  ;;  %v851_v44 = vrot.slane %v20618_v34, 4  ;;  %v5147_v32 = vpop.permute.xlu0 %5146  ;;  %v14888_v34 = vld [vmem:[%s19316_s0 + $0x124] sm:$0xf]  ;;  %v4603_v56 = vrot.slane %v10427_v8, 6  ;;  %v842_v59 = vor.u32 %v841_v18, %v838_v47 }
 0x232   :  { %v14878_v50 = vsel %vm2803_vm11, %v5769_v6, %v5147_v32  ;;  %20621 = vst [vmem:[#allocation26_spill] sm:$0xff] %v14888_v34  ;;  %v14892_v10 = vcombine.low %v14883_v55, %v14888_v34  ;;  %v14894_v16 = vpop.permute.xlu1 %2327  ;;  %v20623_v37 = vld [vmem:[#allocation77_spill] sm:$0xff]  ;;  %v20624_v32 = vld [vmem:[#allocation178_spill] sm:$0xff] }
 0x233   :  { %20619 = vst [vmem:[#allocation118_spill] sm:$0xff] %v14878_v50  ;;  %2621 = vrot.lane.b32.xlu0 %v14852_v42, %s10550_s22  ;;  %7411 = vmatmul.mubr.bf16.gmra.mrb[116].mxu1 %v14878_v50  ;;  %v9490_v46 = vrot.slane %v20623_v37, 10  ;;  %v852_v6 = vor.u32 %v851_v44, %v847_v57  ;;  %v2704_v38 = vsel %vm2641_vm9, %v20624_v32, %v14721_v25  ;;  %v843_v47 = vrot.slane %v842_v59, 4  ;;  %v20628_v18 = vld [vmem:[#allocation189_spill] sm:$0xff]  ;;  %v20633_v59 = vld [vmem:[#allocation126_spill] sm:$0xff] }
 0x234   :  { %20622 = vst [vmem:[#allocation213_spill] sm:$0xff] %v14892_v10  ;;  %5020 = vrot.lane.b32.xlu1 %v20591_v26, %s10548_s16  ;;  %v4604_v44 = vsel %vm12765_vm14, %v4602_v40, %v4603_v56  ;;  %v14921_v26 = vld [vmem:[%s19316_s0 + $0x190] sm:$0xf]  ;;  %v14927_v8 = vsel %vm2641_vm9, %v20628_v18, %v14694_v35 }
 0x235   :  { %v14908_v1 = vpop.permute.xlu0 %2541  ;;  %v4601_v37 = vsel %vm12765_vm14, %v9490_v46, %v4600_v13  ;;  %20627 = vst [vmem:[#allocation214_spill] sm:$0xff] %v14921_v26  ;;  %v1228_v25 = vrot.slane %v14921_v26, 5  ;;  %20629 = vst [vmem:[#allocation189_spill] sm:$0xff] %v14927_v8  ;;  %v853_v13 = vrot.slane %v852_v6, 4  ;;  %v20631_v46 = vld [vmem:[#allocation119_spill] sm:$0xff] }
 0x236   :  { %20625 = vst [vmem:[#allocation77_spill] sm:$0xff] %v14908_v1  ;;  %v14910_v50 = vpop.permute.xlu1 %2397  ;;  %v20632_v40 = vshll.u32 %v20631_v46, 16  ;;  %v3037_v55 = vsel %vm2738_vm10, %v14927_v8, %v14908_v1  ;;  %v14956_v46 = vld [vmem:[%s19316_s0 + $0x18c] sm:$0xf]  ;;  %v20642_v1 = vld [vmem:[#allocation180_spill] sm:$0xff] }
 0x237   :  { %20626 = vst [vmem:[#allocation178_spill] sm:$0xff] %v14910_v50  ;;  %5324 = vrot.lane.b32.xlu0 %v14892_v10, %s10548_s16  ;;  %v14931_v10 = vsel %vm2738_vm10, %v2704_v38, %v14759_v51  ;;  %v14947_v38 = vcombine.low %v4601_v37, %v4604_v44  ;;  %20636 = vst [vmem:[#allocation217_spill] sm:$0xff] %v14956_v46  ;;  %v1230_v8 = vrot.slane %v1228_v25, 4 }
 0x238   :  { %20630 = vst [vmem:[#allocation215_spill] sm:$0xff] %v14931_v10  ;;  %v857_v56 = vrot.slane %v20632_v40, 5  ;;  %2485 = vrot.lane.b32.xlu1 %v20633_v59, %s10548_s16  ;;  %v2865_v35 = vsel %vm2803_vm11, %v14931_v10, %v14776_v60  ;;  %v9308_v40 = vrot.slane %v14956_v46, 9  ;;  %v848_v44 = vsel %vm10710_vm5, %v843_v47, %v847_v57  ;;  %v20638_v57 = vld [vmem:[#allocation63_spill] sm:$0xff]  ;;  %v20639_v47 = vld [vmem:[#allocation97_spill] sm:$0xff] }
 0x239   :  { %v14940_v26 = vpop.permute.xlu0 %2611  ;;  %20635 = vst [vmem:[#allocation216_spill] sm:$0xff] %v14947_v38 }
 0x23a   :  { %20634 = vst [vmem:[#allocation119_spill] sm:$0xff] %v14940_v26  ;;  %v3121_v51 = vsel %vm2803_vm11, %v3037_v55, %v14940_v26  ;;  %v14949_v6 = vpop.permute.xlu1 %5010  ;;  %v10430_v55 = vld [vmem:[%s19316_s0 + $0x194] sm:$0x3]  ;;  %v14972_v26 = vpop.f32.mrb[32].mxu1 }
 0x23b   :  { %5088 = vrot.lane.b32.xlu0 %v13571_v4, %s10549_s21  ;;  %3588 = vmatprep.mubr.bf16.mxu0 %v3121_v51  ;;  %v1231_v37 = vrot.slane %v10430_v55, 5  ;;  %v858_v4 = vsel %vm10710_vm5, %v853_v13, %v857_v56  ;;  %20637 = vst [vmem:[#allocation218_spill] sm:$0xff] %v14972_v26  ;;  %v1229_v55 = vsel %vm10635_vm2, %v9308_v40, %v1228_v25  ;;  %v20645_v25 = vld [vmem:[#allocation95_spill] sm:$0xff] }
 0x23c   :  { %3589 = vmatmul.mubr.bf16.gmra.mrb[80].mxu0 %v2865_v35  ;;  %2179 = vrot.lane.b32.xlu1 %v14852_v42, %s10548_s16  ;;  %v10264_v35 = vld [vmem:[%s19320_s4 + $0x120] sm:$0xff]   ;;  %v14981_v56 = vcombine.low %v848_v44, %v858_v4 }
 0x23d   :  { %v5315_v51 = vpop.permute.xlu0 %5314  ;;  %7861 = vmatpush1.bf16.msra.mxu0 %v10264_v35  ;;  %v20648_v35 = vld [vmem:[#allocation121_spill] sm:$0xff] }
 0x23e   :  { %v5946_v60 = vsel %vm2641_vm9, %v14947_v38, %v5315_v51  ;;  %v14970_v10 = vpop.permute.xlu1 %2475  ;;  %20640 = vst [vmem:[#allocation97_spill] sm:$0xff] %v14981_v56  ;;  %v1232_v51 = vsel %vm10635_vm2, %v1230_v8, %v1231_v37  ;;  %v14987_v38 = vpop.f32.mrb[33].mxu1  ;;  %7862 = vmatprep.subr.bf16.mxu0 %v20547_v3  ;;  %v5690_v8 = vsel %vm2641_vm9, %v20645_v25, %v14812_v41  ;;  %v20647_v37 = vld [vmem:[#allocation194_spill] sm:$0xff] }
 0x23f   :  { %5158 = vrot.lane.b32.xlu0 %v20638_v57, %s10550_s22  ;;  %v6014_v13 = vsel %vm2738_vm10, %v5946_v60, %v20639_v47  ;;  %20641 = vst [vmem:[#allocation219_spill] sm:$0xff] %v14987_v38  ;;  %v14993_v57 = vpop.f32.mrb[34].mxu1  ;;  %v15001_v40 = vcombine.low %v1229_v55, %v1232_v51  ;;  %v20649_v47 = vshrl.u32 %v20648_v35, 16 }
 0x240   :  { %v6064_v26 = vsel %vm2803_vm11, %v6014_v13, %v20642_v1  ;;  %2339 = vrot.lane.b32.xlu1 %v20599_v54, %s10549_s21  ;;  %20643 = vst [vmem:[#allocation180_spill] sm:$0xff] %v14993_v57  ;;  %v14995_v44 = vpop.f32.mrb[35].mxu1  ;;  %v4607_v1 = vrot.slane %v20647_v37, 6  ;;  %v20650_v13 = vshll.u32 %v20648_v35, 16  ;;  %v20651_v54 = vld [vmem:[#allocation122_spill] sm:$0xff] }
 0x241   :  { %v5079_v60 = vpop.permute.xlu0 %5078  ;;  %7418 = vmatprep.mubr.bf16.mxu1 %v6064_v26  ;;  %20644 = vst [vmem:[#allocation220_spill] sm:$0xff] %v14995_v44  ;;  %20646 = vst [vmem:[#allocation221_spill] sm:$0xff] %v15001_v40  ;;  %v862_v26 = vrot.slane %v20649_v47, 4  ;;  %v20652_v44 = vshll.u32 %v20651_v54, 16  ;;  %v20653_v41 = vshrl.u32 %v20651_v54, 16  ;;  %v20658_v47 = vld [vmem:[#allocation111_spill] sm:$0xff] }
 0x242   :  { %v15004_v4 = vpop.permute.xlu1 %2169  ;;  %v865_v57 = vrot.slane %v20650_v13, 5  ;;  %v5771_v51 = vsel %vm2738_vm10, %v5690_v8, %v5079_v60  ;;  %v15027_v35 = vld [vmem:[%s19316_s0 + $0x12c] sm:$0xf]  ;;  %v9491_v60 = vrot.slane %v20658_v47, 10  ;;  %v4609_v13 = vrot.slane %v4607_v1, 4  ;;  %v20659_v47 = vld [vmem:[#allocation185_spill] sm:$0xff] }
 0x243   :  { %2553 = vrot.lane.b32.xlu0 %v14981_v56, %s10549_s21  ;;  %v15014_v38 = vrot.slane %v20652_v44, 5  ;;  %v875_v55 = vrot.slane %v20653_v41, 4  ;;  %20655 = vst [vmem:[#allocation121_spill] sm:$0xff] %v15027_v35  ;;  %v15032_v44 = vld [vmem:[%s19316_s0 + $0x130] sm:$0xf] }
 0x244   :  { %2409 = vrot.lane.b32.xlu1 %v14981_v56, %s10550_s22  ;;  %20656 = vst [vmem:[#allocation122_spill] sm:$0xff] %v15032_v44  ;;  %v15036_v54 = vcombine.low %v15027_v35, %v15032_v44  ;;  %v10433_v41 = vld [vmem:[%s19316_s0 + $0xbc] sm:$0x3]  ;;  %v2707_v35 = vsel %vm2641_vm9, %v20659_v47, %v14854_v11  ;;  %v20664_v11 = vld [vmem:[#allocation193_spill] sm:$0xff] }
 0x245   :  { %v5149_v37 = vpop.permute.xlu0 %5148  ;;  %v876_v56 = vor.u32 %v875_v55, %v15014_v38  ;;  %v15068_v34 = vsel %vm2641_vm9, %v20664_v11, %v14830_v22 }
 0x246   :  { %v15022_v25 = vsel %vm2803_vm11, %v5771_v51, %v5149_v37  ;;  %20657 = vst [vmem:[#allocation222_spill] sm:$0xff] %v15036_v54  ;;  %v15039_v8 = vpop.permute.xlu1 %2329  ;;  %v4610_v51 = vrot.slane %v10433_v41, 6  ;;  %v866_v37 = vor.u32 %v865_v57, %v862_v26 }
 0x247   :  { %20654 = vst [vmem:[#allocation194_spill] sm:$0xff] %v15022_v25  ;;  %2623 = vrot.lane.b32.xlu0 %v15001_v40, %s10550_s22  ;;  %7419 = vmatmul.mubr.bf16.gmra.mrb[120].mxu1 %v15022_v25  ;;  %v4608_v25 = vsel %vm12765_vm14, %v9491_v60, %v4607_v1  ;;  %v877_v55 = vrot.slane %v876_v56, 4  ;;  %v15072_v1 = vsel %vm2738_vm10, %v2707_v35, %v14894_v16  ;;  %v15077_v60 = vld [vmem:[%s19316_s0 + $0x19c] sm:$0xf] }
 0x248   :  { %5022 = vrot.lane.b32.xlu1 %v20624_v32, %s10548_s16  ;;  %v4611_v57 = vsel %vm12765_vm14, %v4609_v13, %v4610_v51  ;;  %v867_v26 = vrot.slane %v866_v37, 4  ;;  %v20662_v32 = vld [vmem:[#allocation123_spill] sm:$0xff]  ;;  %20666 = vst [vmem:[#allocation193_spill] sm:$0xff] %v15072_v1  ;;  %20667 = vst [vmem:[#allocation223_spill] sm:$0xff] %v15077_v60  ;;  %v1235_v13 = vrot.slane %v15077_v60, 5  ;;  %v20668_v56 = vld [vmem:[#allocation136_spill] sm:$0xff]  ;;  %v2868_v16 = vsel %vm2803_vm11, %v15072_v1, %v14910_v50 }
 0x249   :  { %v15053_v44 = vpop.permute.xlu0 %2543  ;;  %v20663_v41 = vshll.u32 %v20662_v32, 16  ;;  %20665 = vst [vmem:[#allocation123_spill] sm:$0xff] %v15068_v34  ;;  %v10267_v37 = vld [vmem:[%s19320_s4 + $0x128] sm:$0xff]   ;;  %v20800_v43 = vld [vmem:[#allocation220_spill] sm:$0xff] }
 0x24a   :  { %20660 = vst [vmem:[#allocation111_spill] sm:$0xff] %v15053_v44  ;;  %v15057_v42 = vpop.permute.xlu1 %2399  ;;  %v3039_v51 = vsel %vm2738_vm10, %v15068_v34, %v15053_v44  ;;  %v872_v50 = vsel %vm10710_vm5, %v867_v26, %v15014_v38  ;;  %7863 = vmatpush1.bf16.msra.mxu0 %v10267_v37 }
 0x24b   :  { %20661 = vst [vmem:[#allocation185_spill] sm:$0xff] %v15057_v42  ;;  %5326 = vrot.lane.b32.xlu0 %v15036_v54, %s10548_s16  ;;  %v881_v46 = vrot.slane %v20663_v41, 5  ;;  %v15095_v41 = vcombine.low %v4608_v25, %v4611_v57  ;;  %v20671_v54 = vld [vmem:[#allocation81_spill] sm:$0xff]  ;;  %v15112_v25 = vld [vmem:[%s19316_s0 + $0x198] sm:$0xf]  ;;  %7864 = vmatprep.subr.bf16.mxu0 %v20547_v3 }
 0x24c   :  { %2487 = vrot.lane.b32.xlu1 %v20668_v56, %s10548_s16  ;;  %v3518_v35 = vpop.f32.mrb[44].mxu0  ;;  %20673 = vst [vmem:[#allocation226_spill] sm:$0xff] %v15112_v25 }
 0x24d   :  { %v15085_v22 = vpop.permute.xlu0 %2613  ;;  %20670 = vst [vmem:[#allocation225_spill] sm:$0xff] %v15095_v41  ;;  %v15098_v60 = vadd.f32 %v20671_v54, %v3518_v35  ;;  %v3520_v34 = vpop.f32.mrb[45].mxu0  ;;  %v882_v1 = vsel %vm10710_vm5, %v877_v55, %v881_v46  ;;  %v1237_v54 = vrot.slane %v1235_v13, 4  ;;  %v20674_v35 = vld [vmem:[#allocation196_spill] sm:$0xff] }
 0x24e   :  { %20669 = vst [vmem:[#allocation224_spill] sm:$0xff] %v15085_v22  ;;  %v3124_v32 = vsel %vm2803_vm11, %v3039_v51, %v15085_v22  ;;  %v15100_v44 = vpop.permute.xlu1 %5012  ;;  %v3521_v51 = vpop.f32.mrb[46].mxu0  ;;  %v9309_v34 = vrot.slane %v15112_v25, 9  ;;  %v20696_v25 = vld [vmem:[#allocation128_spill] sm:$0xff] }
 0x24f   :  { %20672 = vst [vmem:[#allocation81_spill] sm:$0xff] %v15098_v60  ;;  %5090 = vrot.lane.b32.xlu0 %v13706_v58, %s10549_s21  ;;  %3596 = vmatprep.mubr.bf16.mxu0 %v3124_v32  ;;  %v10436_v58 = vld [vmem:[%s19316_s0 + $0x1a0] sm:$0x3]  ;;  %v15119_v38 = vadd.f32 %v20674_v35, %v3521_v51  ;;  %v3523_v26 = vpop.f32.mrb[47].mxu0  ;;  %v15132_v35 = vcombine.low %v872_v50, %v882_v1 }
 0x250   :  { %3597 = vmatmul.mubr.bf16.gmra.mrb[84].mxu0 %v2868_v16  ;;  %v1238_v57 = vrot.slane %v10436_v58, 5  ;;  %2181 = vrot.lane.b32.xlu1 %v15001_v40, %s10548_s16  ;;  %v20676_v32 = vld [vmem:[#allocation69_spill] sm:$0xff]  ;;  %v20677_v58 = vld [vmem:[#allocation31_spill] sm:$0xff]  ;;  %v1236_v37 = vsel %vm10635_vm2, %v9309_v34, %v1235_v13  ;;  %v20697_v40 = vshll.u32 %v20696_v25, 16  ;;  %v10442_v25 = vld [vmem:[%s19316_s0 + $0xf8] sm:$0x3] }
 0x251   :  { %20675 = vst [vmem:[#allocation196_spill] sm:$0xff] %v15119_v38  ;;  %v5317_v46 = vpop.permute.xlu0 %5316  ;;  %20678 = vst [vmem:[#allocation31_spill] sm:$0xff] %v15132_v35  ;;  %v20679_v26 = vld [vmem:[#allocation187_spill] sm:$0xff]  ;;  %v20681_v13 = vld [vmem:[#allocation125_spill] sm:$0xff] }
 0x252   :  { %v5949_v55 = vsel %vm2641_vm9, %v15095_v41, %v5317_v46  ;;  %v15125_v16 = vpop.permute.xlu1 %5082  ;;  %v1239_v46 = vsel %vm10635_vm2, %v1237_v54, %v1238_v57  ;;  %v20682_v34 = vshrl.u32 %v20681_v13, 16  ;;  %v20683_v54 = vshll.u32 %v20681_v13, 16 }
 0x253   :  { %5160 = vrot.lane.b32.xlu0 %v20676_v32, %s10550_s22  ;;  %v6015_v51 = vsel %vm2738_vm10, %v5949_v55, %v20677_v58  ;;  %v20680_v32 = vld [vmem:[#allocation195_spill] sm:$0xff]  ;;  %v15149_v1 = vcombine.low %v1236_v37, %v1239_v46 }
 0x254   :  { %v6066_v38 = vsel %vm2803_vm11, %v6015_v51, %v20679_v26  ;;  %2341 = vrot.lane.b32.xlu1 %v20633_v59, %s10549_s21  ;;  %v5693_v55 = vsel %vm2641_vm9, %v20680_v32, %v14949_v6  ;;  %v886_v58 = vrot.slane %v20682_v34, 4  ;;  %v889_v57 = vrot.slane %v20683_v54, 5  ;;  %v20684_v51 = vld [vmem:[#allocation127_spill] sm:$0xff]  ;;  %v20698_v59 = vld [vmem:[#allocation140_spill] sm:$0xff] }
 0x255   :  { %v5081_v60 = vpop.permute.xlu0 %5080  ;;  %7426 = vmatprep.mubr.bf16.mxu1 %v6066_v38  ;;  %v20685_v26 = vshll.u32 %v20684_v51, 16  ;;  %v20686_v41 = vshrl.u32 %v20684_v51, 16  ;;  %v20691_v34 = vld [vmem:[#allocation151_spill] sm:$0xff] }
 0x256   :  { %v15145_v50 = vpop.permute.xlu1 %2477  ;;  %v5773_v6 = vsel %vm2738_vm10, %v5693_v55, %v5081_v60  ;;  %v15178_v60 = vld [vmem:[%s19316_s0 + $0x13c] sm:$0xf]  ;;  %v890_v55 = vor.u32 %v889_v57, %v886_v58  ;;  %v2710_v54 = vsel %vm2641_vm9, %v20691_v34, %v15004_v4  ;;  %v10440_v4 = vld [vmem:[%s19316_s0 + $0xf0] sm:$0xf]  ;;  %v15210_v57 = vld [vmem:[%s19316_s0 + $0x1a8] sm:$0xf] }
 0x257   :  { %2555 = vrot.lane.b32.xlu0 %v15132_v35, %s10549_s21  ;;  %v895_v38 = vrot.slane %v20685_v26, 5  ;;  %v899_v22 = vrot.slane %v20686_v41, 4  ;;  %v15173_v41 = vld [vmem:[%s19316_s0 + $0x138] sm:$0xf]  ;;  %20689 = vst [vmem:[#allocation127_spill] sm:$0xff] %v15178_v60  ;;  %20693 = vst [vmem:[#allocation228_spill] sm:$0xff] %v15210_v57 }
 0x258   :  { %2411 = vrot.lane.b32.xlu1 %v15132_v35, %s10550_s22  ;;  %20688 = vst [vmem:[#allocation125_spill] sm:$0xff] %v15173_v41  ;;  %v15194_v26 = vld [vmem:[%s19316_s0 + $0xf4] sm:$0xf]  ;;  %v891_v58 = vrot.slane %v890_v55, 4  ;;  %v1242_v35 = vrot.slane %v15210_v57, 5  ;;  %v905_v55 = vrot.slane %v20697_v40, 5 }
 0x259   :  { %v5151_v32 = vpop.permute.xlu0 %5150  ;;  %v900_v13 = vor.u32 %v899_v22, %v895_v38  ;;  %v10269_v22 = vld [vmem:[%s19320_s4 + $0x130] sm:$0xff]   ;;  %v4617_v40 = vrot.slane %v10442_v25, 6  ;;  %v10444_v25 = vld [vmem:[%s19316_s0 + $0x1ac] sm:$0x3] }
 0x25a   :  { %v15163_v37 = vsel %vm2803_vm11, %v5773_v6, %v5151_v32  ;;  %v15165_v46 = vpop.permute.xlu1 %2171  ;;  %v15182_v32 = vcombine.low %v15173_v41, %v15178_v60  ;;  %v4614_v6 = vrot.slane %v15194_v26, 6  ;;  %v15216_v41 = vsel %vm2641_vm9, %v14269_v62, %v14970_v10  ;;  %7865 = vmatpush1.bf16.msra.mxu0 %v10269_v22  ;;  %v15247_v22 = vld [vmem:[%s19316_s0 + $0x1a4] sm:$0xf] }
 0x25b   :  { %20687 = vst [vmem:[#allocation187_spill] sm:$0xff] %v15163_v37  ;;  %2625 = vrot.lane.b32.xlu0 %v15149_v1, %s10550_s22  ;;  %7427 = vmatmul.mubr.bf16.gmra.mrb[124].mxu1 %v15163_v37  ;;  %20694 = vst [vmem:[#allocation229_spill] sm:$0xff] %v15216_v41  ;;  %v901_v60 = vrot.slane %v900_v13, 4 }
 0x25c   :  { %20690 = vst [vmem:[#allocation227_spill] sm:$0xff] %v15182_v32  ;;  %5024 = vrot.lane.b32.xlu1 %v20659_v47, %s10548_s16  ;;  %v9492_v47 = vrot.slane %v10440_v4, 10  ;;  %7866 = vmatprep.subr.bf16.mxu0 %v20547_v3  ;;  %20701 = vst [vmem:[#allocation232_spill] sm:$0xff] %v15247_v22 }
 0x25d   :  { %v15189_v51 = vpop.permute.xlu0 %2545 }
 0x25e   :  { %20692 = vst [vmem:[#allocation151_spill] sm:$0xff] %v15189_v51  ;;  %v15197_v37 = vpop.permute.xlu1 %2331  ;;  %v3041_v57 = vsel %vm2738_vm10, %v15216_v41, %v15189_v51  ;;  %v1244_v41 = vrot.slane %v1242_v35, 4 }
 0x25f   :  { %5328 = vrot.lane.b32.xlu0 %v15182_v32, %s10548_s16  ;;  %v15220_v32 = vsel %vm2738_vm10, %v2710_v54, %v15039_v8  ;;  %v4616_v8 = vrot.slane %v4614_v6, 4 }
 0x260   :  { %20695 = vst [vmem:[#allocation230_spill] sm:$0xff] %v15220_v32  ;;  %2489 = vrot.lane.b32.xlu1 %v20698_v59, %s10548_s16  ;;  %v2871_v10 = vsel %vm2803_vm11, %v15220_v32, %v15057_v42  ;;  %v9310_v42 = vrot.slane %v15247_v22, 9  ;;  %v1245_v32 = vrot.slane %v10444_v25, 5  ;;  %v15265_v25 = vpop.f32.mrb[36].mxu1 }
 0x261   :  { %v15229_v36 = vpop.permute.xlu0 %2615  ;;  %20702 = vst [vmem:[#allocation233_spill] sm:$0xff] %v15265_v25 }
 0x262   :  { %20699 = vst [vmem:[#allocation128_spill] sm:$0xff] %v15229_v36  ;;  %v3127_v13 = vsel %vm2803_vm11, %v3041_v57, %v15229_v36  ;;  %v15240_v54 = vpop.permute.xlu1 %2401  ;;  %v896_v57 = vsel %vm10710_vm5, %v891_v58, %v895_v38  ;;  %v4618_v36 = vsel %vm12765_vm14, %v4616_v8, %v4617_v40  ;;  %v1246_v58 = vsel %vm10635_vm2, %v1244_v41, %v1245_v32 }
 0x263   :  { %20700 = vst [vmem:[#allocation231_spill] sm:$0xff] %v15240_v54  ;;  %5092 = vrot.lane.b32.xlu0 %v20594_v12, %s10549_s21  ;;  %3604 = vmatprep.mubr.bf16.mxu0 %v3127_v13  ;;  %v906_v12 = vsel %vm10710_vm5, %v901_v60, %v905_v55  ;;  %v4615_v13 = vsel %vm12765_vm14, %v9492_v47, %v4614_v6  ;;  %v15275_v6 = vpop.f32.mrb[37].mxu1 }
 0x264   :  { %3605 = vmatmul.mubr.bf16.gmra.mrb[88].mxu0 %v2871_v10  ;;  %2183 = vrot.lane.b32.xlu1 %v15149_v1, %s10548_s16  ;;  %v20703_v10 = vld [vmem:[#allocation79_spill] sm:$0xff]  ;;  %v15269_v38 = vcombine.low %v896_v57, %v906_v12  ;;  %v1243_v60 = vsel %vm10635_vm2, %v9310_v42, %v1242_v35  ;;  %v9572_v47 = vcombine.low %v4615_v13, %v4618_v36  ;;  %v15279_v55 = vpop.f32.mrb[38].mxu1  ;;  %v20707_v42 = vld [vmem:[#allocation134_spill] sm:$0xff] }
 0x265   :  { %v5319_v51 = vpop.permute.xlu0 %5318  ;;  %20704 = vst [vmem:[#allocation234_spill] sm:$0xff] %v15279_v55  ;;  %v15281_v40 = vpop.f32.mrb[39].mxu1  ;;  %v9534_v57 = vcombine.low %v10440_v4, %v15194_v26  ;;  %v15284_v12 = vcombine.low %v1243_v60, %v1246_v58  ;;  %v20708_v35 = vshrl.u32 %v20707_v42, 16  ;;  %v20709_v41 = vshll.u32 %v20707_v42, 16  ;;  %v20710_v13 = vld [vmem:[#allocation135_spill] sm:$0xff]  ;;  %v10272_v42 = vld [vmem:[%s19320_s4 + $0x138] sm:$0xff]  }
 0x266   :  { %v15263_v22 = vpop.permute.xlu1 %5014  ;;  %20705 = vst [vmem:[#allocation235_spill] sm:$0xff] %v15281_v40  ;;  %v20711_v55 = vshll.u32 %v20710_v13, 16  ;;  %v20712_v40 = vshrl.u32 %v20710_v13, 16  ;;  %v5952_v4 = vsel %vm2641_vm9, %v9572_v47, %v5319_v51  ;;  %v15317_v47 = vld [vmem:[%s19316_s0 + $0x144] sm:$0xf]  ;;  %7867 = vmatpush1.bf16.msra.mxu0 %v10272_v42 }
 0x267   :  { %5162 = vrot.lane.b32.xlu0 %v20703_v10, %s10550_s22  ;;  %20706 = vst [vmem:[#allocation236_spill] sm:$0xff] %v15284_v12  ;;  %v910_v36 = vrot.slane %v20708_v35, 4  ;;  %v913_v32 = vrot.slane %v20709_v41, 5  ;;  %v5696_v35 = vsel %vm2641_vm9, %v9534_v57, %v15100_v44  ;;  %20713 = vst [vmem:[#allocation134_spill] sm:$0xff] %v15317_v47  ;;  %7868 = vmatprep.subr.bf16.mxu0 %v20547_v3  ;;  %v20717_v42 = vld [vmem:[#allocation137_spill] sm:$0xff] }
 0x268   :  { %2343 = vrot.lane.b32.xlu1 %v20668_v56, %s10549_s21  ;;  %v15296_v25 = vrot.slane %v20711_v55, 5  ;;  %v923_v26 = vrot.slane %v20712_v40, 4 }
 0x269   :  { %v5355_v8 = vpop.permute.xlu0 %5354  ;;  %v914_v40 = vor.u32 %v913_v32, %v910_v36 }
 0x26a   :  { %v15286_v10 = vpop.permute.xlu1 %5084  ;;  %v6017_v60 = vsel %vm2738_vm10, %v5952_v4, %v5355_v8  ;;  %v15322_v8 = vld [vmem:[%s19316_s0 + $0x148] sm:$0xf]  ;;  %v924_v57 = vor.u32 %v923_v26, %v15296_v25 }
 0x26b   :  { %2557 = vrot.lane.b32.xlu0 %v15269_v38, %s10549_s21  ;;  %v15326_v44 = vcombine.low %v15317_v47, %v15322_v8 }
 0x26c   :  { %2413 = vrot.lane.b32.xlu1 %v15269_v38, %s10550_s22 }
 0x26d   :  { %v5363_v58 = vpop.permute.xlu0 %5362  ;;  %20714 = vst [vmem:[#allocation135_spill] sm:$0xff] %v15326_v44 }
 0x26e   :  { %v6069_v55 = vsel %vm2803_vm11, %v6017_v60, %v5363_v58  ;;  %v15310_v41 = vpop.permute.xlu1 %2479  ;;  %v5775_v60 = vsel %vm2738_vm10, %v5696_v35, %v15125_v16  ;;  %v925_v16 = vrot.slane %v924_v57, 4  ;;  %v20718_v35 = vshll.u32 %v20717_v42, 16 }
 0x26f   :  { %2627 = vrot.lane.b32.xlu0 %v15284_v12, %s10550_s22  ;;  %v3526_v51 = vpop.f32.mrb[48].mxu0  ;;  %7434 = vmatprep.mubr.bf16.mxu1 %v6069_v55  ;;  %v9493_v57 = vrot.slane %v14408_v19, 10  ;;  %v15380_v19 = vld [vmem:[%s19316_s0 + $0x1b0] sm:$0xf] }
 0x270   :  { %v15330_v13 = vadd.f32 %v14427_v45, %v3526_v51  ;;  %v3528_v4 = vpop.f32.mrb[49].mxu0  ;;  %5026 = vrot.lane.b32.xlu1 %v20691_v34, %s10548_s16  ;;  %v4621_v45 = vrot.slane %v14413_v29, 6  ;;  %v915_v34 = vrot.slane %v914_v40, 4  ;;  %v929_v51 = vrot.slane %v20718_v35, 5  ;;  %v20719_v29 = vld [vmem:[#allocation143_spill] sm:$0xff]  ;;  %v10273_v40 = vld [vmem:[%s19320_s4 + $0x80] sm:$0xff]  }
 0x271   :  { %v5153_v58 = vpop.permute.xlu0 %5152  ;;  %v3529_v55 = vpop.f32.mrb[50].mxu0  ;;  %7564 = vmatpush1.bf16.msra.mxu1 %v10273_v40 }
 0x272   :  { %20715 = vst [vmem:[#allocation237_spill] sm:$0xff] %v15330_v13  ;;  %v15338_v47 = vadd.f32 %v14449_v20, %v3529_v55  ;;  %v3531_v36 = vpop.f32.mrb[51].mxu0  ;;  %v5855_v32 = vsel %vm2803_vm11, %v5775_v60, %v5153_v58  ;;  %v15342_v26 = vpop.permute.xlu1 %2173  ;;  %v15351_v20 = vld [vmem:[%s19316_s0 + $0x1b4] sm:$0xf]  ;;  %v2713_v60 = vsel %vm2641_vm9, %v14233_v24, %v15165_v46  ;;  %v4623_v55 = vrot.slane %v4621_v45, 4  ;;  %7565 = vmatprep.subr.bf16.mxu1 %v20547_v3 }
 0x273   :  { %5330 = vrot.lane.b32.xlu0 %v15326_v44, %s10548_s16  ;;  %7435 = vmatmul.mubr.bf16.gmra.mrb[128].mxu1 %v5855_v32  ;;  %v1249_v4 = vrot.slane %v15351_v20, 5  ;;  %v10448_v32 = vld [vmem:[%s19316_s0 + $0x104] sm:$0x3]  ;;  %v920_v46 = vsel %vm10710_vm5, %v915_v34, %v15296_v25  ;;  %v930_v35 = vsel %vm10710_vm5, %v925_v16, %v929_v51  ;;  %v10450_v34 = vld [vmem:[%s19316_s0 + $0x1b8] sm:$0x3]  ;;  %v4622_v13 = vsel %vm12765_vm14, %v9493_v57, %v4621_v45 }
 0x274   :  { %20716 = vst [vmem:[#allocation238_spill] sm:$0xff] %v15338_v47  ;;  %2491 = vrot.lane.b32.xlu1 %v20719_v29, %s10548_s16  ;;  %v4624_v42 = vrot.slane %v10448_v32, 6  ;;  %v9311_v47 = vrot.slane %v15380_v19, 9  ;;  %v15390_v32 = vsel %vm2738_vm10, %v2713_v60, %v15197_v37  ;;  %v1252_v16 = vrot.slane %v10450_v34, 5  ;;  %v20725_v34 = vld [vmem:[#allocation85_spill] sm:$0xff] }
 0x275   :  { %v15359_v58 = vpop.permute.xlu0 %2547  ;;  %20722 = vst [vmem:[#allocation240_spill] sm:$0xff] %v15390_v32  ;;  %v1251_v25 = vrot.slane %v1249_v4, 4  ;;  %v2874_v37 = vsel %vm2803_vm11, %v15390_v32, %v15240_v54  ;;  %v15414_v44 = vcombine.low %v920_v46, %v930_v35  ;;  %v10274_v45 = vld [vmem:[%s19320_s4 + $0x140] sm:$0xff]  }
 0x276   :  { %20720 = vst [vmem:[#allocation137_spill] sm:$0xff] %v15359_v58  ;;  %v15365_v36 = vpop.permute.xlu1 %2333  ;;  %v1250_v54 = vsel %vm10635_vm2, %v9311_v47, %v1249_v4  ;;  %v20729_v47 = vld [vmem:[#allocation139_spill] sm:$0xff]  ;;  %7869 = vmatpush1.bf16.msra.mxu0 %v10274_v45 }
 0x277   :  { %5094 = vrot.lane.b32.xlu0 %v20628_v18, %s10549_s21  ;;  %v15386_v18 = vsel %vm2641_vm9, %v14400_v31, %v15145_v50  ;;  %20726 = vst [vmem:[#allocation243_spill] sm:$0xff] %v15414_v44  ;;  %v20730_v4 = vshrl.u32 %v20729_v47, 16  ;;  %v20731_v46 = vshll.u32 %v20729_v47, 16  ;;  %7870 = vmatprep.subr.bf16.mxu0 %v20547_v3 }
 0x278   :  { %20721 = vst [vmem:[#allocation239_spill] sm:$0xff] %v15386_v18  ;;  %2185 = vrot.lane.b32.xlu1 %v15284_v12, %s10548_s16  ;;  %v3043_v50 = vsel %vm2738_vm10, %v15386_v18, %v15359_v58  ;;  %v4625_v18 = vsel %vm12765_vm14, %v4623_v55, %v4624_v42 }
 0x279   :  { %v15401_v51 = vpop.permute.xlu0 %2617  ;;  %v15429_v57 = vcombine.low %v4622_v13, %v4625_v18  ;;  %v1764_v42 = vrot.slane %v20730_v4, 4  ;;  %v1767_v35 = vrot.slane %v20731_v46, 5 }
 0x27a   :  { %20723 = vst [vmem:[#allocation241_spill] sm:$0xff] %v15401_v51  ;;  %v3130_v60 = vsel %vm2803_vm11, %v3043_v50, %v15401_v51  ;;  %v15408_v40 = vpop.permute.xlu1 %2403  ;;  %v1253_v50 = vsel %vm10635_vm2, %v1251_v25, %v1252_v16  ;;  %v20732_v25 = vld [vmem:[#allocation141_spill] sm:$0xff] }
 0x27b   :  { %20724 = vst [vmem:[#allocation242_spill] sm:$0xff] %v15408_v40  ;;  %5164 = vrot.lane.b32.xlu0 %v20725_v34, %s10550_s22  ;;  %3612 = vmatprep.mubr.bf16.mxu0 %v3130_v60  ;;  %20727 = vst [vmem:[#allocation244_spill] sm:$0xff] %v15429_v57  ;;  %v15433_v55 = vcombine.low %v1250_v54, %v1253_v50  ;;  %v20733_v16 = vshll.u32 %v20732_v25, 16  ;;  %v20734_v32 = vshrl.u32 %v20732_v25, 16  ;;  %v15455_v50 = vld [vmem:[%s19316_s0 + $0x150] sm:$0xf] }
 0x27c   :  { %3613 = vmatmul.mubr.bf16.gmra.mrb[92].mxu0 %v2874_v37  ;;  %2345 = vrot.lane.b32.xlu1 %v20698_v59, %s10549_s21  ;;  %20735 = vst [vmem:[#allocation139_spill] sm:$0xff] %v15455_v50  ;;  %v1768_v25 = vor.u32 %v1767_v35, %v1764_v42 }
 0x27d   :  { %v5321_v34 = vpop.permute.xlu0 %5320  ;;  %20728 = vst [vmem:[#allocation245_spill] sm:$0xff] %v15433_v55  ;;  %v15441_v37 = vrot.slane %v20733_v16, 5  ;;  %v1777_v51 = vrot.slane %v20734_v32, 4  ;;  %v15460_v32 = vld [vmem:[%s19316_s0 + $0x154] sm:$0xf] }
 0x27e   :  { %v15424_v60 = vpop.permute.xlu1 %5016  ;;  %v15464_v45 = vcombine.low %v15455_v50, %v15460_v32  ;;  %v5955_v47 = vsel %vm2641_vm9, %v15429_v57, %v5321_v34  ;;  %v5699_v50 = vsel %vm2641_vm9, %v14417_v15, %v15263_v22  ;;  %v1769_v35 = vrot.slane %v1768_v25, 4  ;;  %v20739_v22 = vld [vmem:[#allocation142_spill] sm:$0xff] }
 0x27f   :  { %2559 = vrot.lane.b32.xlu0 %v15414_v44, %s10549_s21  ;;  %v1778_v16 = vor.u32 %v1777_v51, %v15441_v37  ;;  %v4628_v51 = vrot.slane %v14586_v49, 6 }
 0x280   :  { %2415 = vrot.lane.b32.xlu1 %v15414_v44, %s10550_s22  ;;  %20736 = vst [vmem:[#allocation141_spill] sm:$0xff] %v15464_v45 }
 0x281   :  { %v5357_v13 = vpop.permute.xlu0 %5356  ;;  %v1779_v15 = vrot.slane %v1778_v16, 4  ;;  %v9494_v16 = vrot.slane %v14581_v14, 10  ;;  %v10456_v14 = vld [vmem:[%s19316_s0 + $0x1c4] sm:$0x3] }
 0x282   :  { %v15448_v54 = vpop.permute.xlu1 %2481  ;;  %v6019_v58 = vsel %vm2738_vm10, %v5955_v47, %v5357_v13  ;;  %v20741_v13 = vld [vmem:[#allocation148_spill] sm:$0xff]  ;;  %v5777_v47 = vsel %vm2738_vm10, %v5699_v50, %v15286_v10 }
 0x283   :  { %2629 = vrot.lane.b32.xlu0 %v15433_v55, %s10550_s22  ;;  %v3534_v18 = vpop.f32.mrb[52].mxu0  ;;  %v10455_v10 = vld [vmem:[%s19316_s0 + $0x1bc] sm:$0xf] }
 0x284   :  { %v15469_v4 = vadd.f32 %v14419_v7, %v3534_v18  ;;  %v3536_v46 = vpop.f32.mrb[53].mxu0  ;;  %5028 = vrot.lane.b32.xlu1 %v14233_v24, %s10548_s16  ;;  %v10275_v24 = vld [vmem:[%s19320_s4 + $0x88] sm:$0xff]   ;;  %v9313_v50 = vrot.slane %v10455_v10, 9 }
 0x285   :  { %v5365_v44 = vpop.permute.xlu0 %5364  ;;  %v3537_v12 = vpop.f32.mrb[54].mxu0  ;;  %7566 = vmatpush1.bf16.msra.mxu1 %v10275_v24 }
 0x286   :  { %20737 = vst [vmem:[#allocation246_spill] sm:$0xff] %v15469_v4  ;;  %v15479_v34 = vadd.f32 %v14447_v28, %v3537_v12  ;;  %v3539_v7 = vpop.f32.mrb[55].mxu0  ;;  %v6072_v18 = vsel %vm2803_vm11, %v6019_v58, %v5365_v44  ;;  %v15482_v42 = vpop.permute.xlu1 %2175  ;;  %v20740_v28 = vshll.u32 %v20739_v22, 16  ;;  %v10453_v44 = vld [vmem:[%s19316_s0 + $0x1c0] sm:$0xf]  ;;  %7567 = vmatprep.subr.bf16.mxu1 %v20547_v3  ;;  %v1774_v22 = vsel %vm10710_vm5, %v1769_v35, %v15441_v37  ;;  %v10276_v35 = vld [vmem:[%s19320_s4 + $0x148] sm:$0xff]  }
 0x287   :  { %5332 = vrot.lane.b32.xlu0 %v15464_v45, %s10548_s16  ;;  %7442 = vmatprep.mubr.bf16.mxu1 %v6072_v18  ;;  %v1800_v58 = vrot.slane %v10453_v44, 5  ;;  %v4630_v7 = vrot.slane %v4628_v51, 4  ;;  %v10454_v18 = vld [vmem:[%s19316_s0 + $0x110] sm:$0x3]  ;;  %v1803_v44 = vrot.slane %v10456_v14, 5  ;;  %v15529_v37 = vpop.f32.mrb[40].mxu1  ;;  %v15549_v14 = vsel %vm2641_vm9, %v14562_v61, %v15310_v41 }
 0x288   :  { %20738 = vst [vmem:[#allocation247_spill] sm:$0xff] %v15479_v34  ;;  %v1783_v12 = vrot.slane %v20740_v28, 5  ;;  %2493 = vrot.lane.b32.xlu1 %v20741_v13, %s10548_s16  ;;  %v4631_v24 = vrot.slane %v10454_v18, 6  ;;  %v15544_v10 = vpop.f32.mrb[41].mxu1  ;;  %20744 = vst [vmem:[#allocation249_spill] sm:$0xff] %v15549_v14  ;;  %7871 = vmatpush1.bf16.msra.mxu0 %v10276_v35 }
 0x289   :  { %v5155_v46 = vpop.permute.xlu0 %5154  ;;  %v1802_v28 = vrot.slane %v1800_v58, 4  ;;  %v1801_v18 = vsel %vm10635_vm2, %v9313_v50, %v1800_v58  ;;  %7872 = vmatprep.subr.bf16.mxu0 %v20547_v3 }
 0x28a   :  { %v5858_v49 = vsel %vm2803_vm11, %v5777_v47, %v5155_v46  ;;  %v15501_v25 = vpop.permute.xlu1 %2335  ;;  %v2716_v47 = vsel %vm2641_vm9, %v14362_v33, %v15342_v26  ;;  %v4632_v26 = vsel %vm12765_vm14, %v4630_v7, %v4631_v24 }
 0x28b   :  { %5096 = vrot.lane.b32.xlu0 %v20664_v11, %s10549_s21  ;;  %7443 = vmatmul.mubr.bf16.gmra.mrb[132].mxu1 %v5858_v49  ;;  %v1784_v11 = vsel %vm10710_vm5, %v1779_v15, %v1783_v12  ;;  %v4629_v12 = vsel %vm12765_vm14, %v9494_v16, %v4628_v51  ;;  %v1804_v51 = vsel %vm10635_vm2, %v1802_v28, %v1803_v44  ;;  %v15559_v16 = vpop.f32.mrb[42].mxu1  ;;  %v10277_v28 = vld [vmem:[%s19320_s4 + $0x150] sm:$0xff]  }
 0x28c   :  { %2187 = vrot.lane.b32.xlu1 %v15433_v55, %s10548_s16  ;;  %v15536_v15 = vcombine.low %v1774_v22, %v1784_v11  ;;  %v15553_v22 = vsel %vm2738_vm10, %v2716_v47, %v15365_v36  ;;  %v15569_v36 = vpop.f32.mrb[43].mxu1  ;;  %v15574_v50 = vcombine.low %v4629_v12, %v4632_v26  ;;  %v15583_v44 = vcombine.low %v1801_v18, %v1804_v51  ;;  %v20748_v47 = vld [vmem:[#allocation144_spill] sm:$0xff]  ;;  %v20751_v12 = vld [vmem:[#allocation145_spill] sm:$0xff]  ;;  %v10278_v18 = vld [vmem:[%s19320_s4 + $0x90] sm:$0xff]  }
 0x28d   :  { %v15525_v46 = vpop.permute.xlu0 %2549  ;;  %20745 = vst [vmem:[#allocation250_spill] sm:$0xff] %v15553_v22  ;;  %v2877_v41 = vsel %vm2803_vm11, %v15553_v22, %v15408_v40  ;;  %v20749_v35 = vshrl.u32 %v20748_v47, 16  ;;  %v20750_v4 = vshll.u32 %v20748_v47, 16  ;;  %v20752_v26 = vshll.u32 %v20751_v12, 16  ;;  %7873 = vmatpush1.bf16.msra.mxu0 %v10277_v28  ;;  %v15615_v47 = vld [vmem:[%s19316_s0 + $0x15c] sm:$0xf]  ;;  %7568 = vmatpush1.bf16.msra.mxu1 %v10278_v18 }
 0x28e   :  { %v15527_v49 = vpop.permute.xlu1 %2405  ;;  %20743 = vst [vmem:[#allocation248_spill] sm:$0xff] %v15536_v15  ;;  %v3045_v58 = vsel %vm2738_vm10, %v15549_v14, %v15525_v46  ;;  %20746 = vst [vmem:[#allocation251_spill] sm:$0xff] %v15574_v50  ;;  %v20753_v14 = vshrl.u32 %v20751_v12, 16  ;;  %7874 = vmatprep.subr.bf16.mxu0 %v20547_v3  ;;  %7569 = vmatprep.subr.bf16.mxu1 %v20547_v3  ;;  %v4635_v18 = vrot.slane %v14753_v52, 6 }
 0x28f   :  { %20742 = vst [vmem:[#allocation142_spill] sm:$0xff] %v15527_v49  ;;  %5166 = vrot.lane.b32.xlu0 %v20452_v53, %s10550_s22  ;;  %20747 = vst [vmem:[#allocation252_spill] sm:$0xff] %v15583_v44  ;;  %v1862_v34 = vrot.slane %v20749_v35, 4  ;;  %v15591_v40 = vrot.slane %v20752_v26, 5  ;;  %v15620_v35 = vld [vmem:[%s19316_s0 + $0x160] sm:$0xf] }
 0x290   :  { %2347 = vrot.lane.b32.xlu1 %v20719_v29, %s10549_s21  ;;  %v1875_v53 = vrot.slane %v20753_v14, 4  ;;  %v10279_v14 = vld [vmem:[%s19320_s4 + $0x158] sm:$0xff]   ;;  %v15624_v12 = vcombine.low %v15615_v47, %v15620_v35 }
 0x291   :  { %v15564_v7 = vpop.permute.xlu0 %2619  ;;  %7875 = vmatpush1.bf16.msra.mxu0 %v10279_v14 }
 0x292   :  { %v3133_v24 = vsel %vm2803_vm11, %v3045_v58, %v15564_v7  ;;  %v15576_v11 = vpop.permute.xlu1 %5018  ;;  %v1865_v58 = vrot.slane %v20750_v4, 5  ;;  %20754 = vst [vmem:[#allocation144_spill] sm:$0xff] %v15624_v12  ;;  %7876 = vmatprep.subr.bf16.mxu0 %v20547_v3 }
 0x293   :  { %2561 = vrot.lane.b32.xlu0 %v15536_v15, %s10549_s21  ;;  %3620 = vmatprep.mubr.bf16.mxu0 %v3133_v24 }
 0x294   :  { %3621 = vmatmul.mubr.bf16.gmra.mrb[96].mxu0 %v2877_v41  ;;  %2417 = vrot.lane.b32.xlu1 %v15536_v15, %s10550_s22  ;;  %v1866_v26 = vor.u32 %v1865_v58, %v1862_v34  ;;  %v1876_v15 = vor.u32 %v1875_v53, %v15591_v40  ;;  %v10280_v53 = vld [vmem:[%s19320_s4 + $0x160] sm:$0xff]  }
 0x295   :  { %v5323_v24 = vpop.permute.xlu0 %5322  ;;  %7877 = vmatpush1.bf16.msra.mxu0 %v10280_v53  ;;  %v10461_v53 = vld [vmem:[%s19316_s0 + $0x11c] sm:$0x3] }
 0x296   :  { %v5958_v4 = vsel %vm2641_vm9, %v15574_v50, %v5323_v24  ;;  %v15602_v51 = vpop.permute.xlu1 %2483  ;;  %v1877_v14 = vrot.slane %v1876_v15, 4  ;;  %7878 = vmatprep.subr.bf16.mxu0 %v20547_v3 }
 0x297   :  { %2631 = vrot.lane.b32.xlu0 %v15583_v44, %s10550_s22  ;;  %v3542_v41 = vpop.f32.mrb[56].mxu0  ;;  %v6020_v28 = vsel %vm2738_vm10, %v5958_v4, %v14352_v23 }
 0x298   :  { %v15627_v24 = vadd.f32 %v14704_v27, %v3542_v41  ;;  %v3544_v23 = vpop.f32.mrb[57].mxu0  ;;  %v6074_v4 = vsel %vm2803_vm11, %v6020_v28, %v14380_v0  ;;  %5030 = vrot.lane.b32.xlu1 %v14362_v33, %s10548_s16  ;;  %v5702_v27 = vsel %vm2641_vm9, %v14590_v39, %v15424_v60  ;;  %v1867_v33 = vrot.slane %v1866_v26, 4  ;;  %v20757_v60 = vld [vmem:[#allocation146_spill] sm:$0xff]  ;;  %v20797_v39 = vld [vmem:[#allocation208_spill] sm:$0xff] }
 0x299   :  { %v5087_v29 = vpop.permute.xlu0 %5086  ;;  %v3545_v13 = vpop.f32.mrb[58].mxu0  ;;  %7450 = vmatprep.mubr.bf16.mxu1 %v6074_v4  ;;  %v20758_v41 = vshll.u32 %v20757_v60, 16  ;;  %v15660_v23 = vld [vmem:[%s19316_s0 + $0x178] sm:$0xf]  ;;  %v10281_v60 = vld [vmem:[%s19320_s4 + $0x168] sm:$0xff]  }
 0x29a   :  { %20755 = vst [vmem:[#allocation145_spill] sm:$0xff] %v15627_v24  ;;  %v15639_v34 = vadd.f32 %v14716_v9, %v3545_v13  ;;  %v3547_v58 = vpop.f32.mrb[59].mxu0  ;;  %v15641_v0 = vpop.permute.xlu1 %2177  ;;  %v10459_v13 = vld [vmem:[%s19316_s0 + $0x1cc] sm:$0xf]  ;;  %v15664_v52 = vcombine.low %v14679_v48, %v15660_v23  ;;  %v5779_v15 = vsel %vm2738_vm10, %v5702_v27, %v5087_v29  ;;  %v1872_v48 = vsel %vm10710_vm5, %v1867_v33, %v15591_v40  ;;  %v10463_v40 = vld [vmem:[%s19316_s0 + $0x1d0] sm:$0x3] }
 0x29b   :  { %5334 = vrot.lane.b32.xlu0 %v15624_v12, %s10548_s16  ;;  %v1881_v9 = vrot.slane %v20758_v41, 5  ;;  %v1898_v28 = vrot.slane %v10459_v13, 5  ;;  %v9495_v29 = vrot.slane %v14748_v30, 10  ;;  %v4637_v27 = vrot.slane %v4635_v18, 4  ;;  %7879 = vmatpush1.bf16.msra.mxu0 %v10281_v60  ;;  %v20762_v60 = vld [vmem:[#allocation211_spill] sm:$0xff] }
 0x29c   :  { %20756 = vst [vmem:[#allocation253_spill] sm:$0xff] %v15639_v34  ;;  %5170 = vrot.lane.b32.xlu1 %v20516_v17, %s10550_s22  ;;  %20759 = vst [vmem:[#allocation146_spill] sm:$0xff] %v15664_v52  ;;  %v4638_v41 = vrot.slane %v10461_v53, 6  ;;  %v1901_v30 = vrot.slane %v10463_v40, 5  ;;  %v2719_v33 = vsel %vm2641_vm9, %v14542_v2, %v15482_v42  ;;  %7880 = vmatprep.subr.bf16.mxu0 %v20547_v3 }
 0x29d   :  { %v5157_v26 = vpop.permute.xlu0 %5156  ;;  %v1882_v13 = vsel %vm10710_vm5, %v1877_v14, %v1881_v9  ;;  %v10282_v9 = vld [vmem:[%s19320_s4 + $0x170] sm:$0xff]   ;;  %v15715_v40 = vsel %vm2641_vm9, %v20762_v60, %v15448_v54  ;;  %v15719_v34 = vsel %vm2738_vm10, %v2719_v33, %v15501_v25 }
 0x29e   :  { %v5861_v4 = vsel %vm2803_vm11, %v5779_v15, %v5157_v26  ;;  %v15668_v58 = vpop.permute.xlu1 %2337  ;;  %v1900_v26 = vrot.slane %v1898_v28, 4  ;;  %v15706_v53 = vcombine.low %v1872_v48, %v1882_v13  ;;  %v4639_v42 = vsel %vm12765_vm14, %v4637_v27, %v4638_v41  ;;  %20763 = vst [vmem:[#allocation211_spill] sm:$0xff] %v15715_v40  ;;  %20764 = vst [vmem:[#allocation256_spill] sm:$0xff] %v15719_v34  ;;  %v10284_v41 = vld [vmem:[%s19320_s4 + $0x178] sm:$0xff]  }
 0x29f   :  { %5098 = vrot.lane.b32.xlu0 %v14269_v62, %s10549_s21  ;;  %7451 = vmatmul.mubr.bf16.gmra.mrb[136].mxu1 %v5861_v4  ;;  %v10462_v62 = vld [vmem:[%s19316_s0 + $0x1c8] sm:$0xf]  ;;  %v2880_v54 = vsel %vm2803_vm11, %v15719_v34, %v15527_v49 }
 0x2a0   :  { %v9315_v15 = vrot.slane %v10462_v62, 9  ;;  %5338 = vrot.lane.b32.xlu1 %v15664_v52, %s10548_s16  ;;  %20761 = vst [vmem:[#allocation255_spill] sm:$0xff] %v15706_v53  ;;  %v4636_v62 = vsel %vm12765_vm14, %v9495_v29, %v4635_v18  ;;  %v1902_v48 = vsel %vm10635_vm2, %v1900_v26, %v1901_v30  ;;  %7881 = vmatpush1.bf16.msra.mxu0 %v10282_v9 }
 0x2a1   :  { %v15696_v4 = vpop.permute.xlu0 %2551  ;;  %7882 = vmatprep.subr.bf16.mxu0 %v20547_v3 }
 0x2a2   :  { %v15698_v14 = vpop.permute.xlu1 %2407  ;;  %v1899_v24 = vsel %vm10635_vm2, %v9315_v15, %v1898_v28  ;;  %v3047_v18 = vsel %vm2738_vm10, %v15715_v40, %v15696_v4  ;;  %v15737_v28 = vcombine.low %v4636_v62, %v4639_v42  ;;  %v20767_v15 = vld [vmem:[#allocation18_spill] sm:$0xff] }
 0x2a3   :  { %20760 = vst [vmem:[#allocation254_spill] sm:$0xff] %v15698_v14  ;;  %5168 = vrot.lane.b32.xlu0 %v20491_v21, %s10550_s22  ;;  %v15750_v13 = vcombine.low %v1899_v24, %v1902_v48  ;;  %v20768_v24 = vld [vmem:[#allocation29_spill] sm:$0xff]  ;;  %v15766_v42 = vld [vmem:[%s19316_s0 + $0x168] sm:$0xf]  ;;  %v15771_v48 = vld [vmem:[%s19316_s0 + $0x16c] sm:$0xf] }
 0x2a4   :  { %5102 = vrot.lane.b32.xlu1 %v14562_v61, %s10549_s21  ;;  %20765 = vst [vmem:[#allocation257_spill] sm:$0xff] %v15737_v28  ;;  %v10283_v61 = vld [vmem:[%s19320_s4 + $0x98] sm:$0xff]   ;;  %7883 = vmatpush1.bf16.msra.mxu0 %v10284_v41  ;;  %v20772_v41 = vld [vmem:[#allocation203_spill] sm:$0xff]  ;;  %v20774_v40 = vld [vmem:[#allocation110_spill] sm:$0xff] }
 0x2a5   :  { %v15730_v29 = vpop.permute.xlu0 %2621  ;;  %20766 = vst [vmem:[#allocation258_spill] sm:$0xff] %v15750_v13  ;;  %7570 = vmatpush1.bf16.msra.mxu1 %v10283_v61  ;;  %v5705_v17 = vsel %vm2641_vm9, %v20774_v40, %v15576_v11  ;;  %v20775_v21 = vld [vmem:[#allocation167_spill] sm:$0xff] }
 0x2a6   :  { %v3136_v25 = vsel %vm2803_vm11, %v3047_v18, %v15730_v29  ;;  %v15739_v27 = vpop.permute.xlu1 %5020  ;;  %7571 = vmatprep.subr.bf16.mxu1 %v20547_v3  ;;  %v15775_v18 = vcombine.low %v15766_v42, %v15771_v48 }
 0x2a7   :  { %2563 = vrot.lane.b32.xlu0 %v15706_v53, %s10549_s21  ;;  %3628 = vmatprep.mubr.bf16.mxu0 %v3136_v25 }
 0x2a8   :  { %3629 = vmatmul.mubr.bf16.gmra.mrb[100].mxu0 %v2880_v54  ;;  %6482 = vrot.lane.b32.xlu1 %v20767_v15, %s10550_s22  ;;  %20769 = vst [vmem:[#allocation29_spill] sm:$0xff] %v15775_v18  ;;  %v20770_v54 = vld [vmem:[#allocation210_spill] sm:$0xff] }
 0x2a9   :  { %v5325_v26 = vpop.permute.xlu0 %5324 }
 0x2aa   :  { %v5961_v30 = vsel %vm2641_vm9, %v15737_v28, %v5325_v26  ;;  %v15756_v33 = vpop.permute.xlu1 %2485 }
 0x2ab   :  { %2633 = vrot.lane.b32.xlu0 %v15750_v13, %s10550_s22  ;;  %v3550_v9 = vpop.f32.mrb[60].mxu0  ;;  %v6021_v62 = vsel %vm2738_vm10, %v5961_v30, %v20768_v24  ;;  %v20773_v30 = vld [vmem:[#allocation43_spill] sm:$0xff] }
 0x2ac   :  { %v15778_v25 = vadd.f32 %v20770_v54, %v3550_v9  ;;  %v3552_v61 = vpop.f32.mrb[61].mxu0  ;;  %v6076_v26 = vsel %vm2803_vm11, %v6021_v62, %v20772_v41  ;;  %5034 = vrot.lane.b32.xlu1 %v20773_v30, %s10548_s16  ;;  %v20777_v62 = vld [vmem:[#allocation26_spill] sm:$0xff] }
 0x2ad   :  { %v5089_v24 = vpop.permute.xlu0 %5088  ;;  %v3553_v49 = vpop.f32.mrb[62].mxu0  ;;  %7458 = vmatprep.mubr.bf16.mxu1 %v6076_v26  ;;  %v4642_v54 = vrot.slane %v20777_v62, 6  ;;  %v20778_v61 = vld [vmem:[#allocation117_spill] sm:$0xff]  ;;  %v20779_v41 = vld [vmem:[#allocation214_spill] sm:$0xff] }
 0x2ae   :  { %20771 = vst [vmem:[#allocation210_spill] sm:$0xff] %v15778_v25  ;;  %v15788_v53 = vadd.f32 %v20775_v21, %v3553_v49  ;;  %v3555_v13 = vpop.f32.mrb[63].mxu0  ;;  %v15790_v9 = vpop.permute.xlu1 %2179  ;;  %v20780_v26 = vld [vmem:[#allocation217_spill] sm:$0xff]  ;;  %v5781_v11 = vsel %vm2738_vm10, %v5705_v17, %v5089_v24  ;;  %v2722_v17 = vsel %vm2641_vm9, %v20773_v30, %v15641_v0  ;;  %v20786_v30 = vld [vmem:[#allocation83_spill] sm:$0xff] }
 0x2af   :  { %5336 = vrot.lane.b32.xlu0 %v15775_v18, %s10548_s16  ;;  %v15799_v25 = vcombine.low %v20780_v26, %v20779_v41  ;;  %v20782_v13 = vld [vmem:[#allocation197_spill] sm:$0xff]  ;;  %v15840_v22 = vsel %vm2738_vm10, %v2722_v17, %v15668_v58 }
 0x2b0   :  { %20776 = vst [vmem:[#allocation203_spill] sm:$0xff] %v15788_v53  ;;  %5174 = vrot.lane.b32.xlu1 %v20778_v61, %s10550_s22  ;;  %v9496_v62 = vrot.slane %v20782_v13, 10  ;;  %v4644_v53 = vrot.slane %v4642_v54, 4  ;;  %v10466_v61 = vld [vmem:[%s19316_s0 + $0x128] sm:$0x3]  ;;  %v10285_v26 = vld [vmem:[%s19320_s4 + $0xa0] sm:$0xff]   ;;  %v15836_v13 = vsel %vm2641_vm9, %v20786_v30, %v15602_v51  ;;  %v2883_v51 = vsel %vm2803_vm11, %v15840_v22, %v15698_v14 }
 0x2b1   :  { %20781 = vst [vmem:[#allocation43_spill] sm:$0xff] %v15799_v25  ;;  %v5159_v34 = vpop.permute.xlu0 %5158  ;;  %v4645_v41 = vrot.slane %v10466_v61, 6  ;;  %20787 = vst [vmem:[#allocation214_spill] sm:$0xff] %v15836_v13  ;;  %7572 = vmatpush1.bf16.msra.mxu1 %v10285_v26  ;;  %v20791_v26 = vld [vmem:[#allocation181_spill] sm:$0xff] }
 0x2b2   :  { %v5864_v21 = vsel %vm2803_vm11, %v5781_v11, %v5159_v34  ;;  %v15803_v49 = vpop.permute.xlu1 %2339  ;;  %v20785_v11 = vld [vmem:[#allocation161_spill] sm:$0xff]  ;;  %v4643_v61 = vsel %vm12765_vm14, %v9496_v62, %v4642_v54  ;;  %20788 = vst [vmem:[#allocation217_spill] sm:$0xff] %v15840_v22  ;;  %7573 = vmatprep.subr.bf16.mxu1 %v20547_v3 }
 0x2b3   :  { %5100 = vrot.lane.b32.xlu0 %v14400_v31, %s10549_s21  ;;  %7459 = vmatmul.mubr.bf16.gmra.mrb[140].mxu1 %v5864_v21  ;;  %v15820_v31 = vpop.f32.mrb[44].mxu1  ;;  %v4646_v21 = vsel %vm12765_vm14, %v4644_v53, %v4645_v41 }
 0x2b4   :  { %5342 = vrot.lane.b32.xlu1 %v15799_v25, %s10548_s16  ;;  %20784 = vst [vmem:[#allocation26_spill] sm:$0xff] %v15820_v31  ;;  %v15831_v0 = vpop.f32.mrb[45].mxu1  ;;  %v15859_v41 = vcombine.low %v4643_v61, %v4646_v21  ;;  %v20793_v21 = vld [vmem:[#allocation106_spill] sm:$0xff] }
 0x2b5   :  { %v15816_v34 = vpop.permute.xlu0 %2553  ;;  %v15844_v40 = vpop.f32.mrb[46].mxu1 }
 0x2b6   :  { %v15818_v24 = vpop.permute.xlu1 %2409  ;;  %20789 = vst [vmem:[#allocation197_spill] sm:$0xff] %v15844_v40  ;;  %v3049_v53 = vsel %vm2738_vm10, %v15836_v13, %v15816_v34  ;;  %v15854_v62 = vpop.f32.mrb[47].mxu1  ;;  %20790 = vst [vmem:[#allocation161_spill] sm:$0xff] %v15859_v41 }
 0x2b7   :  { %20783 = vst [vmem:[#allocation167_spill] sm:$0xff] %v15818_v24  ;;  %6480 = vrot.lane.b32.xlu0 %v20785_v11, %s10550_s22 }
 0x2b8   :  { %5106 = vrot.lane.b32.xlu1 %v20786_v30, %s10549_s21 }
 0x2b9   :  { %v15849_v54 = vpop.permute.xlu0 %2623 }
 0x2ba   :  { %v3139_v58 = vsel %vm2803_vm11, %v3049_v53, %v15849_v54  ;;  %v15861_v17 = vpop.permute.xlu1 %5022  ;;  %v20792_v53 = vld [vmem:[#allocation113_spill] sm:$0xff] }
 0x2bb   :  { %5032 = vrot.lane.b32.xlu0 %v14542_v2, %s10548_s16  ;;  %3636 = vmatprep.mubr.bf16.mxu0 %v3139_v58  ;;  %v15878_v2 = vld [vmem:[%s19316_s0 + $0x180] sm:$0xf] }
 0x2bc   :  { %3637 = vmatmul.mubr.bf16.gmra.mrb[104].mxu0 %v2883_v51  ;;  %6486 = vrot.lane.b32.xlu1 %v20791_v26, %s10550_s22  ;;  %v15883_v51 = vld [vmem:[%s19316_s0 + $0x184] sm:$0xf] }
 0x2bd   :  { %v5327_v30 = vpop.permute.xlu0 %5326  ;;  %v15887_v58 = vcombine.low %v15878_v2, %v15883_v51 }
 0x2be   :  { %v5964_v14 = vsel %vm2641_vm9, %v15859_v41, %v5327_v30  ;;  %v15869_v13 = vpop.permute.xlu1 %2487  ;;  %v20795_v30 = vld [vmem:[#allocation219_spill] sm:$0xff]  ;;  %v20799_v41 = vld [vmem:[#allocation213_spill] sm:$0xff] }
 0x2bf   :  { %5172 = vrot.lane.b32.xlu0 %v20792_v53, %s10550_s22  ;;  %v3558_v61 = vpop.f32.mrb[64].mxu0  ;;  %v6022_v22 = vsel %vm2738_vm10, %v5964_v14, %v20793_v21  ;;  %20794 = vst [vmem:[#allocation83_spill] sm:$0xff] %v15887_v58  ;;  %v20798_v21 = vld [vmem:[#allocation97_spill] sm:$0xff]  ;;  %v5708_v5 = vsel %vm2641_vm9, %v20799_v41, %v15739_v27 }
 0x2c0   :  { %v15890_v53 = vadd.f32 %v20795_v30, %v3558_v61  ;;  %v3560_v50 = vpop.f32.mrb[65].mxu0  ;;  %v6078_v14 = vsel %vm2803_vm11, %v6022_v22, %v20797_v39  ;;  %5038 = vrot.lane.b32.xlu1 %v20798_v21, %s10548_s16  ;;  %v20802_v39 = vld [vmem:[#allocation122_spill] sm:$0xff]  ;;  %v20804_v30 = vld [vmem:[#allocation228_spill] sm:$0xff]  ;;  %v20813_v41 = vld [vmem:[#allocation221_spill] sm:$0xff] }
 0x2c1   :  { %v5091_v57 = vpop.permute.xlu0 %5090  ;;  %v3561_v28 = vpop.f32.mrb[66].mxu0  ;;  %7466 = vmatprep.mubr.bf16.mxu1 %v6078_v14  ;;  %v4649_v22 = vrot.slane %v20802_v39, 6  ;;  %v20803_v50 = vld [vmem:[#allocation126_spill] sm:$0xff]  ;;  %v20805_v14 = vld [vmem:[#allocation232_spill] sm:$0xff]  ;;  %v20808_v39 = vld [vmem:[#allocation121_spill] sm:$0xff] }
 0x2c2   :  { %20796 = vst [vmem:[#allocation106_spill] sm:$0xff] %v15890_v53  ;;  %v15900_v40 = vadd.f32 %v20800_v43, %v3561_v28  ;;  %v3563_v31 = vpop.f32.mrb[67].mxu0  ;;  %v15902_v61 = vpop.permute.xlu1 %2181  ;;  %v15911_v53 = vcombine.low %v20805_v14, %v20804_v30  ;;  %v10286_v43 = vld [vmem:[%s19320_s4 + $0xa8] sm:$0xff]   ;;  %v5783_v28 = vsel %vm2738_vm10, %v5708_v5, %v5091_v57  ;;  %v9497_v30 = vrot.slane %v20808_v39, 10  ;;  %v10287_v57 = vld [vmem:[%s19320_s4 + $0xb0] sm:$0xff]  }
 0x2c3   :  { %5340 = vrot.lane.b32.xlu0 %v15887_v58, %s10548_s16  ;;  %7574 = vmatpush1.bf16.msra.mxu1 %v10286_v43  ;;  %v4651_v14 = vrot.slane %v4649_v22, 4 }
 0x2c4   :  { %20801 = vst [vmem:[#allocation219_spill] sm:$0xff] %v15900_v40  ;;  %5178 = vrot.lane.b32.xlu1 %v20803_v50, %s10550_s22  ;;  %20806 = vst [vmem:[#allocation208_spill] sm:$0xff] %v15911_v53  ;;  %v10469_v50 = vld [vmem:[%s19316_s0 + $0x134] sm:$0x3]  ;;  %7575 = vmatprep.subr.bf16.mxu1 %v20547_v3  ;;  %v4650_v39 = vsel %vm12765_vm14, %v9497_v30, %v4649_v22  ;;  %v10288_v22 = vld [vmem:[%s19320_s4 + $0xb8] sm:$0xff]  }
 0x2c5   :  { %v5161_v27 = vpop.permute.xlu0 %5160  ;;  %v4652_v5 = vrot.slane %v10469_v50, 6  ;;  %v20812_v50 = vld [vmem:[#allocation172_spill] sm:$0xff] }
 0x2c6   :  { %v15918_v31 = vsel %vm2803_vm11, %v5783_v28, %v5161_v27  ;;  %v15920_v40 = vpop.permute.xlu1 %2341 }
 0x2c7   :  { %20807 = vst [vmem:[#allocation97_spill] sm:$0xff] %v15918_v31  ;;  %5104 = vrot.lane.b32.xlu0 %v20762_v60, %s10549_s21  ;;  %7467 = vmatmul.mubr.bf16.gmra.mrb[144].mxu1 %v15918_v31  ;;  %v20809_v60 = vld [vmem:[#allocation171_spill] sm:$0xff]  ;;  %v4653_v31 = vsel %vm12765_vm14, %v4651_v14, %v4652_v5 }
 0x2c8   :  { %5346 = vrot.lane.b32.xlu1 %v15911_v53, %s10548_s16  ;;  %v2725_v43 = vsel %vm2641_vm9, %v20809_v60, %v15790_v9  ;;  %7576 = vmatpush1.bf16.msra.mxu1 %v10287_v57  ;;  %v15952_v9 = vsel %vm2641_vm9, %v20813_v41, %v15756_v33  ;;  %v15973_v5 = vcombine.low %v4650_v39, %v4653_v31 }
 0x2c9   :  { %v15938_v28 = vpop.permute.xlu0 %2555  ;;  %7577 = vmatprep.subr.bf16.mxu1 %v20547_v3  ;;  %20814 = vst [vmem:[#allocation228_spill] sm:$0xff] %v15952_v9  ;;  %v15956_v53 = vsel %vm2738_vm10, %v2725_v43, %v15803_v49  ;;  %v20818_v43 = vld [vmem:[#allocation192_spill] sm:$0xff] }
 0x2ca   :  { %20810 = vst [vmem:[#allocation220_spill] sm:$0xff] %v15938_v28  ;;  %v15940_v27 = vpop.permute.xlu1 %2411  ;;  %20815 = vst [vmem:[#allocation232_spill] sm:$0xff] %v15956_v53  ;;  %v3051_v30 = vsel %vm2738_vm10, %v15952_v9, %v15938_v28  ;;  %v2886_v33 = vsel %vm2803_vm11, %v15956_v53, %v15818_v24  ;;  %v10289_v24 = vld [vmem:[%s19320_s4 + $0xc0] sm:$0xff]   ;;  %v20822_v53 = vld [vmem:[#allocation226_spill] sm:$0xff] }
 0x2cb   :  { %20811 = vst [vmem:[#allocation122_spill] sm:$0xff] %v15940_v27  ;;  %6484 = vrot.lane.b32.xlu0 %v20812_v50, %s10550_s22  ;;  %20817 = vst [vmem:[#allocation171_spill] sm:$0xff] %v15973_v5  ;;  %v20824_v28 = vld [vmem:[#allocation218_spill] sm:$0xff] }
 0x2cc   :  { %5110 = vrot.lane.b32.xlu1 %v15149_v1, %s10549_s21  ;;  %7578 = vmatpush1.bf16.msra.mxu1 %v10288_v22 }
 0x2cd   :  { %v15966_v14 = vpop.permute.xlu0 %2625  ;;  %7579 = vmatprep.subr.bf16.mxu1 %v20547_v3 }
 0x2ce   :  { %20816 = vst [vmem:[#allocation121_spill] sm:$0xff] %v15966_v14  ;;  %v3142_v49 = vsel %vm2803_vm11, %v3051_v30, %v15966_v14  ;;  %v15975_v57 = vpop.permute.xlu1 %5024  ;;  %v20820_v30 = vld [vmem:[#allocation112_spill] sm:$0xff] }
 0x2cf   :  { %5036 = vrot.lane.b32.xlu0 %v20809_v60, %s10548_s16  ;;  %3644 = vmatprep.mubr.bf16.mxu0 %v3142_v49  ;;  %v20819_v60 = vld [vmem:[#allocation16_spill] sm:$0xff]  ;;  %v20821_v49 = vld [vmem:[#allocation223_spill] sm:$0xff] }
 0x2d0   :  { %3645 = vmatmul.mubr.bf16.gmra.mrb[108].mxu0 %v2886_v33  ;;  %6490 = vrot.lane.b32.xlu1 %v20818_v43, %s10550_s22  ;;  %v15995_v14 = vcombine.low %v20822_v53, %v20821_v49  ;;  %v20827_v53 = vld [vmem:[#allocation222_spill] sm:$0xff] }
 0x2d1   :  { %v5329_v9 = vpop.permute.xlu0 %5328  ;;  %7580 = vmatpush1.bf16.msra.mxu1 %v10289_v24  ;;  %v5711_v49 = vsel %vm2641_vm9, %v20827_v53, %v15861_v17  ;;  %v10291_v17 = vld [vmem:[%s19320_s4 + $0xd0] sm:$0xff]  }
 0x2d2   :  { %v5967_v31 = vsel %vm2641_vm9, %v15973_v5, %v5329_v9  ;;  %v15987_v39 = vpop.permute.xlu1 %2489  ;;  %20823 = vst [vmem:[#allocation221_spill] sm:$0xff] %v15995_v14  ;;  %7581 = vmatprep.subr.bf16.mxu1 %v20547_v3  ;;  %v20826_v5 = vld [vmem:[#allocation114_spill] sm:$0xff] }
 0x2d3   :  { %5176 = vrot.lane.b32.xlu0 %v20819_v60, %s10550_s22  ;;  %v3566_v22 = vpop.f32.mrb[68].mxu0  ;;  %v6023_v33 = vsel %vm2738_vm10, %v5967_v31, %v20820_v30  ;;  %v10290_v31 = vld [vmem:[%s19320_s4 + $0xc8] sm:$0xff]  }
 0x2d4   :  { %v15999_v25 = vadd.f32 %v20824_v28, %v3566_v22  ;;  %v3568_v9 = vpop.f32.mrb[69].mxu0  ;;  %v6080_v24 = vsel %vm2803_vm11, %v6023_v33, %v20826_v5  ;;  %5042 = vrot.lane.b32.xlu1 %v15269_v38, %s10548_s16  ;;  %v20828_v28 = vld [vmem:[#allocation180_spill] sm:$0xff]  ;;  %v20830_v5 = vld [vmem:[#allocation127_spill] sm:$0xff] }
 0x2d5   :  { %v5093_v30 = vpop.permute.xlu0 %5092  ;;  %v3569_v60 = vpop.f32.mrb[70].mxu0  ;;  %7474 = vmatprep.mubr.bf16.mxu1 %v6080_v24  ;;  %7582 = vmatpush1.bf16.msra.mxu1 %v10290_v31  ;;  %v4656_v33 = vrot.slane %v20830_v5, 6 }
 0x2d6   :  { %20825 = vst [vmem:[#allocation112_spill] sm:$0xff] %v15999_v25  ;;  %v16012_v22 = vadd.f32 %v20828_v28, %v3569_v60  ;;  %v3571_v9 = vpop.f32.mrb[71].mxu0  ;;  %v16014_v25 = vpop.permute.xlu1 %2183  ;;  %7583 = vmatprep.subr.bf16.mxu1 %v20547_v3  ;;  %v5785_v60 = vsel %vm2738_vm10, %v5711_v49, %v5093_v30  ;;  %v20833_v49 = vld [vmem:[#allocation13_spill] sm:$0xff] }
 0x2d7   :  { %5344 = vrot.lane.b32.xlu0 %v15995_v14, %s10548_s16  ;;  %v20832_v9 = vld [vmem:[#allocation125_spill] sm:$0xff] }
 0x2d8   :  { %20829 = vst [vmem:[#allocation223_spill] sm:$0xff] %v16012_v22  ;;  %5182 = vrot.lane.b32.xlu1 %v20698_v59, %s10550_s22  ;;  %v9498_v5 = vrot.slane %v20832_v9, 10  ;;  %v4658_v22 = vrot.slane %v4656_v33, 4  ;;  %v10470_v59 = vld [vmem:[%s19316_s0 + $0x140] sm:$0x3] }
 0x2d9   :  { %v5163_v24 = vpop.permute.xlu0 %5162  ;;  %7584 = vmatpush1.bf16.msra.mxu1 %v10291_v17  ;;  %v4659_v30 = vrot.slane %v10470_v59, 6  ;;  %v10292_v17 = vld [vmem:[%s19320_s4 + $0xd8] sm:$0xff]  }
 0x2da   :  { %v16027_v28 = vsel %vm2803_vm11, %v5785_v60, %v5163_v24  ;;  %v16029_v31 = vpop.permute.xlu1 %2343  ;;  %7585 = vmatprep.subr.bf16.mxu1 %v20547_v3  ;;  %v20835_v59 = vld [vmem:[#allocation188_spill] sm:$0xff]  ;;  %v4657_v9 = vsel %vm12765_vm14, %v9498_v5, %v4656_v33  ;;  %v10293_v33 = vld [vmem:[%s19320_s4 + $0xe0] sm:$0xff]  }
 0x2db   :  { %20831 = vst [vmem:[#allocation226_spill] sm:$0xff] %v16027_v28  ;;  %5108 = vrot.lane.b32.xlu0 %v20813_v41, %s10549_s21  ;;  %7475 = vmatmul.mubr.bf16.gmra.mrb[148].mxu1 %v16027_v28  ;;  %v2728_v41 = vsel %vm2641_vm9, %v20798_v21, %v15902_v61  ;;  %v16061_v21 = vsel %vm2641_vm9, %v15149_v1, %v15869_v13 }
 0x2dc   :  { %5372 = vrot.lane.b32.xlu1 %v20833_v49, %s10548_s16  ;;  %v4660_v49 = vsel %vm12765_vm14, %v4658_v22, %v4659_v30  ;;  %20836 = vst [vmem:[#allocation114_spill] sm:$0xff] %v16061_v21  ;;  %v16065_v61 = vsel %vm2738_vm10, %v2728_v41, %v15920_v40  ;;  %v20840_v41 = vld [vmem:[#allocation31_spill] sm:$0xff]  ;;  %v16108_v28 = vcombine.low %v15380_v19, %v15351_v20 }
 0x2dd   :  { %v16047_v60 = vpop.permute.xlu0 %2557  ;;  %7586 = vmatpush1.bf16.msra.mxu1 %v10292_v17  ;;  %20837 = vst [vmem:[#allocation180_spill] sm:$0xff] %v16065_v61  ;;  %v20838_v17 = vld [vmem:[#allocation6_spill] sm:$0xff]  ;;  %v2889_v1 = vsel %vm2803_vm11, %v16065_v61, %v15940_v27  ;;  %v16082_v13 = vcombine.low %v4657_v9, %v4660_v49  ;;  %v16094_v9 = vpop.f32.mrb[48].mxu1 }
 0x2de   :  { %v16049_v24 = vpop.permute.xlu1 %2413  ;;  %7587 = vmatprep.subr.bf16.mxu1 %v20547_v3  ;;  %v3053_v22 = vsel %vm2738_vm10, %v16061_v21, %v16047_v60  ;;  %v10294_v27 = vld [vmem:[%s19320_s4 + $0xe8] sm:$0xff]   ;;  %20842 = vst [vmem:[#allocation125_spill] sm:$0xff] %v16094_v9  ;;  %20845 = vst [vmem:[#allocation6_spill] sm:$0xff] %v16108_v28 }
 0x2df   :  { %20834 = vst [vmem:[#allocation218_spill] sm:$0xff] %v16049_v24  ;;  %6488 = vrot.lane.b32.xlu0 %v20835_v59, %s10550_s22  ;;  %20839 = vst [vmem:[#allocation127_spill] sm:$0xff] %v16082_v13 }
 0x2e0   :  { %5442 = vrot.lane.b32.xlu1 %v20838_v17, %s10549_s21  ;;  %v20841_v17 = vld [vmem:[#allocation202_spill] sm:$0xff] }
 0x2e1   :  { %v16075_v5 = vpop.permute.xlu0 %2627  ;;  %7588 = vmatpush1.bf16.msra.mxu1 %v10293_v33 }
 0x2e2   :  { %v3145_v40 = vsel %vm2803_vm11, %v3053_v22, %v16075_v5  ;;  %v16084_v30 = vpop.permute.xlu1 %5026  ;;  %7589 = vmatprep.subr.bf16.mxu1 %v20547_v3  ;;  %v16100_v22 = vpop.f32.mrb[49].mxu1 }
 0x2e3   :  { %5040 = vrot.lane.b32.xlu0 %v20840_v41, %s10548_s16  ;;  %3652 = vmatprep.mubr.bf16.mxu0 %v3145_v40  ;;  %20843 = vst [vmem:[#allocation13_spill] sm:$0xff] %v16100_v22  ;;  %v20844_v40 = vld [vmem:[#allocation77_spill] sm:$0xff]  ;;  %v16117_v9 = vpop.f32.mrb[50].mxu1  ;;  %v20871_v22 = vld [vmem:[#allocation234_spill] sm:$0xff] }
 0x2e4   :  { %3653 = vmatmul.mubr.bf16.gmra.mrb[112].mxu0 %v2889_v1  ;;  %6494 = vrot.lane.b32.xlu1 %v20841_v17, %s10550_s22  ;;  %20848 = vst [vmem:[#allocation202_spill] sm:$0xff] %v16117_v9  ;;  %v10471_v9 = vld [vmem:[%s19316_s0 + $0x14c] sm:$0x3] }
 0x2e5   :  { %v5331_v21 = vpop.permute.xlu0 %5330  ;;  %7590 = vmatpush1.bf16.msra.mxu1 %v10294_v27 }
 0x2e6   :  { %v5970_v49 = vsel %vm2641_vm9, %v16082_v13, %v5331_v21  ;;  %v16098_v33 = vpop.permute.xlu1 %2491  ;;  %v20847_v13 = vld [vmem:[#allocation119_spill] sm:$0xff]  ;;  %7591 = vmatprep.subr.bf16.mxu1 %v20547_v3 }
 0x2e7   :  { %5180 = vrot.lane.b32.xlu0 %v20668_v56, %s10550_s22  ;;  %v3574_v1 = vpop.f32.mrb[72].mxu0  ;;  %v6024_v61 = vsel %vm2738_vm10, %v5970_v49, %v20844_v40  ;;  %v10295_v49 = vld [vmem:[%s19320_s4 + $0xf0] sm:$0xff]   ;;  %v16134_v56 = vpop.f32.mrb[51].mxu1 }
 0x2e8   :  { %v16111_v53 = vadd.f32 %v15275_v6, %v3574_v1  ;;  %v3576_v21 = vpop.f32.mrb[73].mxu0  ;;  %v6082_v27 = vsel %vm2803_vm11, %v6024_v61, %v20847_v13  ;;  %5514 = vrot.lane.b32.xlu1 %v20785_v11, %s10549_s21  ;;  %v20849_v6 = vld [vmem:[#allocation227_spill] sm:$0xff]  ;;  %20852 = vst [vmem:[#allocation119_spill] sm:$0xff] %v16134_v56 }
 0x2e9   :  { %v5095_v20 = vpop.permute.xlu0 %5094  ;;  %v3577_v19 = vpop.f32.mrb[74].mxu0  ;;  %7482 = vmatprep.mubr.bf16.mxu1 %v6082_v27  ;;  %v5714_v1 = vsel %vm2641_vm9, %v20849_v6, %v15975_v57  ;;  %v20850_v40 = vld [vmem:[#allocation235_spill] sm:$0xff]  ;;  %7592 = vmatpush1.bf16.msra.mxu1 %v10295_v49  ;;  %v20853_v27 = vld [vmem:[#allocation66_spill] sm:$0xff]  ;;  %v10296_v57 = vld [vmem:[%s19320_s4 + $0xf8] sm:$0xff]  }
 0x2ea   :  { %20846 = vst [vmem:[#allocation31_spill] sm:$0xff] %v16111_v53  ;;  %v16127_v61 = vadd.f32 %v20850_v40, %v3577_v19  ;;  %v3579_v13 = vpop.f32.mrb[75].mxu0  ;;  %v16129_v21 = vpop.permute.xlu1 %2185  ;;  %v4663_v53 = vrot.slane %v15322_v8, 6  ;;  %7593 = vmatprep.subr.bf16.mxu1 %v20547_v3  ;;  %v5787_v19 = vsel %vm2738_vm10, %v5714_v1, %v5095_v20  ;;  %v20855_v8 = vld [vmem:[#allocation236_spill] sm:$0xff]  ;;  %v4666_v20 = vrot.slane %v10471_v9, 6 }
 0x2eb   :  { %5348 = vrot.lane.b32.xlu0 %v16108_v28, %s10548_s16  ;;  %v2731_v1 = vsel %vm2641_vm9, %v20840_v41, %v16014_v25 }
 0x2ec   :  { %20851 = vst [vmem:[#allocation77_spill] sm:$0xff] %v16127_v61  ;;  %5584 = vrot.lane.b32.xlu1 %v20853_v27, %s10550_s22  ;;  %v20856_v61 = vld [vmem:[#allocation134_spill] sm:$0xff]  ;;  %v4665_v6 = vrot.slane %v4663_v53, 4  ;;  %v16178_v25 = vsel %vm2738_vm10, %v2731_v1, %v16029_v31 }
 0x2ed   :  { %v5165_v40 = vpop.permute.xlu0 %5164  ;;  %7594 = vmatpush1.bf16.msra.mxu1 %v10296_v57  ;;  %v9499_v28 = vrot.slane %v20856_v61, 10  ;;  %v20858_v61 = vld [vmem:[#allocation200_spill] sm:$0xff]  ;;  %20860 = vst [vmem:[#allocation134_spill] sm:$0xff] %v16178_v25 }
 0x2ee   :  { %v16144_v49 = vsel %vm2803_vm11, %v5787_v19, %v5165_v40  ;;  %v16146_v13 = vpop.permute.xlu1 %2345  ;;  %9953 = vmatprep.subr.bf16.mxu1 %v20547_v3  ;;  %v4667_v9 = vsel %vm12765_vm14, %v4665_v6, %v4666_v20  ;;  %v20870_v3 = vld [vmem:[#allocation135_spill] sm:$0xff] }
 0x2ef   :  { %20854 = vst [vmem:[#allocation235_spill] sm:$0xff] %v16144_v49  ;;  %5112 = vrot.lane.b32.xlu0 %v20855_v8, %s10549_s21  ;;  %7483 = vmatmul.mubr.bf16.gmra.mrb[152].mxu1 %v16144_v49  ;;  %v4664_v40 = vsel %vm12765_vm14, %v9499_v28, %v4663_v53  ;;  %v2892_v28 = vsel %vm2803_vm11, %v16178_v25, %v16049_v24 }
 0x2f0   :  { %5376 = vrot.lane.b32.xlu1 %v20785_v11, %s10548_s16  ;;  %v16174_v11 = vsel %vm2641_vm9, %v20855_v8, %v15987_v39  ;;  %v16192_v6 = vcombine.low %v4664_v40, %v4667_v9  ;;  %v20863_v8 = vld [vmem:[#allocation155_spill] sm:$0xff]  ;;  %v5717_v56 = vsel %vm2641_vm9, %v20870_v3, %v16084_v30  ;;  %v4698_v3 = vrot.slane %v15883_v51, 6 }
 0x2f1   :  { %v16161_v57 = vpop.permute.xlu0 %2559  ;;  %20859 = vst [vmem:[#allocation236_spill] sm:$0xff] %v16174_v11  ;;  %v20866_v9 = vld [vmem:[#allocation111_spill] sm:$0xff]  ;;  %v4691_v51 = vrot.slane %v15660_v23, 6 }
 0x2f2   :  { %v16163_v19 = vpop.permute.xlu1 %2415  ;;  %v3055_v41 = vsel %vm2738_vm10, %v16174_v11, %v16161_v57  ;;  %20862 = vst [vmem:[#allocation260_spill] sm:$0xff] %v16192_v6  ;;  %v20867_v11 = vld [vmem:[#allocation233_spill] sm:$0xff] }
 0x2f3   :  { %20857 = vst [vmem:[#allocation66_spill] sm:$0xff] %v16163_v19  ;;  %6492 = vrot.lane.b32.xlu0 %v20858_v61, %s10550_s22 }
 0x2f4   :  { %5446 = vrot.lane.b32.xlu1 %v20853_v27, %s10549_s21  ;;  %v20864_v27 = vld [vmem:[#allocation209_spill] sm:$0xff] }
 0x2f5   :  { %v16185_v53 = vpop.permute.xlu0 %2629 }
 0x2f6   :  { %20861 = vst [vmem:[#allocation259_spill] sm:$0xff] %v16185_v53  ;;  %v3148_v39 = vsel %vm2803_vm11, %v3055_v41, %v16185_v53  ;;  %v16194_v31 = vpop.permute.xlu1 %5028  ;;  %v20865_v41 = vld [vmem:[#allocation40_spill] sm:$0xff] }
 0x2f7   :  { %5512 = vrot.lane.b32.xlu0 %v20863_v8, %s10549_s21  ;;  %3660 = vmatprep.mubr.bf16.mxu0 %v3148_v39  ;;  %v20869_v39 = vld [vmem:[#allocation224_spill] sm:$0xff] }
 0x2f8   :  { %3661 = vmatmul.mubr.bf16.gmra.mrb[116].mxu0 %v2892_v28  ;;  %6498 = vrot.lane.b32.xlu1 %v20864_v27, %s10550_s22 }
 0x2f9   :  { %v5333_v20 = vpop.permute.xlu0 %5332 }
 0x2fa   :  { %v5973_v1 = vsel %vm2641_vm9, %v16192_v6, %v5333_v20  ;;  %v16202_v25 = vpop.permute.xlu1 %2493 }
 0x2fb   :  { %5582 = vrot.lane.b32.xlu0 %v20865_v41, %s10550_s22  ;;  %v3582_v40 = vpop.f32.mrb[76].mxu0  ;;  %v6025_v24 = vsel %vm2738_vm10, %v5973_v1, %v20866_v9 }
 0x2fc   :  { %v16209_v49 = vadd.f32 %v20867_v11, %v3582_v40  ;;  %v3584_v28 = vpop.f32.mrb[77].mxu0  ;;  %v6084_v27 = vsel %vm2803_vm11, %v6025_v24, %v20869_v39  ;;  %5518 = vrot.lane.b32.xlu1 %v20812_v50, %s10549_s21  ;;  %v16226_v24 = vld [vmem:[%s19320_s4 + $0x180] sm:$0xff]   ;;  %v20873_v40 = vld [vmem:[#allocation131_spill] sm:$0xff]  ;;  %v10472_v39 = vld [vmem:[%s19316_s0 + $0x158] sm:$0x3] }
 0x2fd   :  { %v5097_v20 = vpop.permute.xlu0 %5096  ;;  %v3585_v6 = vpop.f32.mrb[78].mxu0  ;;  %7490 = vmatprep.mubr.bf16.mxu1 %v6084_v27  ;;  %v4670_v27 = vrot.slane %v15460_v32, 6  ;;  %9848 = vmatprep.subr.bf16.mxu0 %v16226_v24 }
 0x2fe   :  { %20868 = vst [vmem:[#allocation155_spill] sm:$0xff] %v16209_v49  ;;  %v16219_v53 = vadd.f32 %v20871_v22, %v3585_v6  ;;  %v3587_v1 = vpop.f32.mrb[79].mxu0  ;;  %v16221_v11 = vpop.permute.xlu1 %2187  ;;  %v5789_v30 = vsel %vm2738_vm10, %v5717_v56, %v5097_v20  ;;  %v2734_v56 = vsel %vm2641_vm9, %v15269_v38, %v16129_v21 }
 0x2ff   :  { %5374 = vrot.lane.b32.xlu0 %v20863_v8, %s10548_s16  ;;  %v20875_v8 = vld [vmem:[#allocation139_spill] sm:$0xff]  ;;  %v4672_v28 = vrot.slane %v4670_v27, 4  ;;  %v4673_v1 = vrot.slane %v10472_v39, 6  ;;  %v16263_v39 = vsel %vm2641_vm9, %v15433_v55, %v16098_v33  ;;  %v16267_v38 = vsel %vm2738_vm10, %v2734_v56, %v16146_v13  ;;  %v20880_v13 = vld [vmem:[#allocation216_spill] sm:$0xff] }
 0x300   :  { %20872 = vst [vmem:[#allocation40_spill] sm:$0xff] %v16219_v53  ;;  %5588 = vrot.lane.b32.xlu1 %v20873_v40, %s10550_s22  ;;  %v9500_v32 = vrot.slane %v20875_v8, 10  ;;  %20878 = vst [vmem:[#allocation224_spill] sm:$0xff] %v16263_v39  ;;  %v4684_v55 = vrot.slane %v15771_v48, 6 }
 0x301   :  { %v5167_v22 = vpop.permute.xlu0 %5166  ;;  %v4674_v8 = vsel %vm12765_vm14, %v4672_v28, %v4673_v1  ;;  %20879 = vst [vmem:[#allocation234_spill] sm:$0xff] %v16267_v38  ;;  %v16285_v1 = vpop.f32.mrb[52].mxu1 }
 0x302   :  { %v16236_v6 = vsel %vm2803_vm11, %v5789_v30, %v5167_v22  ;;  %v16238_v9 = vpop.permute.xlu1 %2347  ;;  %v4671_v22 = vsel %vm12765_vm14, %v9500_v32, %v4670_v27  ;;  %v2895_v27 = vsel %vm2803_vm11, %v16267_v38, %v16163_v19  ;;  %v20884_v38 = vld [vmem:[#allocation128_spill] sm:$0xff] }
 0x303   :  { %20874 = vst [vmem:[#allocation111_spill] sm:$0xff] %v16236_v6  ;;  %5444 = vrot.lane.b32.xlu0 %v20865_v41, %s10549_s21  ;;  %7491 = vmatmul.mubr.bf16.gmra.mrb[156].mxu1 %v16236_v6  ;;  %v20877_v41 = vld [vmem:[#allocation204_spill] sm:$0xff]  ;;  %v16277_v28 = vcombine.low %v4671_v22, %v4674_v8 }
 0x304   :  { %5380 = vrot.lane.b32.xlu1 %v20812_v50, %s10548_s16  ;;  %v20881_v22 = vld [vmem:[#allocation104_spill] sm:$0xff] }
 0x305   :  { %v2562_v20 = vpop.permute.xlu0 %2561  ;;  %v20890_v6 = vld [vmem:[#allocation212_spill] sm:$0xff] }
 0x306   :  { %v16252_v30 = vpop.permute.xlu1 %2417  ;;  %v3057_v21 = vsel %vm2738_vm10, %v16263_v39, %v2562_v20 }
 0x307   :  { %20876 = vst [vmem:[#allocation233_spill] sm:$0xff] %v16252_v30  ;;  %6496 = vrot.lane.b32.xlu0 %v20877_v41, %s10550_s22 }
 0x308   :  { %5450 = vrot.lane.b32.xlu1 %v20873_v40, %s10549_s21 }
 0x309   :  { %v2632_v53 = vpop.permute.xlu0 %2631 }
 0x30a   :  { %v3151_v32 = vsel %vm2803_vm11, %v3057_v21, %v2632_v53  ;;  %v16279_v33 = vpop.permute.xlu1 %5030  ;;  %v16291_v53 = vpop.f32.mrb[53].mxu1  ;;  %v20882_v21 = vld [vmem:[#allocation151_spill] sm:$0xff] }
 0x30b   :  { %5516 = vrot.lane.b32.xlu0 %v20767_v15, %s10549_s21  ;;  %3668 = vmatprep.mubr.bf16.mxu0 %v3151_v32 }
 0x30c   :  { %3669 = vmatmul.mubr.bf16.gmra.mrb[120].mxu0 %v2895_v27  ;;  %6502 = vrot.lane.b32.xlu1 %v20880_v13, %s10550_s22 }
 0x30d   :  { %v5335_v40 = vpop.permute.xlu0 %5334 }
 0x30e   :  { %v5976_v56 = vsel %vm2641_vm9, %v16277_v28, %v5335_v40  ;;  %v16289_v20 = vpop.permute.xlu1 %5170  ;;  %v16304_v40 = vpop.f32.mrb[54].mxu1 }
 0x30f   :  { %5586 = vrot.lane.b32.xlu0 %v20881_v22, %s10550_s22  ;;  %v3590_v8 = vpop.f32.mrb[80].mxu0  ;;  %v6026_v27 = vsel %vm2738_vm10, %v5976_v56, %v20882_v21  ;;  %v5720_v56 = vsel %vm2641_vm9, %v15464_v45, %v16194_v31  ;;  %v16316_v21 = vpop.f32.mrb[55].mxu1  ;;  %v9502_v31 = vrot.slane %v15766_v42, 10  ;;  %v10474_v42 = vld [vmem:[%s19316_s0 + $0x164] sm:$0x3]  ;;  %v20900_v45 = vld [vmem:[#allocation163_spill] sm:$0xff] }
 0x310   :  { %v16298_v32 = vadd.f32 %v15544_v10, %v3590_v8  ;;  %v3592_v49 = vpop.f32.mrb[81].mxu0  ;;  %v6086_v19 = vsel %vm2803_vm11, %v6026_v27, %v20884_v38  ;;  %5522 = vrot.lane.b32.xlu1 %v20835_v59, %s10549_s21  ;;  %v4677_v38 = vrot.slane %v15620_v35, 6 }
 0x311   :  { %v5099_v39 = vpop.permute.xlu0 %5098  ;;  %v3593_v50 = vpop.f32.mrb[82].mxu0  ;;  %7498 = vmatprep.mubr.bf16.mxu1 %v6086_v19  ;;  %v20886_v19 = vld [vmem:[#allocation160_spill] sm:$0xff] }
 0x312   :  { %20883 = vst [vmem:[#allocation131_spill] sm:$0xff] %v16298_v32  ;;  %v16311_v10 = vadd.f32 %v15569_v36, %v3593_v50  ;;  %v3595_v49 = vpop.f32.mrb[83].mxu0  ;;  %v5339_v8 = vpop.permute.xlu1 %5338  ;;  %v5791_v48 = vsel %vm2738_vm10, %v5720_v56, %v5099_v39  ;;  %v4686_v32 = vrot.slane %v4684_v55, 4  ;;  %v10473_v36 = vld [vmem:[%s19316_s0 + $0x170] sm:$0x3]  ;;  %v9501_v39 = vrot.slane %v15615_v47, 10 }
 0x313   :  { %5378 = vrot.lane.b32.xlu0 %v20767_v15, %s10548_s16  ;;  %v4687_v50 = vrot.slane %v10473_v36, 6  ;;  %v4679_v56 = vrot.slane %v4677_v38, 4  ;;  %v20888_v36 = vld [vmem:[#allocation37_spill] sm:$0xff] }
 0x314   :  { %20885 = vst [vmem:[#allocation139_spill] sm:$0xff] %v16311_v10  ;;  %5592 = vrot.lane.b32.xlu1 %v20886_v19, %s10550_s22  ;;  %v4680_v10 = vrot.slane %v10474_v42, 6  ;;  %v4678_v42 = vsel %vm12765_vm14, %v9501_v39, %v4677_v38 }
 0x315   :  { %v5169_v27 = vpop.permute.xlu0 %5168  ;;  %v4688_v47 = vsel %vm12765_vm14, %v4686_v32, %v4687_v50 }
 0x316   :  { %v16326_v49 = vsel %vm2803_vm11, %v5791_v48, %v5169_v27  ;;  %v16328_v35 = vpop.permute.xlu1 %5102  ;;  %v20889_v48 = vld [vmem:[#allocation243_spill] sm:$0xff] }
 0x317   :  { %20887 = vst [vmem:[#allocation204_spill] sm:$0xff] %v16326_v49  ;;  %5448 = vrot.lane.b32.xlu0 %v20881_v22, %s10549_s21  ;;  %7499 = vmatmul.mubr.bf16.gmra.mrb[160].mxu1 %v16326_v49  ;;  %v2737_v27 = vsel %vm2641_vm9, %v20889_v48, %v16221_v11  ;;  %v4685_v22 = vsel %vm12765_vm14, %v9502_v31, %v4684_v55  ;;  %v20894_v31 = vld [vmem:[#allocation225_spill] sm:$0xff] }
 0x318   :  { %6578 = vrot.lane.b32.xlu1 %v20888_v36, %s10549_s21  ;;  %v4681_v36 = vsel %vm12765_vm14, %v4679_v56, %v4680_v10  ;;  %v16357_v11 = vsel %vm2641_vm9, %v15583_v44, %v16202_v25  ;;  %v16361_v55 = vsel %vm2738_vm10, %v2737_v27, %v16238_v9  ;;  %v16363_v32 = vcombine.low %v4685_v22, %v4688_v47  ;;  %v10475_v25 = vld [vmem:[%s19316_s0 + $0xc4] sm:$0xf]  ;;  %v20895_v47 = vld [vmem:[#allocation47_spill] sm:$0xff] }
 0x319   :  { %v2564_v15 = vpop.permute.xlu0 %2563  ;;  %20891 = vst [vmem:[#allocation216_spill] sm:$0xff] %v16357_v11  ;;  %20892 = vst [vmem:[#allocation104_spill] sm:$0xff] %v16361_v55  ;;  %v2898_v10 = vsel %vm2803_vm11, %v16361_v55, %v16252_v30  ;;  %v4726_v39 = vrot.slane %v10475_v25, 6  ;;  %v16376_v56 = vcombine.low %v4678_v42, %v4681_v36  ;;  %v10476_v42 = vld [vmem:[%s19316_s0 + $0xc0] sm:$0xf] }
 0x31a   :  { %v16346_v49 = vpop.permute.xlu1 %6482  ;;  %20893 = vst [vmem:[#allocation151_spill] sm:$0xff] %v16363_v32  ;;  %v3059_v38 = vsel %vm2738_vm10, %v16357_v11, %v2564_v15  ;;  %v5982_v15 = vsel %vm2641_vm9, %v16363_v32, %v5339_v8  ;;  %v9508_v36 = vrot.slane %v10476_v42, 10  ;;  %v20897_v42 = vld [vmem:[#allocation137_spill] sm:$0xff] }
 0x31b   :  { %6500 = vrot.lane.b32.xlu0 %v20890_v6, %s10550_s22  ;;  %v6028_v11 = vsel %vm2738_vm10, %v5982_v15, %v15525_v46  ;;  %v20899_v48 = vld [vmem:[#allocation241_spill] sm:$0xff] }
 0x31c   :  { %6504 = vrot.lane.b32.xlu1 %v20894_v31, %s10550_s22 }
 0x31d   :  { %v2634_v50 = vpop.permute.xlu0 %2633 }
 0x31e   :  { %v3154_v9 = vsel %vm2803_vm11, %v3059_v38, %v2634_v50  ;;  %v16378_v27 = vpop.permute.xlu1 %5034  ;;  %v4728_v38 = vrot.slane %v4726_v39, 4  ;;  %v10477_v50 = vld [vmem:[%s19316_s0 + $0xc8] sm:$0x3] }
 0x31f   :  { %5520 = vrot.lane.b32.xlu0 %v20791_v26, %s10549_s21  ;;  %3676 = vmatprep.mubr.bf16.mxu0 %v3154_v9  ;;  %v5723_v9 = vsel %vm2641_vm9, %v15624_v12, %v16279_v33 }
 0x320   :  { %3677 = vmatmul.mubr.bf16.gmra.mrb[124].mxu0 %v2898_v10  ;;  %5524 = vrot.lane.b32.xlu1 %v20818_v43, %s10549_s21  ;;  %v4729_v10 = vrot.slane %v10477_v50, 6 }
 0x321   :  { %v5337_v22 = vpop.permute.xlu0 %5336  ;;  %7884 = vmatprep.mubr.bf16.mxu0 %v20895_v47  ;;  %v20896_v47 = vld [vmem:[#allocation33_spill] sm:$0xff] }
 0x322   :  { %v5979_v8 = vsel %vm2641_vm9, %v16376_v56, %v5337_v22  ;;  %v16395_v25 = vpop.permute.xlu1 %5174  ;;  %v4730_v46 = vsel %vm12765_vm14, %v4728_v38, %v4729_v10  ;;  %v20904_v38 = vld [vmem:[#allocation58_spill] sm:$0xff] }
 0x323   :  { %5590 = vrot.lane.b32.xlu0 %v20896_v47, %s10550_s22  ;;  %v3598_v55 = vpop.f32.mrb[84].mxu0  ;;  %v6027_v30 = vsel %vm2738_vm10, %v5979_v8, %v20897_v42  ;;  %v4727_v8 = vsel %vm12765_vm14, %v9508_v36, %v4726_v39  ;;  %v20903_v39 = vld [vmem:[#allocation41_spill] sm:$0xff]  ;;  %v10478_v36 = vld [vmem:[%s19316_s0 + $0x188] sm:$0x3]  ;;  %v4693_v42 = vrot.slane %v4691_v51, 4 }
 0x324   :  { %v16407_v50 = vadd.f32 %v15529_v37, %v3598_v55  ;;  %v3600_v22 = vpop.f32.mrb[85].mxu0  ;;  %v6088_v44 = vsel %vm2803_vm11, %v6027_v30, %v20899_v48  ;;  %5594 = vrot.lane.b32.xlu1 %v20900_v45, %s10550_s22  ;;  %v6090_v48 = vsel %vm2803_vm11, %v6028_v11, %v15564_v7  ;;  %v9504_v7 = vrot.slane %v15878_v2, 10 }
 0x325   :  { %v5101_v33 = vpop.permute.xlu0 %5100  ;;  %v3601_v12 = vpop.f32.mrb[86].mxu0  ;;  %7506 = vmatprep.mubr.bf16.mxu1 %v6088_v44  ;;  %v4700_v11 = vrot.slane %v4698_v3, 4  ;;  %v10480_v22 = vld [vmem:[%s19316_s0 + $0x17c] sm:$0x3] }
 0x326   :  { %20898 = vst [vmem:[#allocation128_spill] sm:$0xff] %v16407_v50  ;;  %v5793_v37 = vsel %vm2738_vm10, %v5723_v9, %v5101_v33  ;;  %v16420_v55 = vadd.f32 %v15559_v16, %v3601_v12  ;;  %v3603_v30 = vpop.f32.mrb[87].mxu0  ;;  %v5343_v15 = vpop.permute.xlu1 %5342  ;;  %v16434_v16 = vcombine.low %v4727_v8, %v4730_v46  ;;  %v10479_v9 = vld [vmem:[%s19316_s0 + $0x174] sm:$0xf]  ;;  %v4694_v33 = vrot.slane %v10480_v22, 6  ;;  %v20905_v8 = vld [vmem:[#allocation174_spill] sm:$0xff] }
 0x327   :  { %5382 = vrot.lane.b32.xlu0 %v20791_v26, %s10548_s16  ;;  %v16428_v44 = vsel %vm2803_vm11, %v5793_v37, %v16289_v20  ;;  %v4701_v20 = vrot.slane %v10478_v36, 6  ;;  %v9503_v2 = vrot.slane %v10479_v9, 10  ;;  %v20912_v22 = vld [vmem:[#allocation62_spill] sm:$0xff] }
 0x328   :  { %20901 = vst [vmem:[#allocation160_spill] sm:$0xff] %v16420_v55  ;;  %20902 = vst [vmem:[#allocation37_spill] sm:$0xff] %v16428_v44  ;;  %7507 = vmatmul.mubr.bf16.gmra.mrb[164].mxu1 %v16428_v44  ;;  %6580 = vrot.lane.b32.xlu1 %v20903_v39, %s10549_s21 }
 0x329   :  { %v6481_v12 = vpop.permute.xlu0 %6480  ;;  %7514 = vmatprep.mubr.bf16.mxu1 %v6090_v48  ;;  %v4702_v37 = vsel %vm12765_vm14, %v4700_v11, %v4701_v20  ;;  %v4692_v36 = vsel %vm12765_vm14, %v9503_v2, %v4691_v51  ;;  %v20908_v11 = vld [vmem:[#allocation71_spill] sm:$0xff] }
 0x32a   :  { %v6643_v23 = vsel %vm2803_vm11, %v20904_v38, %v6481_v12  ;;  %v16442_v10 = vpop.permute.xlu1 %5106  ;;  %v20906_v12 = vld [vmem:[#allocation156_spill] sm:$0xff]  ;;  %v4695_v38 = vsel %vm12765_vm14, %v4693_v42, %v4694_v33  ;;  %v6646_v20 = vsel %vm2803_vm11, %v20908_v11, %v16346_v49  ;;  %v16482_v51 = vld [vmem:[%s19316_s0 + $0xd0] sm:$0xf]  ;;  %v20913_v33 = vld [vmem:[#allocation74_spill] sm:$0xff] }
 0x32b   :  { %5452 = vrot.lane.b32.xlu0 %v20896_v47, %s10549_s21  ;;  %7885 = vmatmul.mubr.bf16.vlgmr.msra.gmra.mrb[128].mxu0 %v6643_v23  ;;  %v4699_v47 = vsel %vm12765_vm14, %v9504_v7, %v4698_v3  ;;  %v4740_v23 = vrot.slane %v16482_v51, 6  ;;  %v16488_v2 = vcombine.low %v4692_v36, %v4695_v38 }
 0x32c   :  { %7892 = vmatprep.mubr.bf16.mxu0 %v20905_v8  ;;  %6506 = vrot.lane.b32.xlu1 %v16434_v16, %s10550_s22  ;;  %v16470_v3 = vcombine.low %v4699_v47, %v4702_v37 }
 0x32d   :  { %v5033_v46 = vpop.permute.xlu0 %5032  ;;  %9849 = vmatpush3.bf16.msra.mxu0 %v16226_v24  ;;  %20910 = vst [vmem:[#allocation47_spill] sm:$0xff] %v16488_v2  ;;  %v4742_v37 = vrot.slane %v4740_v23, 4 }
 0x32e   :  { %v5726_v30 = vsel %vm2641_vm9, %v15775_v18, %v5033_v46  ;;  %v16462_v48 = vpop.permute.xlu1 %6486  ;;  %20907 = vst [vmem:[#allocation212_spill] sm:$0xff] %v16470_v3  ;;  %v5988_v49 = vsel %vm2641_vm9, %v16470_v3, %v5343_v15  ;;  %v16503_v46 = vld [vmem:[%s19316_s0 + $0xcc] sm:$0xf]  ;;  %v16509_v15 = vpop.f32.mrb[56].mxu1 }
 0x32f   :  { %6556 = vrot.lane.b32.xlu0 %v20906_v12, %s10548_s16  ;;  %v5795_v24 = vsel %vm2738_vm10, %v5726_v30, %v16328_v35  ;;  %v20911_v35 = vld [vmem:[#allocation45_spill] sm:$0xff]  ;;  %v9510_v47 = vrot.slane %v16503_v46, 10  ;;  %v10483_v30 = vld [vmem:[%s19316_s0 + $0xd4] sm:$0x3] }
 0x330   :  { %5526 = vrot.lane.b32.xlu1 %v20858_v61, %s10549_s21  ;;  %v4743_v12 = vrot.slane %v10483_v30, 6 }
 0x331   :  { %v5173_v7 = vpop.permute.xlu0 %5172 }
 0x332   :  { %v16486_v9 = vsel %vm2803_vm11, %v5795_v24, %v5173_v7  ;;  %v16490_v42 = vpop.permute.xlu1 %5038  ;;  %v16515_v24 = vpop.f32.mrb[57].mxu1  ;;  %v5729_v7 = vsel %vm2641_vm9, %v15664_v52, %v16378_v27  ;;  %v20935_v52 = vld [vmem:[#allocation60_spill] sm:$0xff] }
 0x333   :  { %20909 = vst [vmem:[#allocation225_spill] sm:$0xff] %v16486_v9  ;;  %6600 = vrot.lane.b32.xlu0 %v20911_v35, %s10550_s22  ;;  %7515 = vmatmul.mubr.bf16.gmra.mrb[168].mxu1 %v16486_v9  ;;  %v16533_v27 = vpop.f32.mrb[58].mxu1  ;;  %v20932_v9 = vld [vmem:[#allocation43_spill] sm:$0xff] }
 0x334   :  { %7893 = vmatmul.mubr.bf16.gmra.mrb[132].mxu0 %v6646_v20  ;;  %5596 = vrot.lane.b32.xlu1 %v20912_v22, %s10550_s22  ;;  %20915 = vst [vmem:[#allocation137_spill] sm:$0xff] %v16533_v27  ;;  %v5735_v44 = vsel %vm2641_vm9, %v20932_v9, %v16490_v42 }
 0x335   :  { %7900 = vmatprep.mubr.bf16.mxu0 %v20913_v33  ;;  %v5341_v8 = vpop.permute.xlu0 %5340  ;;  %v6030_v33 = vsel %vm2738_vm10, %v5988_v49, %v15816_v34  ;;  %v4744_v49 = vsel %vm12765_vm14, %v4742_v37, %v4743_v12  ;;  %v10487_v12 = vld [vmem:[%s19316_s0 + $0x1a0] sm:$0x3] }
 0x336   :  { %v5985_v36 = vsel %vm2641_vm9, %v16488_v2, %v5341_v8  ;;  %v16513_v38 = vpop.permute.xlu1 %5178 }
 0x337   :  { %5384 = vrot.lane.b32.xlu0 %v20835_v59, %s10548_s16  ;;  %v3606_v11 = vpop.f32.mrb[88].mxu0  ;;  %v6029_v20 = vsel %vm2738_vm10, %v5985_v36, %v15696_v4  ;;  %v10484_v4 = vld [vmem:[%s19316_s0 + $0x19c] sm:$0xf] }
 0x338   :  { %v16527_v8 = vadd.f32 %v15831_v0, %v3606_v11  ;;  %v3608_v30 = vpop.f32.mrb[89].mxu0  ;;  %v6092_v55 = vsel %vm2803_vm11, %v6029_v20, %v15730_v29  ;;  %6458 = vrot.lane.b32.xlu1 %v20903_v39, %s10548_s16  ;;  %v4712_v34 = vrot.slane %v10484_v4, 6  ;;  %v4741_v0 = vsel %vm12765_vm14, %v9510_v47, %v4740_v23  ;;  %v10485_v23 = vld [vmem:[%s19316_s0 + $0x190] sm:$0xf]  ;;  %v16557_v47 = vpop.f32.mrb[59].mxu1 }
 0x339   :  { %v5105_v50 = vpop.permute.xlu0 %5104  ;;  %v3609_v59 = vpop.f32.mrb[90].mxu0  ;;  %7522 = vmatprep.mubr.bf16.mxu1 %v6092_v55  ;;  %v6094_v55 = vsel %vm2803_vm11, %v6030_v33, %v15849_v54  ;;  %v16562_v54 = vcombine.low %v4741_v0, %v4744_v49  ;;  %v20919_v33 = vld [vmem:[#allocation91_spill] sm:$0xff]  ;;  %v20921_v49 = vld [vmem:[#allocation52_spill] sm:$0xff] }
 0x33a   :  { %20914 = vst [vmem:[#allocation33_spill] sm:$0xff] %v16527_v8  ;;  %v5797_v29 = vsel %vm2738_vm10, %v5729_v7, %v5105_v50  ;;  %v16544_v39 = vadd.f32 %v15854_v62, %v3609_v59  ;;  %v3611_v36 = vpop.f32.mrb[91].mxu0  ;;  %v5347_v11 = vpop.permute.xlu1 %5346  ;;  %v4705_v50 = vrot.slane %v10485_v23, 6  ;;  %v20918_v62 = vld [vmem:[#allocation50_spill] sm:$0xff]  ;;  %v4714_v37 = vrot.slane %v4712_v34, 4 }
 0x33b   :  { %5454 = vrot.lane.b32.xlu0 %v20886_v19, %s10549_s21  ;;  %v16552_v20 = vsel %vm2803_vm11, %v5797_v29, %v16395_v25  ;;  %v10486_v19 = vld [vmem:[%s19316_s0 + $0x198] sm:$0xf]  ;;  %v4715_v7 = vrot.slane %v10487_v12, 6  ;;  %v16574_v0 = vpop.f32.mrb[60].mxu1  ;;  %v10488_v29 = vld [vmem:[%s19316_s0 + $0x18c] sm:$0xf] }
 0x33c   :  { %20916 = vst [vmem:[#allocation241_spill] sm:$0xff] %v16544_v39  ;;  %20917 = vst [vmem:[#allocation163_spill] sm:$0xff] %v16552_v20  ;;  %7523 = vmatmul.mubr.bf16.gmra.mrb[172].mxu1 %v16552_v20  ;;  %6466 = vrot.lane.b32.xlu1 %v20918_v62, %s10549_s21  ;;  %v9506_v25 = vrot.slane %v10486_v19, 10  ;;  %v9505_v36 = vrot.slane %v10488_v29, 10  ;;  %v10489_v23 = vld [vmem:[%s19316_s0 + $0x194] sm:$0x3] }
 0x33d   :  { %v6485_v59 = vpop.permute.xlu0 %6484  ;;  %7530 = vmatprep.mubr.bf16.mxu1 %v6094_v55  ;;  %20920 = vst [vmem:[#allocation41_spill] sm:$0xff] %v16574_v0  ;;  %v4707_v55 = vrot.slane %v4705_v50, 4  ;;  %v4708_v19 = vrot.slane %v10489_v23, 6  ;;  %v20923_v12 = vld [vmem:[#allocation102_spill] sm:$0xff]  ;;  %v4716_v29 = vsel %vm12765_vm14, %v4714_v37, %v4715_v7  ;;  %v20927_v7 = vld [vmem:[#allocation109_spill] sm:$0xff] }
 0x33e   :  { %v6649_v30 = vsel %vm2803_vm11, %v20919_v33, %v6485_v59  ;;  %v16572_v4 = vpop.permute.xlu1 %5110  ;;  %v16584_v59 = vpop.f32.mrb[61].mxu1  ;;  %v4713_v39 = vsel %vm12765_vm14, %v9506_v25, %v4712_v34 }
 0x33f   :  { %6558 = vrot.lane.b32.xlu0 %v20921_v49, %s10548_s16  ;;  %7901 = vmatmul.mubr.bf16.gmra.mrb[136].mxu0 %v6649_v30  ;;  %20922 = vst [vmem:[#allocation58_spill] sm:$0xff] %v16584_v59  ;;  %v16589_v33 = vpop.f32.mrb[62].mxu1  ;;  %v4709_v20 = vsel %vm12765_vm14, %v4707_v55, %v4708_v19  ;;  %v16607_v34 = vcombine.low %v4713_v39, %v4716_v29  ;;  %v20930_v19 = vld [vmem:[#allocation54_spill] sm:$0xff]  ;;  %v20931_v29 = vld [vmem:[#allocation84_spill] sm:$0xff] }
 0x340   :  { %7908 = vmatprep.mubr.bf16.mxu0 %v20923_v12  ;;  %6508 = vrot.lane.b32.xlu1 %v16562_v54, %s10550_s22  ;;  %20924 = vst [vmem:[#allocation174_spill] sm:$0xff] %v16589_v33  ;;  %v16595_v8 = vpop.f32.mrb[63].mxu1  ;;  %v4706_v12 = vsel %vm12765_vm14, %v9505_v36, %v4705_v50  ;;  %v16619_v50 = vld [vmem:[%s19316_s0 + $0xdc] sm:$0xf]  ;;  %v20934_v33 = vld [vmem:[#allocation121_spill] sm:$0xff] }
 0x341   :  { %v5037_v30 = vpop.permute.xlu0 %5036  ;;  %20925 = vst [vmem:[#allocation156_spill] sm:$0xff] %v16595_v8  ;;  %20926 = vst [vmem:[#allocation71_spill] sm:$0xff] %v16607_v34  ;;  %v16625_v36 = vcombine.low %v4706_v12, %v4709_v20  ;;  %v5994_v20 = vsel %vm2641_vm9, %v16607_v34, %v5347_v11  ;;  %v16650_v12 = vld [vmem:[%s19316_s0 + $0xd8] sm:$0xf] }
 0x342   :  { %v5732_v23 = vsel %vm2641_vm9, %v15887_v58, %v5037_v30  ;;  %v16599_v26 = vpop.permute.xlu1 %6490  ;;  %v6652_v30 = vsel %vm2803_vm11, %v20927_v7, %v16462_v48  ;;  %v16640_v48 = vld [vmem:[%s19316_s0 + $0xe8] sm:$0xf]  ;;  %v10492_v7 = vld [vmem:[%s19316_s0 + $0xe0] sm:$0x3]  ;;  %v20933_v34 = vld [vmem:[#allocation220_spill] sm:$0xff] }
 0x343   :  { %6602 = vrot.lane.b32.xlu0 %v20918_v62, %s10550_s22  ;;  %v5799_v25 = vsel %vm2738_vm10, %v5732_v23, %v16442_v10  ;;  %v4754_v62 = vrot.slane %v16619_v50, 6  ;;  %20929 = vst [vmem:[#allocation74_spill] sm:$0xff] %v16625_v36  ;;  %v16635_v10 = vld [vmem:[%s19316_s0 + $0xe4] sm:$0xf]  ;;  %v4776_v35 = vshll.u32 %v16640_v48, 16  ;;  %v4780_v58 = vshrl.u32 %v16640_v48, 16 }
 0x344   :  { %5528 = vrot.lane.b32.xlu1 %v20841_v17, %s10549_s21 }
 0x345   :  { %v5177_v37 = vpop.permute.xlu0 %5176 }
 0x346   :  { %v16623_v39 = vsel %vm2803_vm11, %v5799_v25, %v5177_v37  ;;  %v16627_v55 = vpop.permute.xlu1 %5042  ;;  %v9512_v25 = vrot.slane %v16650_v12, 10  ;;  %v4756_v37 = vrot.slane %v4754_v62, 4 }
 0x347   :  { %20928 = vst [vmem:[#allocation62_spill] sm:$0xff] %v16623_v39  ;;  %5386 = vrot.lane.b32.xlu0 %v20818_v43, %s10548_s16  ;;  %7531 = vmatmul.mubr.bf16.gmra.mrb[176].mxu1 %v16623_v39  ;;  %v4770_v39 = vshll.u32 %v16635_v10, 16 }
 0x348   :  { %7909 = vmatmul.mubr.bf16.gmra.mrb[140].mxu0 %v6652_v30  ;;  %5598 = vrot.lane.b32.xlu1 %v20930_v19, %s10550_s22  ;;  %v4757_v30 = vrot.slane %v10492_v7, 6 }
 0x349   :  { %7916 = vmatprep.mubr.bf16.mxu0 %v20931_v29  ;;  %v5345_v23 = vpop.permute.xlu0 %5344  ;;  %v4767_v29 = vshrl.u32 %v16635_v10, 16 }
 0x34a   :  { %v5991_v11 = vsel %vm2641_vm9, %v16625_v36, %v5345_v23  ;;  %v16658_v43 = vpop.permute.xlu1 %5182  ;;  %v6032_v23 = vsel %vm2738_vm10, %v5994_v20, %v16047_v60  ;;  %v4758_v60 = vsel %vm12765_vm14, %v4756_v37, %v4757_v30  ;;  %v20938_v37 = vld [vmem:[#allocation26_spill] sm:$0xff]  ;;  %v20940_v30 = vld [vmem:[#allocation55_spill] sm:$0xff] }
 0x34b   :  { %5456 = vrot.lane.b32.xlu0 %v20900_v45, %s10549_s21  ;;  %v6031_v7 = vsel %vm2738_vm10, %v5991_v11, %v20933_v34  ;;  %v10493_v45 = vld [vmem:[%s19316_s0 + $0x1a8] sm:$0xf]  ;;  %v4755_v34 = vsel %vm12765_vm14, %v9512_v25, %v4754_v62  ;;  %v4769_v11 = vrot.slane %v4767_v29, 4  ;;  %v16695_v62 = vrot.slane %v4776_v35, 5 }
 0x34c   :  { %v6096_v0 = vsel %vm2803_vm11, %v6031_v7, %v20934_v33  ;;  %6460 = vrot.lane.b32.xlu1 %v20935_v52, %s10548_s16  ;;  %v4719_v42 = vrot.slane %v10493_v45, 6  ;;  %v6098_v33 = vsel %vm2803_vm11, %v6032_v23, %v16075_v5  ;;  %v4772_v7 = vrot.slane %v4770_v39, 5  ;;  %v16704_v5 = vld [vmem:[%s19316_s0 + $0xec] sm:$0x3] }
 0x34d   :  { %v5109_v18 = vpop.permute.xlu0 %5108  ;;  %7538 = vmatprep.mubr.bf16.mxu1 %v6096_v0  ;;  %v20936_v0 = vld [vmem:[#allocation170_spill] sm:$0xff]  ;;  %v4782_v25 = vrot.slane %v4780_v58, 4  ;;  %v16708_v23 = vcombine.low %v4755_v34, %v4758_v60 }
 0x34e   :  { %v5801_v20 = vsel %vm2738_vm10, %v5735_v44, %v5109_v18  ;;  %v16687_v9 = vpop.permute.xlu1 %5372  ;;  %v20944_v36 = vld [vmem:[#allocation130_spill] sm:$0xff]  ;;  %v4773_v27 = vor.u32 %v4772_v7, %v4769_v11 }
 0x34f   :  { %6560 = vrot.lane.b32.xlu0 %v20936_v0, %s10548_s16  ;;  %v3614_v8 = vpop.f32.mrb[92].mxu0  ;;  %v16693_v45 = vsel %vm2803_vm11, %v5801_v20, %v16513_v38  ;;  %20941 = vst [vmem:[#allocation52_spill] sm:$0xff] %v16708_v23  ;;  %v10495_v34 = vld [vmem:[%s19316_s0 + $0x1ac] sm:$0x3] }
 0x350   :  { %20937 = vst [vmem:[#allocation50_spill] sm:$0xff] %v16693_v45  ;;  %v16698_v18 = vadd.f32 %v20938_v37, %v3614_v8  ;;  %v3616_v44 = vpop.f32.mrb[93].mxu0  ;;  %7539 = vmatmul.mubr.bf16.gmra.mrb[180].mxu1 %v16693_v45  ;;  %6468 = vrot.lane.b32.xlu1 %v20940_v30, %s10549_s21  ;;  %v10494_v8 = vld [vmem:[%s19316_s0 + $0x1a4] sm:$0xf]  ;;  %v4722_v60 = vrot.slane %v10495_v34, 6  ;;  %v4774_v7 = vrot.slane %v4773_v27, 4 }
 0x351   :  { %v6489_v38 = vpop.permute.xlu0 %6488  ;;  %v3617_v20 = vpop.f32.mrb[94].mxu0  ;;  %7546 = vmatprep.mubr.bf16.mxu1 %v6098_v33  ;;  %v9507_v37 = vrot.slane %v10494_v8, 10  ;;  %v4721_v44 = vrot.slane %v4719_v42, 4  ;;  %v4783_v8 = vor.u32 %v4782_v25, %v16695_v62  ;;  %v4822_v34 = vrot.slane %v16640_v48, 5 }
 0x352   :  { %20939 = vst [vmem:[#allocation91_spill] sm:$0xff] %v16698_v18  ;;  %v20942_v18 = vld [vmem:[#allocation197_spill] sm:$0xff]  ;;  %v3619_v59 = vpop.f32.mrb[95].mxu0  ;;  %v6655_v0 = vsel %vm2803_vm11, %v20944_v36, %v6489_v38  ;;  %v16721_v33 = vpop.permute.xlu1 %5442 }
 0x353   :  { %v16714_v45 = vadd.f32 %v20942_v18, %v3617_v20  ;;  %6582 = vrot.lane.b32.xlu0 %v20935_v52, %s10549_s21  ;;  %7917 = vmatmul.mubr.bf16.gmra.mrb[144].mxu0 %v6655_v0  ;;  %v4786_v18 = vshll.u32 %v16704_v5, 16  ;;  %v20945_v59 = vld [vmem:[#allocation138_spill] sm:$0xff]  ;;  %v4720_v11 = vsel %vm12765_vm14, %v9507_v37, %v4719_v42  ;;  %v4723_v52 = vsel %vm12765_vm14, %v4721_v44, %v4722_v60  ;;  %v20946_v37 = vld [vmem:[#allocation21_spill] sm:$0xff] }
 0x354   :  { %7924 = vmatprep.mubr.bf16.mxu0 %v20945_v59  ;;  %6510 = vrot.lane.b32.xlu1 %v16708_v23, %s10550_s22  ;;  %v4784_v25 = vrot.slane %v4783_v8, 4  ;;  %v4834_v59 = vrot.slane %v4767_v29, 5  ;;  %v4838_v23 = vrot.slane %v4780_v58, 5  ;;  %v16752_v29 = vcombine.low %v4720_v11, %v4723_v52  ;;  %v21137_v58 = vld [vmem:[#allocation189_spill] sm:$0xff] }
 0x355   :  { %20943 = vst [vmem:[#allocation102_spill] sm:$0xff] %v16714_v45  ;;  %v5041_v36 = vpop.permute.xlu0 %5040  ;;  %v4788_v20 = vrot.slane %v4786_v18, 5  ;;  %v4835_v45 = vrot.slane %v4770_v39, 6  ;;  %v4824_v60 = vrot.slane %v4822_v34, 4  ;;  %v4825_v8 = vrot.slane %v16704_v5, 5 }
 0x356   :  { %v5738_v38 = vsel %vm2641_vm9, %v15995_v14, %v5041_v36  ;;  %v16736_v0 = vpop.permute.xlu1 %6494  ;;  %v4839_v36 = vrot.slane %v4776_v35, 6  ;;  %v4843_v14 = vshrl.u32 %v16704_v5, 16  ;;  %20947 = vst [vmem:[#allocation109_spill] sm:$0xff] %v16752_v29  ;;  %v4779_v35 = vsel %vm10710_vm5, %v4774_v7, %v16695_v62  ;;  %v20949_v7 = vld [vmem:[#allocation65_spill] sm:$0xff] }
 0x357   :  { %6604 = vrot.lane.b32.xlu0 %v20940_v30, %s10550_s22  ;;  %v5803_v27 = vsel %vm2738_vm10, %v5738_v38, %v16572_v4  ;;  %v6658_v30 = vsel %vm2803_vm11, %v20946_v37, %v16599_v26  ;;  %v4789_v4 = vsel %vm10710_vm5, %v4784_v25, %v4788_v20  ;;  %v9514_v26 = vrot.slane %v16635_v10, 9 }
 0x358   :  { %5530 = vrot.lane.b32.xlu1 %v20877_v41, %s10549_s21  ;;  %v4836_v38 = vor.u32 %v4835_v45, %v4834_v59  ;;  %v4840_v11 = vor.u32 %v4839_v36, %v4838_v23  ;;  %v4845_v52 = vrot.slane %v4843_v14, 5  ;;  %v4846_v62 = vrot.slane %v4786_v18, 6  ;;  %v20953_v59 = vld [vmem:[#allocation259_spill] sm:$0xff] }
 0x359   :  { %v5181_v42 = vpop.permute.xlu0 %5180  ;;  %v9602_v25 = vcombine.low %v4779_v35, %v4789_v4  ;;  %v4823_v23 = vsel %vm10635_vm2, %v9514_v26, %v4822_v34  ;;  %v4826_v18 = vsel %vm10635_vm2, %v4824_v60, %v4825_v8  ;;  %v21144_v60 = vld [vmem:[#allocation188_spill] sm:$0xff] }
 0x35a   :  { %v16750_v44 = vsel %vm2803_vm11, %v5803_v27, %v5181_v42  ;;  %v16757_v39 = vpop.permute.xlu1 %5514  ;;  %v20950_v27 = vld [vmem:[#allocation147_spill] sm:$0xff]  ;;  %v4842_v35 = vrot.slane %v4840_v11, 4  ;;  %v4847_v4 = vor.u32 %v4846_v62, %v4845_v52  ;;  %v9604_v26 = vcombine.low %v4823_v23, %v4826_v18  ;;  %v20956_v62 = vld [vmem:[#allocation34_spill] sm:$0xff]  ;;  %v20960_v23 = vld [vmem:[#allocation161_spill] sm:$0xff] }
 0x35b   :  { %5388 = vrot.lane.b32.xlu0 %v20858_v61, %s10548_s16  ;;  %7547 = vmatmul.mubr.bf16.gmra.mrb[184].mxu1 %v16750_v44  ;;  %v20951_v61 = vld [vmem:[#allocation208_spill] sm:$0xff] }
 0x35c   :  { %7925 = vmatmul.mubr.bf16.gmra.mrb[148].mxu0 %v6658_v30  ;;  %5600 = vrot.lane.b32.xlu1 %v20949_v7, %s10550_s22  ;;  %v5741_v5 = vsel %vm2641_vm9, %v20951_v61, %v16627_v55  ;;  %v4837_v30 = vrot.slane %v4836_v38, 4  ;;  %v4848_v38 = vsel %vm10743_vm8, %v4842_v35, %v4847_v4  ;;  %v20962_v35 = vld [vmem:[#allocation119_spill] sm:$0xff] }
 0x35d   :  { %7932 = vmatprep.mubr.bf16.mxu0 %v20950_v27  ;;  %v5349_v42 = vpop.permute.xlu0 %5348 }
 0x35e   :  { %v5997_v37 = vsel %vm2641_vm9, %v16752_v29, %v5349_v42  ;;  %v5585_v20 = vpop.permute.xlu1 %5584  ;;  %v4841_v8 = vsel %vm10743_vm8, %v4837_v30, %v4840_v11  ;;  %v10301_v30 = vld [vmem:[%s19320_s4 + $0x188] sm:$0xff]  }
 0x35f   :  { %5458 = vrot.lane.b32.xlu0 %v20912_v22, %s10549_s21  ;;  %v6033_v14 = vsel %vm2738_vm10, %v5997_v37, %v16161_v57  ;;  %v9606_v37 = vcombine.low %v4841_v8, %v4848_v38  ;;  %9850 = vmatprep.subr.bf16.mxu0 %v10301_v30 }
 0x360   :  { %v6100_v36 = vsel %vm2803_vm11, %v6033_v14, %v20953_v59  ;;  %5392 = vrot.lane.b32.xlu1 %v20877_v41, %s10548_s16  ;;  %v20959_v14 = vld [vmem:[#allocation103_spill] sm:$0xff]  ;;  %9851 = vmatpush3.bf16.msra.mxu0 %v10301_v30 }
 0x361   :  { %v5113_v55 = vpop.permute.xlu0 %5112  ;;  %7554 = vmatprep.mubr.bf16.mxu1 %v6100_v36 }
 0x362   :  { %v5805_v22 = vsel %vm2738_vm10, %v5741_v5, %v5113_v55  ;;  %v16787_v57 = vpop.permute.xlu1 %5376 }
 0x363   :  { %6562 = vrot.lane.b32.xlu0 %v9602_v25, %s10548_s16  ;;  %v16792_v34 = vsel %vm2803_vm11, %v5805_v22, %v16658_v43  ;;  %v20957_v25 = vld [vmem:[#allocation13_spill] sm:$0xff] }
 0x364   :  { %20954 = vst [vmem:[#allocation54_spill] sm:$0xff] %v16792_v34  ;;  %7555 = vmatmul.mubr.bf16.gmra.mrb[188].mxu1 %v16792_v34  ;;  %5462 = vrot.lane.b32.xlu1 %v20949_v7, %s10549_s21  ;;  %v20961_v7 = vld [vmem:[#allocation10_spill] sm:$0xff] }
 0x365   :  { %v6493_v52 = vpop.permute.xlu0 %6492  ;;  %v6104_v18 = vsel %vm2641_vm9, %v20961_v7, %v16687_v9  ;;  %v20964_v9 = vld [vmem:[#allocation36_spill] sm:$0xff] }
 0x366   :  { %v6661_v27 = vsel %vm2803_vm11, %v20956_v62, %v6493_v52  ;;  %v16803_v42 = vpop.permute.xlu1 %5446  ;;  %v20965_v52 = vld [vmem:[#allocation30_spill] sm:$0xff]  ;;  %v20968_v7 = vld [vmem:[#allocation72_spill] sm:$0xff] }
 0x367   :  { %6584 = vrot.lane.b32.xlu0 %v9604_v26, %s10549_s21  ;;  %v3622_v43 = vpop.f32.mrb[96].mxu0  ;;  %7933 = vmatmul.mubr.bf16.gmra.mrb[152].mxu0 %v6661_v27  ;;  %v6171_v26 = vsel %vm2738_vm10, %v6104_v18, %v16721_v33  ;;  %v6664_v62 = vsel %vm2803_vm11, %v20965_v52, %v16736_v0  ;;  %v20966_v27 = vld [vmem:[#allocation38_spill] sm:$0xff] }
 0x368   :  { %v16807_v5 = vadd.f32 %v20957_v25, %v3622_v43  ;;  %v3624_v11 = vpop.f32.mrb[97].mxu0  ;;  %7940 = vmatprep.mubr.bf16.mxu0 %v20959_v14  ;;  %6514 = vrot.lane.b32.xlu1 %v20960_v23, %s10550_s22  ;;  %v6301_v43 = vsel %vm2738_vm10, %v20966_v27, %v16757_v39  ;;  %v20969_v39 = vld [vmem:[#allocation95_spill] sm:$0xff] }
 0x369   :  { %v5513_v59 = vpop.permute.xlu0 %5512  ;;  %v3625_v36 = vpop.f32.mrb[98].mxu0  ;;  %v6366_v33 = vsel %vm2803_vm11, %v6301_v43, %v5585_v20  ;;  %v20967_v11 = vld [vmem:[#allocation44_spill] sm:$0xff]  ;;  %v10496_v20 = vld [vmem:[%s19320_s4 + $0x100] sm:$0xff]  }
 0x36a   :  { %20958 = vst [vmem:[#allocation84_spill] sm:$0xff] %v16807_v5  ;;  %v16819_v4 = vadd.f32 %v20962_v35, %v3625_v36  ;;  %v3627_v55 = vpop.f32.mrb[99].mxu0  ;;  %v16821_v22 = vpop.permute.xlu1 %6498  ;;  %v6299_v8 = vsel %vm2738_vm10, %v20964_v9, %v5513_v59  ;;  %v6234_v14 = vsel %vm2803_vm11, %v6171_v26, %v20967_v11  ;;  %v20970_v59 = vmov 0   ;;  %v20971_v36 = vld [vmem:[#allocation9_spill] sm:$0xff]  ;;  %v10497_v9 = vld [vmem:[%s19320_s4 + $0x108] sm:$0xff]  }
 0x36b   :  { %6606 = vrot.lane.b32.xlu0 %v9606_v37, %s10550_s22 }
 0x36c   :  { %20963 = vst [vmem:[#allocation220_spill] sm:$0xff] %v16819_v4  ;;  %5534 = vrot.lane.b32.xlu1 %v20890_v6, %s10549_s21 }
 0x36d   :  { %v5583_v38 = vpop.permute.xlu0 %5582 }
 0x36e   :  { %v6363_v37 = vsel %vm2803_vm11, %v6299_v8, %v5583_v38  ;;  %v5519_v25 = vpop.permute.xlu1 %5518  ;;  %v20973_v8 = vld [vmem:[#allocation48_spill] sm:$0xff] }
 0x36f   :  { %5390 = vrot.lane.b32.xlu0 %v20841_v17, %s10548_s16  ;;  %7595 = vmatprep.mubr.bf16.mxu1 %v6363_v37  ;;  %v10498_v37 = vld [vmem:[%s19320_s4 + $0x110] sm:$0xff]  }
 0x370   :  { %7941 = vmatmul.mubr.bf16.gmra.mrb[156].mxu0 %v6664_v62  ;;  %7596 = vmatmul.mubr.bf16.vlgmr.msra.gmra.mrb[64].mxu1 %v6234_v14  ;;  %v20974_v62 = vld [vmem:[#allocation166_spill] sm:$0xff]  ;;  %v20976_v14 = vld [vmem:[#allocation125_spill] sm:$0xff] }
 0x371   :  { %7948 = vmatprep.mubr.bf16.mxu0 %v20968_v7  ;;  %v5375_v0 = vpop.permute.xlu0 %5374  ;;  %7603 = vmatprep.mubr.bf16.mxu1 %v6366_v33  ;;  %v20975_v33 = vld [vmem:[#allocation209_spill] sm:$0xff] }
 0x372   :  { %5604 = vrot.lane.b32.xlu1 %v20969_v39, %s10550_s22  ;;  %v5589_v18 = vpop.permute.xlu1 %5588  ;;  %9969 = vmatpush1.bf16.msra.mxu1 %v10496_v20  ;;  %v6107_v30 = vsel %vm2641_vm9, %v20971_v36, %v5375_v0  ;;  %v20978_v20 = vld [vmem:[#allocation118_spill] sm:$0xff] }
 0x373   :  { %5460 = vrot.lane.b32.xlu0 %v20930_v19, %s10549_s21  ;;  %9954 = vmatprep.subr.bf16.mxu1 %v20970_v59  ;;  %v20972_v19 = vld [vmem:[#allocation257_spill] sm:$0xff] }
 0x375   :  { %v5445_v35 = vpop.permute.xlu0 %5444 }
 0x376   :  { %v6173_v55 = vsel %vm2738_vm10, %v6107_v30, %v5445_v35  ;;  %5396 = vrot.lane.b32.xlu1 %v20890_v6, %s10548_s16  ;;  %v16856_v26 = vpop.permute.xlu1 %5380  ;;  %9970 = vmatpush1.bf16.msra.mxu1 %v10497_v9 }
 0x377   :  { %6512 = vrot.lane.b32.xlu0 %v20972_v19, %s10550_s22  ;;  %v6236_v38 = vsel %vm2803_vm11, %v6173_v55, %v20973_v8  ;;  %9955 = vmatprep.subr.bf16.mxu1 %v20970_v59  ;;  %v20980_v55 = vld [vmem:[#allocation202_spill] sm:$0xff] }
 0x378   :  { %7604 = vmatmul.mubr.bf16.gmra.mrb[68].mxu1 %v6236_v38  ;;  %v20982_v38 = vld [vmem:[#allocation127_spill] sm:$0xff] }
 0x379   :  { %v6497_v52 = vpop.permute.xlu0 %6496 }
 0x37a   :  { %v6667_v27 = vsel %vm2803_vm11, %v20974_v62, %v6497_v52  ;;  %5466 = vrot.lane.b32.xlu1 %v20969_v39, %s10549_s21  ;;  %v16870_v43 = vpop.permute.xlu1 %5450  ;;  %9971 = vmatpush1.bf16.msra.mxu1 %v10498_v37  ;;  %v20979_v39 = vld [vmem:[#allocation11_spill] sm:$0xff]  ;;  %v10499_v62 = vld [vmem:[%s19320_s4 + $0x118] sm:$0xff]   ;;  %v20984_v37 = vld [vmem:[#allocation57_spill] sm:$0xff] }
 0x37b   :  { %5532 = vrot.lane.b32.xlu0 %v20975_v33, %s10549_s21  ;;  %v3630_v11 = vpop.f32.mrb[100].mxu0  ;;  %7949 = vmatmul.mubr.bf16.gmra.mrb[160].mxu0 %v6667_v27  ;;  %v6109_v36 = vsel %vm2641_vm9, %v20979_v39, %v16787_v57  ;;  %v20983_v27 = vld [vmem:[#allocation86_spill] sm:$0xff]  ;;  %v20986_v39 = vld [vmem:[#allocation68_spill] sm:$0xff] }
 0x37c   :  { %v16878_v7 = vadd.f32 %v20976_v14, %v3630_v11  ;;  %v3632_v0 = vpop.f32.mrb[101].mxu0  ;;  %7956 = vmatprep.mubr.bf16.mxu0 %v20978_v20  ;;  %9956 = vmatprep.subr.bf16.mxu1 %v20970_v59  ;;  %v6175_v57 = vsel %vm2738_vm10, %v6109_v36, %v16803_v42  ;;  %v10500_v42 = vld [vmem:[%s19320_s4 + $0x120] sm:$0xff]   ;;  %v20988_v36 = vld [vmem:[#allocation194_spill] sm:$0xff] }
 0x37d   :  { %v5517_v30 = vpop.permute.xlu0 %5516  ;;  %v3633_v35 = vpop.f32.mrb[102].mxu0  ;;  %v20985_v0 = vld [vmem:[#allocation53_spill] sm:$0xff] }
 0x37e   :  { %20977 = vst [vmem:[#allocation121_spill] sm:$0xff] %v16878_v7  ;;  %v16886_v9 = vadd.f32 %v20980_v55, %v3633_v35  ;;  %v3635_v8 = vpop.f32.mrb[103].mxu0  ;;  %6518 = vrot.lane.b32.xlu1 %v20982_v38, %s10550_s22  ;;  %v16890_v52 = vpop.permute.xlu1 %6502  ;;  %9972 = vmatpush1.bf16.msra.mxu1 %v10499_v62  ;;  %v6303_v11 = vsel %vm2738_vm10, %v20984_v37, %v5517_v30  ;;  %v20989_v30 = vld [vmem:[#allocation90_spill] sm:$0xff] }
 0x37f   :  { %5602 = vrot.lane.b32.xlu0 %v20983_v27, %s10550_s22  ;;  %9957 = vmatprep.subr.bf16.mxu1 %v20970_v59  ;;  %v6670_v20 = vsel %vm2803_vm11, %v20985_v0, %v16821_v22  ;;  %v6305_v35 = vsel %vm2738_vm10, %v20986_v39, %v5519_v25  ;;  %v20987_v22 = vld [vmem:[#allocation61_spill] sm:$0xff] }
 0x380   :  { %20981 = vst [vmem:[#allocation60_spill] sm:$0xff] %v16886_v9  ;;  %v6372_v8 = vsel %vm2803_vm11, %v6305_v35, %v5589_v18  ;;  %v6238_v25 = vsel %vm2803_vm11, %v6175_v57, %v20987_v22  ;;  %v20990_v57 = vld [vmem:[#allocation12_spill] sm:$0xff]  ;;  %v20992_v35 = vld [vmem:[#allocation75_spill] sm:$0xff] }
 0x381   :  { %v5587_v14 = vpop.permute.xlu0 %5586  ;;  %v20993_v22 = vld [vmem:[#allocation179_spill] sm:$0xff] }
 0x382   :  { %v6369_v55 = vsel %vm2803_vm11, %v6303_v11, %v5587_v14  ;;  %5538 = vrot.lane.b32.xlu1 %v20894_v31, %s10549_s21  ;;  %v5523_v62 = vpop.permute.xlu1 %5522  ;;  %9973 = vmatpush1.bf16.msra.mxu1 %v10500_v42  ;;  %v10501_v11 = vld [vmem:[%s19320_s4 + $0x128] sm:$0xff]   ;;  %v21093_v9 = vld [vmem:[#allocation51_spill] sm:$0xff] }
 0x383   :  { %5394 = vrot.lane.b32.xlu0 %v20975_v33, %s10548_s16  ;;  %7611 = vmatprep.mubr.bf16.mxu1 %v6369_v55 }
 0x384   :  { %7957 = vmatmul.mubr.bf16.gmra.mrb[164].mxu0 %v6670_v20  ;;  %7612 = vmatmul.mubr.bf16.gmra.mrb[72].mxu1 %v6238_v25 }
 0x385   :  { %7964 = vmatprep.mubr.bf16.mxu0 %v20988_v36  ;;  %v5379_v18 = vpop.permute.xlu0 %5378  ;;  %7619 = vmatprep.mubr.bf16.mxu1 %v6372_v8  ;;  %v10502_v8 = vld [vmem:[%s19320_s4 + $0x130] sm:$0xff]  }
 0x386   :  { %5608 = vrot.lane.b32.xlu1 %v20989_v30, %s10550_s22  ;;  %v5593_v37 = vpop.permute.xlu1 %5592  ;;  %9958 = vmatprep.subr.bf16.mxu1 %v20970_v59  ;;  %v6111_v14 = vsel %vm2641_vm9, %v20990_v57, %v5379_v18 }
 0x387   :  { %5464 = vrot.lane.b32.xlu0 %v20983_v27, %s10549_s21  ;;  %9974 = vmatpush1.bf16.msra.mxu1 %v10501_v11  ;;  %v20991_v27 = vld [vmem:[#allocation171_spill] sm:$0xff] }
 0x388   :  { %9959 = vmatprep.subr.bf16.mxu1 %v20970_v59 }
 0x389   :  { %v5449_v0 = vpop.permute.xlu0 %5448 }
 0x38a   :  { %v6177_v20 = vsel %vm2738_vm10, %v6111_v14, %v5449_v0  ;;  %5400 = vrot.lane.b32.xlu1 %v20894_v31, %s10548_s16  ;;  %v16933_v39 = vpop.permute.xlu1 %6578  ;;  %v20995_v14 = vld [vmem:[#allocation187_spill] sm:$0xff]  ;;  %v10503_v0 = vld [vmem:[%s19320_s4 + $0x138] sm:$0xff]  }
 0x38b   :  { %6516 = vrot.lane.b32.xlu0 %v20991_v27, %s10550_s22  ;;  %v6240_v55 = vsel %vm2803_vm11, %v6177_v20, %v20992_v35  ;;  %9975 = vmatpush1.bf16.msra.mxu1 %v10502_v8  ;;  %v20996_v20 = vld [vmem:[#allocation14_spill] sm:$0xff] }
 0x38c   :  { %7620 = vmatmul.mubr.bf16.gmra.mrb[76].mxu1 %v6240_v55  ;;  %9960 = vmatprep.subr.bf16.mxu1 %v20970_v59  ;;  %v6113_v35 = vsel %vm2641_vm9, %v20996_v20, %v16856_v26  ;;  %v10504_v26 = vld [vmem:[%s19320_s4 + $0x140] sm:$0xff]  }
 0x38d   :  { %v6501_v42 = vpop.permute.xlu0 %6500 }
 0x38e   :  { %v6673_v25 = vsel %vm2803_vm11, %v20993_v22, %v6501_v42  ;;  %5470 = vrot.lane.b32.xlu1 %v20989_v30, %s10549_s21  ;;  %v16947_v36 = vpop.permute.xlu1 %6504 }
 0x38f   :  { %5536 = vrot.lane.b32.xlu0 %v20880_v13, %s10549_s21  ;;  %v3638_v18 = vpop.f32.mrb[104].mxu0  ;;  %7965 = vmatmul.mubr.bf16.gmra.mrb[168].mxu0 %v6673_v25  ;;  %v20998_v25 = vld [vmem:[#allocation195_spill] sm:$0xff] }
 0x390   :  { %v16952_v11 = vadd.f32 %v16291_v53, %v3638_v18  ;;  %v3640_v57 = vpop.f32.mrb[105].mxu0  ;;  %7972 = vmatprep.mubr.bf16.mxu0 %v20995_v14  ;;  %9976 = vmatpush1.bf16.msra.mxu1 %v10503_v0  ;;  %v6179_v18 = vsel %vm2738_vm10, %v6113_v35, %v16870_v43  ;;  %v21000_v0 = vld [vmem:[#allocation186_spill] sm:$0xff] }
 0x391   :  { %v5521_v55 = vpop.permute.xlu0 %5520  ;;  %v3641_v8 = vpop.f32.mrb[106].mxu0  ;;  %9961 = vmatprep.subr.bf16.mxu1 %v20970_v59  ;;  %v20999_v57 = vld [vmem:[#allocation82_spill] sm:$0xff]  ;;  %v6676_v20 = vsel %vm2803_vm11, %v21000_v0, %v16890_v52  ;;  %v21002_v52 = vld [vmem:[#allocation87_spill] sm:$0xff] }
 0x392   :  { %20994 = vst [vmem:[#allocation26_spill] sm:$0xff] %v16952_v11  ;;  %v16963_v42 = vadd.f32 %v16316_v21, %v3641_v8  ;;  %v3643_v53 = vpop.f32.mrb[107].mxu0  ;;  %6522 = vrot.lane.b32.xlu1 %v16277_v28, %s10550_s22  ;;  %v5525_v22 = vpop.permute.xlu1 %5524  ;;  %v6307_v21 = vsel %vm2738_vm10, %v20999_v57, %v5521_v55  ;;  %v21001_v8 = vld [vmem:[#allocation107_spill] sm:$0xff]  ;;  %v16988_v55 = vcombine.low %v16650_v12, %v16619_v50 }
 0x393   :  { %5606 = vrot.lane.b32.xlu0 %v20998_v25, %s10550_s22  ;;  %v6309_v53 = vsel %vm2738_vm10, %v21001_v8, %v5523_v62  ;;  %v6242_v62 = vsel %vm2803_vm11, %v6179_v18, %v21002_v52  ;;  %v21003_v12 = vld [vmem:[#allocation15_spill] sm:$0xff] }
 0x394   :  { %20997 = vst [vmem:[#allocation55_spill] sm:$0xff] %v16963_v42  ;;  %9977 = vmatpush1.bf16.msra.mxu1 %v10504_v26  ;;  %v6378_v35 = vsel %vm2803_vm11, %v6309_v53, %v5593_v37  ;;  %v10505_v37 = vld [vmem:[%s19320_s4 + $0x148] sm:$0xff]  }
 0x395   :  { %v5591_v14 = vpop.permute.xlu0 %5590  ;;  %9962 = vmatprep.subr.bf16.mxu1 %v20970_v59 }
 0x396   :  { %v6375_v43 = vsel %vm2803_vm11, %v6307_v21, %v5591_v14  ;;  %5542 = vrot.lane.b32.xlu1 %v16562_v54, %s10549_s21  ;;  %v5595_v26 = vpop.permute.xlu1 %5594  ;;  %v21004_v14 = vld [vmem:[#allocation120_spill] sm:$0xff] }
 0x397   :  { %5398 = vrot.lane.b32.xlu0 %v20880_v13, %s10548_s16  ;;  %7627 = vmatprep.mubr.bf16.mxu1 %v6375_v43  ;;  %v6311_v0 = vsel %vm2738_vm10, %v21004_v14, %v5525_v22  ;;  %v21005_v43 = vld [vmem:[#allocation244_spill] sm:$0xff]  ;;  %v21007_v22 = vld [vmem:[#allocation99_spill] sm:$0xff] }
 0x398   :  { %7973 = vmatmul.mubr.bf16.gmra.mrb[172].mxu0 %v6676_v20  ;;  %7628 = vmatmul.mubr.bf16.gmra.mrb[80].mxu1 %v6242_v62  ;;  %v10506_v20 = vld [vmem:[%s19320_s4 + $0x150] sm:$0xff]   ;;  %v6381_v53 = vsel %vm2803_vm11, %v6311_v0, %v5595_v26  ;;  %v10507_v26 = vld [vmem:[%s19320_s4 + $0x158] sm:$0xff]  }
 0x399   :  { %v5383_v57 = vpop.permute.xlu0 %5382  ;;  %7635 = vmatprep.mubr.bf16.mxu1 %v6378_v35  ;;  %9978 = vmatpush1.bf16.msra.mxu1 %v10505_v37  ;;  %v21006_v35 = vld [vmem:[#allocation260_spill] sm:$0xff]  ;;  %v21008_v37 = vld [vmem:[#allocation157_spill] sm:$0xff] }
 0x39a   :  { %5612 = vrot.lane.b32.xlu1 %v16988_v55, %s10550_s22  ;;  %v16999_v50 = vpop.permute.xlu1 %6580  ;;  %9963 = vmatprep.subr.bf16.mxu1 %v20970_v59  ;;  %v6115_v18 = vsel %vm2641_vm9, %v21003_v12, %v5383_v57 }
 0x39b   :  { %5468 = vrot.lane.b32.xlu0 %v20998_v25, %s10549_s21 }
 0x39d   :  { %v5453_v21 = vpop.permute.xlu0 %5452  ;;  %9979 = vmatpush1.bf16.msra.mxu1 %v10506_v20 }
 0x39e   :  { %v6181_v8 = vsel %vm2738_vm10, %v6115_v18, %v5453_v21  ;;  %5404 = vrot.lane.b32.xlu1 %v21005_v43, %s10548_s16  ;;  %v17015_v25 = vpop.permute.xlu1 %6506  ;;  %9964 = vmatprep.subr.bf16.mxu1 %v20970_v59  ;;  %v9592_v21 = vcombine.low %v16503_v46, %v16482_v51 }
 0x39f   :  { %6520 = vrot.lane.b32.xlu0 %v21006_v35, %s10550_s22  ;;  %v6244_v52 = vsel %vm2803_vm11, %v6181_v8, %v21007_v22  ;;  %v10508_v22 = vld [vmem:[%s19320_s4 + $0x160] sm:$0xff]  }
 0x3a0   :  { %7636 = vmatmul.mubr.bf16.gmra.mrb[84].mxu1 %v6244_v52  ;;  %v10509_v52 = vld [vmem:[%s19320_s4 + $0x168] sm:$0xff]  }
 0x3a1   :  { %v6557_v62 = vpop.permute.xlu0 %6556  ;;  %7643 = vmatprep.mubr.bf16.mxu1 %v6381_v53  ;;  %9980 = vmatpush1.bf16.msra.mxu1 %v10507_v26  ;;  %v21010_v53 = vld [vmem:[#allocation191_spill] sm:$0xff] }
 0x3a2   :  { %v6740_v57 = vsel %vm2641_vm9, %v20989_v30, %v6557_v62  ;;  %5474 = vrot.lane.b32.xlu1 %v21008_v37, %s10549_s21  ;;  %v5527_v12 = vpop.permute.xlu1 %5526  ;;  %9965 = vmatprep.subr.bf16.mxu1 %v20970_v59  ;;  %v6679_v43 = vsel %vm2803_vm11, %v21010_v53, %v16947_v36  ;;  %v21012_v62 = vld [vmem:[#allocation17_spill] sm:$0xff]  ;;  %v21013_v37 = vld [vmem:[#allocation19_spill] sm:$0xff] }
 0x3a3   :  { %5540 = vrot.lane.b32.xlu0 %v16434_v16, %s10549_s21  ;;  %v3646_v18 = vpop.f32.mrb[108].mxu0  ;;  %v6763_v30 = vsel %vm2738_vm10, %v6740_v57, %v16933_v39 }
 0x3a4   :  { %v17035_v14 = vadd.f32 %v16285_v1, %v3646_v18  ;;  %v3648_v0 = vpop.f32.mrb[109].mxu0  ;;  %v6313_v18 = vsel %vm2738_vm10, %v21013_v37, %v5527_v12 }
 0x3a5   :  { %v6601_v20 = vpop.permute.xlu0 %6600  ;;  %v3649_v8 = vpop.f32.mrb[110].mxu0  ;;  %9981 = vmatpush1.bf16.msra.mxu1 %v10508_v22  ;;  %v10510_v0 = vld [vmem:[%s19320_s4 + $0x170] sm:$0xff]  }
 0x3a6   :  { %21009 = vst [vmem:[#allocation197_spill] sm:$0xff] %v17035_v14  ;;  %v17046_v51 = vadd.f32 %v16304_v40, %v3649_v8  ;;  %v3651_v1 = vpop.f32.mrb[111].mxu0  ;;  %v6779_v46 = vsel %vm2803_vm11, %v6763_v30, %v6601_v20  ;;  %6526 = vrot.lane.b32.xlu1 %v16363_v32, %s10550_s22  ;;  %v5597_v39 = vpop.permute.xlu1 %5596  ;;  %9966 = vmatprep.subr.bf16.mxu1 %v20970_v59  ;;  %v21014_v8 = vld [vmem:[#allocation213_spill] sm:$0xff]  ;;  %v21080_v14 = vld [vmem:[#allocation6_spill] sm:$0xff] }
 0x3a7   :  { %5610 = vrot.lane.b32.xlu0 %v9592_v21, %s10550_s22  ;;  %7980 = vmatprep.mubr.bf16.mxu0 %v6779_v46  ;;  %v6384_v20 = vsel %vm2803_vm11, %v6313_v18, %v5597_v39  ;;  %v10511_v1 = vld [vmem:[%s19320_s4 + $0x178] sm:$0xff]  }
 0x3a8   :  { %21011 = vst [vmem:[#allocation130_spill] sm:$0xff] %v17046_v51  ;;  %7981 = vmatmul.mubr.bf16.gmra.mrb[176].mxu0 %v6679_v43  ;;  %v21015_v43 = vld [vmem:[#allocation115_spill] sm:$0xff] }
 0x3a9   :  { %v5385_v36 = vpop.permute.xlu0 %5384  ;;  %9982 = vmatpush1.bf16.msra.mxu1 %v10509_v52  ;;  %v21016_v52 = vld [vmem:[#allocation199_spill] sm:$0xff] }
 0x3aa   :  { %5546 = vrot.lane.b32.xlu1 %v20972_v19, %s10549_s21  ;;  %v6459_v40 = vpop.permute.xlu1 %6458  ;;  %9967 = vmatprep.subr.bf16.mxu1 %v20970_v59  ;;  %v6117_v26 = vsel %vm2641_vm9, %v21012_v62, %v5385_v36  ;;  %v6682_v62 = vsel %vm2803_vm11, %v21016_v52, %v17015_v25 }
 0x3ab   :  { %5402 = vrot.lane.b32.xlu0 %v16434_v16, %s10548_s16 }
 0x3ad   :  { %v5455_v57 = vpop.permute.xlu0 %5454  ;;  %9983 = vmatpush1.bf16.msra.mxu1 %v10510_v0 }
 0x3ae   :  { %v6183_v30 = vsel %vm2738_vm10, %v6117_v26, %v5455_v57  ;;  %5616 = vrot.lane.b32.xlu1 %v21014_v8, %s10550_s22  ;;  %v6467_v53 = vpop.permute.xlu1 %6466  ;;  %9968 = vmatprep.subr.bf16.mxu1 %v20970_v59 }
 0x3af   :  { %5472 = vrot.lane.b32.xlu0 %v9592_v21, %s10549_s21  ;;  %v6246_v12 = vsel %vm2803_vm11, %v6183_v30, %v21015_v43  ;;  %v21021_v43 = vld [vmem:[#allocation20_spill] sm:$0xff] }
 0x3b0   :  { %7644 = vmatmul.mubr.bf16.gmra.mrb[88].mxu1 %v6246_v12 }
 0x3b1   :  { %v6559_v22 = vpop.permute.xlu0 %6558  ;;  %7651 = vmatprep.mubr.bf16.mxu1 %v6384_v20  ;;  %9984 = vmatpush1.bf16.msra.mxu1 %v10511_v1 }
 0x3b2   :  { %v6743_v46 = vsel %vm2641_vm9, %v9592_v21, %v6559_v22  ;;  %5408 = vrot.lane.b32.xlu1 %v20972_v19, %s10548_s16  ;;  %v6509_v39 = vpop.permute.xlu1 %6508  ;;  %v21017_v19 = vld [vmem:[#allocation251_spill] sm:$0xff]  ;;  %v21022_v22 = vld [vmem:[#allocation22_spill] sm:$0xff] }
 0x3b3   :  { %6524 = vrot.lane.b32.xlu0 %v16376_v56, %s10550_s22  ;;  %v6765_v59 = vsel %vm2738_vm10, %v6743_v46, %v16999_v50 }
 0x3b5   :  { %v6603_v36 = vpop.permute.xlu0 %6602 }
 0x3b6   :  { %v6782_v26 = vsel %vm2803_vm11, %v6765_v59, %v6603_v36  ;;  %5478 = vrot.lane.b32.xlu1 %v21014_v8, %s10549_s21  ;;  %v5529_v21 = vpop.permute.xlu1 %5528  ;;  %v21020_v8 = vld [vmem:[#allocation110_spill] sm:$0xff]  ;;  %v21023_v36 = vld [vmem:[#allocation132_spill] sm:$0xff] }
 0x3b7   :  { %5544 = vrot.lane.b32.xlu0 %v21017_v19, %s10549_s21  ;;  %v3654_v57 = vpop.f32.mrb[112].mxu0  ;;  %7988 = vmatprep.mubr.bf16.mxu0 %v6782_v26  ;;  %v6315_v1 = vsel %vm2738_vm10, %v21022_v22, %v5529_v21  ;;  %v21024_v26 = vld [vmem:[#allocation227_spill] sm:$0xff]  ;;  %v21026_v22 = vld [vmem:[#allocation137_spill] sm:$0xff] }
 0x3b8   :  { %v17095_v37 = vadd.f32 %v16515_v24, %v3654_v57  ;;  %v3656_v50 = vpop.f32.mrb[113].mxu0  ;;  %7989 = vmatmul.mubr.bf16.gmra.mrb[180].mxu0 %v6682_v62  ;;  %v6624_v57 = vsel %vm2641_vm9, %v20921_v49, %v6459_v40 }
 0x3b9   :  { %v5387_v18 = vpop.permute.xlu0 %5386  ;;  %v3657_v0 = vpop.f32.mrb[114].mxu0 }
 0x3ba   :  { %21018 = vst [vmem:[#allocation138_spill] sm:$0xff] %v17095_v37  ;;  %v17098_v25 = vadd.f32 %v16557_v47, %v3657_v0  ;;  %v3659_v30 = vpop.f32.mrb[115].mxu0  ;;  %6530 = vrot.lane.b32.xlu1 %v16470_v3, %s10550_s22  ;;  %v5599_v20 = vpop.permute.xlu1 %5598  ;;  %v6119_v12 = vsel %vm2641_vm9, %v21021_v43, %v5387_v18  ;;  %v6635_v0 = vsel %vm2738_vm10, %v6624_v57, %v6467_v53 }
 0x3bb   :  { %5614 = vrot.lane.b32.xlu0 %v21020_v8, %s10550_s22  ;;  %v6387_v47 = vsel %vm2803_vm11, %v6315_v1, %v5599_v20 }
 0x3bc   :  { %21019 = vst [vmem:[#allocation21_spill] sm:$0xff] %v17098_v25  ;;  %v21079_v25 = vld [vmem:[#allocation198_spill] sm:$0xff] }
 0x3bd   :  { %v5457_v24 = vpop.permute.xlu0 %5456 }
 0x3be   :  { %v6185_v46 = vsel %vm2738_vm10, %v6119_v12, %v5457_v24  ;;  %5550 = vrot.lane.b32.xlu1 %v20991_v27, %s10549_s21  ;;  %v6461_v59 = vpop.permute.xlu1 %6460 }
 0x3bf   :  { %5406 = vrot.lane.b32.xlu0 %v21017_v19, %s10548_s16  ;;  %v6248_v52 = vsel %vm2803_vm11, %v6185_v46, %v21023_v36  ;;  %v21029_v36 = vld [vmem:[#allocation23_spill] sm:$0xff] }
 0x3c0   :  { %7652 = vmatmul.mubr.bf16.gmra.mrb[92].mxu1 %v6248_v52 }
 0x3c1   :  { %v6561_v62 = vpop.permute.xlu0 %6560  ;;  %7659 = vmatprep.mubr.bf16.mxu1 %v6387_v47  ;;  %v21028_v47 = vld [vmem:[#allocation222_spill] sm:$0xff] }
 0x3c2   :  { %5620 = vrot.lane.b32.xlu1 %v21024_v26, %s10550_s22  ;;  %v6469_v21 = vpop.permute.xlu1 %6468  ;;  %v6746_v18 = vsel %vm2641_vm9, %v16988_v55, %v6561_v62  ;;  %v21030_v62 = vld [vmem:[#allocation35_spill] sm:$0xff] }
 0x3c3   :  { %5476 = vrot.lane.b32.xlu0 %v21020_v8, %s10549_s21  ;;  %v6685_v8 = vsel %vm2803_vm11, %v6635_v0, %v6509_v39 }
 0x3c5   :  { %v6583_v50 = vpop.permute.xlu0 %6582 }
 0x3c6   :  { %5412 = vrot.lane.b32.xlu1 %v20991_v27, %s10548_s16  ;;  %v6511_v19 = vpop.permute.xlu1 %6510  ;;  %v6767_v30 = vsel %vm2738_vm10, %v6746_v18, %v6583_v50  ;;  %v21031_v50 = vld [vmem:[#allocation135_spill] sm:$0xff] }
 0x3c7   :  { %6528 = vrot.lane.b32.xlu0 %v16488_v2, %s10550_s22 }
 0x3c9   :  { %v6605_v20 = vpop.permute.xlu0 %6604 }
 0x3ca   :  { %v6785_v49 = vsel %vm2803_vm11, %v6767_v30, %v6605_v20  ;;  %5482 = vrot.lane.b32.xlu1 %v21024_v26, %s10549_s21  ;;  %v5531_v40 = vpop.permute.xlu1 %5530  ;;  %v21032_v30 = vld [vmem:[#allocation149_spill] sm:$0xff] }
 0x3cb   :  { %5548 = vrot.lane.b32.xlu0 %v20960_v23, %s10549_s21  ;;  %v3662_v43 = vpop.f32.mrb[116].mxu0  ;;  %7996 = vmatprep.mubr.bf16.mxu0 %v6785_v49  ;;  %v6317_v26 = vsel %vm2738_vm10, %v21030_v62, %v5531_v40  ;;  %v9600_v40 = vcombine.low %v16635_v10, %v16640_v48  ;;  %v21036_v62 = vld [vmem:[#allocation58_spill] sm:$0xff] }
 0x3cc   :  { %v17137_v55 = vadd.f32 %v16509_v15, %v3662_v43  ;;  %v3664_v53 = vpop.f32.mrb[117].mxu0  ;;  %7997 = vmatmul.mubr.bf16.gmra.mrb[184].mxu0 %v6685_v8  ;;  %v21033_v43 = vld [vmem:[#allocation170_spill] sm:$0xff] }
 0x3cd   :  { %v5389_v12 = vpop.permute.xlu0 %5388  ;;  %v3665_v24 = vpop.f32.mrb[118].mxu0  ;;  %v6627_v53 = vsel %vm2641_vm9, %v21033_v43, %v6461_v59 }
 0x3ce   :  { %21025 = vst [vmem:[#allocation7_spill] sm:$0xff] %v17137_v55  ;;  %v17140_v39 = vadd.f32 %v21026_v22, %v3665_v24  ;;  %v3667_v1 = vpop.f32.mrb[119].mxu0  ;;  %5414 = vrot.lane.b32.xlu1 %v20982_v38, %s10548_s16  ;;  %v5601_v46 = vpop.permute.xlu1 %5600  ;;  %v6121_v52 = vsel %vm2641_vm9, %v21029_v36, %v5389_v12  ;;  %v21034_v24 = vld [vmem:[#allocation141_spill] sm:$0xff]  ;;  %v6637_v36 = vsel %vm2738_vm10, %v6627_v53, %v6469_v21  ;;  %v21042_v53 = vld [vmem:[#allocation24_spill] sm:$0xff] }
 0x3cf   :  { %5618 = vrot.lane.b32.xlu0 %v21028_v47, %s10550_s22  ;;  %v6390_v18 = vsel %vm2803_vm11, %v6317_v26, %v5601_v46  ;;  %v21035_v1 = vld [vmem:[#allocation74_spill] sm:$0xff]  ;;  %v6688_v10 = vsel %vm2803_vm11, %v6637_v36, %v6511_v19  ;;  %v21039_v19 = vld [vmem:[#allocation156_spill] sm:$0xff] }
 0x3d0   :  { %21027 = vst [vmem:[#allocation65_spill] sm:$0xff] %v17140_v39  ;;  %v21078_v55 = vld [vmem:[#allocation240_spill] sm:$0xff] }
 0x3d1   :  { %v5459_v15 = vpop.permute.xlu0 %5458 }
 0x3d2   :  { %v6187_v57 = vsel %vm2738_vm10, %v6121_v52, %v5459_v15  ;;  %5484 = vrot.lane.b32.xlu1 %v21031_v50, %s10549_s21  ;;  %v5393_v0 = vpop.permute.xlu1 %5392 }
 0x3d3   :  { %5410 = vrot.lane.b32.xlu0 %v20960_v23, %s10548_s16  ;;  %v6250_v20 = vsel %vm2803_vm11, %v6187_v57, %v21032_v30  ;;  %v21038_v30 = vld [vmem:[#allocation97_spill] sm:$0xff] }
 0x3d4   :  { %7660 = vmatmul.mubr.bf16.gmra.mrb[96].mxu1 %v6250_v20 }
 0x3d5   :  { %v6563_v8 = vpop.permute.xlu0 %6562  ;;  %7667 = vmatprep.mubr.bf16.mxu1 %v6390_v18 }
 0x3d6   :  { %5416 = vrot.lane.b32.xlu1 %v21006_v35, %s10548_s16  ;;  %v5463_v49 = vpop.permute.xlu1 %5462  ;;  %v6749_v46 = vsel %vm2641_vm9, %v9600_v40, %v6563_v8  ;;  %v21041_v40 = vld [vmem:[#allocation144_spill] sm:$0xff] }
 0x3d7   :  { %5480 = vrot.lane.b32.xlu0 %v21028_v47, %s10549_s21 }
 0x3d9   :  { %v6585_v12 = vpop.permute.xlu0 %6584 }
 0x3da   :  { %5486 = vrot.lane.b32.xlu1 %v21034_v24, %s10549_s21  ;;  %v6515_v22 = vpop.permute.xlu1 %6514  ;;  %v6769_v47 = vsel %vm2738_vm10, %v6749_v46, %v6585_v12 }
 0x3db   :  { %6532 = vrot.lane.b32.xlu0 %v21035_v1, %s10550_s22 }
 0x3dd   :  { %v6607_v52 = vpop.permute.xlu0 %6606 }
 0x3de   :  { %v6788_v48 = vsel %vm2803_vm11, %v6769_v47, %v6607_v52  ;;  %5418 = vrot.lane.b32.xlu1 %v16277_v28, %s10548_s16  ;;  %v5535_v59 = vpop.permute.xlu1 %5534  ;;  %v21043_v47 = vld [vmem:[#allocation153_spill] sm:$0xff] }
 0x3df   :  { %5552 = vrot.lane.b32.xlu0 %v20982_v38, %s10549_s21  ;;  %v3670_v15 = vpop.f32.mrb[120].mxu0  ;;  %8004 = vmatprep.mubr.bf16.mxu0 %v6788_v48 }
 0x3e0   :  { %v17180_v26 = vadd.f32 %v21036_v62, %v3670_v15  ;;  %v3672_v21 = vpop.f32.mrb[121].mxu0  ;;  %8005 = vmatmul.mubr.bf16.gmra.mrb[188].mxu0 %v6688_v10  ;;  %v21045_v62 = vld [vmem:[#allocation29_spill] sm:$0xff] }
 0x3e1   :  { %v5391_v57 = vpop.permute.xlu0 %5390  ;;  %v3673_v18 = vpop.f32.mrb[122].mxu0  ;;  %8012 = vmatprep.mubr.bf16.mxu0 %v21038_v30  ;;  %v21046_v21 = vld [vmem:[#allocation226_spill] sm:$0xff] }
 0x3e2   :  { %21037 = vst [vmem:[#allocation147_spill] sm:$0xff] %v17180_v26  ;;  %v17184_v20 = vadd.f32 %v21039_v19, %v3673_v18  ;;  %v3675_v8 = vpop.f32.mrb[123].mxu0  ;;  %5488 = vrot.lane.b32.xlu1 %v21041_v40, %s10549_s21  ;;  %v6123_v12 = vsel %vm2641_vm9, %v21042_v53, %v5391_v57  ;;  %v21047_v18 = vld [vmem:[#allocation25_spill] sm:$0xff] }
 0x3e3   :  { %5622 = vrot.lane.b32.xlu0 %v21031_v50, %s10550_s22  ;;  %v21044_v50 = vld [vmem:[#allocation207_spill] sm:$0xff]  ;;  %v6125_v30 = vsel %vm2641_vm9, %v21047_v18, %v5393_v0 }
 0x3e4   :  { %21040 = vst [vmem:[#allocation208_spill] sm:$0xff] %v17184_v20  ;;  %v5605_v43 = vpop.permute.xlu1 %5604  ;;  %v6191_v8 = vsel %vm2738_vm10, %v6125_v30, %v5463_v49  ;;  %v21053_v30 = vld [vmem:[#allocation41_spill] sm:$0xff] }
 0x3e5   :  { %v5461_v46 = vpop.permute.xlu0 %5460 }
 0x3e6   :  { %v6189_v36 = vsel %vm2738_vm10, %v6123_v12, %v5461_v46  ;;  %5420 = vrot.lane.b32.xlu1 %v16376_v56, %s10548_s16  ;;  %v21048_v12 = vld [vmem:[#allocation165_spill] sm:$0xff] }
 0x3e7   :  { %5554 = vrot.lane.b32.xlu0 %v21006_v35, %s10549_s21  ;;  %v6252_v52 = vsel %vm2803_vm11, %v6189_v36, %v21043_v47  ;;  %v21049_v36 = vld [vmem:[#allocation182_spill] sm:$0xff] }
 0x3e8   :  { %7668 = vmatmul.mubr.bf16.gmra.mrb[100].mxu1 %v6252_v52  ;;  %v5397_v10 = vpop.permute.xlu1 %5396  ;;  %v6694_v47 = vsel %vm2803_vm11, %v21049_v36, %v6515_v22  ;;  %v21050_v52 = vld [vmem:[#allocation59_spill] sm:$0xff] }
 0x3e9   :  { %v6513_v48 = vpop.permute.xlu0 %6512  ;;  %v6321_v0 = vsel %vm2738_vm10, %v21050_v52, %v5535_v59 }
 0x3ea   :  { %v6691_v15 = vsel %vm2803_vm11, %v21044_v50, %v6513_v48  ;;  %5490 = vrot.lane.b32.xlu1 %v21045_v62, %s10549_s21  ;;  %v6396_v50 = vsel %vm2803_vm11, %v6321_v0, %v5605_v43 }
 0x3eb   :  { %5624 = vrot.lane.b32.xlu0 %v21034_v24, %s10550_s22  ;;  %8013 = vmatmul.mubr.bf16.gmra.mrb[192].mxu0 %v6691_v15  ;;  %v21051_v15 = vld [vmem:[#allocation146_spill] sm:$0xff] }
 0x3ec   :  { %8020 = vmatprep.mubr.bf16.mxu0 %v21046_v21  ;;  %v5467_v57 = vpop.permute.xlu1 %5466  ;;  %v21052_v21 = vld [vmem:[#allocation46_spill] sm:$0xff] }
 0x3ed   :  { %v5533_v19 = vpop.permute.xlu0 %5532  ;;  %v6254_v18 = vsel %vm2803_vm11, %v6191_v8, %v21052_v21 }
 0x3ee   :  { %5422 = vrot.lane.b32.xlu1 %v16363_v32, %s10548_s16  ;;  %v6319_v24 = vsel %vm2738_vm10, %v21048_v12, %v5533_v19  ;;  %v21055_v12 = vld [vmem:[#allocation235_spill] sm:$0xff] }
 0x3ef   :  { %5556 = vrot.lane.b32.xlu0 %v16277_v28, %s10549_s21 }
 0x3f0   :  { %v6519_v53 = vpop.permute.xlu1 %6518 }
 0x3f1   :  { %v5603_v46 = vpop.permute.xlu0 %5602 }
 0x3f2   :  { %v6393_v48 = vsel %vm2803_vm11, %v6319_v24, %v5603_v46  ;;  %5492 = vrot.lane.b32.xlu1 %v21051_v15, %s10549_s21  ;;  %v21056_v46 = vld [vmem:[#allocation174_spill] sm:$0xff] }
 0x3f3   :  { %5626 = vrot.lane.b32.xlu0 %v21041_v40, %s10550_s22  ;;  %v3678_v49 = vpop.f32.mrb[124].mxu0  ;;  %7675 = vmatprep.mubr.bf16.mxu1 %v6393_v48 }
 0x3f4   :  { %v17228_v22 = vadd.f32 %v21053_v30, %v3678_v49  ;;  %8021 = vmatmul.mubr.bf16.gmra.mrb[196].mxu0 %v6694_v47  ;;  %v3680_v59 = vpop.f32.mrb[125].mxu0  ;;  %7676 = vmatmul.mubr.bf16.gmra.mrb[104].mxu1 %v6254_v18  ;;  %v5539_v19 = vpop.permute.xlu1 %5538  ;;  %v21058_v47 = vld [vmem:[#allocation27_spill] sm:$0xff] }
 0x3f5   :  { %8028 = vmatprep.mubr.bf16.mxu0 %v21055_v12  ;;  %v5395_v43 = vpop.permute.xlu0 %5394  ;;  %v3681_v24 = vpop.f32.mrb[126].mxu0  ;;  %7683 = vmatprep.mubr.bf16.mxu1 %v6396_v50  ;;  %v21059_v49 = vld [vmem:[#allocation83_spill] sm:$0xff]  ;;  %v21060_v50 = vld [vmem:[#allocation169_spill] sm:$0xff] }
 0x3f6   :  { %21054 = vst [vmem:[#allocation5_spill] sm:$0xff] %v17228_v22  ;;  %v17232_v36 = vadd.f32 %v21056_v46, %v3681_v24  ;;  %v3683_v40 = vpop.f32.mrb[127].mxu0  ;;  %5424 = vrot.lane.b32.xlu1 %v16488_v2, %s10548_s16  ;;  %v6127_v52 = vsel %vm2641_vm9, %v21058_v47, %v5395_v43  ;;  %v21061_v12 = vld [vmem:[#allocation215_spill] sm:$0xff]  ;;  %v21063_v47 = vld [vmem:[#allocation28_spill] sm:$0xff] }
 0x3f7   :  { %5558 = vrot.lane.b32.xlu0 %v16376_v56, %s10549_s21  ;;  %v21062_v46 = vld [vmem:[#allocation111_spill] sm:$0xff]  ;;  %v21067_v22 = vld [vmem:[#allocation152_spill] sm:$0xff] }
 0x3f8   :  { %21057 = vst [vmem:[#allocation259_spill] sm:$0xff] %v17232_v36  ;;  %v5609_v8 = vpop.permute.xlu1 %5608 }
 0x3f9   :  { %v5465_v0 = vpop.permute.xlu0 %5464 }
 0x3fa   :  { %v6193_v48 = vsel %vm2738_vm10, %v6127_v52, %v5465_v0  ;;  %5494 = vrot.lane.b32.xlu1 %v21059_v49, %s10549_s21  ;;  %v6129_v52 = vsel %vm2641_vm9, %v21063_v47, %v5397_v10  ;;  %v6325_v10 = vsel %vm2738_vm10, %v21067_v22, %v5539_v19 }
 0x3fb   :  { %5628 = vrot.lane.b32.xlu0 %v21045_v62, %s10550_s22  ;;  %v6256_v21 = vsel %vm2803_vm11, %v6193_v48, %v21060_v50  ;;  %v21064_v50 = vld [vmem:[#allocation43_spill] sm:$0xff] }
 0x3fc   :  { %7684 = vmatmul.mubr.bf16.gmra.mrb[108].mxu1 %v6256_v21  ;;  %v17247_v18 = vpop.permute.xlu1 %5400  ;;  %v6195_v21 = vsel %vm2738_vm10, %v6129_v52, %v5467_v57  ;;  %v21068_v57 = vld [vmem:[#allocation173_spill] sm:$0xff] }
 0x3fd   :  { %v6517_v30 = vpop.permute.xlu0 %6516  ;;  %v6258_v52 = vsel %vm2803_vm11, %v6195_v21, %v21068_v57 }
 0x3fe   :  { %v17249_v59 = vpop.f32.mrb[128].mxu0  ;;  %v6697_v43 = vsel %vm2803_vm11, %v21061_v12, %v6517_v30  ;;  %5426 = vrot.lane.b32.xlu1 %v16470_v3, %s10548_s16  ;;  %v21065_v12 = vld [vmem:[#allocation133_spill] sm:$0xff] }
 0x3ff   :  { %5560 = vrot.lane.b32.xlu0 %v16363_v32, %s10549_s21  ;;  %v7888_v24 = vpop.f32.mrb[129].mxu0  ;;  %8029 = vmatmul.mubr.bf16.gmra.mrb[200].mxu0 %v6697_v43 }
 0x400   :  { %v17257_v62 = vpop.f32.mrb[130].mxu0  ;;  %8036 = vmatprep.mubr.bf16.mxu0 %v21062_v46  ;;  %v5471_v40 = vpop.permute.xlu1 %5470  ;;  %v21066_v46 = vld [vmem:[#allocation193_spill] sm:$0xff] }
 0x401   :  { %v5537_v0 = vpop.permute.xlu0 %5536  ;;  %v7891_v48 = vpop.f32.mrb[131].mxu0  ;;  %v6700_v36 = vsel %vm2803_vm11, %v21066_v46, %v6519_v53  ;;  %v21071_v46 = vld [vmem:[#allocation32_spill] sm:$0xff] }
 0x402   :  { %5496 = vrot.lane.b32.xlu1 %v21064_v50, %s10549_s21  ;;  %v6323_v43 = vsel %vm2738_vm10, %v21065_v12, %v5537_v0  ;;  %v6402_v48 = vsel %vm2803_vm11, %v6325_v10, %v5609_v8  ;;  %v21069_v0 = vld [vmem:[#allocation204_spill] sm:$0xff] }
 0x403   :  { %5630 = vrot.lane.b32.xlu0 %v21051_v15, %s10550_s22 }
 0x404   :  { %v6523_v30 = vpop.permute.xlu1 %6522 }
 0x405   :  { %v5607_v24 = vpop.permute.xlu0 %5606 }
 0x406   :  { %v6399_v47 = vsel %vm2803_vm11, %v6323_v43, %v5607_v24  ;;  %5428 = vrot.lane.b32.xlu1 %v21035_v1, %s10548_s16  ;;  %v21070_v43 = vld [vmem:[#allocation221_spill] sm:$0xff] }
 0x407   :  { %v17277_v15 = vpop.f32.mrb[132].mxu0  ;;  %5562 = vrot.lane.b32.xlu0 %v16488_v2, %s10549_s21  ;;  %7691 = vmatprep.mubr.bf16.mxu1 %v6399_v47  ;;  %v21072_v47 = vld [vmem:[#allocation71_spill] sm:$0xff] }
 0x408   :  { %v7896_v53 = vpop.f32.mrb[133].mxu0  ;;  %8037 = vmatmul.mubr.bf16.gmra.mrb[204].mxu0 %v6700_v36  ;;  %7692 = vmatmul.mubr.bf16.gmra.mrb[112].mxu1 %v6258_v52  ;;  %v5543_v22 = vpop.permute.xlu1 %5542 }
 0x409   :  { %v17283_v19 = vpop.f32.mrb[134].mxu0  ;;  %8044 = vmatprep.mubr.bf16.mxu0 %v21069_v0  ;;  %v5399_v8 = vpop.permute.xlu0 %5398  ;;  %7699 = vmatprep.mubr.bf16.mxu1 %v6402_v48  ;;  %v21073_v48 = vld [vmem:[#allocation177_spill] sm:$0xff]  ;;  %v10512_v53 = vld [vmem:[%s19316_s0 + $0x1b4] sm:$0xf]  ;;  %v6329_v37 = vsel %vm2738_vm10, %v21079_v25, %v5543_v22 }
 0x40a   :  { %v7899_v12 = vpop.f32.mrb[135].mxu0  ;;  %5498 = vrot.lane.b32.xlu1 %v21070_v43, %s10549_s21  ;;  %v6131_v21 = vsel %vm2641_vm9, %v21071_v46, %v5399_v8  ;;  %v4733_v0 = vrot.slane %v10512_v53, 6 }
 0x40b   :  { %5632 = vrot.lane.b32.xlu0 %v21059_v49, %s10550_s22  ;;  %v21074_v12 = vld [vmem:[#allocation230_spill] sm:$0xff] }
 0x40c   :  { %v5613_v24 = vpop.permute.xlu1 %5612 }
 0x40d   :  { %v5469_v36 = vpop.permute.xlu0 %5468 }
 0x40e   :  { %v6197_v10 = vsel %vm2738_vm10, %v6131_v21, %v5469_v36  ;;  %5430 = vrot.lane.b32.xlu1 %v21072_v47, %s10548_s16 }
 0x40f   :  { %5564 = vrot.lane.b32.xlu0 %v16470_v3, %s10549_s21  ;;  %v6260_v57 = vsel %vm2803_vm11, %v6197_v10, %v21073_v48  ;;  %v21075_v10 = vld [vmem:[#allocation37_spill] sm:$0xff]  ;;  %v21122_v3 = vld [vmem:[#allocation150_spill] sm:$0xff] }
 0x410   :  { %7700 = vmatmul.mubr.bf16.gmra.mrb[116].mxu1 %v6260_v57  ;;  %v17299_v52 = vpop.permute.xlu1 %5404  ;;  %v10513_v57 = vld [vmem:[%s19316_s0 + $0x1b0] sm:$0xf] }
 0x411   :  { %v6521_v49 = vpop.permute.xlu0 %6520  ;;  %v9509_v53 = vrot.slane %v10513_v57, 10 }
 0x412   :  { %v17304_v8 = vpop.f32.mrb[136].mxu0  ;;  %v6703_v46 = vsel %vm2803_vm11, %v21074_v12, %v6521_v49  ;;  %5500 = vrot.lane.b32.xlu1 %v20951_v61, %s10549_s21  ;;  %v21076_v49 = vld [vmem:[#allocation39_spill] sm:$0xff] }
 0x413   :  { %5634 = vrot.lane.b32.xlu0 %v21064_v50, %s10550_s22  ;;  %v7904_v21 = vpop.f32.mrb[137].mxu0  ;;  %8045 = vmatmul.mubr.bf16.gmra.mrb[208].mxu0 %v6703_v46  ;;  %v6133_v12 = vsel %vm2641_vm9, %v21076_v49, %v17247_v18  ;;  %v4735_v50 = vrot.slane %v4733_v0, 4  ;;  %v10514_v46 = vld [vmem:[%s19316_s0 + $0x1b8] sm:$0x3]  ;;  %v4734_v18 = vsel %vm12765_vm14, %v9509_v53, %v4733_v0 }
 0x414   :  { %v17312_v36 = vpop.f32.mrb[138].mxu0  ;;  %8052 = vmatprep.mubr.bf16.mxu0 %v21075_v10  ;;  %v17315_v48 = vpop.permute.xlu1 %5474  ;;  %v4736_v21 = vrot.slane %v10514_v46, 6  ;;  %v6199_v10 = vsel %vm2738_vm10, %v6133_v12, %v5471_v40  ;;  %v6706_v46 = vsel %vm2803_vm11, %v21078_v55, %v6523_v30  ;;  %v6408_v12 = vsel %vm2803_vm11, %v6329_v37, %v5613_v24  ;;  %v21081_v55 = vld [vmem:[#allocation124_spill] sm:$0xff]  ;;  %v21083_v37 = vld [vmem:[#allocation225_spill] sm:$0xff] }
 0x415   :  { %v5541_v20 = vpop.permute.xlu0 %5540  ;;  %v7907_v26 = vpop.f32.mrb[139].mxu0 }
 0x416   :  { %5432 = vrot.lane.b32.xlu1 %v16752_v29, %s10548_s16  ;;  %v21077_v26 = vld [vmem:[#allocation190_spill] sm:$0xff]  ;;  %v4737_v51 = vsel %vm12765_vm14, %v4735_v50, %v4736_v21 }
 0x417   :  { %5566 = vrot.lane.b32.xlu0 %v21035_v1, %s10549_s21  ;;  %v6327_v49 = vsel %vm2738_vm10, %v21077_v26, %v5541_v20  ;;  %v6262_v20 = vsel %vm2803_vm11, %v6199_v10, %v21081_v55  ;;  %v17353_v30 = vcombine.low %v4734_v18, %v4737_v51  ;;  %v10516_v51 = vld [vmem:[%s19316_s0 + $0x1c0] sm:$0xf] }
 0x418   :  { %v17331_v57 = vpop.permute.xlu1 %6526  ;;  %v21085_v10 = vld [vmem:[#allocation45_spill] sm:$0xff] }
 0x419   :  { %v5611_v39 = vpop.permute.xlu0 %5610  ;;  %21082 = vst [vmem:[#allocation8_spill] sm:$0xff] %v17353_v30 }
 0x41a   :  { %v6405_v40 = vsel %vm2803_vm11, %v6327_v49, %v5611_v39  ;;  %5502 = vrot.lane.b32.xlu1 %v21080_v14, %s10549_s21 }
 0x41b   :  { %v17347_v0 = vpop.f32.mrb[140].mxu0  ;;  %5636 = vrot.lane.b32.xlu0 %v21070_v43, %s10550_s22  ;;  %7707 = vmatprep.mubr.bf16.mxu1 %v6405_v40  ;;  %v10515_v43 = vld [vmem:[%s19316_s0 + $0x1bc] sm:$0xf] }
 0x41c   :  { %v7912_v25 = vpop.f32.mrb[141].mxu0  ;;  %8053 = vmatmul.mubr.bf16.gmra.mrb[212].mxu0 %v6706_v46  ;;  %7708 = vmatmul.mubr.bf16.gmra.mrb[120].mxu1 %v6262_v20  ;;  %v5547_v39 = vpop.permute.xlu1 %5546  ;;  %v17368_v50 = vcombine.low %v10515_v43, %v10516_v51  ;;  %v21086_v46 = vld [vmem:[#allocation158_spill] sm:$0xff] }
 0x41d   :  { %v17355_v22 = vpop.f32.mrb[142].mxu0  ;;  %8060 = vmatprep.mubr.bf16.mxu0 %v21083_v37  ;;  %v5403_v24 = vpop.permute.xlu0 %5402  ;;  %7715 = vmatprep.mubr.bf16.mxu1 %v6408_v12  ;;  %v21087_v25 = vld [vmem:[#allocation250_spill] sm:$0xff]  ;;  %v6333_v7 = vsel %vm2738_vm10, %v21093_v9, %v5547_v39 }
 0x41e   :  { %v7915_v53 = vpop.f32.mrb[143].mxu0  ;;  %5434 = vrot.lane.b32.xlu1 %v17353_v30, %s10548_s16  ;;  %21084 = vst [vmem:[#allocation34_spill] sm:$0xff] %v17368_v50  ;;  %v6135_v18 = vsel %vm2641_vm9, %v21085_v10, %v5403_v24  ;;  %v4747_v10 = vrot.slane %v10516_v51, 6  ;;  %v10517_v51 = vld [vmem:[%s19316_s0 + $0x1c4] sm:$0x3] }
 0x41f   :  { %5568 = vrot.lane.b32.xlu0 %v21072_v47, %s10549_s21  ;;  %v21088_v53 = vld [vmem:[#allocation163_spill] sm:$0xff] }
 0x420   :  { %v5617_v21 = vpop.permute.xlu1 %5616 }
 0x421   :  { %v5473_v26 = vpop.permute.xlu0 %5472 }
 0x422   :  { %v6201_v49 = vsel %vm2738_vm10, %v6135_v18, %v5473_v26  ;;  %5504 = vrot.lane.b32.xlu1 %v17368_v50, %s10549_s21  ;;  %v21089_v26 = vld [vmem:[#allocation168_spill] sm:$0xff] }
 0x423   :  { %5638 = vrot.lane.b32.xlu0 %v20951_v61, %s10550_s22  ;;  %v6264_v40 = vsel %vm2803_vm11, %v6201_v49, %v21086_v46  ;;  %v6138_v49 = vsel %vm2641_vm9, %v21089_v26, %v17299_v52  ;;  %v21091_v52 = vld [vmem:[#allocation201_spill] sm:$0xff] }
 0x424   :  { %7716 = vmatmul.mubr.bf16.gmra.mrb[124].mxu1 %v6264_v40  ;;  %v17379_v12 = vpop.permute.xlu1 %5408 }
 0x425   :  { %v6525_v55 = vpop.permute.xlu0 %6524 }
 0x426   :  { %v17381_v20 = vpop.f32.mrb[144].mxu0  ;;  %v6709_v37 = vsel %vm2803_vm11, %v21087_v25, %v6525_v55  ;;  %6534 = vrot.lane.b32.xlu1 %v21072_v47, %s10550_s22  ;;  %v21090_v55 = vld [vmem:[#allocation245_spill] sm:$0xff]  ;;  %v6203_v25 = vsel %vm2738_vm10, %v6138_v49, %v17315_v48 }
 0x427   :  { %5570 = vrot.lane.b32.xlu0 %v16752_v29, %s10549_s21  ;;  %v7920_v24 = vpop.f32.mrb[145].mxu0  ;;  %8061 = vmatmul.mubr.bf16.gmra.mrb[216].mxu0 %v6709_v37  ;;  %v9511_v37 = vrot.slane %v10515_v43, 10  ;;  %v6414_v43 = vsel %vm2803_vm11, %v6333_v7, %v5617_v21 }
 0x428   :  { %v17389_v61 = vpop.f32.mrb[146].mxu0  ;;  %8068 = vmatprep.mubr.bf16.mxu0 %v21088_v53  ;;  %v17392_v18 = vpop.permute.xlu1 %5478  ;;  %v4749_v24 = vrot.slane %v4747_v10, 4  ;;  %v4750_v53 = vrot.slane %v10517_v51, 6 }
 0x429   :  { %v5545_v46 = vpop.permute.xlu0 %5544  ;;  %v7923_v40 = vpop.f32.mrb[147].mxu0  ;;  %v4748_v9 = vsel %vm12765_vm14, %v9511_v37, %v4747_v10 }
 0x42a   :  { %6586 = vrot.lane.b32.xlu1 %v21090_v55, %s10549_s21  ;;  %v6331_v26 = vsel %vm2738_vm10, %v21091_v52, %v5545_v46  ;;  %v21092_v55 = vld [vmem:[#allocation256_spill] sm:$0xff]  ;;  %v21094_v46 = vld [vmem:[#allocation42_spill] sm:$0xff]  ;;  %v4751_v7 = vsel %vm12765_vm14, %v4749_v24, %v4750_v53 }
 0x42b   :  { %5640 = vrot.lane.b32.xlu0 %v21080_v14, %s10550_s22  ;;  %v6712_v11 = vsel %vm2803_vm11, %v21092_v55, %v17331_v57  ;;  %v6266_v51 = vsel %vm2803_vm11, %v6203_v25, %v21094_v46  ;;  %v21095_v52 = vld [vmem:[#allocation62_spill] sm:$0xff]  ;;  %v21096_v55 = vld [vmem:[#allocation252_spill] sm:$0xff] }
 0x42c   :  { %v6531_v42 = vpop.permute.xlu1 %6530  ;;  %v21098_v25 = vld [vmem:[#allocation164_spill] sm:$0xff]  ;;  %v17448_v46 = vld [vmem:[%s19316_s0 + $0x1c8] sm:$0xf] }
 0x42d   :  { %v5615_v40 = vpop.permute.xlu0 %5614 }
 0x42e   :  { %v6411_v48 = vsel %vm2803_vm11, %v6331_v26, %v5615_v40  ;;  %6536 = vrot.lane.b32.xlu1 %v16752_v29, %s10550_s22 }
 0x42f   :  { %v17417_v49 = vpop.f32.mrb[148].mxu0  ;;  %5572 = vrot.lane.b32.xlu0 %v17353_v30, %s10549_s21  ;;  %7723 = vmatprep.mubr.bf16.mxu1 %v6411_v48  ;;  %v21099_v48 = vld [vmem:[#allocation93_spill] sm:$0xff] }
 0x430   :  { %v7928_v57 = vpop.f32.mrb[149].mxu0  ;;  %8069 = vmatmul.mubr.bf16.gmra.mrb[220].mxu0 %v6712_v11  ;;  %7724 = vmatmul.mubr.bf16.gmra.mrb[128].mxu1 %v6266_v51  ;;  %v5551_v39 = vpop.permute.xlu1 %5550  ;;  %v17434_v11 = vcombine.low %v4748_v9, %v4751_v7  ;;  %v17453_v51 = vld [vmem:[%s19316_s0 + $0x1cc] sm:$0xf] }
 0x431   :  { %v17427_v21 = vpop.f32.mrb[150].mxu0  ;;  %8076 = vmatprep.mubr.bf16.mxu0 %v21095_v52  ;;  %v5407_v26 = vpop.permute.xlu0 %5406  ;;  %7731 = vmatprep.mubr.bf16.mxu1 %v6414_v43  ;;  %v17457_v57 = vcombine.low %v17448_v46, %v17453_v51 }
 0x432   :  { %v7931_v40 = vpop.f32.mrb[151].mxu0  ;;  %6588 = vrot.lane.b32.xlu1 %v21096_v55, %s10549_s21  ;;  %21097 = vst [vmem:[#allocation13_spill] sm:$0xff] %v17434_v11  ;;  %v6141_v37 = vsel %vm2641_vm9, %v21098_v25, %v5407_v26  ;;  %v21101_v26 = vld [vmem:[#allocation217_spill] sm:$0xff] }
 0x433   :  { %5642 = vrot.lane.b32.xlu0 %v17368_v50, %s10550_s22  ;;  %21100 = vst [vmem:[#allocation103_spill] sm:$0xff] %v17457_v57 }
 0x434   :  { %v5621_v10 = vpop.permute.xlu1 %5620 }
 0x435   :  { %v5477_v24 = vpop.permute.xlu0 %5476 }
 0x436   :  { %v6205_v53 = vsel %vm2738_vm10, %v6141_v37, %v5477_v24  ;;  %6538 = vrot.lane.b32.xlu1 %v17353_v30, %s10550_s22  ;;  %v21102_v24 = vld [vmem:[#allocation50_spill] sm:$0xff]  ;;  %v21109_v30 = vld [vmem:[#allocation232_spill] sm:$0xff] }
 0x437   :  { %5574 = vrot.lane.b32.xlu0 %v17434_v11, %s10549_s21  ;;  %v6268_v43 = vsel %vm2803_vm11, %v6205_v53, %v21099_v48  ;;  %v21103_v48 = vld [vmem:[#allocation63_spill] sm:$0xff]  ;;  %v6718_v29 = vsel %vm2803_vm11, %v21109_v30, %v6531_v42 }
 0x438   :  { %7732 = vmatmul.mubr.bf16.gmra.mrb[132].mxu1 %v6268_v43  ;;  %v17459_v9 = vpop.permute.xlu1 %5412  ;;  %v6143_v43 = vsel %vm2641_vm9, %v21103_v48, %v17379_v12  ;;  %v4761_v12 = vrot.slane %v17453_v51, 6  ;;  %v21111_v42 = vld [vmem:[#allocation143_spill] sm:$0xff] }
 0x439   :  { %v6529_v7 = vpop.permute.xlu0 %6528 }
 0x43a   :  { %v17461_v52 = vpop.f32.mrb[152].mxu0  ;;  %v6715_v40 = vsel %vm2803_vm11, %v21101_v26, %v6529_v7  ;;  %6462 = vrot.lane.b32.xlu1 %v21096_v55, %s10548_s16  ;;  %v17480_v55 = vld [vmem:[%s19316_s0 + $0x1d4] sm:$0xf]  ;;  %v21105_v26 = vld [vmem:[#allocation148_spill] sm:$0xff] }
 0x43b   :  { %5644 = vrot.lane.b32.xlu0 %v17457_v57, %s10550_s22  ;;  %v7936_v25 = vpop.f32.mrb[153].mxu0  ;;  %8077 = vmatmul.mubr.bf16.gmra.mrb[224].mxu0 %v6715_v40  ;;  %21104 = vst [vmem:[#allocation161_spill] sm:$0xff] %v17480_v55  ;;  %v21106_v40 = vld [vmem:[#allocation243_spill] sm:$0xff] }
 0x43c   :  { %v17469_v37 = vpop.f32.mrb[154].mxu0  ;;  %8084 = vmatprep.mubr.bf16.mxu0 %v21102_v24  ;;  %v17472_v53 = vpop.permute.xlu1 %5482  ;;  %v17489_v25 = vld [vmem:[%s19316_s0 + $0x1d8] sm:$0xf]  ;;  %v6207_v24 = vsel %vm2738_vm10, %v6143_v43, %v17392_v18 }
 0x43d   :  { %v5549_v4 = vpop.permute.xlu0 %5548  ;;  %v7939_v7 = vpop.f32.mrb[155].mxu0  ;;  %21107 = vst [vmem:[#allocation10_spill] sm:$0xff] %v17489_v25 }
 0x43e   :  { %6470 = vrot.lane.b32.xlu1 %v21105_v26, %s10549_s21  ;;  %v21108_v7 = vld [vmem:[#allocation108_spill] sm:$0xff] }
 0x43f   :  { %6564 = vrot.lane.b32.xlu0 %v21106_v40, %s10548_s16  ;;  %v6335_v5 = vsel %vm2738_vm10, %v21108_v7, %v5549_v4  ;;  %v21110_v40 = vld [vmem:[#allocation76_spill] sm:$0xff] }
 0x440   :  { %v6337_v50 = vsel %vm2738_vm10, %v21110_v40, %v5551_v39  ;;  %v17501_v47 = vpop.permute.xlu1 %5414  ;;  %v21112_v39 = vld [vmem:[#allocation101_spill] sm:$0xff] }
 0x441   :  { %v5619_v57 = vpop.permute.xlu0 %5618  ;;  %v6420_v18 = vsel %vm2803_vm11, %v6337_v50, %v5621_v10  ;;  %v6270_v40 = vsel %vm2803_vm11, %v6207_v24, %v21112_v39  ;;  %v4763_v50 = vrot.slane %v4761_v12, 4  ;;  %v10520_v10 = vld [vmem:[%s19316_s0 + $0x1d0] sm:$0x3]  ;;  %v21115_v39 = vshll.u32 %v17480_v55, 16 }
 0x442   :  { %v6417_v51 = vsel %vm2803_vm11, %v6335_v5, %v5619_v57  ;;  %6540 = vrot.lane.b32.xlu1 %v17434_v11, %s10550_s22  ;;  %v9513_v5 = vrot.slane %v17448_v46, 10  ;;  %v4764_v57 = vrot.slane %v10520_v10, 6  ;;  %v21114_v46 = vshrl.u32 %v17480_v55, 16 }
 0x443   :  { %v17510_v7 = vpop.f32.mrb[156].mxu0  ;;  %6608 = vrot.lane.b32.xlu0 %v21111_v42, %s10550_s22  ;;  %v7597_v30 = vpop.f32.mrb[64].mxu1  ;;  %7739 = vmatprep.mubr.bf16.mxu1 %v6417_v51  ;;  %v4796_v11 = vrot.slane %v21115_v39, 5 }
 0x444   :  { %v17521_v43 = vadd.f32 %v17249_v59, %v7597_v30  ;;  %v7944_v4 = vpop.f32.mrb[157].mxu0  ;;  %8085 = vmatmul.mubr.bf16.gmra.mrb[228].mxu0 %v6718_v29  ;;  %v7599_v1 = vpop.f32.mrb[65].mxu1  ;;  %7740 = vmatmul.mubr.bf16.gmra.mrb[136].mxu1 %v6270_v40  ;;  %v4793_v51 = vrot.slane %v21114_v46, 4  ;;  %v21116_v59 = vshll.u32 %v17489_v25, 16  ;;  %v21117_v29 = vshrl.u32 %v17489_v25, 16  ;;  %v21118_v30 = vld [vmem:[#allocation258_spill] sm:$0xff] }
 0x445   :  { %v17523_v48 = vpop.f32.mrb[158].mxu0  ;;  %8092 = vmatprep.mubr.bf16.mxu0 %v16750_v44  ;;  %v5411_v24 = vpop.permute.xlu0 %5410  ;;  %7747 = vmatprep.mubr.bf16.mxu1 %v6420_v18  ;;  %v21120_v40 = vld [vmem:[#allocation248_spill] sm:$0xff]  ;;  %v4762_v39 = vsel %vm12765_vm14, %v9513_v5, %v4761_v12  ;;  %v21124_v5 = vld [vmem:[#allocation49_spill] sm:$0xff] }
 0x446   :  { %21113 = vst [vmem:[#allocation119_spill] sm:$0xff] %v17521_v43  ;;  %v7600_v10 = vpop.f32.mrb[66].mxu1  ;;  %v7947_v14 = vpop.f32.mrb[159].mxu0  ;;  %v17532_v4 = vrot.slane %v21116_v59, 5  ;;  %v4806_v1 = vrot.slane %v21117_v29, 4  ;;  %6464 = vrot.lane.b32.xlu1 %v21118_v30, %s10548_s16  ;;  %v4765_v59 = vsel %vm12765_vm14, %v4763_v50, %v4764_v57  ;;  %v21121_v29 = vld [vmem:[#allocation69_spill] sm:$0xff] }
 0x447   :  { %v17539_v44 = vadd.f32 %v17257_v62, %v7600_v10  ;;  %v7602_v18 = vpop.f32.mrb[67].mxu1  ;;  %6566 = vrot.lane.b32.xlu0 %v21120_v40, %s10548_s16  ;;  %v17543_v46 = vpop.permute.xlu1 %5484  ;;  %v17548_v14 = vld [vmem:[%s19316_s0 + $0x1dc] sm:$0x3]  ;;  %v6145_v62 = vsel %vm2641_vm9, %v21121_v29, %v5411_v24  ;;  %v17561_v34 = vcombine.low %v4762_v39, %v4765_v59 }
 0x448   :  { %v4797_v18 = vor.u32 %v4796_v11, %v4793_v51  ;;  %v4807_v43 = vor.u32 %v4806_v1, %v17532_v4  ;;  %v4810_v40 = vshll.u32 %v17548_v14, 16 }
 0x449   :  { %21119 = vst [vmem:[#allocation36_spill] sm:$0xff] %v17539_v44  ;;  %v5481_v10 = vpop.permute.xlu0 %5480  ;;  %21123 = vst [vmem:[#allocation30_spill] sm:$0xff] %v17561_v34 }
 0x44a   :  { %v6209_v44 = vsel %vm2738_vm10, %v6145_v62, %v5481_v10  ;;  %6472 = vrot.lane.b32.xlu1 %v21122_v3, %s10549_s21  ;;  %v4798_v29 = vrot.slane %v4797_v18, 4  ;;  %v4829_v18 = vrot.slane %v17489_v25, 5 }
 0x44b   :  { %6610 = vrot.lane.b32.xlu0 %v21105_v26, %s10550_s22  ;;  %v7605_v12 = vpop.f32.mrb[68].mxu1  ;;  %v6272_v50 = vsel %vm2803_vm11, %v6209_v44, %v21124_v5  ;;  %v17567_v57 = vpop.permute.xlu1 %5416  ;;  %v21127_v26 = vld [vmem:[#allocation180_spill] sm:$0xff]  ;;  %v4808_v44 = vrot.slane %v4807_v43, 4  ;;  %v4812_v5 = vrot.slane %v4810_v40, 5 }
 0x44c   :  { %v17570_v11 = vadd.f32 %v17277_v15, %v7605_v12  ;;  %v7607_v24 = vpop.f32.mrb[69].mxu1  ;;  %7748 = vmatmul.mubr.bf16.gmra.mrb[140].mxu1 %v6272_v50  ;;  %v21128_v15 = vld [vmem:[#allocation255_spill] sm:$0xff]  ;;  %v21129_v50 = vshrl.u32 %v17480_v55, 16 }
 0x44d   :  { %v6533_v51 = vpop.permute.xlu0 %6532  ;;  %v7608_v1 = vpop.f32.mrb[70].mxu1 }
 0x44e   :  { %21125 = vst [vmem:[#allocation38_spill] sm:$0xff] %v17570_v11  ;;  %v17573_v39 = vadd.f32 %v17283_v19, %v7608_v1  ;;  %v7610_v59 = vpop.f32.mrb[71].mxu1  ;;  %v17575_v62 = vpop.f32.mrb[160].mxu0  ;;  %v6721_v10 = vsel %vm2803_vm11, %v21127_v26, %v6533_v51  ;;  %6542 = vrot.lane.b32.xlu1 %v17561_v34, %s10550_s22  ;;  %v4849_v24 = vrot.slane %v21129_v50, 5  ;;  %v21130_v1 = vshll.u32 %v17480_v55, 16 }
 0x44f   :  { %6568 = vrot.lane.b32.xlu0 %v21128_v15, %s10548_s16  ;;  %v7952_v12 = vpop.f32.mrb[161].mxu0  ;;  %8093 = vmatmul.mubr.bf16.gmra.mrb[232].mxu0 %v6721_v10  ;;  %v17584_v19 = vpop.permute.xlu1 %5486  ;;  %v21132_v59 = vld [vmem:[#allocation18_spill] sm:$0xff]  ;;  %v21133_v26 = vshrl.u32 %v17489_v25, 16  ;;  %v21134_v10 = vshll.u32 %v17489_v25, 16  ;;  %v4858_v11 = vshrl.u32 %v17548_v14, 16  ;;  %v21135_v15 = vld [vmem:[#allocation79_spill] sm:$0xff] }
 0x450   :  { %21126 = vst [vmem:[#allocation44_spill] sm:$0xff] %v17573_v39  ;;  %v4850_v51 = vrot.slane %v21130_v1, 6  ;;  %v17590_v43 = vpop.f32.mrb[162].mxu0  ;;  %9852 = vmatprep.mubr.msk.bf16.mxu0 %vm2641_vm9, %v21132_v59  ;;  %v6147_v50 = vsel %vm2641_vm9, %v21135_v15, %v17459_v9  ;;  %v4803_v1 = vsel %vm10710_vm5, %v4798_v29, %v17532_v4  ;;  %v4813_v59 = vsel %vm10710_vm5, %v4808_v44, %v4812_v5 }
 0x451   :  { %21131 = vst [vmem:[#allocation72_spill] sm:$0xff] %v17590_v43  ;;  %v4853_v39 = vrot.slane %v21133_v26, 5  ;;  %v4854_v12 = vrot.slane %v21134_v10, 6  ;;  %v5553_v34 = vpop.permute.xlu0 %5552  ;;  %v7955_v2 = vpop.f32.mrb[163].mxu0  ;;  %v21136_v26 = vld [vmem:[#allocation154_spill] sm:$0xff]  ;;  %v9515_v10 = vrot.slane %v17480_v55, 9  ;;  %v9603_v32 = vcombine.low %v4803_v1, %v4813_v59 }
 0x452   :  { %3992 = vrot.lane.b32.xlu1 %v21136_v26, %s10548_s16  ;;  %v4831_v25 = vrot.slane %v4829_v18, 4  ;;  %v4832_v9 = vrot.slane %v17548_v14, 5  ;;  %v4851_v15 = vor.u32 %v4850_v51, %v4849_v24  ;;  %v6211_v2 = vsel %vm2738_vm10, %v6147_v50, %v17472_v53  ;;  %v21138_v53 = vld [vmem:[#allocation70_spill] sm:$0xff] }
 0x453   :  { %6590 = vrot.lane.b32.xlu0 %v21118_v30, %s10549_s21  ;;  %v4855_v43 = vor.u32 %v4854_v12, %v4853_v39  ;;  %v4860_v4 = vrot.slane %v4858_v11, 5  ;;  %v4861_v29 = vrot.slane %v4810_v40, 6  ;;  %v6339_v44 = vsel %vm2738_vm10, %v21137_v58, %v5553_v34  ;;  %v17617_v26 = vpop.permute.xlu1 %5418  ;;  %v21139_v12 = vld [vmem:[#allocation172_spill] sm:$0xff] }
 0x454   :  { %v6274_v11 = vsel %vm2803_vm11, %v6211_v2, %v21138_v53  ;;  %v4830_v40 = vsel %vm10635_vm2, %v9515_v10, %v4829_v18  ;;  %v4833_v34 = vsel %vm10635_vm2, %v4831_v25, %v4832_v9  ;;  %v21140_v2 = vld [vmem:[#allocation85_spill] sm:$0xff] }
 0x455   :  { %v5623_v5 = vpop.permute.xlu0 %5622  ;;  %v4857_v1 = vrot.slane %v4855_v43, 4  ;;  %v4862_v59 = vor.u32 %v4861_v29, %v4860_v4  ;;  %v6149_v58 = vsel %vm2641_vm9, %v21140_v2, %v17501_v47  ;;  %v21141_v25 = vld [vmem:[#allocation181_spill] sm:$0xff] }
 0x456   :  { %v6423_v30 = vsel %vm2803_vm11, %v6339_v44, %v5623_v5  ;;  %v6213_v29 = vsel %vm2738_vm10, %v6149_v58, %v17543_v46 }
 0x457   :  { %v17620_v55 = vpop.f32.mrb[164].mxu0  ;;  %6612 = vrot.lane.b32.xlu0 %v21122_v3, %s10550_s22  ;;  %v7613_v24 = vpop.f32.mrb[72].mxu1  ;;  %7755 = vmatprep.mubr.bf16.mxu1 %v6423_v30  ;;  %v4852_v3 = vrot.slane %v4851_v15, 4  ;;  %v9605_v15 = vcombine.low %v4830_v40, %v4833_v34  ;;  %v4863_v5 = vsel %vm10743_vm8, %v4857_v1, %v4862_v59  ;;  %v21142_v30 = vld [vmem:[#allocation123_spill] sm:$0xff]  ;;  %v21146_v59 = vld [vmem:[#allocation192_spill] sm:$0xff] }
 0x458   :  { %v17631_v39 = vadd.f32 %v17304_v8, %v7613_v24  ;;  %v7960_v51 = vpop.f32.mrb[165].mxu0  ;;  %9853 = vmatmul.mubr.msk.bf16.vlgmr.msra.gmra.mrb[236].mxu0 %vm2641_vm9, %v21139_v12  ;;  %v7615_v50 = vpop.f32.mrb[73].mxu1  ;;  %7756 = vmatmul.mubr.bf16.gmra.mrb[144].mxu1 %v6274_v11  ;;  %v21143_v11 = vld [vmem:[#allocation178_spill] sm:$0xff]  ;;  %v21145_v12 = vld [vmem:[#allocation89_spill] sm:$0xff] }
 0x459   :  { %v17638_v18 = vpop.f32.mrb[166].mxu0  ;;  %v5555_v45 = vpop.permute.xlu0 %5554  ;;  %9856 = vmatprep.mubr.msk.bf16.mxu0 %vm2641_vm9, %v21141_v25  ;;  %v4856_v47 = vsel %vm10743_vm8, %v4852_v3, %v4855_v43  ;;  %v6276_v40 = vsel %vm2803_vm11, %v6213_v29, %v21143_v11  ;;  %v6151_v50 = vsel %vm2641_vm9, %v21145_v12, %v17567_v57  ;;  %v21147_v57 = vld [vmem:[#allocation229_spill] sm:$0xff] }
 0x45a   :  { %v7616_v8 = vpop.f32.mrb[74].mxu1  ;;  %v7963_v10 = vpop.f32.mrb[167].mxu0  ;;  %v6341_v24 = vsel %vm2738_vm10, %v21142_v30, %v5555_v45  ;;  %v9607_v46 = vcombine.low %v4856_v47, %v4863_v5  ;;  %v21148_v47 = vld [vmem:[#allocation205_spill] sm:$0xff] }
 0x45b   :  { %v17643_v9 = vadd.f32 %v17312_v36, %v7616_v8  ;;  %v7618_v44 = vpop.f32.mrb[75].mxu1  ;;  %6570 = vrot.lane.b32.xlu0 %v9603_v32, %s10548_s16  ;;  %v5489_v4 = vpop.permute.xlu1 %5488  ;;  %v6215_v8 = vsel %vm2738_vm10, %v6151_v50, %v17584_v19  ;;  %v21149_v5 = vld [vmem:[#allocation185_spill] sm:$0xff]  ;;  %v21151_v19 = vld [vmem:[#allocation94_spill] sm:$0xff]  ;;  %v21152_v50 = vld [vmem:[#allocation239_spill] sm:$0xff] }
 0x45c   :  { %v6278_v30 = vsel %vm2803_vm11, %v6215_v8, %v21149_v5 }
 0x45d   :  { %v5625_v53 = vpop.permute.xlu0 %5624 }
 0x45e   :  { %v6426_v36 = vsel %vm2803_vm11, %v6341_v24, %v5625_v53  ;;  %v21150_v24 = vld [vmem:[#allocation200_spill] sm:$0xff]  ;;  %v6153_v53 = vsel %vm2641_vm9, %v21151_v19, %v17617_v26 }
 0x45f   :  { %6592 = vrot.lane.b32.xlu0 %v9605_v15, %s10549_s21  ;;  %v7621_v32 = vpop.f32.mrb[76].mxu1  ;;  %7763 = vmatprep.mubr.bf16.mxu1 %v6426_v36  ;;  %v5421_v34 = vpop.permute.xlu1 %5420 }
 0x460   :  { %v17659_v43 = vadd.f32 %v17347_v0, %v7621_v32  ;;  %9857 = vmatmul.mubr.msk.bf16.gmra.mrb[240].mxu0 %vm2641_vm9, %v21144_v60  ;;  %v7623_v51 = vpop.f32.mrb[77].mxu1  ;;  %7764 = vmatmul.mubr.bf16.gmra.mrb[148].mxu1 %v6276_v40 }
 0x461   :  { %v5557_v3 = vpop.permute.xlu0 %5556  ;;  %v7624_v1 = vpop.f32.mrb[78].mxu1  ;;  %9860 = vmatprep.mubr.msk.bf16.mxu0 %vm2641_vm9, %v21146_v59 }
 0x462   :  { %v17669_v2 = vadd.f32 %v17355_v22, %v7624_v1  ;;  %v7626_v58 = vpop.f32.mrb[79].mxu1  ;;  %v17671_v0 = vpop.f32.mrb[168].mxu0  ;;  %v6343_v44 = vsel %vm2738_vm10, %v21147_v57, %v5557_v3 }
 0x463   :  { %6614 = vrot.lane.b32.xlu0 %v9607_v46, %s10550_s22  ;;  %v7968_v45 = vpop.f32.mrb[169].mxu0  ;;  %v5491_v25 = vpop.permute.xlu1 %5490  ;;  %v6217_v46 = vsel %vm2738_vm10, %v6153_v53, %v5489_v4  ;;  %v21153_v4 = vld [vmem:[#allocation231_spill] sm:$0xff] }
 0x464   :  { %v17676_v10 = vpop.f32.mrb[170].mxu0 }
 0x465   :  { %v5627_v15 = vpop.permute.xlu0 %5626  ;;  %v7971_v29 = vpop.f32.mrb[171].mxu0 }
 0x466   :  { %v6429_v22 = vsel %vm2803_vm11, %v6343_v44, %v5627_v15  ;;  %v21154_v44 = vld [vmem:[#allocation105_spill] sm:$0xff] }
 0x467   :  { %3990 = vrot.lane.b32.xlu0 %v21148_v47, %s10548_s16  ;;  %7771 = vmatprep.mubr.bf16.mxu1 %v6429_v22  ;;  %v5423_v32 = vpop.permute.xlu1 %5422  ;;  %v6155_v15 = vsel %vm2641_vm9, %v21154_v44, %v5421_v34 }
 0x468   :  { %9861 = vmatmul.mubr.msk.bf16.gmra.mrb[244].mxu0 %vm2641_vm9, %v21150_v24  ;;  %7772 = vmatmul.mubr.bf16.gmra.mrb[152].mxu1 %v6278_v30  ;;  %v6219_v47 = vsel %vm2738_vm10, %v6155_v15, %v5491_v25  ;;  %v21155_v24 = vld [vmem:[#allocation249_spill] sm:$0xff] }
 0x469   :  { %v5559_v36 = vpop.permute.xlu0 %5558  ;;  %9864 = vmatprep.mubr.msk.bf16.mxu0 %vm2641_vm9, %v20841_v17  ;;  %v21160_v15 = vld [vmem:[#allocation117_spill] sm:$0xff] }
 0x46a   :  { %v6345_v3 = vsel %vm2738_vm10, %v21152_v50, %v5559_v36 }
 0x46b   :  { %v17692_v11 = vpop.f32.mrb[172].mxu0  ;;  %v7629_v40 = vpop.f32.mrb[80].mxu1 }
 0x46c   :  { %v17696_v60 = vadd.f32 %v17381_v20, %v7629_v40  ;;  %v7976_v51 = vpop.f32.mrb[173].mxu0  ;;  %v7631_v12 = vpop.f32.mrb[81].mxu1  ;;  %v6280_v20 = vsel %vm2803_vm11, %v6217_v46, %v21153_v4 }
 0x46d   :  { %v17700_v1 = vpop.f32.mrb[174].mxu0  ;;  %v5629_v26 = vpop.permute.xlu0 %5628 }
 0x46e   :  { %v7632_v59 = vpop.f32.mrb[82].mxu1  ;;  %v7979_v58 = vpop.f32.mrb[175].mxu0  ;;  %v6432_v17 = vsel %vm2803_vm11, %v6345_v3, %v5629_v26 }
 0x46f   :  { %v17704_v45 = vadd.f32 %v17389_v61, %v7632_v59  ;;  %v7634_v8 = vpop.f32.mrb[83].mxu1  ;;  %7779 = vmatprep.mubr.bf16.mxu1 %v6432_v17  ;;  %v5493_v57 = vpop.permute.xlu1 %5492  ;;  %v21158_v59 = vld [vmem:[#allocation211_spill] sm:$0xff] }
 0x470   :  { %9865 = vmatmul.mubr.msk.bf16.gmra.mrb[248].mxu0 %vm2641_vm9, %v20877_v41  ;;  %7780 = vmatmul.mubr.bf16.gmra.mrb[156].mxu1 %v6280_v20 }
 0x471   :  { %v5561_v29 = vpop.permute.xlu0 %5560  ;;  %9868 = vmatprep.mubr.msk.bf16.mxu0 %vm2641_vm9, %v20975_v33  ;;  %v21156_v33 = vld [vmem:[#allocation242_spill] sm:$0xff] }
 0x472   :  { %v6347_v19 = vsel %vm2738_vm10, %v21155_v24, %v5561_v29  ;;  %v6282_v46 = vsel %vm2803_vm11, %v6219_v47, %v21156_v33 }
 0x473   :  { %v7637_v22 = vpop.f32.mrb[84].mxu1  ;;  %v5425_v61 = vpop.permute.xlu1 %5424 }
 0x474   :  { %v17716_v5 = vadd.f32 %v17417_v49, %v7637_v22  ;;  %v7639_v30 = vpop.f32.mrb[85].mxu1  ;;  %v21157_v49 = vld [vmem:[#allocation113_spill] sm:$0xff]  ;;  %v6159_v29 = vsel %vm2641_vm9, %v21160_v15, %v5425_v61  ;;  %v10523_v61 = vld [vmem:[%s19316_s0 + $0xec] sm:$0x3] }
 0x475   :  { %v5631_v41 = vpop.permute.xlu0 %5630  ;;  %v7640_v53 = vpop.f32.mrb[86].mxu1  ;;  %v6157_v51 = vsel %vm2641_vm9, %v21157_v49, %v5423_v32  ;;  %v21159_v32 = vld [vmem:[#allocation142_spill] sm:$0xff] }
 0x476   :  { %v17721_v36 = vadd.f32 %v17427_v21, %v7640_v53  ;;  %v7642_v34 = vpop.f32.mrb[87].mxu1  ;;  %v6435_v40 = vsel %vm2803_vm11, %v6347_v19, %v5631_v41  ;;  %v6221_v3 = vsel %vm2738_vm10, %v6157_v51, %v5493_v57  ;;  %v10521_v57 = vld [vmem:[%s19316_s0 + $0xe8] sm:$0xf]  ;;  %v10522_v41 = vld [vmem:[%s19316_s0 + $0xe4] sm:$0xf] }
 0x477   :  { %7787 = vmatprep.mubr.bf16.mxu1 %v6435_v40  ;;  %v5495_v25 = vpop.permute.xlu1 %5494  ;;  %v6284_v20 = vsel %vm2803_vm11, %v6221_v3, %v21159_v32  ;;  %v4866_v44 = vrot.slane %v10521_v57, 6  ;;  %v9516_v53 = vrot.slane %v10522_v41, 10  ;;  %v4869_v40 = vrot.slane %v10523_v61, 6 }
 0x478   :  { %9869 = vmatmul.mubr.msk.bf16.gmra.mrb[252].mxu0 %vm2641_vm9, %v20890_v6  ;;  %7788 = vmatmul.mubr.bf16.gmra.mrb[160].mxu1 %v6282_v46  ;;  %v6223_v24 = vsel %vm2738_vm10, %v6159_v29, %v5495_v25  ;;  %v21165_v29 = vld [vmem:[#allocation228_spill] sm:$0xff] }
 0x479   :  { %v5563_v12 = vpop.permute.xlu0 %5562  ;;  %9872 = vmatprep.mubr.msk.bf16.mxu0 %vm2641_vm9, %v20880_v13  ;;  %v4868_v34 = vrot.slane %v4866_v44, 4 }
 0x47a   :  { %v6349_v58 = vsel %vm2738_vm10, %v21158_v59, %v5563_v12  ;;  %v21162_v12 = vld [vmem:[#allocation254_spill] sm:$0xff]  ;;  %v4867_v59 = vsel %vm12765_vm14, %v9516_v53, %v4866_v44 }
 0x47b   :  { %v17732_v21 = vpop.f32.mrb[176].mxu0  ;;  %v5427_v50 = vpop.permute.xlu1 %5426  ;;  %v6286_v3 = vsel %vm2803_vm11, %v6223_v24, %v21162_v12 }
 0x47c   :  { %v7984_v26 = vpop.f32.mrb[177].mxu0 }
 0x47d   :  { %v5633_v17 = vpop.permute.xlu0 %5632  ;;  %v17737_v8 = vpop.f32.mrb[178].mxu0 }
 0x47e   :  { %v7987_v6 = vpop.f32.mrb[179].mxu0  ;;  %v6438_v4 = vsel %vm2803_vm11, %v6349_v58, %v5633_v17  ;;  %v4870_v58 = vsel %vm12765_vm14, %v4868_v34, %v4869_v40  ;;  %v21167_v34 = vld [vmem:[#allocation126_spill] sm:$0xff] }
 0x47f   :  { %7795 = vmatprep.mubr.bf16.mxu1 %v6438_v4  ;;  %v5497_v13 = vpop.permute.xlu1 %5496  ;;  %v21164_v4 = vld [vmem:[#allocation52_spill] sm:$0xff]  ;;  %v9608_v57 = vcombine.low %v4867_v59, %v4870_v58 }
 0x480   :  { %9873 = vmatmul.mubr.msk.bf16.gmra.mrb[0].mxu0 %vm2641_vm9, %v20894_v31  ;;  %7796 = vmatmul.mubr.bf16.gmra.mrb[164].mxu1 %v6284_v20 }
 0x481   :  { %v5565_v22 = vpop.permute.xlu0 %5564  ;;  %9876 = vmatprep.mubr.msk.bf16.mxu0 %vm2641_vm9, %v16434_v16  ;;  %v21161_v16 = vld [vmem:[#allocation214_spill] sm:$0xff] }
 0x482   :  { %v6351_v33 = vsel %vm2738_vm10, %v21161_v16, %v5565_v22 }
 0x483   :  { %v7645_v47 = vpop.f32.mrb[88].mxu1  ;;  %v5429_v30 = vpop.permute.xlu1 %5428 }
 0x484   :  { %v17753_v19 = vadd.f32 %v17461_v52, %v7645_v47  ;;  %v7647_v31 = vpop.f32.mrb[89].mxu1 }
 0x485   :  { %v5635_v46 = vpop.permute.xlu0 %5634  ;;  %v7648_v25 = vpop.f32.mrb[90].mxu1  ;;  %v21166_v31 = vld [vmem:[#allocation167_spill] sm:$0xff] }
 0x486   :  { %v17764_v52 = vadd.f32 %v17469_v37, %v7648_v25  ;;  %v7650_v49 = vpop.f32.mrb[91].mxu1  ;;  %v6441_v51 = vsel %vm2803_vm11, %v6351_v33, %v5635_v46  ;;  %v21163_v37 = vld [vmem:[#allocation16_spill] sm:$0xff] }
 0x487   :  { %7803 = vmatprep.mubr.bf16.mxu1 %v6441_v51  ;;  %v5499_v26 = vpop.permute.xlu1 %5498  ;;  %v6161_v17 = vsel %vm2641_vm9, %v21163_v37, %v5427_v50  ;;  %v21168_v49 = vld [vmem:[#allocation114_spill] sm:$0xff] }
 0x488   :  { %9877 = vmatmul.mubr.msk.bf16.gmra.mrb[4].mxu0 %vm2641_vm9, %v16562_v54  ;;  %7804 = vmatmul.mubr.bf16.gmra.mrb[168].mxu1 %v6286_v3  ;;  %v6225_v54 = vsel %vm2738_vm10, %v6161_v17, %v5497_v13  ;;  %v6163_v13 = vsel %vm2641_vm9, %v21167_v34, %v5429_v30 }
 0x489   :  { %v5567_v6 = vpop.permute.xlu0 %5566  ;;  %9880 = vmatprep.mubr.msk.bf16.mxu0 %vm2641_vm9, %v21164_v4  ;;  %v6288_v41 = vsel %vm2803_vm11, %v6225_v54, %v21166_v31  ;;  %v6227_v33 = vsel %vm2738_vm10, %v6163_v13, %v5499_v26 }
 0x48a   :  { %v6353_v44 = vsel %vm2738_vm10, %v21165_v29, %v5567_v6 }
 0x48b   :  { %v17779_v32 = vpop.f32.mrb[180].mxu0  ;;  %v5431_v20 = vpop.permute.xlu1 %5430 }
 0x48c   :  { %v7992_v15 = vpop.f32.mrb[181].mxu0 }
 0x48d   :  { %v5637_v22 = vpop.permute.xlu0 %5636  ;;  %v17784_v47 = vpop.f32.mrb[182].mxu0 }
 0x48e   :  { %v7995_v24 = vpop.f32.mrb[183].mxu0  ;;  %v6444_v50 = vsel %vm2803_vm11, %v6353_v44, %v5637_v22 }
 0x48f   :  { %7811 = vmatprep.mubr.bf16.mxu1 %v6444_v50  ;;  %v5501_v53 = vpop.permute.xlu1 %5500  ;;  %v21173_v24 = vld [vmem:[#allocation140_spill] sm:$0xff] }
 0x490   :  { %9881 = vmatmul.mubr.msk.bf16.gmra.mrb[8].mxu0 %vm2641_vm9, %v9608_v57  ;;  %7812 = vmatmul.mubr.bf16.gmra.mrb[172].mxu1 %v6288_v41  ;;  %v21171_v57 = vld [vmem:[#allocation236_spill] sm:$0xff] }
 0x491   :  { %v5569_v61 = vpop.permute.xlu0 %5568  ;;  %9884 = vmatprep.mubr.msk.bf16.mxu0 %vm2641_vm9, %v20960_v23  ;;  %v21169_v23 = vld [vmem:[#allocation122_spill] sm:$0xff] }
 0x492   :  { %v6355_v51 = vsel %vm2738_vm10, %v21168_v49, %v5569_v61  ;;  %v6290_v37 = vsel %vm2803_vm11, %v6227_v33, %v21169_v23  ;;  %v21174_v61 = vld [vmem:[#allocation224_spill] sm:$0xff]  ;;  %v21175_v49 = vld [vmem:[#allocation66_spill] sm:$0xff]  ;;  %v21176_v23 = vld [vmem:[#allocation151_spill] sm:$0xff] }
 0x493   :  { %v7653_v40 = vpop.f32.mrb[92].mxu1  ;;  %v5433_v16 = vpop.permute.xlu1 %5432 }
 0x494   :  { %v17796_v46 = vadd.f32 %v17510_v7, %v7653_v40  ;;  %v7655_v25 = vpop.f32.mrb[93].mxu1  ;;  %v21170_v7 = vld [vmem:[#allocation136_spill] sm:$0xff]  ;;  %v6167_v50 = vsel %vm2641_vm9, %v21173_v24, %v5433_v16 }
 0x495   :  { %v5639_v12 = vpop.permute.xlu0 %5638  ;;  %v7656_v3 = vpop.f32.mrb[94].mxu1  ;;  %v6165_v17 = vsel %vm2641_vm9, %v21170_v7, %v5431_v20 }
 0x496   :  { %v17801_v59 = vadd.f32 %v17523_v48, %v7656_v3  ;;  %v7658_v30 = vpop.f32.mrb[95].mxu1  ;;  %v6447_v58 = vsel %vm2803_vm11, %v6355_v51, %v5639_v12  ;;  %v6229_v4 = vsel %vm2738_vm10, %v6165_v17, %v5501_v53 }
 0x497   :  { %7819 = vmatprep.mubr.bf16.mxu1 %v6447_v58  ;;  %v5503_v26 = vpop.permute.xlu1 %5502 }
 0x498   :  { %9885 = vmatmul.mubr.msk.bf16.gmra.mrb[12].mxu0 %vm2641_vm9, %v20991_v27  ;;  %7820 = vmatmul.mubr.bf16.gmra.mrb[176].mxu1 %v6290_v37  ;;  %v21172_v27 = vld [vmem:[#allocation218_spill] sm:$0xff]  ;;  %v6231_v13 = vsel %vm2738_vm10, %v6167_v50, %v5503_v26  ;;  %v21177_v37 = vld [vmem:[#allocation72_spill] sm:$0xff] }
 0x499   :  { %v5571_v6 = vpop.permute.xlu0 %5570  ;;  %9888 = vmatprep.mubr.msk.bf16.mxu0 %vm2641_vm9, %v20982_v38  ;;  %v6292_v22 = vsel %vm2803_vm11, %v6229_v4, %v21172_v27  ;;  %v6294_v16 = vsel %vm2803_vm11, %v6231_v13, %v21175_v49  ;;  %v21181_v27 = vld [vmem:[#allocation54_spill] sm:$0xff] }
 0x49a   :  { %v6357_v54 = vsel %vm2738_vm10, %v21171_v57, %v5571_v6  ;;  %v21178_v6 = vld [vmem:[#allocation216_spill] sm:$0xff] }
 0x49b   :  { %v5435_v48 = vpop.permute.xlu1 %5434 }
 0x49c   :  { %v6169_v3 = vsel %vm2641_vm9, %v21111_v42, %v5435_v48  ;;  %v21179_v42 = vld [vmem:[#allocation233_spill] sm:$0xff] }
 0x49d   :  { %v5641_v15 = vpop.permute.xlu0 %5640 }
 0x49e   :  { %v6450_v29 = vsel %vm2803_vm11, %v6357_v54, %v5641_v15  ;;  %v21180_v15 = vld [vmem:[#allocation47_spill] sm:$0xff] }
 0x49f   :  { %7827 = vmatprep.mubr.bf16.mxu1 %v6450_v29  ;;  %v17816_v44 = vpop.f32.mrb[184].mxu0  ;;  %v5505_v20 = vpop.permute.xlu1 %5504 }
 0x4a0   :  { %9889 = vmatmul.mubr.msk.bf16.gmra.mrb[16].mxu0 %vm2641_vm9, %v21006_v35  ;;  %7828 = vmatmul.mubr.bf16.gmra.mrb[180].mxu1 %v6292_v22  ;;  %v8000_v38 = vpop.f32.mrb[185].mxu0  ;;  %v21182_v22 = vld [vmem:[#allocation212_spill] sm:$0xff] }
 0x4a1   :  { %v5573_v31 = vpop.permute.xlu0 %5572  ;;  %v17824_v41 = vpop.f32.mrb[186].mxu0  ;;  %9892 = vmatprep.mubr.msk.bf16.mxu0 %vm2641_vm9, %v16277_v28 }
 0x4a2   :  { %v8003_v53 = vpop.f32.mrb[187].mxu0  ;;  %v6359_v40 = vsel %vm2738_vm10, %v21174_v61, %v5573_v31 }
 0x4a3   :  { %v6535_v34 = vpop.permute.xlu1 %6534 }
 0x4a5   :  { %v5643_v33 = vpop.permute.xlu0 %5642 }
 0x4a6   :  { %v6453_v35 = vsel %vm2803_vm11, %v6359_v40, %v5643_v33 }
 0x4a7   :  { %v7661_v25 = vpop.f32.mrb[96].mxu1  ;;  %7835 = vmatprep.mubr.bf16.mxu1 %v6453_v35  ;;  %v6587_v51 = vpop.permute.xlu1 %6586  ;;  %v21184_v35 = vld [vmem:[#allocation134_spill] sm:$0xff] }
 0x4a8   :  { %v17835_v12 = vadd.f32 %v17575_v62, %v7661_v25  ;;  %9893 = vmatmul.mubr.msk.bf16.gmra.mrb[20].mxu0 %vm2641_vm9, %v16376_v56  ;;  %v7663_v28 = vpop.f32.mrb[97].mxu1  ;;  %7836 = vmatmul.mubr.bf16.gmra.mrb[184].mxu1 %v6294_v16  ;;  %v6233_v62 = vsel %vm2738_vm10, %v6169_v3, %v5505_v20  ;;  %v21183_v20 = vld [vmem:[#allocation6_spill] sm:$0xff]  ;;  %v6724_v25 = vsel %vm2803_vm11, %v21184_v35, %v6535_v34  ;;  %v4876_v35 = vrot.slane %v17548_v14, 6 }
 0x4a9   :  { %v5575_v30 = vpop.permute.xlu0 %5574  ;;  %v7664_v58 = vpop.f32.mrb[98].mxu1  ;;  %9896 = vmatprep.mubr.msk.bf16.mxu0 %vm2641_vm9, %v21176_v23  ;;  %v6296_v48 = vsel %vm2803_vm11, %v6233_v62, %v21179_v42  ;;  %v21185_v16 = vld [vmem:[#allocation74_spill] sm:$0xff] }
 0x4aa   :  { %v17844_v26 = vadd.f32 %v21177_v37, %v7664_v58  ;;  %v7666_v7 = vpop.f32.mrb[99].mxu1  ;;  %v6361_v56 = vsel %vm2738_vm10, %v21178_v6, %v5575_v30  ;;  %v21187_v3 = vld [vmem:[#allocation34_spill] sm:$0xff] }
 0x4ab   :  { %v6537_v17 = vpop.permute.xlu1 %6536 }
 0x4ad   :  { %v5645_v4 = vpop.permute.xlu0 %5644 }
 0x4ae   :  { %v6456_v57 = vsel %vm2803_vm11, %v6361_v56, %v5645_v4 }
 0x4af   :  { %7843 = vmatprep.mubr.bf16.mxu1 %v6456_v57  ;;  %v6589_v54 = vpop.permute.xlu1 %6588 }
 0x4b0   :  { %9897 = vmatmul.mubr.msk.bf16.gmra.mrb[24].mxu0 %vm2641_vm9, %v21180_v15  ;;  %7844 = vmatmul.mubr.bf16.gmra.mrb[188].mxu1 %v6296_v48  ;;  %v21188_v15 = vld [vmem:[#allocation234_spill] sm:$0xff] }
 0x4b1   :  { %v6565_v29 = vpop.permute.xlu0 %6564  ;;  %8100 = vmatprep.mubr.bf16.mxu1 %v21181_v27  ;;  %9900 = vmatprep.mubr.msk.bf16.mxu0 %vm2641_vm9, %v21182_v22  ;;  %v21189_v27 = vld [vmem:[#allocation109_spill] sm:$0xff]  ;;  %v21190_v22 = vld [vmem:[#allocation10_spill] sm:$0xff] }
 0x4b2   :  { %v6752_v38 = vsel %vm2641_vm9, %v21183_v20, %v6565_v29  ;;  %v4873_v20 = vrot.slane %v21190_v22, 6 }
 0x4b3   :  { %v6771_v24 = vsel %vm2738_vm10, %v6752_v38, %v6587_v51  ;;  %v17860_v50 = vpop.f32.mrb[188].mxu0  ;;  %v6539_v31 = vpop.permute.xlu1 %6538  ;;  %v21186_v51 = vld [vmem:[#allocation71_spill] sm:$0xff] }
 0x4b4   :  { %v8008_v53 = vpop.f32.mrb[189].mxu0 }
 0x4b5   :  { %v6609_v13 = vpop.permute.xlu0 %6608  ;;  %v17862_v61 = vpop.f32.mrb[190].mxu0  ;;  %v21192_v53 = vld [vmem:[#allocation103_spill] sm:$0xff] }
 0x4b6   :  { %v8011_v40 = vpop.f32.mrb[191].mxu0  ;;  %v6791_v33 = vsel %vm2803_vm11, %v6771_v24, %v6609_v13  ;;  %v21191_v24 = vld [vmem:[#allocation8_spill] sm:$0xff] }
 0x4b7   :  { %v6463_v49 = vpop.permute.xlu1 %6462  ;;  %v21193_v40 = vld [vmem:[#allocation161_spill] sm:$0xff] }
 0x4b8   :  { %9901 = vmatmul.mubr.msk.bf16.gmra.mrb[28].mxu0 %vm2641_vm9, %v21185_v16  ;;  %8101 = vmatmul.mubr.bf16.vlgmr.msra.gmra.mrb[172].mxu1 %v6724_v25 }
 0x4b9   :  { %v6567_v28 = vpop.permute.xlu0 %6566  ;;  %9904 = vmatprep.mubr.msk.bf16.mxu0 %vm2641_vm9, %v21186_v51  ;;  %8108 = vmatprep.mubr.bf16.mxu1 %v6791_v33  ;;  %v4875_v33 = vrot.slane %v4873_v20, 4 }
 0x4ba   :  { %v6755_v30 = vsel %vm2641_vm9, %v21187_v3, %v6567_v28  ;;  %v21194_v28 = vld [vmem:[#allocation248_spill] sm:$0xff] }
 0x4bb   :  { %v6773_v58 = vsel %vm2738_vm10, %v6755_v30, %v6589_v54  ;;  %v7669_v23 = vpop.f32.mrb[100].mxu1  ;;  %v6471_v37 = vpop.permute.xlu1 %6470  ;;  %v6727_v54 = vsel %vm2803_vm11, %v21188_v15, %v6537_v17  ;;  %v9517_v17 = vrot.slane %v21193_v40, 10  ;;  %v6630_v51 = vsel %vm2641_vm9, %v21194_v28, %v6463_v49 }
 0x4bc   :  { %v17875_v7 = vadd.f32 %v17620_v55, %v7669_v23  ;;  %v7671_v34 = vpop.f32.mrb[101].mxu1  ;;  %v21195_v23 = vld [vmem:[#allocation104_spill] sm:$0xff] }
 0x4bd   :  { %v6611_v62 = vpop.permute.xlu0 %6610  ;;  %v7672_v6 = vpop.f32.mrb[102].mxu1  ;;  %v6730_v34 = vsel %vm2803_vm11, %v21195_v23, %v6539_v31  ;;  %v4874_v49 = vsel %vm12765_vm14, %v9517_v17, %v4873_v20 }
 0x4be   :  { %v17878_v56 = vadd.f32 %v17638_v18, %v7672_v6  ;;  %v7674_v4 = vpop.f32.mrb[103].mxu1  ;;  %v17880_v57 = vpop.f32.mrb[192].mxu0  ;;  %v6794_v42 = vsel %vm2803_vm11, %v6773_v58, %v6611_v62 }
 0x4bf   :  { %v8016_v48 = vpop.f32.mrb[193].mxu0  ;;  %v6541_v29 = vpop.permute.xlu1 %6540  ;;  %v21196_v4 = vld [vmem:[#allocation13_spill] sm:$0xff] }
 0x4c0   :  { %9905 = vmatmul.mubr.msk.bf16.gmra.mrb[32].mxu0 %vm2641_vm9, %v21189_v27  ;;  %v17887_v55 = vpop.f32.mrb[194].mxu0  ;;  %8109 = vmatmul.mubr.bf16.gmra.mrb[176].mxu1 %v6727_v54  ;;  %v21197_v54 = vld [vmem:[#allocation30_spill] sm:$0xff] }
 0x4c1   :  { %v6569_v18 = vpop.permute.xlu0 %6568  ;;  %v8019_v38 = vpop.f32.mrb[195].mxu0  ;;  %9908 = vmatprep.mubr.msk.bf16.mxu0 %vm2641_vm9, %v21191_v24  ;;  %8116 = vmatprep.mubr.bf16.mxu1 %v6794_v42  ;;  %v4877_v42 = vsel %vm12765_vm14, %v4875_v33, %v4876_v35  ;;  %v21198_v33 = vld [vmem:[#allocation255_spill] sm:$0xff] }
 0x4c2   :  { %v6758_v13 = vsel %vm2641_vm9, %v21192_v53, %v6569_v18  ;;  %v9609_v63 = vcombine.low %v4874_v49, %v4877_v42  ;;  %v9601_v53 = vcombine.low %v21193_v40, %v21190_v22 }
 0x4c3   :  { %v6465_v16 = vpop.permute.xlu1 %6464 }
 0x4c5   :  { %v6591_v25 = vpop.permute.xlu0 %6590 }
 0x4c6   :  { %v6775_v3 = vsel %vm2738_vm10, %v6758_v13, %v6591_v25 }
 0x4c7   :  { %v17899_v30 = vpop.f32.mrb[196].mxu0  ;;  %v7677_v58 = vpop.f32.mrb[104].mxu1 }
 0x4c8   :  { %v17904_v62 = vadd.f32 %v17671_v0, %v7677_v58  ;;  %v8024_v6 = vpop.f32.mrb[197].mxu0  ;;  %9909 = vmatmul.mubr.msk.bf16.gmra.mrb[36].mxu0 %vm2641_vm9, %v21196_v4  ;;  %v7679_v14 = vpop.f32.mrb[105].mxu1  ;;  %8117 = vmatmul.mubr.bf16.gmra.mrb[180].mxu1 %v6730_v34  ;;  %v6639_v0 = vsel %vm2738_vm10, %v6630_v51, %v6471_v37  ;;  %v6633_v37 = vsel %vm2641_vm9, %v21198_v33, %v6465_v16 }
 0x4c9   :  { %v17912_v48 = vpop.f32.mrb[198].mxu0  ;;  %v6613_v15 = vpop.permute.xlu0 %6612  ;;  %9912 = vmatprep.mubr.msk.bf16.mxu0 %vm2641_vm9, %v21197_v54  ;;  %v6733_v17 = vsel %vm2803_vm11, %v6639_v0, %v6541_v29 }
 0x4ca   :  { %v7680_v31 = vpop.f32.mrb[106].mxu1  ;;  %v8027_v27 = vpop.f32.mrb[199].mxu0  ;;  %v6797_v18 = vsel %vm2803_vm11, %v6775_v3, %v6613_v15 }
 0x4cb   :  { %v17919_v38 = vadd.f32 %v17676_v10, %v7680_v31  ;;  %v7682_v24 = vpop.f32.mrb[107].mxu1  ;;  %8124 = vmatprep.mubr.bf16.mxu1 %v6797_v18  ;;  %v6473_v20 = vpop.permute.xlu1 %6472 }
 0x4cc   :  { %v6641_v29 = vsel %vm2738_vm10, %v6633_v37, %v6473_v20 }
 0x4cd   :  { %v6571_v13 = vpop.permute.xlu0 %6570 }
 0x4ce   :  { %v6761_v25 = vsel %vm2641_vm9, %v9601_v53, %v6571_v13 }
 0x4cf   :  { %v7685_v35 = vpop.f32.mrb[108].mxu1  ;;  %v6543_v51 = vpop.permute.xlu1 %6542 }
 0x4d0   :  { %v17928_v28 = vadd.f32 %v17692_v11, %v7685_v35  ;;  %9913 = vmatmul.mubr.msk.bf16.gmra.mrb[40].mxu0 %vm2641_vm9, %v9609_v63  ;;  %v7687_v10 = vpop.f32.mrb[109].mxu1  ;;  %8125 = vmatmul.mubr.bf16.gmra.mrb[184].mxu1 %v6733_v17  ;;  %v6736_v14 = vsel %vm2803_vm11, %v6641_v29, %v6543_v51 }
 0x4d1   :  { %v6593_v3 = vpop.permute.xlu0 %6592  ;;  %v7688_v58 = vpop.f32.mrb[110].mxu1 }
 0x4d2   :  { %v17932_v22 = vadd.f32 %v17700_v1, %v7688_v58  ;;  %v7690_v40 = vpop.f32.mrb[111].mxu1  ;;  %v17935_v16 = vpop.f32.mrb[200].mxu0  ;;  %v6777_v23 = vsel %vm2738_vm10, %v6761_v25, %v6593_v3 }
 0x4d3   :  { %v8032_v34 = vpop.f32.mrb[201].mxu0 }
 0x4d4   :  { %v17938_v11 = vpop.f32.mrb[202].mxu0 }
 0x4d5   :  { %v6615_v6 = vpop.permute.xlu0 %6614  ;;  %v8035_v4 = vpop.f32.mrb[203].mxu0 }
 0x4d6   :  { %v6800_v49 = vsel %vm2803_vm11, %v6777_v23, %v6615_v6 }
 0x4d7   :  { %8132 = vmatprep.mubr.bf16.mxu1 %v6800_v49 }
 0x4d8   :  { %8133 = vmatmul.mubr.bf16.gmra.mrb[188].mxu1 %v6736_v14 }
 0x4db   :  { %v17942_v1 = vpop.f32.mrb[204].mxu0  ;;  %v7693_v42 = vpop.f32.mrb[112].mxu1 }
 0x4dc   :  { %v17945_v15 = vadd.f32 %v17732_v21, %v7693_v42  ;;  %v8040_v54 = vpop.f32.mrb[205].mxu0  ;;  %v7695_v0 = vpop.f32.mrb[113].mxu1 }
 0x4dd   :  { %v17947_v31 = vpop.f32.mrb[206].mxu0  ;;  %v7696_v27 = vpop.f32.mrb[114].mxu1 }
 0x4de   :  { %v17950_v18 = vadd.f32 %v17737_v8, %v7696_v27  ;;  %v8043_v24 = vpop.f32.mrb[207].mxu0  ;;  %v7698_v20 = vpop.f32.mrb[115].mxu1 }
 0x4e3   :  { %v7701_v63 = vpop.f32.mrb[116].mxu1 }
 0x4e4   :  { %v17953_v53 = vadd.f32 %v17779_v32, %v7701_v63  ;;  %v7703_v13 = vpop.f32.mrb[117].mxu1 }
 0x4e5   :  { %v7704_v17 = vpop.f32.mrb[118].mxu1 }
 0x4e6   :  { %v17956_v33 = vadd.f32 %v17784_v47, %v7704_v17  ;;  %v7706_v21 = vpop.f32.mrb[119].mxu1  ;;  %v17958_v37 = vpop.f32.mrb[208].mxu0 }
 0x4e7   :  { %v8048_v35 = vpop.f32.mrb[209].mxu0 }
 0x4e8   :  { %v17960_v25 = vpop.f32.mrb[210].mxu0 }
 0x4e9   :  { %v8051_v10 = vpop.f32.mrb[211].mxu0 }
 0x4ef   :  { %v17962_v8 = vpop.f32.mrb[212].mxu0  ;;  %v7709_v51 = vpop.f32.mrb[120].mxu1 }
 0x4f0   :  { %v17965_v3 = vadd.f32 %v17816_v44, %v7709_v51  ;;  %v8056_v32 = vpop.f32.mrb[213].mxu0  ;;  %v7711_v58 = vpop.f32.mrb[121].mxu1 }
 0x4f1   :  { %v17967_v29 = vpop.f32.mrb[214].mxu0  ;;  %v7712_v40 = vpop.f32.mrb[122].mxu1 }
 0x4f2   :  { %v17970_v47 = vadd.f32 %v17824_v41, %v7712_v40  ;;  %v8059_v23 = vpop.f32.mrb[215].mxu0  ;;  %v7714_v34 = vpop.f32.mrb[123].mxu1 }
 0x4f7   :  { %v7717_v6 = vpop.f32.mrb[124].mxu1 }
 0x4f8   :  { %v17973_v4 = vadd.f32 %v17860_v50, %v7717_v6  ;;  %v7719_v14 = vpop.f32.mrb[125].mxu1 }
 0x4f9   :  { %v7720_v49 = vpop.f32.mrb[126].mxu1 }
 0x4fa   :  { %v17976_v42 = vadd.f32 %v17862_v61, %v7720_v49  ;;  %v7722_v44 = vpop.f32.mrb[127].mxu1  ;;  %v17978_v54 = vpop.f32.mrb[216].mxu0 }
 0x4fb   :  { %v8064_v0 = vpop.f32.mrb[217].mxu0 }
 0x4fc   :  { %v17980_v27 = vpop.f32.mrb[218].mxu0 }
 0x4fd   :  { %v8067_v24 = vpop.f32.mrb[219].mxu0 }
 0x503   :  { %v17982_v41 = vpop.f32.mrb[220].mxu0  ;;  %v7725_v20 = vpop.f32.mrb[128].mxu1 }
 0x504   :  { %v17985_v63 = vadd.f32 %v17880_v57, %v7725_v20  ;;  %v8072_v50 = vpop.f32.mrb[221].mxu0  ;;  %v7727_v13 = vpop.f32.mrb[129].mxu1 }
 0x505   :  { %v17987_v17 = vpop.f32.mrb[222].mxu0  ;;  %v7728_v21 = vpop.f32.mrb[130].mxu1 }
 0x506   :  { %v17990_v61 = vadd.f32 %v17887_v55, %v7728_v21  ;;  %v8075_v35 = vpop.f32.mrb[223].mxu0  ;;  %v7730_v10 = vpop.f32.mrb[131].mxu1 }
 0x50b   :  { %v7733_v51 = vpop.f32.mrb[132].mxu1 }
 0x50c   :  { %v17993_v32 = vadd.f32 %v17899_v30, %v7733_v51  ;;  %v7735_v58 = vpop.f32.mrb[133].mxu1 }
 0x50d   :  { %v7736_v40 = vpop.f32.mrb[134].mxu1 }
 0x50e   :  { %v17996_v23 = vadd.f32 %v17912_v48, %v7736_v40  ;;  %v7738_v57 = vpop.f32.mrb[135].mxu1  ;;  %v17998_v34 = vpop.f32.mrb[224].mxu0 }
 0x50f   :  { %v8080_v6 = vpop.f32.mrb[225].mxu0 }
 0x510   :  { %v18000_v14 = vpop.f32.mrb[226].mxu0 }
 0x511   :  { %v8083_v49 = vpop.f32.mrb[227].mxu0 }
 0x517   :  { %v18002_v55 = vpop.f32.mrb[228].mxu0  ;;  %v7741_v44 = vpop.f32.mrb[136].mxu1 }
 0x518   :  { %v18005_v0 = vadd.f32 %v17935_v16, %v7741_v44  ;;  %v8088_v30 = vpop.f32.mrb[229].mxu0  ;;  %v7743_v24 = vpop.f32.mrb[137].mxu1 }
 0x519   :  { %v18007_v20 = vpop.f32.mrb[230].mxu0  ;;  %v7744_v50 = vpop.f32.mrb[138].mxu1  ;;  %v21201_v24 = vld [vmem:[#allocation38_spill] sm:$0xff] }
 0x51a   :  { %v18010_v48 = vadd.f32 %v17938_v11, %v7744_v50  ;;  %v8091_v13 = vpop.f32.mrb[231].mxu0  ;;  %v7746_v21 = vpop.f32.mrb[139].mxu1 }
 0x51c   :  { %21199 = vst [vmem:[#allocation95_spill] sm:$0xff] %v18010_v48 }
 0x51f   :  { %v7749_v35 = vpop.f32.mrb[140].mxu1 }
 0x520   :  { %v18013_v10 = vadd.f32 %v17942_v1, %v7749_v35  ;;  %v7751_v51 = vpop.f32.mrb[141].mxu1  ;;  %v21203_v35 = vld [vmem:[#allocation119_spill] sm:$0xff] }
 0x521   :  { %v7752_v58 = vpop.f32.mrb[142].mxu1 }
 0x522   :  { %v18016_v40 = vadd.f32 %v17947_v31, %v7752_v58  ;;  %v7754_v16 = vpop.f32.mrb[143].mxu1  ;;  %v18018_v57 = vpop.f32.mrb[232].mxu0 }
 0x523   :  { %v8096_v6 = vpop.f32.mrb[233].mxu0  ;;  %v21204_v16 = vld [vmem:[#allocation44_spill] sm:$0xff] }
 0x524   :  { %21200 = vst [vmem:[#allocation9_spill] sm:$0xff] %v18016_v40  ;;  %v18020_v49 = vpop.f32.mrb[234].mxu0 }
 0x525   :  { %v8099_v44 = vpop.f32.mrb[235].mxu0 }
 0x52b   :  { %v9854_v11 = vpop.f32.mrb[236].mxu0  ;;  %v7757_v30 = vpop.f32.mrb[144].mxu1 }
 0x52c   :  { %v18023_v50 = vadd.f32 %v21201_v24, %v9854_v11  ;;  %v18026_v1 = vadd.f32 %v17958_v37, %v7757_v30  ;;  %v8175_v13 = vpop.f32.mrb[237].mxu0  ;;  %v7759_v21 = vpop.f32.mrb[145].mxu1  ;;  %v21205_v11 = vld [vmem:[#allocation36_spill] sm:$0xff] }
 0x52d   :  { %v18029_v31 = vadd.f32 %v21203_v35, %v8175_v13  ;;  %v9855_v51 = vpop.f32.mrb[238].mxu0  ;;  %v7760_v58 = vpop.f32.mrb[146].mxu1 }
 0x52e   :  { %21202 = vst [vmem:[#allocation257_spill] sm:$0xff] %v18023_v50  ;;  %v18032_v6 = vadd.f32 %v21204_v16, %v9855_v51  ;;  %v18035_v44 = vadd.f32 %v17960_v25, %v7760_v58  ;;  %v8178_v48 = vpop.f32.mrb[239].mxu0  ;;  %v7762_v40 = vpop.f32.mrb[147].mxu1 }
 0x52f   :  { %v18038_v24 = vadd.f32 %v21205_v11, %v8178_v48 }
 0x533   :  { %v9858_v37 = vpop.f32.mrb[240].mxu0  ;;  %v7765_v30 = vpop.f32.mrb[148].mxu1 }
 0x534   :  { %v18041_v21 = vadd.f32 %v17659_v43, %v9858_v37  ;;  %v18044_v13 = vadd.f32 %v17962_v8, %v7765_v30  ;;  %v8191_v35 = vpop.f32.mrb[241].mxu0  ;;  %v7767_v50 = vpop.f32.mrb[149].mxu1 }
 0x535   :  { %v18047_v51 = vadd.f32 %v17631_v39, %v8191_v35  ;;  %v9859_v25 = vpop.f32.mrb[242].mxu0  ;;  %v7768_v58 = vpop.f32.mrb[150].mxu1 }
 0x536   :  { %v18050_v40 = vadd.f32 %v17669_v2, %v9859_v25  ;;  %v18053_v48 = vadd.f32 %v17967_v29, %v7768_v58  ;;  %v8194_v16 = vpop.f32.mrb[243].mxu0  ;;  %v7770_v11 = vpop.f32.mrb[151].mxu1 }
 0x537   :  { %v18056_v43 = vadd.f32 %v17643_v9, %v8194_v16 }
 0x53b   :  { %v9862_v8 = vpop.f32.mrb[244].mxu0  ;;  %v7773_v37 = vpop.f32.mrb[152].mxu1 }
 0x53c   :  { %v18059_v50 = vadd.f32 %v17716_v5, %v9862_v8  ;;  %v18062_v39 = vadd.f32 %v17978_v54, %v7773_v37  ;;  %v8207_v30 = vpop.f32.mrb[245].mxu0  ;;  %v7775_v35 = vpop.f32.mrb[153].mxu1 }
 0x53d   :  { %v18065_v2 = vadd.f32 %v17696_v60, %v8207_v30  ;;  %v9863_v29 = vpop.f32.mrb[246].mxu0  ;;  %v7776_v25 = vpop.f32.mrb[154].mxu1 }
 0x53e   :  { %v18068_v58 = vadd.f32 %v17721_v36, %v9863_v29  ;;  %v18071_v9 = vadd.f32 %v17980_v27, %v7776_v25  ;;  %v8210_v16 = vpop.f32.mrb[247].mxu0  ;;  %v7778_v11 = vpop.f32.mrb[155].mxu1 }
 0x53f   :  { %v18074_v5 = vadd.f32 %v17704_v45, %v8210_v16 }
 0x540   :  { %21206 = vst [vmem:[#allocation48_spill] sm:$0xff] %v18068_v58 }
 0x543   :  { %v9866_v54 = vpop.f32.mrb[248].mxu0  ;;  %v7781_v8 = vpop.f32.mrb[156].mxu1 }
 0x544   :  { %v18077_v37 = vadd.f32 %v17796_v46, %v9866_v54  ;;  %v18080_v60 = vadd.f32 %v17982_v41, %v7781_v8  ;;  %v8223_v30 = vpop.f32.mrb[249].mxu0  ;;  %v7783_v35 = vpop.f32.mrb[157].mxu1 }
 0x545   :  { %v18083_v36 = vadd.f32 %v17753_v19, %v8223_v30  ;;  %v9867_v27 = vpop.f32.mrb[250].mxu0  ;;  %v7784_v29 = vpop.f32.mrb[158].mxu1 }
 0x546   :  { %21207 = vst [vmem:[#allocation166_spill] sm:$0xff] %v18077_v37  ;;  %v18086_v25 = vadd.f32 %v17801_v59, %v9867_v27  ;;  %v18089_v45 = vadd.f32 %v17987_v17, %v7784_v29  ;;  %v8226_v16 = vpop.f32.mrb[251].mxu0  ;;  %v7786_v11 = vpop.f32.mrb[159].mxu1  ;;  %v21268_v37 = vld [vmem:[#allocation73_spill] sm:$0xff] }
 0x547   :  { %21208 = vst [vmem:[#allocation209_spill] sm:$0xff] %v18083_v36  ;;  %v18092_v46 = vadd.f32 %v17764_v52, %v8226_v16 }
 0x548   :  { %21209 = vst [vmem:[#allocation125_spill] sm:$0xff] %v18086_v25 }
 0x549   :  { %21210 = vst [vmem:[#allocation118_spill] sm:$0xff] %v18092_v46 }
 0x54b   :  { %v9870_v41 = vpop.f32.mrb[252].mxu0  ;;  %v7789_v54 = vpop.f32.mrb[160].mxu1 }
 0x54c   :  { %v18095_v8 = vadd.f32 %v17875_v7, %v9870_v41  ;;  %v18098_v19 = vadd.f32 %v17998_v34, %v7789_v54  ;;  %v8239_v30 = vpop.f32.mrb[253].mxu0  ;;  %v7791_v35 = vpop.f32.mrb[161].mxu1  ;;  %v21211_v41 = vld [vmem:[#allocation106_spill] sm:$0xff] }
 0x54d   :  { %v8240_v59 = vadd.f32 %v17835_v12, %v8239_v30  ;;  %v9871_v27 = vpop.f32.mrb[254].mxu0  ;;  %v7792_v17 = vpop.f32.mrb[162].mxu1 }
 0x54e   :  { %v18102_v29 = vadd.f32 %v17878_v56, %v9871_v27  ;;  %v18105_v52 = vadd.f32 %v18000_v14, %v7792_v17  ;;  %v8242_v16 = vpop.f32.mrb[255].mxu0  ;;  %v7794_v11 = vpop.f32.mrb[163].mxu1 }
 0x54f   :  { %v8243_v7 = vadd.f32 %v17844_v26, %v8242_v16  ;;  %8446 = vrot.lane.b32.xlu0 %v8240_v59, %s10548_s16  ;;  %v21212_v59 = vld [vmem:[#allocation219_spill] sm:$0xff] }
 0x551   :  { %8448 = vrot.lane.b32.xlu1 %v8243_v7, %s10548_s16 }
 0x553   :  { %v9874_v34 = vpop.f32.mrb[0].mxu0  ;;  %4054 = vrot.lane.b32.xlu0 %v21211_v41, %s10549_s21  ;;  %v7797_v12 = vpop.f32.mrb[164].mxu1 }
 0x554   :  { %v18113_v54 = vadd.f32 %v17928_v28, %v9874_v34  ;;  %v18116_v56 = vadd.f32 %v18002_v55, %v7797_v12  ;;  %v8255_v14 = vpop.f32.mrb[1].mxu0  ;;  %v7799_v30 = vpop.f32.mrb[165].mxu1 }
 0x555   :  { %v18119_v35 = vadd.f32 %v17904_v62, %v8255_v14  ;;  %v9875_v26 = vpop.f32.mrb[2].mxu0  ;;  %4056 = vrot.lane.b32.xlu1 %v21212_v59, %s10549_s21  ;;  %v7800_v27 = vpop.f32.mrb[166].mxu1 }
 0x556   :  { %v18124_v17 = vadd.f32 %v17932_v22, %v9875_v26  ;;  %v18127_v16 = vadd.f32 %v18007_v20, %v7800_v27  ;;  %v8258_v28 = vpop.f32.mrb[3].mxu0  ;;  %v7802_v11 = vpop.f32.mrb[167].mxu1 }
 0x557   :  { %v18130_v55 = vadd.f32 %v17919_v38, %v8258_v28 }
 0x55b   :  { %v9878_v7 = vpop.f32.mrb[4].mxu0  ;;  %v7805_v34 = vpop.f32.mrb[168].mxu1 }
 0x55c   :  { %v18133_v62 = vadd.f32 %v17953_v53, %v9878_v7  ;;  %v18136_v41 = vadd.f32 %v18018_v57, %v7805_v34  ;;  %v8271_v12 = vpop.f32.mrb[5].mxu0  ;;  %v7807_v14 = vpop.f32.mrb[169].mxu1 }
 0x55d   :  { %v18139_v22 = vadd.f32 %v17945_v15, %v8271_v12  ;;  %v9879_v20 = vpop.f32.mrb[6].mxu0  ;;  %v7808_v30 = vpop.f32.mrb[170].mxu1 }
 0x55e   :  { %v18142_v26 = vadd.f32 %v17956_v33, %v9879_v20  ;;  %v18145_v38 = vadd.f32 %v18020_v49, %v7808_v30  ;;  %v8274_v59 = vpop.f32.mrb[7].mxu0  ;;  %v7810_v27 = vpop.f32.mrb[171].mxu1 }
 0x55f   :  { %v18148_v53 = vadd.f32 %v17950_v18, %v8274_v59 }
 0x563   :  { %v9882_v57 = vpop.f32.mrb[8].mxu0 }
 0x564   :  { %v18151_v28 = vadd.f32 %v17973_v4, %v9882_v57  ;;  %v8287_v11 = vpop.f32.mrb[9].mxu0  ;;  %v21214_v57 = vld [vmem:[#allocation84_spill] sm:$0xff] }
 0x565   :  { %v18154_v15 = vadd.f32 %v17965_v3, %v8287_v11  ;;  %v9883_v7 = vpop.f32.mrb[10].mxu0 }
 0x566   :  { %v18157_v33 = vadd.f32 %v17976_v42, %v9883_v7  ;;  %v8290_v34 = vpop.f32.mrb[11].mxu0 }
 0x567   :  { %v18160_v49 = vadd.f32 %v17970_v47, %v8290_v34  ;;  %v21213_v47 = vld [vmem:[#allocation206_spill] sm:$0xff]  ;;  %v21216_v34 = vld [vmem:[#allocation95_spill] sm:$0xff] }
 0x56b   :  { %v9886_v12 = vpop.f32.mrb[12].mxu0 }
 0x56c   :  { %v8312_v18 = vadd.f32 %v17993_v32, %v9886_v12  ;;  %v8303_v14 = vpop.f32.mrb[13].mxu0 }
 0x56d   :  { %v8304_v20 = vadd.f32 %v17985_v63, %v8303_v14  ;;  %v9887_v4 = vpop.f32.mrb[14].mxu0  ;;  %v21217_v14 = vld [vmem:[#allocation220_spill] sm:$0xff] }
 0x56e   :  { %v18165_v30 = vadd.f32 %v17996_v23, %v9887_v4  ;;  %v8306_v3 = vpop.f32.mrb[15].mxu0 }
 0x56f   :  { %v8307_v59 = vadd.f32 %v17990_v61, %v8306_v3  ;;  %8510 = vrot.lane.b32.xlu0 %v8304_v20, %s10549_s21  ;;  %v21215_v61 = vld [vmem:[#allocation9_spill] sm:$0xff] }
 0x571   :  { %8512 = vrot.lane.b32.xlu1 %v8307_v59, %s10549_s21 }
 0x573   :  { %v9890_v42 = vpop.f32.mrb[16].mxu0  ;;  %3994 = vrot.lane.b32.xlu0 %v21213_v47, %s10548_s16 }
 0x574   :  { %v18173_v32 = vadd.f32 %v18013_v10, %v9890_v42  ;;  %v8319_v27 = vpop.f32.mrb[17].mxu0 }
 0x575   :  { %v18176_v63 = vadd.f32 %v18005_v0, %v8319_v27  ;;  %v9891_v23 = vpop.f32.mrb[18].mxu0  ;;  %4118 = vrot.lane.b32.xlu1 %v21214_v57, %s10550_s22 }
 0x576   :  { %v18181_v11 = vadd.f32 %v21215_v61, %v9891_v23  ;;  %v8322_v7 = vpop.f32.mrb[19].mxu0 }
 0x577   :  { %v18184_v12 = vadd.f32 %v21216_v34, %v8322_v7  ;;  %4120 = vrot.lane.b32.xlu0 %v21217_v14, %s10550_s22 }
 0x579   :  { %8450 = vrot.lane.b32.xlu1 %v18095_v8, %s10548_s16 }
 0x57b   :  { %v9894_v10 = vpop.f32.mrb[20].mxu0 }
 0x57c   :  { %v18191_v0 = vadd.f32 %v18044_v13, %v9894_v10  ;;  %v8335_v20 = vpop.f32.mrb[21].mxu0 }
 0x57d   :  { %v18194_v4 = vadd.f32 %v18026_v1, %v8335_v20  ;;  %v9895_v3 = vpop.f32.mrb[22].mxu0 }
 0x57e   :  { %v18197_v59 = vadd.f32 %v18053_v48, %v9895_v3  ;;  %v8338_v42 = vpop.f32.mrb[23].mxu0 }
 0x57f   :  { %v18200_v47 = vadd.f32 %v18035_v44, %v8338_v42 }
 0x583   :  { %v9898_v27 = vpop.f32.mrb[24].mxu0 }
 0x584   :  { %v18203_v23 = vadd.f32 %v18080_v60, %v9898_v27  ;;  %v8351_v8 = vpop.f32.mrb[25].mxu0 }
 0x585   :  { %v18206_v13 = vadd.f32 %v18062_v39, %v8351_v8  ;;  %v9899_v57 = vpop.f32.mrb[26].mxu0  ;;  %v21218_v8 = vld [vmem:[#allocation112_spill] sm:$0xff] }
 0x586   :  { %v18209_v1 = vadd.f32 %v18089_v45, %v9899_v57  ;;  %v8354_v61 = vpop.f32.mrb[27].mxu0 }
 0x587   :  { %v18212_v48 = vadd.f32 %v18071_v9, %v8354_v61 }
 0x58b   :  { %v9902_v7 = vpop.f32.mrb[28].mxu0  ;;  %v8102_v34 = vpop.f32.mrb[172].mxu1 }
 0x58c   :  { %v8376_v44 = vadd.f32 %v18116_v56, %v9902_v7  ;;  %v8367_v14 = vpop.f32.mrb[29].mxu0  ;;  %v8104_v10 = vpop.f32.mrb[173].mxu1 }
 0x58d   :  { %v8368_v60 = vadd.f32 %v18098_v19, %v8367_v14  ;;  %v9903_v20 = vpop.f32.mrb[30].mxu0  ;;  %v8105_v3 = vpop.f32.mrb[174].mxu1 }
 0x58e   :  { %v8379_v39 = vadd.f32 %v18127_v16, %v9903_v20  ;;  %v8370_v42 = vpop.f32.mrb[31].mxu0  ;;  %v8107_v27 = vpop.f32.mrb[175].mxu1 }
 0x58f   :  { %v8371_v45 = vadd.f32 %v18105_v52, %v8370_v42  ;;  %8574 = vrot.lane.b32.xlu0 %v8368_v60, %s10550_s22  ;;  %v21219_v42 = vld [vmem:[#allocation183_spill] sm:$0xff] }
 0x591   :  { %8576 = vrot.lane.b32.xlu1 %v8371_v45, %s10550_s22 }
 0x593   :  { %v9906_v9 = vpop.f32.mrb[32].mxu0  ;;  %4058 = vrot.lane.b32.xlu0 %v21218_v8, %s10549_s21  ;;  %v8110_v56 = vpop.f32.mrb[176].mxu1 }
 0x594   :  { %v18222_v57 = vadd.f32 %v9906_v9, %v8102_v34  ;;  %v8383_v19 = vpop.f32.mrb[33].mxu0  ;;  %v8112_v61 = vpop.f32.mrb[177].mxu1  ;;  %v21220_v34 = vld [vmem:[#allocation121_spill] sm:$0xff] }
 0x595   :  { %v8384_v7 = vadd.f32 %v18136_v41, %v8383_v19  ;;  %v9907_v16 = vpop.f32.mrb[34].mxu0  ;;  %8514 = vrot.lane.b32.xlu1 %v8312_v18, %s10549_s21  ;;  %v8113_v14 = vpop.f32.mrb[178].mxu1 }
 0x596   :  { %v18226_v52 = vadd.f32 %v9907_v16, %v8105_v3  ;;  %v8386_v10 = vpop.f32.mrb[35].mxu0  ;;  %v8115_v60 = vpop.f32.mrb[179].mxu1 }
 0x597   :  { %v8387_v20 = vadd.f32 %v18145_v38, %v8386_v10  ;;  %3996 = vrot.lane.b32.xlu0 %v21219_v42, %s10548_s16  ;;  %v21221_v60 = vld [vmem:[#allocation223_spill] sm:$0xff]  ;;  %v21222_v42 = vld [vmem:[#allocation100_spill] sm:$0xff] }
 0x599   :  { %4122 = vrot.lane.b32.xlu1 %v21220_v34, %s10550_s22 }
 0x59b   :  { %v9910_v27 = vpop.f32.mrb[36].mxu0  ;;  %8452 = vrot.lane.b32.xlu0 %v18102_v29, %s10548_s16  ;;  %v8118_v41 = vpop.f32.mrb[180].mxu1 }
 0x59c   :  { %v18235_v45 = vadd.f32 %v9910_v27, %v8118_v41  ;;  %v8399_v18 = vpop.f32.mrb[37].mxu0  ;;  %v8120_v3 = vpop.f32.mrb[181].mxu1 }
 0x59d   :  { %v8400_v9 = vadd.f32 %v8399_v18, %v8110_v56  ;;  %v9911_v8 = vpop.f32.mrb[38].mxu0  ;;  %8578 = vrot.lane.b32.xlu1 %v8376_v44, %s10550_s22  ;;  %v8121_v38 = vpop.f32.mrb[182].mxu1  ;;  %v21223_v18 = vld [vmem:[#allocation60_spill] sm:$0xff] }
 0x59e   :  { %v18238_v19 = vadd.f32 %v9911_v8, %v8121_v38  ;;  %v8402_v61 = vpop.f32.mrb[39].mxu0  ;;  %v8123_v16 = vpop.f32.mrb[183].mxu1 }
 0x59f   :  { %v18240_v10 = vadd.f32 %v8402_v61, %v8113_v14  ;;  %4060 = vrot.lane.b32.xlu0 %v21221_v60, %s10549_s21 }
 0x5a1   :  { %8516 = vrot.lane.b32.xlu1 %v18165_v30, %s10549_s21  ;;  %v21224_v30 = vld [vmem:[#allocation31_spill] sm:$0xff] }
 0x5a3   :  { %v9914_v29 = vpop.f32.mrb[40].mxu0  ;;  %3998 = vrot.lane.b32.xlu0 %v21222_v42, %s10548_s16  ;;  %v8126_v56 = vpop.f32.mrb[184].mxu1 }
 0x5a4   :  { %v8415_v34 = vpop.f32.mrb[41].mxu0  ;;  %v8128_v44 = vpop.f32.mrb[185].mxu1 }
 0x5a5   :  { %v18248_v27 = vadd.f32 %v8415_v34, %v8126_v56  ;;  %v9915_v41 = vpop.f32.mrb[42].mxu0  ;;  %4124 = vrot.lane.b32.xlu1 %v21223_v18, %s10550_s22  ;;  %v8129_v14 = vpop.f32.mrb[186].mxu1  ;;  %v21225_v44 = vld [vmem:[#allocation78_spill] sm:$0xff]  ;;  %v21239_v18 = vld [vmem:[#allocation139_spill] sm:$0xff] }
 0x5a6   :  { %v8418_v3 = vpop.f32.mrb[43].mxu0  ;;  %v8131_v8 = vpop.f32.mrb[187].mxu1 }
 0x5a7   :  { %v18252_v38 = vadd.f32 %v8418_v3, %v8129_v14  ;;  %8454 = vrot.lane.b32.xlu0 %v18119_v35, %s10548_s16  ;;  %v21226_v35 = vld [vmem:[#allocation26_spill] sm:$0xff] }
 0x5a8   :  { %v21240_v14 = vld [vmem:[#allocation246_spill] sm:$0xff] }
 0x5a9   :  { %8580 = vrot.lane.b32.xlu1 %v8379_v39, %s10550_s22  ;;  %v21227_v39 = vld [vmem:[#allocation77_spill] sm:$0xff] }
 0x5ab   :  { %4062 = vrot.lane.b32.xlu0 %v21224_v30, %s10549_s21  ;;  %v8134_v61 = vpop.f32.mrb[188].mxu1 }
 0x5ac   :  { %v18259_v16 = vadd.f32 %v9914_v29, %v8134_v61  ;;  %v8136_v60 = vpop.f32.mrb[189].mxu1  ;;  %v21229_v29 = vld [vmem:[#allocation55_spill] sm:$0xff] }
 0x5ad   :  { %8518 = vrot.lane.b32.xlu1 %v18176_v63, %s10549_s21  ;;  %v8137_v42 = vpop.f32.mrb[190].mxu1  ;;  %v21228_v63 = vld [vmem:[#allocation81_spill] sm:$0xff]  ;;  %v21243_v60 = vld [vmem:[#allocation247_spill] sm:$0xff] }
 0x5ae   :  { %v18263_v56 = vadd.f32 %v9915_v41, %v8137_v42  ;;  %v8139_v34 = vpop.f32.mrb[191].mxu1  ;;  %v18315_v41 = vpop.permute.xlu0 %3990 }
 0x5af   :  { %4000 = vrot.lane.b32.xlu0 %v21225_v44, %s10548_s16 }
 0x5b1   :  { %4126 = vrot.lane.b32.xlu1 %v21226_v35, %s10550_s22  ;;  %v21246_v35 = vld [vmem:[#allocation145_spill] sm:$0xff] }
 0x5b3   :  { %8456 = vrot.lane.b32.xlu0 %v18130_v55, %s10548_s16  ;;  %v21230_v55 = vld [vmem:[#allocation155_spill] sm:$0xff] }
 0x5b5   :  { %8582 = vrot.lane.b32.xlu1 %v8384_v7, %s10550_s22  ;;  %v21231_v7 = vld [vmem:[#allocation196_spill] sm:$0xff] }
 0x5b7   :  { %4064 = vrot.lane.b32.xlu0 %v21227_v39, %s10549_s21 }
 0x5b9   :  { %8520 = vrot.lane.b32.xlu1 %v18184_v12, %s10549_s21  ;;  %v21232_v12 = vld [vmem:[#allocation197_spill] sm:$0xff] }
 0x5bb   :  { %4002 = vrot.lane.b32.xlu0 %v21228_v63, %s10548_s16  ;;  %v21247_v63 = vld [vmem:[#allocation65_spill] sm:$0xff] }
 0x5bd   :  { %4128 = vrot.lane.b32.xlu1 %v21229_v29, %s10550_s22 }
 0x5bf   :  { %8458 = vrot.lane.b32.xlu0 %v18113_v54, %s10548_s16  ;;  %v21233_v54 = vld [vmem:[#allocation40_spill] sm:$0xff] }
 0x5c1   :  { %8584 = vrot.lane.b32.xlu1 %v8387_v20, %s10550_s22  ;;  %v21235_v20 = vld [vmem:[#allocation130_spill] sm:$0xff] }
 0x5c3   :  { %4066 = vrot.lane.b32.xlu0 %v21230_v55, %s10549_s21 }
 0x5c5   :  { %8522 = vrot.lane.b32.xlu1 %v18173_v32, %s10549_s21  ;;  %v21234_v32 = vld [vmem:[#allocation237_spill] sm:$0xff] }
 0x5c7   :  { %4004 = vrot.lane.b32.xlu0 %v21231_v7, %s10548_s16 }
 0x5c9   :  { %4130 = vrot.lane.b32.xlu1 %v21232_v12, %s10550_s22  ;;  %v21249_v12 = vld [vmem:[#allocation253_spill] sm:$0xff] }
 0x5cb   :  { %8460 = vrot.lane.b32.xlu0 %v18124_v17, %s10548_s16  ;;  %v21236_v17 = vld [vmem:[#allocation131_spill] sm:$0xff] }
 0x5cd   :  { %8586 = vrot.lane.b32.xlu1 %v18222_v57, %s10550_s22  ;;  %v21238_v57 = vld [vmem:[#allocation138_spill] sm:$0xff] }
 0x5cf   :  { %4068 = vrot.lane.b32.xlu0 %v21233_v54, %s10549_s21 }
 0x5d1   :  { %8524 = vrot.lane.b32.xlu1 %v18181_v11, %s10549_s21  ;;  %v21237_v11 = vld [vmem:[#allocation238_spill] sm:$0xff] }
 0x5d3   :  { %4006 = vrot.lane.b32.xlu0 %v21234_v32, %s10548_s16  ;;  %v21250_v32 = vld [vmem:[#allocation147_spill] sm:$0xff] }
 0x5d5   :  { %4132 = vrot.lane.b32.xlu1 %v21235_v20, %s10550_s22 }
 0x5d7   :  { %8462 = vrot.lane.b32.xlu0 %v18139_v22, %s10548_s16  ;;  %v18319_v22 = vpop.permute.xlu1 %3992 }
 0x5d8   :  { %v4167_v46 = vsel %vm2641_vm9, %v21268_v37, %v18319_v22 }
 0x5d9   :  { %8588 = vrot.lane.b32.xlu1 %v18226_v52, %s10550_s22  ;;  %v18322_v52 = vpop.permute.xlu0 %8446 }
 0x5db   :  { %4070 = vrot.lane.b32.xlu0 %v21236_v17, %s10549_s21 }
 0x5dd   :  { %8526 = vrot.lane.b32.xlu1 %v18194_v4, %s10549_s21  ;;  %v18326_v4 = vpop.permute.xlu1 %8448  ;;  %v18332_v3 = vpop.permute.xlu0 %4054 }
 0x5df   :  { %4008 = vrot.lane.b32.xlu0 %v21237_v11, %s10548_s16 }
 0x5e1   :  { %4134 = vrot.lane.b32.xlu1 %v21238_v57, %s10550_s22  ;;  %v18336_v8 = vpop.permute.xlu1 %4056  ;;  %v21252_v57 = vld [vmem:[#allocation210_spill] sm:$0xff] }
 0x5e2   :  { %v4183_v36 = vsel %vm2738_vm10, %v4167_v46, %v18336_v8  ;;  %v21270_v8 = vld [vmem:[#allocation175_spill] sm:$0xff] }
 0x5e3   :  { %8464 = vrot.lane.b32.xlu0 %v18148_v53, %s10548_s16  ;;  %v21241_v53 = vld [vmem:[#allocation21_spill] sm:$0xff] }
 0x5e5   :  { %8590 = vrot.lane.b32.xlu1 %v8400_v9, %s10550_s22  ;;  %v18340_v9 = vpop.permute.xlu0 %8510  ;;  %v18344_v30 = vpop.permute.xlu1 %8512 }
 0x5e7   :  { %4072 = vrot.lane.b32.xlu0 %v21239_v18, %s10549_s21 }
 0x5e9   :  { %8528 = vrot.lane.b32.xlu1 %v18200_v47, %s10549_s21  ;;  %v21242_v47 = vld [vmem:[#allocation128_spill] sm:$0xff]  ;;  %v18350_v61 = vpop.permute.xlu0 %3994  ;;  %v18354_v42 = vpop.permute.xlu1 %4118 }
 0x5eb   :  { %4010 = vrot.lane.b32.xlu0 %v21240_v14, %s10548_s16  ;;  %v21253_v14 = vld [vmem:[#allocation208_spill] sm:$0xff] }
 0x5ed   :  { %4136 = vrot.lane.b32.xlu1 %v21241_v53, %s10550_s22  ;;  %v18364_v34 = vpop.permute.xlu1 %8450 }
 0x5ef   :  { %8466 = vrot.lane.b32.xlu0 %v18133_v62, %s10548_s16  ;;  %v21244_v62 = vld [vmem:[#allocation7_spill] sm:$0xff] }
 0x5f1   :  { %8592 = vrot.lane.b32.xlu1 %v18240_v10, %s10550_s22  ;;  %v18360_v10 = vpop.permute.xlu0 %4120 }
 0x5f2   :  { %v18568_v37 = vsel %vm2803_vm11, %v4183_v36, %v18360_v10  ;;  %v21271_v36 = vld [vmem:[#allocation257_spill] sm:$0xff] }
 0x5f3   :  { %4074 = vrot.lane.b32.xlu0 %v21242_v47, %s10549_s21 }
 0x5f5   :  { %8530 = vrot.lane.b32.xlu1 %v18191_v0, %s10549_s21  ;;  %v21245_v0 = vld [vmem:[#allocation160_spill] sm:$0xff] }
 0x5f7   :  { %4012 = vrot.lane.b32.xlu0 %v21243_v60, %s10548_s16 }
 0x5f9   :  { %4138 = vrot.lane.b32.xlu1 %v21244_v62, %s10550_s22 }
 0x5fb   :  { %8468 = vrot.lane.b32.xlu0 %v18142_v26, %s10548_s16 }
 0x5fd   :  { %8594 = vrot.lane.b32.xlu1 %v18235_v45, %s10550_s22 }
 0x5ff   :  { %4076 = vrot.lane.b32.xlu0 %v21245_v0, %s10549_s21 }
 0x601   :  { %v18368_v44 = vpop.permute.xlu0 %8574  ;;  %8532 = vrot.lane.b32.xlu1 %v18197_v59, %s10549_s21  ;;  %v21248_v59 = vld [vmem:[#allocation33_spill] sm:$0xff] }
 0x603   :  { %4014 = vrot.lane.b32.xlu0 %v21246_v35, %s10548_s16  ;;  %v18374_v39 = vpop.permute.xlu1 %8576  ;;  %v21255_v35 = vld [vmem:[#allocation203_spill] sm:$0xff] }
 0x605   :  { %v18376_v26 = vpop.permute.xlu0 %4058  ;;  %4140 = vrot.lane.b32.xlu1 %v21247_v63, %s10550_s22 }
 0x607   :  { %8470 = vrot.lane.b32.xlu0 %v18154_v15, %s10548_s16  ;;  %v18382_v45 = vpop.permute.xlu1 %8514 }
 0x609   :  { %v18384_v29 = vpop.permute.xlu0 %3996  ;;  %8596 = vrot.lane.b32.xlu1 %v18238_v19, %s10550_s22 }
 0x60b   :  { %4078 = vrot.lane.b32.xlu0 %v21248_v59, %s10549_s21  ;;  %v18390_v55 = vpop.permute.xlu1 %4122  ;;  %v21256_v59 = vld [vmem:[#allocation176_spill] sm:$0xff] }
 0x60d   :  { %v18392_v7 = vpop.permute.xlu0 %8452  ;;  %8534 = vrot.lane.b32.xlu1 %v18206_v13, %s10549_s21  ;;  %v21251_v13 = vld [vmem:[#allocation241_spill] sm:$0xff] }
 0x60f   :  { %4016 = vrot.lane.b32.xlu0 %v21249_v12, %s10548_s16  ;;  %v18398_v15 = vpop.permute.xlu1 %8578 }
 0x611   :  { %v18400_v54 = vpop.permute.xlu0 %4060  ;;  %4142 = vrot.lane.b32.xlu1 %v21250_v32, %s10550_s22 }
 0x613   :  { %8472 = vrot.lane.b32.xlu0 %v18160_v49, %s10548_s16  ;;  %v18406_v19 = vpop.permute.xlu1 %8516 }
 0x615   :  { %v18408_v20 = vpop.permute.xlu0 %3998  ;;  %8598 = vrot.lane.b32.xlu1 %v18248_v27, %s10550_s22 }
 0x617   :  { %4080 = vrot.lane.b32.xlu0 %v21251_v13, %s10549_s21  ;;  %v18414_v17 = vpop.permute.xlu1 %4124 }
 0x619   :  { %v8455_v11 = vpop.permute.xlu0 %8454  ;;  %8536 = vrot.lane.b32.xlu1 %v18212_v48, %s10549_s21  ;;  %v21254_v48 = vld [vmem:[#allocation91_spill] sm:$0xff] }
 0x61a   :  { %v8626_v62 = vsel %vm2641_vm9, %v18047_v51, %v8455_v11 }
 0x61b   :  { %4018 = vrot.lane.b32.xlu0 %v21252_v57, %s10548_s16  ;;  %v18420_v49 = vpop.permute.xlu1 %8580  ;;  %v21258_v57 = vld [vmem:[#allocation88_spill] sm:$0xff] }
 0x61d   :  { %v18422_v18 = vpop.permute.xlu0 %4062  ;;  %4144 = vrot.lane.b32.xlu1 %v21253_v14, %s10550_s22 }
 0x61f   :  { %8474 = vrot.lane.b32.xlu0 %v18151_v28, %s10548_s16  ;;  %v8519_v27 = vpop.permute.xlu1 %8518 }
 0x620   :  { %v8642_v0 = vsel %vm2738_vm10, %v8626_v62, %v8519_v27  ;;  %v21259_v27 = vld [vmem:[#allocation102_spill] sm:$0xff]  ;;  %v21260_v62 = vld [vmem:[#allocation259_spill] sm:$0xff] }
 0x621   :  { %v4001_v53 = vpop.permute.xlu0 %4000  ;;  %8600 = vrot.lane.b32.xlu1 %v18252_v38, %s10550_s22 }
 0x622   :  { %v4171_v12 = vsel %vm2641_vm9, %v21256_v59, %v4001_v53 }
 0x623   :  { %4082 = vrot.lane.b32.xlu0 %v21254_v48, %s10549_s21  ;;  %v18432_v47 = vpop.permute.xlu1 %4126 }
 0x625   :  { %v8457_v60 = vpop.permute.xlu0 %8456  ;;  %8538 = vrot.lane.b32.xlu1 %v18203_v23, %s10549_s21  ;;  %v21257_v23 = vld [vmem:[#allocation5_spill] sm:$0xff] }
 0x626   :  { %v8627_v28 = vsel %vm2641_vm9, %v18056_v43, %v8457_v60 }
 0x627   :  { %4020 = vrot.lane.b32.xlu0 %v21255_v35, %s10548_s16  ;;  %v8583_v38 = vpop.permute.xlu1 %8582 }
 0x628   :  { %v18444_v63 = vsel %vm2803_vm11, %v8642_v0, %v8583_v38 }
 0x629   :  { %v4065_v32 = vpop.permute.xlu0 %4064  ;;  %4146 = vrot.lane.b32.xlu1 %v21257_v23, %s10550_s22 }
 0x62a   :  { %v4187_v51 = vsel %vm2738_vm10, %v4171_v12, %v4065_v32  ;;  %v21261_v12 = vld [vmem:[#allocation184_spill] sm:$0xff] }
 0x62b   :  { %8476 = vrot.lane.b32.xlu0 %v18157_v33, %s10548_s16  ;;  %v8521_v43 = vpop.permute.xlu1 %8520 }
 0x62c   :  { %v8643_v13 = vsel %vm2738_vm10, %v8627_v28, %v8521_v43 }
 0x62d   :  { %v4003_v11 = vpop.permute.xlu0 %4002  ;;  %8602 = vrot.lane.b32.xlu1 %v18259_v16, %s10550_s22 }
 0x62e   :  { %v4172_v14 = vsel %vm2641_vm9, %v21258_v57, %v4003_v11 }
 0x62f   :  { %4084 = vrot.lane.b32.xlu0 %v21259_v27, %s10549_s21  ;;  %v4129_v53 = vpop.permute.xlu1 %4128 }
 0x630   :  { %v18461_v48 = vsel %vm2803_vm11, %v4187_v51, %v4129_v53 }
 0x631   :  { %v8459_v60 = vpop.permute.xlu0 %8458  ;;  %8540 = vrot.lane.b32.xlu1 %v18209_v1, %s10549_s21 }
 0x632   :  { %v8628_v33 = vsel %vm2641_vm9, %v18041_v21, %v8459_v60  ;;  %v21262_v60 = vld [vmem:[#allocation159_spill] sm:$0xff] }
 0x633   :  { %4148 = vrot.lane.b32.xlu0 %v21260_v62, %s10550_s22  ;;  %v8585_v16 = vpop.permute.xlu1 %8584 }
 0x634   :  { %v18470_v28 = vsel %vm2803_vm11, %v8643_v13, %v8585_v16 }
 0x635   :  { %v4067_v0 = vpop.permute.xlu0 %4066  ;;  %8604 = vrot.lane.b32.xlu1 %v18263_v56, %s10550_s22 }
 0x636   :  { %v4188_v35 = vsel %vm2738_vm10, %v4172_v14, %v4067_v0 }
 0x637   :  { %v8523_v38 = vpop.permute.xlu1 %8522 }
 0x638   :  { %v8644_v59 = vsel %vm2738_vm10, %v8628_v33, %v8523_v38 }
 0x639   :  { %v4005_v1 = vpop.permute.xlu0 %4004 }
 0x63a   :  { %v4173_v21 = vsel %vm2641_vm9, %v21261_v12, %v4005_v1 }
 0x63b   :  { %v4131_v32 = vpop.permute.xlu1 %4130 }
 0x63c   :  { %v18479_v23 = vsel %vm2803_vm11, %v4188_v35, %v4131_v32 }
 0x63d   :  { %v8461_v51 = vpop.permute.xlu0 %8460 }
 0x63e   :  { %v8629_v43 = vsel %vm2641_vm9, %v18050_v40, %v8461_v51  ;;  %v21263_v51 = vld [vmem:[#allocation80_spill] sm:$0xff] }
 0x63f   :  { %v8587_v13 = vpop.permute.xlu1 %8586 }
 0x640   :  { %v18484_v56 = vsel %vm2803_vm11, %v8644_v59, %v8587_v13 }
 0x641   :  { %v4069_v11 = vpop.permute.xlu0 %4068 }
 0x642   :  { %v4189_v57 = vsel %vm2738_vm10, %v4173_v21, %v4069_v11 }
 0x643   :  { %v8525_v14 = vpop.permute.xlu1 %8524 }
 0x644   :  { %v8645_v27 = vsel %vm2738_vm10, %v8629_v43, %v8525_v14 }
 0x645   :  { %v4007_v53 = vpop.permute.xlu0 %4006 }
 0x646   :  { %v4174_v33 = vsel %vm2641_vm9, %v21262_v60, %v4007_v53 }
 0x647   :  { %v4133_v62 = vpop.permute.xlu1 %4132 }
 0x648   :  { %v18491_v16 = vsel %vm2803_vm11, %v4189_v57, %v4133_v62 }
 0x649   :  { %v8463_v0 = vpop.permute.xlu0 %8462 }
 0x64a   :  { %v8630_v40 = vsel %vm2641_vm9, %v18065_v2, %v8463_v0 }
 0x64b   :  { %v8589_v35 = vpop.permute.xlu1 %8588 }
 0x64c   :  { %v18496_v38 = vsel %vm2803_vm11, %v8645_v27, %v8589_v35 }
 0x64d   :  { %v4071_v59 = vpop.permute.xlu0 %4070 }
 0x64e   :  { %v4190_v1 = vsel %vm2738_vm10, %v4174_v33, %v4071_v59 }
 0x64f   :  { %v8527_v12 = vpop.permute.xlu1 %8526 }
 0x650   :  { %v8646_v21 = vsel %vm2738_vm10, %v8630_v40, %v8527_v12 }
 0x651   :  { %v4009_v32 = vpop.permute.xlu0 %4008 }
 0x652   :  { %v18502_v43 = vsel %vm2641_vm9, %v21263_v51, %v4009_v32 }
 0x653   :  { %v4135_v13 = vpop.permute.xlu1 %4134 }
 0x654   :  { %v18505_v11 = vsel %vm2803_vm11, %v4190_v1, %v4135_v13 }
 0x655   :  { %v8465_v2 = vpop.permute.xlu0 %8464 }
 0x656   :  { %v18509_v57 = vsel %vm2641_vm9, %v18074_v5, %v8465_v2 }
 0x657   :  { %v8591_v14 = vpop.permute.xlu1 %8590 }
 0x658   :  { %v18512_v27 = vsel %vm2803_vm11, %v8646_v21, %v8591_v14 }
 0x659   :  { %v18514_v53 = vpop.permute.xlu0 %4072 }
 0x65b   :  { %v18516_v60 = vpop.permute.xlu1 %8528 }
 0x65d   :  { %v18518_v33 = vpop.permute.xlu0 %4010 }
 0x65f   :  { %v18520_v62 = vpop.permute.xlu1 %4136 }
 0x661   :  { %v18522_v0 = vpop.permute.xlu0 %8466 }
 0x663   :  { %v18524_v40 = vpop.permute.xlu1 %8592 }
 0x665   :  { %v18526_v35 = vpop.permute.xlu0 %4074 }
 0x667   :  { %v18528_v5 = vpop.permute.xlu1 %8530 }
 0x669   :  { %v18530_v59 = vpop.permute.xlu0 %4012 }
 0x66b   :  { %v18532_v1 = vpop.permute.xlu1 %4138 }
 0x66d   :  { %v18534_v12 = vpop.permute.xlu0 %8468 }
 0x66e   :  { %21264 = vst [vmem:[#allocation11_spill] sm:$0xff] %v18534_v12  ;;  %v21269_v12 = vld [vmem:[#allocation56_spill] sm:$0xff] }
 0x66f   :  { %v18536_v21 = vpop.permute.xlu1 %8594 }
 0x671   :  { %v18538_v32 = vpop.permute.xlu0 %4076 }
 0x673   :  { %v18540_v51 = vpop.permute.xlu1 %8532 }
 0x674   :  { %21265 = vst [vmem:[#allocation202_spill] sm:$0xff] %v18540_v51  ;;  %v4166_v51 = vsel %vm2641_vm9, %v21269_v12, %v18315_v41 }
 0x675   :  { %v18542_v13 = vpop.permute.xlu0 %4014  ;;  %v4182_v46 = vsel %vm2738_vm10, %v4166_v51, %v18332_v3 }
 0x677   :  { %v18544_v2 = vpop.permute.xlu1 %4140 }
 0x678   :  { %21266 = vst [vmem:[#allocation127_spill] sm:$0xff] %v18544_v2  ;;  %v8622_v2 = vsel %vm2641_vm9, %v18029_v31, %v18322_v52  ;;  %v4168_v31 = vsel %vm2641_vm9, %v21270_v8, %v18350_v61  ;;  %v21272_v61 = vld [vmem:[#allocation64_spill] sm:$0xff] }
 0x679   :  { %v18546_v14 = vpop.permute.xlu0 %8470  ;;  %v8638_v22 = vsel %vm2738_vm10, %v8622_v2, %v18340_v9  ;;  %v4236_v9 = vmul.f32 %v18568_v37, %v18568_v37 }
 0x67b   :  { %v18548_v25 = vpop.permute.xlu1 %8596 }
 0x67c   :  { %21267 = vst [vmem:[#allocation86_spill] sm:$0xff] %v18548_v25  ;;  %v8623_v25 = vsel %vm2641_vm9, %v18038_v24, %v18326_v4  ;;  %v18583_v24 = vsel %vm2803_vm11, %v4182_v46, %v18354_v42  ;;  %v8624_v4 = vsel %vm2641_vm9, %v21271_v36, %v18364_v34  ;;  %v4169_v42 = vsel %vm2641_vm9, %v21272_v61, %v18384_v29 }
 0x67d   :  { %v18555_v58 = vpop.permute.xlu0 %4078  ;;  %v8639_v41 = vsel %vm2738_vm10, %v8623_v25, %v18344_v30  ;;  %v4184_v25 = vsel %vm2738_vm10, %v4168_v31, %v18376_v26  ;;  %v8640_v30 = vsel %vm2738_vm10, %v8624_v4, %v18382_v45  ;;  %v8625_v26 = vsel %vm2641_vm9, %v18032_v6, %v18392_v7 }
 0x67e   :  { %v18590_v3 = vsel %vm2803_vm11, %v8639_v41, %v18374_v39  ;;  %v18603_v10 = vsel %vm2803_vm11, %v4184_v25, %v18390_v55  ;;  %v18609_v39 = vsel %vm2803_vm11, %v8638_v22, %v18368_v44  ;;  %v18616_v45 = vsel %vm2803_vm11, %v8640_v30, %v18398_v15  ;;  %v21273_v44 = vld [vmem:[#allocation67_spill] sm:$0xff] }
 0x67f   :  { %v18579_v52 = vpop.permute.xlu1 %8534  ;;  %v4185_v29 = vsel %vm2738_vm10, %v4169_v42, %v18400_v54  ;;  %v8692_v55 = vmul.f32 %v18590_v3, %v18590_v3  ;;  %v8641_v12 = vsel %vm2738_vm10, %v8625_v26, %v18406_v19  ;;  %v4170_v51 = vsel %vm2641_vm9, %v21273_v44, %v18408_v20 }
 0x680   :  { %v18629_v6 = vsel %vm2803_vm11, %v4185_v29, %v18414_v17  ;;  %v4235_v15 = vmul.f32 %v18583_v24, %v18583_v24  ;;  %v4237_v54 = vmul.f32 %v18603_v10, %v18603_v10  ;;  %v18639_v2 = vsel %vm2803_vm11, %v8641_v12, %v18420_v49 }
 0x681   :  { %v18605_v34 = vpop.permute.xlu0 %4016  ;;  %v4186_v19 = vsel %vm2738_vm10, %v4170_v51, %v18422_v18  ;;  %v4214_v20 = vadd.f32 %v18568_v37, %v18583_v24  ;;  %v8691_v17 = vmul.f32 %v18609_v39, %v18609_v39  ;;  %v8693_v46 = vmul.f32 %v18616_v45, %v18616_v45 }
 0x682   :  { %v18651_v22 = vsel %vm2803_vm11, %v4186_v19, %v18432_v47  ;;  %v4251_v49 = vadd.f32 %v4236_v9, %v4235_v15  ;;  %v8670_v8 = vadd.f32 %v18590_v3, %v18609_v39  ;;  %v4238_v18 = vmul.f32 %v18629_v6, %v18629_v6 }
 0x683   :  { %v18631_v7 = vpop.permute.xlu1 %4142  ;;  %v8707_v31 = vadd.f32 %v8692_v55, %v8691_v17  ;;  %v4215_v36 = vadd.f32 %v4214_v20, %v18603_v10  ;;  %v8694_v4 = vmul.f32 %v18639_v2, %v18639_v2  ;;  %v4239_v9 = vmul.f32 %v18651_v22, %v18651_v22 }
 0x684   :  { %v4252_v30 = vadd.f32 %v4251_v49, %v4237_v54  ;;  %v8671_v47 = vadd.f32 %v8670_v8, %v18616_v45  ;;  %v8695_v26 = vmul.f32 %v18444_v63, %v18444_v63  ;;  %v4240_v44 = vmul.f32 %v18461_v48, %v18461_v48 }
 0x685   :  { %v18653_v41 = vpop.permute.xlu0 %8472  ;;  %v8708_v61 = vadd.f32 %v8707_v31, %v8693_v46  ;;  %v4216_v42 = vadd.f32 %v4215_v36, %v18629_v6  ;;  %v8696_v54 = vmul.f32 %v18470_v28, %v18470_v28  ;;  %v4241_v46 = vmul.f32 %v18479_v23, %v18479_v23 }
 0x686   :  { %v4253_v55 = vadd.f32 %v4252_v30, %v4238_v18  ;;  %v8672_v12 = vadd.f32 %v8671_v47, %v18639_v2 }
 0x687   :  { %v18662_v25 = vpop.permute.xlu1 %8598  ;;  %v8709_v51 = vadd.f32 %v8708_v61, %v8694_v4  ;;  %v4217_v15 = vadd.f32 %v4216_v42, %v18651_v22  ;;  %v8697_v4 = vmul.f32 %v18484_v56, %v18484_v56  ;;  %v4191_v61 = vsel %vm2738_vm10, %v18502_v43, %v18514_v53  ;;  %v21274_v43 = vld [vmem:[#allocation116_spill] sm:$0xff] }
 0x688   :  { %v4254_v20 = vadd.f32 %v4253_v55, %v4239_v9  ;;  %v8673_v17 = vadd.f32 %v8672_v12, %v18444_v63  ;;  %v4242_v9 = vmul.f32 %v18491_v16, %v18491_v16  ;;  %v8698_v55 = vmul.f32 %v18496_v38, %v18496_v38 }
 0x689   :  { %v18670_v29 = vpop.permute.xlu0 %4080  ;;  %v8710_v49 = vadd.f32 %v8709_v51, %v8695_v26  ;;  %v4218_v8 = vadd.f32 %v4217_v15, %v18461_v48  ;;  %v8647_v12 = vsel %vm2738_vm10, %v18509_v57, %v18516_v60  ;;  %v4243_v15 = vmul.f32 %v18505_v11, %v18505_v11 }
 0x68a   :  { %v4255_v31 = vadd.f32 %v4254_v20, %v4240_v44  ;;  %v8674_v36 = vadd.f32 %v8673_v17, %v18470_v28  ;;  %v18702_v44 = vsel %vm2803_vm11, %v4191_v61, %v18520_v62  ;;  %v4176_v53 = vsel %vm2641_vm9, %v21274_v43, %v18518_v33 }
 0x68b   :  { %v18678_v19 = vpop.permute.xlu1 %8536  ;;  %v8711_v30 = vadd.f32 %v8710_v49, %v8696_v54  ;;  %v4219_v47 = vadd.f32 %v4218_v8, %v18479_v23  ;;  %v18712_v54 = vsel %vm2803_vm11, %v8647_v12, %v18524_v40  ;;  %v8699_v60 = vmul.f32 %v18512_v27, %v18512_v27  ;;  %v21275_v12 = vld [vmem:[#allocation162_spill] sm:$0xff] }
 0x68c   :  { %v4256_v26 = vadd.f32 %v4255_v31, %v4241_v46  ;;  %v8675_v51 = vadd.f32 %v8674_v36, %v18484_v56  ;;  %v4192_v62 = vsel %vm2738_vm10, %v4176_v53, %v18526_v35  ;;  %v4244_v49 = vmul.f32 %v18702_v44, %v18702_v44 }
 0x68d   :  { %v18684_v18 = vpop.permute.xlu0 %4018  ;;  %v8712_v17 = vadd.f32 %v8711_v30, %v8697_v4  ;;  %v4220_v57 = vadd.f32 %v4219_v47, %v18491_v16  ;;  %v8632_v33 = vsel %vm2641_vm9, %v18059_v50, %v18522_v0  ;;  %v18726_v40 = vsel %vm2803_vm11, %v4192_v62, %v18532_v1 }
 0x68e   :  { %v4257_v46 = vadd.f32 %v4256_v26, %v4242_v9  ;;  %v8676_v31 = vadd.f32 %v8675_v51, %v18496_v38  ;;  %v8700_v4 = vmul.f32 %v18712_v54, %v18712_v54  ;;  %v8648_v35 = vsel %vm2738_vm10, %v8632_v33, %v18528_v5 }
 0x68f   :  { %v4145_v42 = vpop.permute.xlu1 %4144  ;;  %v8713_v36 = vadd.f32 %v8712_v17, %v8698_v55  ;;  %v4221_v30 = vadd.f32 %v4220_v57, %v18505_v11  ;;  %v18736_v50 = vsel %vm2803_vm11, %v8648_v35, %v18536_v21  ;;  %v4245_v61 = vmul.f32 %v18726_v40, %v18726_v40  ;;  %v21276_v57 = vld [vmem:[#allocation11_spill] sm:$0xff]  ;;  %v21280_v35 = vld [vmem:[#allocation202_spill] sm:$0xff] }
 0x690   :  { %v4258_v47 = vadd.f32 %v4257_v46, %v4243_v15  ;;  %v8677_v1 = vadd.f32 %v8676_v31, %v18512_v27  ;;  %v4177_v5 = vsel %vm2641_vm9, %v21275_v12, %v18530_v59  ;;  %v8701_v21 = vmul.f32 %v18736_v50, %v18736_v50  ;;  %v21278_v46 = vld [vmem:[#allocation92_spill] sm:$0xff] }
 0x691   :  { %v8475_v20 = vpop.permute.xlu0 %8474  ;;  %v8714_v9 = vadd.f32 %v8713_v36, %v8699_v60  ;;  %v4222_v26 = vadd.f32 %v4221_v30, %v18702_v44  ;;  %v4193_v53 = vsel %vm2738_vm10, %v4177_v5, %v18538_v32  ;;  %v21277_v60 = vld [vmem:[#allocation48_spill] sm:$0xff]  ;;  %v4178_v59 = vsel %vm2641_vm9, %v21278_v46, %v18542_v13  ;;  %v21286_v46 = vld [vmem:[#allocation166_spill] sm:$0xff] }
 0x692   :  { %v4259_v55 = vadd.f32 %v4258_v47, %v4244_v49  ;;  %v8678_v15 = vadd.f32 %v8677_v1, %v18712_v54  ;;  %v8633_v62 = vsel %vm2641_vm9, %v21277_v60, %v21276_v57  ;;  %v21279_v49 = vld [vmem:[#allocation127_spill] sm:$0xff]  ;;  %v4194_v30 = vsel %vm2738_vm10, %v4178_v59, %v18555_v58  ;;  %v21281_v47 = vld [vmem:[#allocation209_spill] sm:$0xff] }
 0x693   :  { %v8601_v8 = vpop.permute.xlu1 %8600  ;;  %v8715_v43 = vadd.f32 %v8714_v9, %v8700_v4  ;;  %v4223_v17 = vadd.f32 %v4222_v26, %v18726_v40  ;;  %v18759_v33 = vsel %vm2803_vm11, %v4193_v53, %v21279_v49  ;;  %v8649_v32 = vsel %vm2738_vm10, %v8633_v62, %v21280_v35  ;;  %v21282_v9 = vld [vmem:[#allocation86_spill] sm:$0xff]  ;;  %v21283_v26 = vld [vmem:[#allocation129_spill] sm:$0xff] }
 0x694   :  { %v4260_v36 = vadd.f32 %v4259_v55, %v4245_v61  ;;  %v8679_v4 = vadd.f32 %v8678_v15, %v18736_v50  ;;  %v8634_v1 = vsel %vm2641_vm9, %v21281_v47, %v18546_v14  ;;  %v18771_v13 = vsel %vm2803_vm11, %v8649_v32, %v21282_v9  ;;  %v21284_v53 = vld [vmem:[#allocation118_spill] sm:$0xff] }
 0x695   :  { %v4083_v0 = vpop.permute.xlu0 %4082  ;;  %v4179_v61 = vsel %vm2641_vm9, %v21283_v26, %v18605_v34  ;;  %v18778_v55 = vsel %vm2803_vm11, %v4194_v30, %v18631_v7  ;;  %v8716_v5 = vadd.f32 %v8715_v43, %v8701_v21  ;;  %v4246_v58 = vmul.f32 %v18759_v33, %v18759_v33  ;;  %v21285_v7 = vld [vmem:[#allocation96_spill] sm:$0xff] }
 0x696   :  { %v8650_v14 = vsel %vm2738_vm10, %v8634_v1, %v18579_v52  ;;  %v4195_v15 = vsel %vm2738_vm10, %v4179_v61, %v18670_v29  ;;  %v8635_v57 = vsel %vm2641_vm9, %v21284_v53, %v18653_v41  ;;  %v4180_v43 = vsel %vm2641_vm9, %v21285_v7, %v18684_v18 }
 0x697   :  { %v8539_v51 = vpop.permute.xlu1 %8538  ;;  %v18791_v34 = vsel %vm2803_vm11, %v8650_v14, %v18662_v25  ;;  %v18797_v21 = vsel %vm2803_vm11, %v4195_v15, %v4145_v42  ;;  %v8702_v52 = vmul.f32 %v18771_v13, %v18771_v13  ;;  %v4247_v29 = vmul.f32 %v18778_v55, %v18778_v55 }
 0x698   :  { %v8651_v41 = vsel %vm2738_vm10, %v8635_v57, %v18678_v19  ;;  %v4196_v25 = vsel %vm2738_vm10, %v4180_v43, %v4083_v0  ;;  %v4224_v62 = vadd.f32 %v4223_v17, %v18759_v33  ;;  %v8636_v18 = vsel %vm2641_vm9, %v21286_v46, %v8475_v20 }
 0x699   :  { %v4021_v31 = vpop.permute.xlu0 %4020  ;;  %v18810_v42 = vsel %vm2803_vm11, %v8651_v41, %v8601_v8  ;;  %v4261_v35 = vadd.f32 %v4260_v36, %v4246_v58  ;;  %v8703_v32 = vmul.f32 %v18791_v34, %v18791_v34  ;;  %v4248_v19 = vmul.f32 %v18797_v21, %v18797_v21  ;;  %v21287_v58 = vld [vmem:[#allocation98_spill] sm:$0xff] }
 0x69a   :  { %v8652_v0 = vsel %vm2738_vm10, %v8636_v18, %v8539_v51  ;;  %v8680_v17 = vadd.f32 %v8679_v4, %v18771_v13  ;;  %v4225_v20 = vadd.f32 %v4224_v62, %v18778_v55  ;;  %v8717_v47 = vadd.f32 %v8716_v5, %v8702_v52 }
 0x69b   :  { %v4147_v12 = vpop.permute.xlu1 %4146  ;;  %v4262_v1 = vadd.f32 %v4261_v35, %v4247_v29  ;;  %v8704_v36 = vmul.f32 %v18810_v42, %v18810_v42  ;;  %v4181_v14 = vsel %vm2641_vm9, %v21287_v58, %v4021_v31  ;;  %v21288_v29 = vld [vmem:[#allocation125_spill] sm:$0xff] }
 0x69c   :  { %v18813_v59 = vsel %vm2803_vm11, %v4196_v25, %v4147_v12  ;;  %v8681_v26 = vadd.f32 %v8680_v17, %v18791_v34  ;;  %v4226_v51 = vadd.f32 %v4225_v20, %v18797_v21  ;;  %v8718_v4 = vadd.f32 %v8717_v47, %v8703_v32 }
 0x69d   :  { %v8477_v60 = vpop.permute.xlu0 %8476  ;;  %v4249_v9 = vmul.f32 %v18813_v59, %v18813_v59  ;;  %v4263_v12 = vadd.f32 %v4262_v1, %v4248_v19 }
 0x69e   :  { %v8682_v15 = vadd.f32 %v8681_v26, %v18810_v42  ;;  %v4227_v53 = vadd.f32 %v4226_v51, %v18813_v59  ;;  %v8719_v43 = vadd.f32 %v8718_v4, %v8704_v36  ;;  %v8637_v41 = vsel %vm2641_vm9, %v21288_v29, %v8477_v60 }
 0x69f   :  { %v8603_v49 = vpop.permute.xlu1 %8602  ;;  %v4264_v52 = vadd.f32 %v4263_v12, %v4249_v9 }
 0x6a0   :  { %v18823_v8 = vsel %vm2803_vm11, %v8652_v0, %v8603_v49 }
 0x6a1   :  { %v4085_v30 = vpop.permute.xlu0 %4084  ;;  %v8705_v5 = vmul.f32 %v18823_v8, %v18823_v8  ;;  %v8683_v31 = vadd.f32 %v8682_v15, %v18823_v8 }
 0x6a2   :  { %v4197_v57 = vsel %vm2738_vm10, %v4181_v14, %v4085_v30 }
 0x6a3   :  { %v8541_v61 = vpop.permute.xlu1 %8540  ;;  %v8720_v35 = vadd.f32 %v8719_v43, %v8705_v5 }
 0x6a4   :  { %v8653_v62 = vsel %vm2738_vm10, %v8637_v41, %v8541_v61 }
 0x6a5   :  { %v4149_v7 = vpop.permute.xlu0 %4148 }
 0x6a6   :  { %v18841_v25 = vsel %vm2803_vm11, %v4197_v57, %v4149_v7 }
 0x6a7   :  { %v4228_v46 = vadd.f32 %v4227_v53, %v18841_v25  ;;  %v4250_v18 = vmul.f32 %v18841_v25, %v18841_v25  ;;  %v8605_v49 = vpop.permute.xlu1 %8604 }
 0x6a8   :  { %v18849_v32 = vsel %vm2803_vm11, %v8653_v62, %v8605_v49 }
 0x6a9   :  { %v4229_v19 = vrot.slane %v4228_v46, 4  ;;  %v4265_v0 = vadd.f32 %v4264_v52, %v4250_v18  ;;  %v8684_v60 = vadd.f32 %v8683_v31, %v18849_v32  ;;  %v8706_v17 = vmul.f32 %v18849_v32, %v18849_v32 }
 0x6ab   :  { %v4230_v20 = vadd.f32 %v4229_v19, %v4228_v46  ;;  %v4266_v30 = vrot.slane %v4265_v0, 4  ;;  %v8685_v47 = vrot.slane %v8684_v60, 4  ;;  %v8721_v1 = vadd.f32 %v8720_v35, %v8706_v17 }
 0x6ad   :  { %v4231_v36 = vrot.slane %v4230_v20, 2  ;;  %v4267_v9 = vadd.f32 %v4266_v30, %v4265_v0  ;;  %v8686_v26 = vadd.f32 %v8685_v47, %v8684_v60  ;;  %v8722_v51 = vrot.slane %v8721_v1, 4 }
 0x6af   :  { %v4232_v61 = vadd.f32 %v4231_v36, %v4230_v20  ;;  %v4268_v4 = vrot.slane %v4267_v9, 2  ;;  %v8687_v12 = vrot.slane %v8686_v26, 2  ;;  %v8723_v58 = vadd.f32 %v8722_v51, %v8721_v1 }
 0x6b1   :  { %v8688_v14 = vadd.f32 %v8687_v12, %v8686_v26  ;;  %v8724_v5 = vrot.slane %v8723_v58, 2  ;;  %v4233_v15 = vrot.slane %v4232_v61, 1  ;;  %v4269_v53 = vadd.f32 %v4268_v4, %v4267_v9 }
 0x6b3   :  { %v4234_v57 = vadd.f32 %v4233_v15, %v4232_v61  ;;  %v8689_v7 = vrot.slane %v8688_v14, 1  ;;  %v4270_v43 = vrot.slane %v4269_v53, 1  ;;  %v8725_v52 = vadd.f32 %v8724_v5, %v8723_v58 }
 0x6b5   :  { %4273 = vrot.lane.b32.xlu0 %v4234_v57, %s10550_s22  ;;  %v8690_v29 = vadd.f32 %v8689_v7, %v8688_v14  ;;  %v4271_v41 = vadd.f32 %v4270_v43, %v4269_v53  ;;  %v8726_v31 = vrot.slane %v8725_v52, 1 }
 0x6b7   :  { %8729 = vrot.lane.b32.xlu1 %v8690_v29, %s10550_s22  ;;  %v8727_v62 = vadd.f32 %v8726_v31, %v8725_v52 }
 0x6b9   :  { %4278 = vrot.lane.b32.xlu0 %v4271_v41, %s10550_s22 }
 0x6bb   :  { %4282 = vrot.lane.b32.xlu1 %v4234_v57, %s10549_s21 }
 0x6bd   :  { %8734 = vrot.lane.b32.xlu0 %v8727_v62, %s10550_s22 }
 0x6bf   :  { %8738 = vrot.lane.b32.xlu1 %v8690_v29, %s10549_s21 }
 0x6c1   :  { %4286 = vrot.lane.b32.xlu0 %v4271_v41, %s10549_s21 }
 0x6c3   :  { %4290 = vrot.lane.b32.xlu1 %v4234_v57, %s10548_s16 }
 0x6c5   :  { %8742 = vrot.lane.b32.xlu0 %v8727_v62, %s10549_s21 }
 0x6c7   :  { %8746 = vrot.lane.b32.xlu1 %v8690_v29, %s10548_s16 }
 0x6c9   :  { %4294 = vrot.lane.b32.xlu0 %v4271_v41, %s10548_s16 }
 0x6cb   :  { %8750 = vrot.lane.b32.xlu1 %v8727_v62, %s10548_s16 }
 0x727   :  { %v4274_v46 = vpop.permute.xlu0 %4273 }
 0x728   :  { %v4276_v60 = vadd.f32 %v4274_v46, %v4234_v57 }
 0x729   :  { %v8730_v18 = vpop.permute.xlu1 %8729 }
 0x72a   :  { %v8732_v47 = vadd.f32 %v8730_v18, %v8690_v29 }
 0x72b   :  { %v4279_v49 = vpop.permute.xlu0 %4278 }
 0x72c   :  { %v4281_v9 = vadd.f32 %v4279_v49, %v4271_v41  ;;  %v4310_v49 = vlaneseq }
 0x72d   :  { %v4283_v35 = vpop.permute.xlu1 %4282 }
 0x72e   :  { %v4285_v20 = vadd.f32 %v4283_v35, %v4276_v60 }
 0x72f   :  { %v8735_v19 = vpop.permute.xlu0 %8734 }
 0x730   :  { %v8737_v61 = vadd.f32 %v8735_v19, %v8727_v62  ;;  %v4311_v62 = vshrl.u32 %v4310_v49, 7  ;;  %v4302_v19 = vld [vmem:[%s19318_s2] sm:$0x1] }
 0x731   :  { %v8739_v0 = vpop.permute.xlu1 %8738 }
 0x732   :  { %v8741_v26 = vadd.f32 %v8739_v0, %v8732_v47  ;;  %v18869_v0 = vsub.s32 0, %v4311_v62 }
 0x733   :  { %v4287_v17 = vpop.permute.xlu0 %4286 }
 0x734   :  { %v4289_v4 = vadd.f32 %v4287_v17, %v4281_v9  ;;  %v8758_v17 = vld [vmem:[%s19321_s5] sm:$0x1] }
 0x735   :  { %v4291_v30 = vpop.permute.xlu1 %4290 }
 0x736   :  { %v4293_v1 = vadd.f32 %v4291_v30, %v4285_v20 }
 0x737   :  { %v8743_v36 = vpop.permute.xlu0 %8742 }
 0x738   :  { %v4298_v12 = vmul.f32 0.001953125, %v4293_v1  ;;  %v8745_v5 = vadd.f32 %v8743_v36, %v8737_v61 }
 0x739   :  { %v8747_v51 = vpop.permute.xlu1 %8746 }
 0x73a   :  { %v8749_v58 = vadd.f32 %v8747_v51, %v8741_v26  ;;  %v4300_v43 = vmul.f32 %v4298_v12, %v4298_v12  ;;  %v4306_v26 = vld [vmem:[%s19319_s3] sm:$0x1] }
 0x73b   :  { %v4295_v14 = vpop.permute.xlu0 %4294 }
 0x73c   :  { %v8754_v15 = vmul.f32 0.001953125, %v8749_v58  ;;  %v4297_v53 = vadd.f32 %v4295_v14, %v4289_v4  ;;  %v8762_v4 = vld [vmem:[%s19322_s6] sm:$0x1] }
 0x73d   :  { %v8751_v7 = vpop.permute.xlu1 %8750 }
 0x73e   :  { %v4299_v57 = vmul.f32 0.001953125, %v4297_v53  ;;  %v8753_v52 = vadd.f32 %v8751_v7, %v8745_v5  ;;  %v8756_v31 = vmul.f32 %v8754_v15, %v8754_v15  ;;  %v8905_v5 = vld [vmem:[%s19323_s7] sm:$0xff]  ;;  %v10552_v53 = vmov 0.0|0.0  }
 0x73f   :  { %9941 = vmatprep.subr.bf16.mxu0 %v10552_v53 }
 0x740   :  { %v4301_v46 = vsub.f32 %v4299_v57, %v4300_v43  ;;  %v8755_v29 = vmul.f32 0.001953125, %v8753_v52 }
 0x742   :  { %v4303_v18 = vadd.f32 1e-05, %v4301_v46  ;;  %v8757_v35 = vsub.f32 %v8755_v29, %v8756_v31 }
 0x744   :  { %10305 = vrsqrt.f32 %v4303_v18  ;;  %v8759_v41 = vadd.f32 1e-05, %v8757_v35 }
 0x746   :  { %10307 = vrsqrt.f32 %v8759_v41 }
 0x74e   :  { %v10306_v60 = vpop.eup %10305 }
 0x74f   :  { %v4305_v20 = vmul.f32 %v10306_v60, %v4302_v19 }
 0x750   :  { %v10308_v30 = vpop.eup %10307 }
 0x751   :  { %v4313_v47 = vrot.slane %v4305_v20, %v18869_v0  ;;  %v8761_v1 = vmul.f32 %v10308_v30, %v8758_v17  ;;  %v4307_v9 = vmul.f32 %v4305_v20, %v4298_v12 }
 0x753   :  { %4314 = vrot.lane.b32.xlu0 %v4313_v47, %s10548_s16  ;;  %v8769_v36 = vrot.slane %v8761_v1, %v18869_v0  ;;  %v4308_v51 = vsub.f32 %v4306_v26, %v4307_v9  ;;  %v8763_v61 = vmul.f32 %v8761_v1, %v8754_v15  ;;  %v8906_v15 = vld [vmem:[%s19323_s7 + $0x8] sm:$0xff] }
 0x754   :  { %v9942_v7 = vpack.c.bf16 %v8906_v15, %v8905_v5 }
 0x755   :  { %8770 = vrot.lane.b32.xlu1 %v8769_v36, %s10548_s16  ;;  %v4330_v12 = vrot.slane %v4308_v51, %v18869_v0  ;;  %v8764_v58 = vsub.f32 %v8762_v4, %v8763_v61 }
 0x756   :  { %9943 = vmatpush3.bf16.msra.mxu0 %v9942_v7 }
 0x757   :  { %4317 = vrot.lane.b32.xlu0 %v4313_v47, %s10549_s21  ;;  %v8786_v14 = vrot.slane %v8764_v58, %v18869_v0  ;;  %9944 = vmatprep.subr.bf16.mxu0 %v10552_v53 }
 0x759   :  { %8773 = vrot.lane.b32.xlu1 %v8769_v36, %s10549_s21 }
 0x75b   :  { %4320 = vrot.lane.b32.xlu0 %v4313_v47, %s10550_s22 }
 0x75d   :  { %4331 = vrot.lane.b32.xlu1 %v4330_v12, %s10548_s16 }
 0x75f   :  { %8776 = vrot.lane.b32.xlu0 %v8769_v36, %s10550_s22 }
 0x761   :  { %8787 = vrot.lane.b32.xlu1 %v8786_v14, %s10548_s16 }
 0x763   :  { %4334 = vrot.lane.b32.xlu0 %v4330_v12, %s10549_s21 }
 0x765   :  { %8790 = vrot.lane.b32.xlu1 %v8786_v14, %s10549_s21 }
 0x767   :  { %4337 = vrot.lane.b32.xlu0 %v4330_v12, %s10550_s22 }
 0x769   :  { %8793 = vrot.lane.b32.xlu1 %v8786_v14, %s10550_s22 }
 0x7c5   :  { %v4315_v43 = vpop.permute.xlu0 %4314 }
 0x7c6   :  { %v4323_v17 = vsel %vm2641_vm9, %v4305_v20, %v4315_v43 }
 0x7c7   :  { %v8771_v57 = vpop.permute.xlu1 %8770 }
 0x7c8   :  { %v8779_v62 = vsel %vm2641_vm9, %v8761_v1, %v8771_v57 }
 0x7c9   :  { %v4318_v52 = vpop.permute.xlu0 %4317 }
 0x7ca   :  { %v4324_v36 = vsel %vm2738_vm10, %v4323_v17, %v4318_v52 }
 0x7cb   :  { %v8774_v31 = vpop.permute.xlu1 %8773 }
 0x7cc   :  { %v8780_v19 = vsel %vm2738_vm10, %v8779_v62, %v8774_v31 }
 0x7cd   :  { %v4321_v46 = vpop.permute.xlu0 %4320 }
 0x7ce   :  { %v4325_v61 = vsel %vm2803_vm11, %v4324_v36, %v4321_v46 }
 0x7cf   :  { %v4332_v29 = vpop.permute.xlu1 %4331 }
 0x7d0   :  { %v4340_v4 = vsel %vm2641_vm9, %v4308_v51, %v4332_v29 }
 0x7d1   :  { %v8777_v18 = vpop.permute.xlu0 %8776 }
 0x7d2   :  { %v8781_v30 = vsel %vm2803_vm11, %v8780_v19, %v8777_v18 }
 0x7d3   :  { %v8788_v35 = vpop.permute.xlu1 %8787  ;;  %v18915_v12 = vrot.slane %v8781_v30, %v18869_v0 }
 0x7d4   :  { %v8796_v47 = vsel %vm2641_vm9, %v8764_v58, %v8788_v35  ;;  %v18920_v58 = vrot.slane %v4325_v61, %v18869_v0 }
 0x7d5   :  { %v4335_v41 = vpop.permute.xlu0 %4334  ;;  %v8803_v51 = vmul.f32 %v18915_v12, %v18609_v39  ;;  %v8804_v7 = vmul.f32 %v18915_v12, %v18590_v3  ;;  %v8805_v3 = vmul.f32 %v18915_v12, %v18616_v45 }
 0x7d6   :  { %v4341_v20 = vsel %vm2738_vm10, %v4340_v4, %v4335_v41  ;;  %v4347_v43 = vmul.f32 %v18920_v58, %v18583_v24  ;;  %v4348_v57 = vmul.f32 %v18920_v58, %v18568_v37  ;;  %v4349_v24 = vmul.f32 %v18920_v58, %v18603_v10 }
 0x7d7   :  { %v8791_v49 = vpop.permute.xlu1 %8790  ;;  %v8806_v37 = vmul.f32 %v18915_v12, %v18639_v2  ;;  %v4350_v41 = vmul.f32 %v18920_v58, %v18629_v6  ;;  %v4351_v19 = vmul.f32 %v18920_v58, %v18651_v22  ;;  %v8808_v6 = vmul.f32 %v18915_v12, %v18470_v28 }
 0x7d8   :  { %v8797_v9 = vsel %vm2738_vm10, %v8796_v47, %v8791_v49  ;;  %v8807_v49 = vmul.f32 %v18915_v12, %v18444_v63  ;;  %v4352_v47 = vmul.f32 %v18920_v58, %v18461_v48  ;;  %v4353_v4 = vmul.f32 %v18920_v58, %v18479_v23 }
 0x7d9   :  { %v4338_v26 = vpop.permute.xlu0 %4337  ;;  %v4354_v23 = vmul.f32 %v18920_v58, %v18491_v16  ;;  %v4355_v16 = vmul.f32 %v18920_v58, %v18505_v11  ;;  %v4356_v11 = vmul.f32 %v18920_v58, %v18702_v44  ;;  %v4357_v44 = vmul.f32 %v18920_v58, %v18726_v40 }
 0x7da   :  { %v4342_v14 = vsel %vm2803_vm11, %v4341_v20, %v4338_v26  ;;  %v8810_v20 = vmul.f32 %v18915_v12, %v18496_v38  ;;  %v8811_v38 = vmul.f32 %v18915_v12, %v18512_v27  ;;  %v8812_v27 = vmul.f32 %v18915_v12, %v18712_v54 }
 0x7db   :  { %v8794_v60 = vpop.permute.xlu1 %8793  ;;  %v18926_v15 = vrot.slane %v4342_v14, %v18869_v0  ;;  %v8813_v54 = vmul.f32 %v18915_v12, %v18736_v50  ;;  %v8814_v50 = vmul.f32 %v18915_v12, %v18771_v13  ;;  %v4358_v40 = vmul.f32 %v18920_v58, %v18759_v33 }
 0x7dc   :  { %v8798_v1 = vsel %vm2803_vm11, %v8797_v9, %v8794_v60  ;;  %v8809_v9 = vmul.f32 %v18915_v12, %v18484_v56  ;;  %v8815_v13 = vmul.f32 %v18915_v12, %v18791_v34  ;;  %v4359_v33 = vmul.f32 %v18920_v58, %v18778_v55 }
 0x7dd   :  { %v18923_v5 = vrot.slane %v8798_v1, %v18869_v0  ;;  %v18943_v46 = vadd.f32 %v18926_v15, %v4347_v43  ;;  %v18946_v39 = vadd.f32 %v18926_v15, %v4348_v57  ;;  %v18964_v45 = vadd.f32 %v18926_v15, %v4349_v24 }
 0x7de   :  { %v18974_v60 = vadd.f32 %v18926_v15, %v4350_v41  ;;  %v18993_v28 = vadd.f32 %v18926_v15, %v4351_v19  ;;  %v19005_v1 = vadd.f32 %v18926_v15, %v4352_v47  ;;  %v19021_v43 = vadd.f32 %v18926_v15, %v4353_v4 }
 0x7df   :  { %v18937_v52 = vadd.f32 %v18923_v5, %v8803_v51  ;;  %v18940_v31 = vadd.f32 %v18923_v5, %v8804_v7  ;;  %v18955_v29 = vadd.f32 %v18923_v5, %v8805_v3  ;;  %v4383_v10 = vmax.f32 %v18943_v46, 0.0 }
 0x7e0   :  { %v4384_v2 = vmax.f32 %v18946_v39, 0.0  ;;  %v18969_v62 = vadd.f32 %v18923_v5, %v8806_v37  ;;  %v18979_v63 = vadd.f32 %v18923_v5, %v8807_v49  ;;  %v4385_v36 = vmax.f32 %v18964_v45, 0.0 }
 0x7e1   :  { %v20010_v18 = vmax.f32 %v18937_v52, 0.0  ;;  %v20009_v35 = vmax.f32 %v18940_v31, 0.0  ;;  %v20004_v17 = vmax.f32 %v18955_v29, 0.0  ;;  %v18999_v26 = vadd.f32 %v18923_v5, %v8808_v6 }
 0x7e2   :  { %v20002_v61 = vmax.f32 %v18969_v62, 0.0  ;;  %v4386_v48 = vmax.f32 %v18974_v60, 0.0  ;;  %v19011_v14 = vadd.f32 %v18923_v5, %v8809_v9  ;;  %v20000_v56 = vmax.f32 %v18979_v63, 0.0 }
 0x7e3   :  { %v8855_v30 = vadd.f32 %v20010_v18, %v4383_v10  ;;  %v8856_v22 = vadd.f32 %v20009_v35, %v4384_v2  ;;  %v8857_v51 = vadd.f32 %v20004_v17, %v4385_v36  ;;  %v4387_v57 = vmax.f32 %v18993_v28, 0.0 }
 0x7e4   :  { %v19027_v3 = vadd.f32 %v18923_v5, %v8810_v20  ;;  %v19998_v24 = vmax.f32 %v18999_v26, 0.0  ;;  %v8858_v37 = vadd.f32 %v20002_v61, %v4386_v48  ;;  %v19037_v49 = vadd.f32 %v18926_v15, %v4354_v23 }
 0x7e5   :  { %v8871_v7 = vadd.f32 %v8856_v22, %v8855_v30  ;;  %v4388_v19 = vmax.f32 %v19005_v1, 0.0  ;;  %v19043_v6 = vadd.f32 %v18923_v5, %v8811_v38  ;;  %v19999_v30 = vmax.f32 %v19011_v14, 0.0 }
 0x7e6   :  { %v8859_v22 = vadd.f32 %v20000_v56, %v4387_v57  ;;  %v19053_v9 = vadd.f32 %v18926_v15, %v4355_v16  ;;  %v4389_v4 = vmax.f32 %v19021_v43, 0.0  ;;  %v19059_v20 = vadd.f32 %v18923_v5, %v8812_v27 }
 0x7e7   :  { %v8872_v41 = vadd.f32 %v8871_v7, %v8857_v51  ;;  %v20001_v51 = vmax.f32 %v19027_v3, 0.0  ;;  %v8860_v7 = vadd.f32 %v19998_v24, %v4388_v19  ;;  %v19069_v38 = vadd.f32 %v18926_v15, %v4356_v11 }
 0x7e8   :  { %v20003_v16 = vmax.f32 %v19043_v6, 0.0  ;;  %v8861_v27 = vadd.f32 %v19999_v30, %v4389_v4  ;;  %v4391_v11 = vmax.f32 %v19053_v9, 0.0  ;;  %v20005_v24 = vmax.f32 %v19059_v20, 0.0 }
 0x7e9   :  { %v8873_v47 = vadd.f32 %v8872_v41, %v8858_v37  ;;  %v4390_v37 = vmax.f32 %v19037_v49, 0.0  ;;  %v19075_v41 = vadd.f32 %v18923_v5, %v8813_v54  ;;  %v19091_v54 = vadd.f32 %v18923_v5, %v8814_v50 }
 0x7ea   :  { %v4392_v30 = vmax.f32 %v19069_v38, 0.0  ;;  %v8816_v34 = vmul.f32 %v18915_v12, %v18810_v42  ;;  %v19107_v50 = vadd.f32 %v18923_v5, %v8815_v13  ;;  %v4360_v55 = vmul.f32 %v18920_v58, %v18797_v21 }
 0x7eb   :  { %v8874_v23 = vadd.f32 %v8873_v47, %v8859_v22  ;;  %v19085_v47 = vadd.f32 %v18926_v15, %v4357_v44  ;;  %v19101_v44 = vadd.f32 %v18926_v15, %v4358_v40  ;;  %v20006_v56 = vmax.f32 %v19075_v41, 0.0 }
 0x7ec   :  { %v19117_v40 = vadd.f32 %v18926_v15, %v4359_v33  ;;  %v8817_v42 = vmul.f32 %v18915_v12, %v18823_v8  ;;  %v19123_v13 = vadd.f32 %v18923_v5, %v8816_v34  ;;  %v20007_v61 = vmax.f32 %v19091_v54, 0.0 }
 0x7ed   :  { %v8875_v22 = vadd.f32 %v8874_v23, %v8860_v7  ;;  %v8862_v7 = vadd.f32 %v20001_v51, %v4390_v37  ;;  %v4393_v51 = vmax.f32 %v19085_v47, 0.0  ;;  %v4361_v21 = vmul.f32 %v18920_v58, %v18813_v59 }
 0x7ee   :  { %v19133_v33 = vadd.f32 %v18926_v15, %v4360_v55  ;;  %v8818_v8 = vmul.f32 %v18915_v12, %v18849_v32  ;;  %v19139_v34 = vadd.f32 %v18923_v5, %v8817_v42  ;;  %v20008_v17 = vmax.f32 %v19107_v50, 0.0 }
 0x7ef   :  { %v8876_v23 = vadd.f32 %v8875_v22, %v8861_v27  ;;  %v8863_v27 = vadd.f32 %v20003_v16, %v4391_v11  ;;  %v4394_v16 = vmax.f32 %v19101_v44, 0.0  ;;  %v4362_v59 = vmul.f32 %v18920_v58, %v18841_v25 }
 0x7f0   :  { %v19149_v55 = vadd.f32 %v18926_v15, %v4361_v21  ;;  %v19153_v32 = vadd.f32 %v18923_v5, %v8818_v8  ;;  %v20011_v12 = vmax.f32 %v19123_v13, 0.0  ;;  %v20016_v25 = vmax.f32 %v19133_v33, 0.0 }
 0x7f1   :  { %v8877_v22 = vadd.f32 %v8876_v23, %v8862_v7  ;;  %v8864_v7 = vadd.f32 %v20005_v24, %v4392_v30  ;;  %v4395_v24 = vmax.f32 %v19117_v40, 0.0  ;;  %v8866_v42 = vadd.f32 %v20007_v61, %v4394_v16 }
 0x7f2   :  { %v20012_v58 = vmax.f32 %v19139_v34, 0.0  ;;  %v20015_v21 = vmax.f32 %v19149_v55, 0.0  ;;  %v20013_v8 = vmax.f32 %v19153_v32, 0.0  ;;  %v21289_v28 = vmax.f32 %v19133_v33, 0.0 }
 0x7f3   :  { %v8878_v23 = vadd.f32 %v8877_v22, %v8863_v27  ;;  %v8865_v27 = vadd.f32 %v20006_v56, %v4393_v51  ;;  %v8867_v5 = vadd.f32 %v20008_v17, %v4395_v24  ;;  %v21290_v1 = vmax.f32 %v19149_v55, 0.0 }
 0x7f4   :  { %v21292_v49 = vmax.f32 %v18937_v52, 0.0  ;;  %v21297_v47 = vmax.f32 %v18999_v26, 0.0  ;;  %v21298_v44 = vmax.f32 %v19011_v14, 0.0  ;;  %v21299_v52 = vmax.f32 %v19027_v3, 0.0 }
 0x7f5   :  { %v8879_v22 = vadd.f32 %v8878_v23, %v8864_v7  ;;  %v19161_v7 = vadd.f32 %v18926_v15, %v4362_v59  ;;  %v8868_v15 = vadd.f32 %v20011_v12, %v20016_v25  ;;  %v8869_v59 = vadd.f32 %v20012_v58, %v20015_v21 }
 0x7f6   :  { %v21304_v26 = vmax.f32 %v19107_v50, 0.0  ;;  %v21305_v14 = vmax.f32 %v19123_v13, 0.0  ;;  %v21306_v3 = vmax.f32 %v19139_v34, 0.0 }
 0x7f7   :  { %v8880_v56 = vadd.f32 %v8879_v22, %v8865_v27  ;;  %v20014_v22 = vmax.f32 %v19161_v7, 0.0  ;;  %v21291_v43 = vmax.f32 %v19161_v7, 0.0 }
 0x7f9   :  { %v8881_v23 = vadd.f32 %v8880_v56, %v8866_v42  ;;  %v8870_v56 = vadd.f32 %v20013_v8, %v20014_v22 }
 0x7fb   :  { %v8882_v27 = vadd.f32 %v8881_v23, %v8867_v5  ;;  %v8907_v5 = vld [vmem:[%s19323_s7 + $0x10] sm:$0xff]  ;;  %v8908_v23 = vld [vmem:[%s19323_s7 + $0x18] sm:$0xff] }
 0x7fc   :  { %v9945_v58 = vpack.c.bf16 %v8908_v23, %v8907_v5  ;;  %v9697_v23 = vld [vmem:[%s19325_s9 + $0x18] sm:$0xff] }
 0x7fd   :  { %v8883_v61 = vadd.f32 %v8882_v27, %v8868_v15 }
 0x7fe   :  { %9946 = vmatpush3.bf16.msra.mxu0 %v9945_v58 }
 0x7ff   :  { %v8884_v42 = vadd.f32 %v8883_v61, %v8869_v59  ;;  %9947 = vmatprep.subr.bf16.mxu0 %v10552_v53 }
 0x801   :  { %v8885_v17 = vadd.f32 %v8884_v42, %v8870_v56 }
 0x803   :  { %v8886_v35 = vrot.slane %v8885_v17, 4 }
 0x805   :  { %v8887_v18 = vadd.f32 %v8886_v35, %v8885_v17  ;;  %v10554_v35 = vmov 0.0  }
 0x806   :  { %9924 = vmatprep.mubr.msk.f32.mxu0 %vm10553_vm15, %v10554_v35 }
 0x807   :  { %v8888_v12 = vrot.slane %v8887_v18, 2 }
 0x809   :  { %v8889_v15 = vadd.f32 %v8888_v12, %v8887_v18  ;;  %v8989_v18 = vld [vmem:[%s19325_s9] sm:$0xff]  ;;  %v8990_v12 = vld [vmem:[%s19325_s9 + $0x8] sm:$0xff] }
 0x80a   :  { %v9948_v42 = vpack.c.bf16 %v8990_v12, %v8989_v18  ;;  %v9694_v12 = vld [vmem:[%s19326_s10] ss:$0 sm:$0xff] }
 0x80b   :  { %v8890_v27 = vrot.slane %v8889_v15, 1 }
 0x80d   :  { %v8891_v8 = vadd.f32 %v8890_v27, %v8889_v15  ;;  %v9692_v15 = vld [vmem:[%s19324_s8] ss:$0 sm:$0xff]  ;;  %s10555_s8 = smov [#allocation2]  }
 0x80f   :  { %8893 = vrot.lane.b32.xlu0 %v8891_v8, %s10550_s22 }
 0x881   :  { %v8894_v17 = vpop.permute.xlu0 %8893 }
 0x882   :  { %v8896_v61 = vadd.f32 %v8894_v17, %v8891_v8  ;;  %v9696_v8 = vld [vmem:[%s19325_s9 + $0x10] sm:$0xff] }
 0x883   :  { %v9951_v17 = vpack.c.bf16 %v9697_v23, %v9696_v8 }
 0x884   :  { %v8898_v59 = vrot.slane %v8896_v61, 7 }
 0x886   :  { %8899 = vrot.lane.b32.xlu1 %v8898_v59, %s10549_s21 }
 0x8f8   :  { %v8900_v58 = vpop.permute.xlu1 %8899 }
 0x8f9   :  { %v8903_v56 = vsel %vm8902_vm0, %v8896_v61, %v8900_v58  ;;  %v9699_v58 = vld [vmem:[%s19326_s10 + $0x1] ss:$0 sm:$0xff]  ;;  %s9269_s10 = sshll.u32 %s10555_s8, 4  ;;  %s19297_s10 = int_to_ptr.vmem [resolvable:$true] %s9269_s10 }
 0x8fa   :  { %v8904_v5 = vmul.f32 0.00390625, %v8903_v56  ;;  %p10529_p1 = scmp.lt.s32.totalorder %s19297_s10, %s19297_s10 }
 0x8fc   :  { %9925 = vmatmul.mubr.msk.f32.vlgmr.msra.gmra.mrb[44].mxu0 %vm2641_vm9, %v8904_v5 }
 0x8fd   :  { %9949 = vmatpush3.bf16.msra.mxu0 %v9948_v42  ;;  %9931 = vmatprep.mubr.msk.f32.mxu0 %vm10553_vm15, %v10554_v35 }
 0x8fe   :  { %9950 = vmatprep.subr.bf16.mxu0 %v10552_v53 }
 0x9cf   :  { %v8985_v27 = vpop.f32.mrb[44].mxu0 }
 0x9d0   :  { %v8986_v61 = vadd.f32 %v9692_v15, %v8985_v27  ;;  %v9926_v59 = vpop.f32.mrb[45].mxu0 }
 0x9d2   :  { %9932 = vmatmul.mubr.msk.f32.vlgmr.msra.gmra.mrb[46].mxu0 %vm8998_vm1, %v8986_v61 }
 0x9d3   :  { %9952 = vmatpush3.bf16.msra.mxu0 %v9951_v17  ;;  %9938 = vmatprep.mubr.msk.f32.mxu0 %vm10553_vm15, %v10554_v35 }
 0x9d6   :  { %9939 = vmatmul.mubr.msk.f32.vlgmr.msra.gmra.mrb[48].mxu0 %vm8998_vm1, %v8986_v61 }
 0xaa5   :  { %v9068_v53 = vpop.f32.mrb[46].mxu0 }
 0xaa6   :  { %v9933_v18 = vpop.f32.mrb[47].mxu0  ;;  %v9069_v42 = vadd.f32 %v9694_v12, %v9068_v53 }
 0xaa9   :  { %v9149_v56 = vpop.f32.mrb[48].mxu0 }
 0xaaa   :  { %v9150_v5 = vadd.f32 %v9699_v58, %v9149_v56  ;;  %v9940_v8 = vpop.f32.mrb[49].mxu0 }
 0xaac   :  { %v9153_v23 = vmax.f32 %v9069_v42, %v9150_v5 }
 0xaae   :  { %v9154_v15 = vsub.f32 %v9069_v42, %v9153_v23  ;;  %v9157_v27 = vsub.f32 %v9150_v5, %v9153_v23 }
 0xab0   :  { %v9155_v17 = vmul.f32 1.442695, %v9154_v15  ;;  %v9158_v35 = vmul.f32 1.442695, %v9157_v27 }
 0xab2   :  { %10309 = vpow2.f32 %v9155_v17 }
 0xab3   :  { %10311 = vpow2.f32 %v9158_v35 }
 0xabc   :  { %v10310_v61 = vpop.eup %10309 }
 0xabd   :  { %v10312_v59 = vpop.eup %10311 }
 0xabe   :  { %v9160_v18 = vadd.f32 %v10312_v59, %v10310_v61 }
 0xac0   :  { %10313 = vrcp.f32 %v9160_v18 }
 0xaca   :  { %v10314_v22 = vpop.eup %10313 }
 0xacb   :  { %v9197_v21 = vmul.f32 %v10314_v22, %v10312_v59  ;;  %v9162_v25 = vmul.f32 %v10314_v22, %v10310_v61 }
 0xacd   :  { %9199 = vrot.lane.b32.xlu1 %v9197_v21, %s10548_s16  ;;  %9164 = vrot.lane.b32.xlu0 %v9162_v25, %s10548_s16  ;;  %v9202_v53 = vrot.slane %v9197_v21, 1  ;;  %v9167_v12 = vrot.slane %v9162_v25, 1  ;;  %s10524_s16 = scalar_lea.vmem %s19297_s10, 2048 }
 0xace   :  { %p10525_p0 = scmp.ne.s32.totalorder %s19297_s10, %s10524_s16  ;;  %p10530_p2 = scmp.lt.s32.totalorder %s10524_s16, %s10524_s16 }
 0xad0   :  { %p10531_p3 = por %p10530_p2, %p10529_p1 }
 0xad1   :  { %9203 = vrot.lane.b32.xlu1 %v9202_v53, %s10549_s21  ;;  %9168 = vrot.lane.b32.xlu0 %v9167_v12, %s10549_s21 }
 0xad2   :  { %p10532_p4 = pnand %p10531_p3, %p10525_p0 }
 0xad5   :  { %9206 = vrot.lane.b32.xlu1 %v9202_v53, %s10550_s22  ;;  %9171 = vrot.lane.b32.xlu0 %v9167_v12, %s10550_s22 }
 0xb3f   :  { %v9200_v58 = vpop.permute.xlu1 %9199  ;;  %v9165_v56 = vpop.permute.xlu0 %9164 }
 0xb40   :  { %v9209_v22 = vsel %vm2641_vm9, %v9197_v21, %v9200_v58  ;;  %v9174_v8 = vsel %vm2641_vm9, %v9162_v25, %v9165_v56 }
 0xb43   :  { %v9204_v42 = vpop.permute.xlu1 %9203  ;;  %v9169_v5 = vpop.permute.xlu0 %9168 }
 0xb44   :  { %v9210_v23 = vsel %vm2738_vm10, %v9209_v22, %v9204_v42  ;;  %v9175_v15 = vsel %vm2738_vm10, %v9174_v8, %v9169_v5 }
 0xb47   :  { %v9207_v27 = vpop.permute.xlu1 %9206  ;;  %v9172_v17 = vpop.permute.xlu0 %9171 }
 0xb48   :  { %v9211_v35 = vsel %vm2803_vm11, %v9210_v23, %v9207_v27  ;;  %v9176_v61 = vsel %vm2803_vm11, %v9175_v15, %v9172_v17 }
 0xb49   :  { %v9180_v59 = vrot.slane %v9176_v61, %v18869_v0  ;;  %v9215_v18 = vrot.slane %v9211_v35, %v18869_v0 }
 0xb4b   :  { %v9181_v53 = vmul.f32 %v9180_v59, %v4383_v10  ;;  %v9182_v25 = vmul.f32 %v9180_v59, %v4384_v2  ;;  %v9183_v21 = vmul.f32 %v9180_v59, %v4385_v36  ;;  %v9184_v12 = vmul.f32 %v9180_v59, %v4386_v48 }
 0xb4c   :  { %v9185_v58 = vmul.f32 %v9180_v59, %v4387_v57  ;;  %v9186_v56 = vmul.f32 %v9180_v59, %v4388_v19  ;;  %v9187_v0 = vmul.f32 %v9180_v59, %v4389_v4  ;;  %v9188_v46 = vmul.f32 %v9180_v59, %v4390_v37 }
 0xb4d   :  { %v9189_v39 = vmul.f32 %v9180_v59, %v4391_v11  ;;  %v9190_v45 = vmul.f32 %v9180_v59, %v4392_v30  ;;  %v9191_v10 = vmul.f32 %v9180_v59, %v4393_v51  ;;  %v9192_v2 = vmul.f32 %v9180_v59, %v4394_v16 }
 0xb4e   :  { %v9193_v60 = vmul.f32 %v9180_v59, %v4395_v24  ;;  %v9194_v36 = vmul.f32 %v9180_v59, %v21289_v28  ;;  %v9195_v48 = vmul.f32 %v9180_v59, %v21290_v1  ;;  %v9196_v57 = vmul.f32 %v9180_v59, %v21291_v43 }
 0xb4f   :  { %v9216_v19 = vmul.f32 %v9215_v18, %v21292_v49  ;;  %v21293_v30 = vmax.f32 %v18940_v31, 0.0  ;;  %v21294_v4 = vmax.f32 %v18955_v29, 0.0  ;;  %v21295_v24 = vmax.f32 %v18969_v62, 0.0 }
 0xb50   :  { %v21296_v37 = vmax.f32 %v18979_v63, 0.0  ;;  %v9221_v11 = vmul.f32 %v9215_v18, %v21297_v47  ;;  %v9222_v40 = vmul.f32 %v9215_v18, %v21298_v44  ;;  %v9223_v33 = vmul.f32 %v9215_v18, %v21299_v52 }
 0xb51   :  { %v9217_v9 = vmul.f32 %v9215_v18, %v21293_v30  ;;  %v9218_v51 = vmul.f32 %v9215_v18, %v21294_v4  ;;  %v9219_v38 = vmul.f32 %v9215_v18, %v21295_v24  ;;  %v21300_v31 = vmax.f32 %v19043_v6, 0.0 }
 0xb52   :  { %v9220_v16 = vmul.f32 %v9215_v18, %v21296_v37  ;;  %v21301_v29 = vmax.f32 %v19059_v20, 0.0  ;;  %v21302_v62 = vmax.f32 %v19075_v41, 0.0  ;;  %v21303_v63 = vmax.f32 %v19091_v54, 0.0 }
 0xb53   :  { %v9224_v55 = vmul.f32 %v9215_v18, %v21300_v31  ;;  %v9228_v22 = vmul.f32 %v9215_v18, %v21304_v26  ;;  %v9229_v8 = vmul.f32 %v9215_v18, %v21305_v14  ;;  %v9230_v23 = vmul.f32 %v9215_v18, %v21306_v3 }
 0xb54   :  { %v9225_v7 = vmul.f32 %v9215_v18, %v21301_v29  ;;  %v9226_v42 = vmul.f32 %v9215_v18, %v21302_v62  ;;  %v9227_v5 = vmul.f32 %v9215_v18, %v21303_v63  ;;  %v21307_v6 = vmax.f32 %v19153_v32, 0.0 }
 0xb55   :  { %v9232_v20 = vadd.f32 %v9216_v19, %v9181_v53  ;;  %v9233_v41 = vadd.f32 %v9217_v9, %v9182_v25  ;;  %v9234_v27 = vadd.f32 %v9218_v51, %v9183_v21  ;;  %v9235_v17 = vadd.f32 %v9219_v38, %v9184_v12 }
 0xb56   :  { %v9231_v15 = vmul.f32 %v9215_v18, %v21307_v6  ;;  %v9236_v54 = vadd.f32 %v9220_v16, %v9185_v58  ;;  %v9237_v35 = vadd.f32 %v9221_v11, %v9186_v56  ;;  %v9238_v61 = vadd.f32 %v9222_v40, %v9187_v0 }
 0xb57   :  { %v9239_v50 = vadd.f32 %v9223_v33, %v9188_v46  ;;  %v9240_v59 = vadd.f32 %v9224_v55, %v9189_v39  ;;  %v9241_v28 = vadd.f32 %v9225_v7, %v9190_v45  ;;  %v9242_v13 = vadd.f32 %v9226_v42, %v9191_v10  ;;  %9248 = vst [vmem:[#allocation2] sm:$0xff] %v9232_v20 }
 0xb58   :  { %v9243_v1 = vadd.f32 %v9227_v5, %v9192_v2  ;;  %9249 = vst [vmem:[#allocation2 + $0x8] sm:$0xff] %v9233_v41  ;;  %9250 = vst [vmem:[#allocation2 + $0x10] sm:$0xff] %v9234_v27  ;;  %v9244_v34 = vadd.f32 %v9228_v22, %v9193_v60  ;;  %v9245_v32 = vadd.f32 %v9229_v8, %v9194_v36 }
 0xb59   :  { %9251 = vst [vmem:[#allocation2 + $0x18] sm:$0xff] %v9235_v17  ;;  %v9246_v18 = vadd.f32 %v9230_v23, %v9195_v48  ;;  %v9247_v53 = vadd.f32 %v9231_v15, %v9196_v57  ;;  %9252 = vst [vmem:[#allocation2 + $0x20] sm:$0xff] %v9236_v54 }
 0xb5a   :  { %9253 = vst [vmem:[#allocation2 + $0x28] sm:$0xff] %v9237_v35  ;;  %9254 = vst [vmem:[#allocation2 + $0x30] sm:$0xff] %v9238_v61 }
 0xb5b   :  { %9255 = vst [vmem:[#allocation2 + $0x38] sm:$0xff] %v9239_v50  ;;  %9256 = vst [vmem:[#allocation2 + $0x40] sm:$0xff] %v9240_v59 }
 0xb5c   :  { %9257 = vst [vmem:[#allocation2 + $0x48] sm:$0xff] %v9241_v28  ;;  %9258 = vst [vmem:[#allocation2 + $0x50] sm:$0xff] %v9242_v13 }
 0xb5d   :  { %9259 = vst [vmem:[#allocation2 + $0x58] sm:$0xff] %v9243_v1  ;;  %9260 = vst [vmem:[#allocation2 + $0x60] sm:$0xff] %v9244_v34 }
 0xb5e   :  { %9261 = vst [vmem:[#allocation2 + $0x68] sm:$0xff] %v9245_v32  ;;  %9262 = vst [vmem:[#allocation2 + $0x70] sm:$0xff] %v9246_v18 }
 0xb5f   :  { %9263 = vst [vmem:[#allocation2 + $0x78] sm:$0xff] %v9247_v53 }
 0xb60   :  { %10535 = shalt.err (!%p10532_p4)
}
 0xb61   :  { %s10536_s20 = scalar_lea.hbm %s19327_s11, 2048 }
 0xb62   :  { %p10537_p5 = scmp.ne.s32.totalorder %s19327_s11, %s10536_s20  ;;  %p10540_p6 = scmp.lt.u32.totalorder %s10536_s20, %s19327_s11 }
 0xb64   :  { %p10542_p7 = pnand %p10540_p6, %p10537_p5 }
 0xb66   :  { %10545 = shalt.err (!%p10542_p7)
}
 0xb67   :  { %s10556_s23 = smov 128   ;;  %s10557_s4 = smov 8  }
 0xb68   :  { %9275 = dma.vmem_to_hbm [thread:$0]  %s19297_s10, 2048, %s19327_s11, [#allocation3], %s10556_s23, %s10556_s23, %s10557_s4  }
 0xb69   :  { %10546 = dma.done.wait [#allocation3], 2048  }
 0xb6a   :  { %10547 = vsyncadd [#allocation3], 4294965248 }
 0xb6b   :  { %9279 = vsyncpa [#allocation3], 1 }

</bundles_post_ra>
